<compile_context>
chip_gen: v7x
topology: tpu7x:2x2x1
jax: 0.10.0
libtpu: 0.0.40
codegen_flags: <defaults>
</compile_context>

<pallas_src>
import jax
import jax.numpy as jnp
import numpy as np
from jax.experimental import pallas as pl
from jax.experimental.pallas import tpu as pltpu

POOL_K = 5
POOL_S = 3


def _aux_fused_kernel(x_ref, cw_ref, cb_ref, w1_ref, b1_ref, w2_ref, b2_ref, o_ref):
    """Fused AvgPool(5,3) + 1x1 Conv + ReLU + flatten + Linear+ReLU + Linear.

    x_ref : (TB, 14, 14, C)  bf16, NHWC batch tile
    cw_ref: (C, 128)         bf16 1x1 conv weight, 1/25 pool scale folded in
    cb_ref: (1, 128)         f32 conv bias
    w1_ref: (16, 128, 1024)  bf16 linear1 weight, laid out [p, o, n] (p = h*4 + w)
    b1_ref: (1, 1024)        f32
    w2_ref: (1024, NCP)      bf16 linear2 weight, classes zero-padded to NCP
    b2_ref: (1, NCP)         f32
    o_ref : (TB, NCP)        f32 logits (padded classes are sliced off outside)
    """
    # TODO(synk): training-mode stochastic dropout not implemented (inference only).
    TB = x_ref.shape[0]

    # --- AvgPool2d(5, 3): shared h-window partial sums reused across the 4 w-windows.
    # (1/25 normalization is folded into cw_ref.)
    pieces = []
    for i in range(4):                               # pooled output rows (h)
        win = x_ref[:, POOL_S * i:POOL_S * i + POOL_K, :, :].astype(jnp.float32)
        hs = jnp.sum(win, axis=1)                    # (TB, 14, C)
        for j in range(4):                           # pooled output cols (w)
            pieces.append(jnp.sum(hs[:, POOL_S * j:POOL_S * j + POOL_K, :], axis=1))
    # Row order p*TB + b with p = i*4 + j (matches torch h*4 + w).
    pooled = jnp.stack(pieces, axis=0).reshape(16 * TB, x_ref.shape[3])   # (16*TB, C)

    # --- 1x1 conv == single channel matmul over all 16 positions, + bias + ReLU.
    conv = jnp.dot(pooled.astype(jnp.bfloat16), cw_ref[...],
                   preferred_element_type=jnp.float32)
    conv = jnp.maximum(conv + cb_ref[...], 0.0)      # (16*TB, 128), f32
    conv_bf = conv.astype(jnp.bfloat16)

    # --- Linear(2048 -> 1024) + ReLU, with the flatten permutation folded into w1:
    #     h1[b, n] = sum_p sum_o conv[p*TB + b, o] * w1[p, o, n].
    # 16 accumulated (TB,128)@(128,1024) partials — no lane-direction concat.
    h1 = jnp.broadcast_to(b1_ref[...], (TB, 1024)).astype(jnp.float32)
    for p in range(16):
        h1 = h1 + jnp.dot(conv_bf[p * TB:(p + 1) * TB, :], w1_ref[p],
                          preferred_element_type=jnp.float32)
    h1 = jnp.maximum(h1, 0.0)                        # (TB, 1024), f32

    # --- Linear(1024 -> padded num_classes).  (dropout == identity in eval mode)
    out = jnp.dot(h1.astype(jnp.bfloat16), w2_ref[...],
                  preferred_element_type=jnp.float32) + b2_ref[...]
    o_ref[...] = out


def _vmem_budget_bytes():
    """Per-generation VMEM budget: ~3/4 of capacity, capped at 96 MiB."""
    cap = None
    try:
        cap = int(pltpu.get_tpu_info().vmem_capacity_bytes)
    except Exception:
        cap = None
    if cap is None or cap <= 0:
        try:
            kind = jax.devices()[0].device_kind.lower()
        except Exception:
            kind = ""
        cap = 64 * 1024 * 1024 if "v7" in kind else 128 * 1024 * 1024
    return min((cap * 3) // 4, 96 * 1024 * 1024)


def _choose_tb(B, C, ncp, budget_bytes):
    """Largest batch tile that fits the VMEM budget, preferring >=2 grid steps."""
    weight_bytes = (C * 128 * 2 + 128 * 4            # conv w (bf16) + bias (f32)
                    + 16 * 128 * 1024 * 2 + 1024 * 4  # w1 (bf16) + b1 (f32)
                    + 1024 * ncp * 2 + ncp * 4)       # w2 (bf16) + b2 (f32)
    per_sample = (2 * 14 * 14 * C * 2                # double-buffered bf16 x tile
                  + 2 * ncp * 4                      # double-buffered f32 out tile
                  + 16 * C * 6                       # pooled f32 + bf16
                  + 16 * 128 * 6                     # conv f32 + bf16
                  + 1024 * 6                         # h1 f32 + bf16
                  + 4096)                            # slack
    tb = 8
    for cand in (16, 32, 64, 128, 256):
        if weight_bytes + cand * per_sample <= budget_bytes:
            tb = cand
    # Don't tile far beyond the real batch; once the batch is large enough, prefer
    # >=2 grid steps so x DMA pipelines and megacore ("parallel") can split the grid.
    while tb > 8 and (tb >= 2 * B or (B >= 32 and 2 * tb > B)):
        tb //= 2
    return max(tb, 8)


def _resident(shape):
    """Constant-index BlockSpec for weights, single-buffered when supported."""
    idx = lambda b, _n=len(shape): (0,) * _n
    try:
        return pl.BlockSpec(shape, idx, pipeline_mode=pl.Buffered(1))
    except Exception:
        return pl.BlockSpec(shape, idx)


def inception_aux_forward(x_nchw, kparams):
    """Run the fused InceptionAux forward. x_nchw: (B, C, 14, 14)."""
    B, C, H, W = x_nchw.shape
    assert (H, W) == (14, 14), "InceptionAux requires 14x14 spatial (linear1 expects 2048 features)"
    nc = kparams["num_classes"]
    ncp = kparams["w2"].shape[1]

    # NCHW -> NHWC, streamed in bf16 (halves x HBM traffic / VMEM footprint).
    x_nhwc = jnp.transpose(x_nchw, (0, 2, 3, 1)).astype(jnp.bfloat16)

    budget = _vmem_budget_bytes()
    TB = _choose_tb(B, C, ncp, budget)
    Bp = ((B + TB - 1) // TB) * TB
    if Bp != B:
        x_nhwc = jnp.pad(x_nhwc, ((0, Bp - B), (0, 0), (0, 0), (0, 0)))
    grid = (Bp // TB,)

    flops = int(Bp * (2 * 16 * C * 128 + 2 * 2048 * 1024 + 2 * 1024 * ncp + 16 * 25 * C))
    bytes_accessed = int(
        Bp * 14 * 14 * C * 2                                   # x (bf16)
        + (C * 128 + 16 * 128 * 1024 + 1024 * ncp) * 2         # bf16 weights
        + (128 + 1024 + ncp) * 4                               # f32 biases
        + Bp * ncp * 4)                                        # output
    cost = pl.CostEstimate(flops=flops, transcendentals=0, bytes_accessed=bytes_accessed)

    out = pl.pallas_call(
        _aux_fused_kernel,
        out_shape=jax.ShapeDtypeStruct((Bp, ncp), jnp.float32),
        grid=grid,
        in_specs=[
            pl.BlockSpec((TB, 14, 14, C), lambda b: (b, 0, 0, 0)),   # x: streamed per batch tile
            _resident((C, 128)),                                     # weights: resident, single-buffered
            _resident((1, 128)),
            _resident((16, 128, 1024)),
            _resident((1, 1024)),
            _resident((1024, ncp)),
            _resident((1, ncp)),
        ],
        out_specs=pl.BlockSpec((TB, ncp), lambda b: (b, 0)),
        compiler_params=pltpu.CompilerParams(
            dimension_semantics=("parallel",),
            vmem_limit_bytes=int(budget)),
        cost_estimate=cost,
    )(x_nhwc, kparams["conv_w"], kparams["conv_b"], kparams["w1"],
      kparams["b1"], kparams["w2"], kparams["b2"])

    return out[:B, :nc]


def init_params(key, in_chnls, num_classes):
    """Deterministic synthetic parameters in the PyTorch module's native layout."""
    ks = jax.random.split(key, 6)
    s = 0.02
    return {
        "conv_w": jax.random.normal(ks[0], (128, in_chnls, 1, 1), jnp.float32) * s,
        "conv_b": jax.random.normal(ks[1], (128,), jnp.float32) * s,
        "w1": jax.random.normal(ks[2], (1024, 2048), jnp.float32) * s,   # nn.Linear(2048, 1024).weight
        "b1": jax.random.normal(ks[3], (1024,), jnp.float32) * s,
        "w2": jax.random.normal(ks[4], (num_classes, 1024), jnp.float32) * s,
        "b2": jax.random.normal(ks[5], (num_classes,), jnp.float32) * s,
    }


def prepare_kernel_params(pt, num_classes):
    """Convert PyTorch-layout params into the fused-kernel layout:
    bf16 weights, 1/25 pool scale folded into conv_w, flatten permutation folded
    into w1 as (16, 128, 1024) = [p, o, n], classes padded to a multiple of 128."""
    nc = num_classes
    ncp = ((nc + 127) // 128) * 128

    conv_w = jnp.transpose(pt["conv_w"][:, :, 0, 0], (1, 0))             # (C, 128)
    conv_w = (conv_w * (1.0 / (POOL_K * POOL_K))).astype(jnp.bfloat16)   # fold avg-pool scale
    conv_b = pt["conv_b"][None, :].astype(jnp.float32)                   # (1, 128)

    # PyTorch flatten index f = o*16 + p (p = h*4 + w). Kernel wants [p, o, n].
    w1p = pt["w1"].reshape(1024, 128, 16)            # [n, o, p]
    w1p = jnp.transpose(w1p, (2, 1, 0))              # [p, o, n]
    w1p = w1p.astype(jnp.bfloat16)                                       # (16, 128, 1024)
    b1 = pt["b1"][None, :].astype(jnp.float32)                           # (1, 1024)

    w2 = jnp.zeros((1024, ncp), jnp.float32).at[:, :nc].set(jnp.transpose(pt["w2"], (1, 0)))
    b2 = jnp.zeros((1, ncp), jnp.float32).at[0, :nc].set(pt["b2"])
    return {
        "conv_w": conv_w, "conv_b": conv_b,
        "w1": w1p, "b1": b1,
        "w2": w2.astype(jnp.bfloat16), "b2": b2,
        "num_classes": nc,
    }


def reference_forward(x_nchw, pt):
    """Pure-JAX reference mirroring the PyTorch forward (eval mode), f32 weights."""
    B = x_nchw.shape[0]
    x = x_nchw.astype(jnp.float32)
    pooled = jax.lax.reduce_window(
        x, 0.0, jax.lax.add,
        window_dimensions=(1, 1, POOL_K, POOL_K),
        window_strides=(1, 1, POOL_S, POOL_S),
        padding="VALID") / float(POOL_K * POOL_K)                    # (B, C, 4, 4)
    w = pt["conv_w"][:, :, 0, 0]                                     # (128, C)
    y = jnp.einsum("bchw,oc->bohw", pooled, w) + pt["conv_b"][None, :, None, None]
    y = jnp.maximum(y, 0.0)                                          # (B, 128, 4, 4)
    flat = y.reshape(B, -1)                                          # (B, 2048)
    h1 = jnp.maximum(flat @ pt["w1"].T + pt["b1"], 0.0)
    return h1 @ pt["w2"].T + pt["b2"]


if __name__ == "__main__":
    key = jax.random.PRNGKey(0)
    kx, kp = jax.random.split(key)
    B, C = 2, 4
    num_classes = 10
    # 14x14 spatial -> avgpool(5,3) -> 4x4 -> 128*4*4 = 2048 features for linear1
    x = jax.random.normal(kx, (B, C, 14, 14), jnp.float32)

    pt_params = init_params(kp, C, num_classes)
    kparams = prepare_kernel_params(pt_params, num_classes)

    out = inception_aux_forward(x, kparams)
    out = jax.block_until_ready(out)

    ref = reference_forward(x, pt_params)
    np.testing.assert_allclose(np.asarray(out), np.asarray(ref), rtol=2e-2, atol=2e-2)
    print("KERNEL_OK")
</pallas_src>

<mosaic_0001>
module attributes {stable_mosaic.version = 11 : i64} {
  func.func @_aux_fused_kernel(%arg0: i32, %arg1: memref<8x14x14x4xbf16, #tpu.memory_space<vmem>>, %arg2: memref<4x128xbf16, #tpu.memory_space<vmem>>, %arg3: memref<1x128xf32, #tpu.memory_space<vmem>>, %arg4: memref<16x128x1024xbf16, #tpu.memory_space<vmem>>, %arg5: memref<1x1024xf32, #tpu.memory_space<vmem>>, %arg6: memref<1024x128xbf16, #tpu.memory_space<vmem>>, %arg7: memref<1x128xf32, #tpu.memory_space<vmem>>, %arg8: memref<8x128xf32, #tpu.memory_space<vmem>>) attributes {dimension_semantics = [#tpu.dimension_semantics<parallel>], iteration_bounds = array<i64: 1>, scalar_prefetch = 0 : i64, scratch_operands = 0 : i64, tpu.core_type = #tpu.core_type<tc>, window_params = [{transform_indices = @transform_0, window_bounds = array<i64: 8, 14, 14, 4>}, {pipeline_mode = #tpu.pipeline_mode<synchronous>, transform_indices = @transform_1, window_bounds = array<i64: 4, 128>}, {pipeline_mode = #tpu.pipeline_mode<synchronous>, transform_indices = @transform_2, window_bounds = array<i64: 1, 128>}, {pipeline_mode = #tpu.pipeline_mode<synchronous>, transform_indices = @transform_3, window_bounds = array<i64: 16, 128, 1024>}, {pipeline_mode = #tpu.pipeline_mode<synchronous>, transform_indices = @transform_4, window_bounds = array<i64: 1, 1024>}, {pipeline_mode = #tpu.pipeline_mode<synchronous>, transform_indices = @transform_5, window_bounds = array<i64: 1024, 128>}, {pipeline_mode = #tpu.pipeline_mode<synchronous>, transform_indices = @transform_6, window_bounds = array<i64: 1, 128>}, {transform_indices = @transform_7, window_bounds = array<i64: 8, 128>}]} {
    %c0 = arith.constant 0 : index
    %c0_0 = arith.constant 0 : index
    %c0_1 = arith.constant 0 : index
    %c0_2 = arith.constant 0 : index
    %0 = vector.load %arg1[%c0, %c0_0, %c0_1, %c0_2] : memref<8x14x14x4xbf16, #tpu.memory_space<vmem>>, vector<8x5x14x4xbf16>
    %1 = arith.extf %0 : vector<8x5x14x4xbf16> to vector<8x5x14x4xf32>
    %cst = arith.constant dense<0.000000e+00> : vector<8x14x4xf32>
    %2 = vector.multi_reduction <add>, %1, %cst [1] : vector<8x5x14x4xf32> to vector<8x14x4xf32>
    %3 = vector.extract_strided_slice %2 {offsets = [0, 0, 0], sizes = [8, 5, 4], strides = [1, 1, 1]} : vector<8x14x4xf32> to vector<8x5x4xf32>
    %cst_3 = arith.constant dense<0.000000e+00> : vector<8x4xf32>
    %4 = vector.multi_reduction <add>, %3, %cst_3 [1] : vector<8x5x4xf32> to vector<8x4xf32>
    %5 = vector.extract_strided_slice %2 {offsets = [0, 3, 0], sizes = [8, 5, 4], strides = [1, 1, 1]} : vector<8x14x4xf32> to vector<8x5x4xf32>
    %cst_4 = arith.constant dense<0.000000e+00> : vector<8x4xf32>
    %6 = vector.multi_reduction <add>, %5, %cst_4 [1] : vector<8x5x4xf32> to vector<8x4xf32>
    %7 = vector.extract_strided_slice %2 {offsets = [0, 6, 0], sizes = [8, 5, 4], strides = [1, 1, 1]} : vector<8x14x4xf32> to vector<8x5x4xf32>
    %cst_5 = arith.constant dense<0.000000e+00> : vector<8x4xf32>
    %8 = vector.multi_reduction <add>, %7, %cst_5 [1] : vector<8x5x4xf32> to vector<8x4xf32>
    %9 = vector.extract_strided_slice %2 {offsets = [0, 9, 0], sizes = [8, 5, 4], strides = [1, 1, 1]} : vector<8x14x4xf32> to vector<8x5x4xf32>
    %cst_6 = arith.constant dense<0.000000e+00> : vector<8x4xf32>
    %10 = vector.multi_reduction <add>, %9, %cst_6 [1] : vector<8x5x4xf32> to vector<8x4xf32>
    %c0_7 = arith.constant 0 : index
    %c3 = arith.constant 3 : index
    %c0_8 = arith.constant 0 : index
    %c0_9 = arith.constant 0 : index
    %11 = vector.load %arg1[%c0_7, %c3, %c0_8, %c0_9] : memref<8x14x14x4xbf16, #tpu.memory_space<vmem>>, vector<8x5x14x4xbf16>
    %12 = arith.extf %11 : vector<8x5x14x4xbf16> to vector<8x5x14x4xf32>
    %cst_10 = arith.constant dense<0.000000e+00> : vector<8x14x4xf32>
    %13 = vector.multi_reduction <add>, %12, %cst_10 [1] : vector<8x5x14x4xf32> to vector<8x14x4xf32>
    %14 = vector.extract_strided_slice %13 {offsets = [0, 0, 0], sizes = [8, 5, 4], strides = [1, 1, 1]} : vector<8x14x4xf32> to vector<8x5x4xf32>
    %cst_11 = arith.constant dense<0.000000e+00> : vector<8x4xf32>
    %15 = vector.multi_reduction <add>, %14, %cst_11 [1] : vector<8x5x4xf32> to vector<8x4xf32>
    %16 = vector.extract_strided_slice %13 {offsets = [0, 3, 0], sizes = [8, 5, 4], strides = [1, 1, 1]} : vector<8x14x4xf32> to vector<8x5x4xf32>
    %cst_12 = arith.constant dense<0.000000e+00> : vector<8x4xf32>
    %17 = vector.multi_reduction <add>, %16, %cst_12 [1] : vector<8x5x4xf32> to vector<8x4xf32>
    %18 = vector.extract_strided_slice %13 {offsets = [0, 6, 0], sizes = [8, 5, 4], strides = [1, 1, 1]} : vector<8x14x4xf32> to vector<8x5x4xf32>
    %cst_13 = arith.constant dense<0.000000e+00> : vector<8x4xf32>
    %19 = vector.multi_reduction <add>, %18, %cst_13 [1] : vector<8x5x4xf32> to vector<8x4xf32>
    %20 = vector.extract_strided_slice %13 {offsets = [0, 9, 0], sizes = [8, 5, 4], strides = [1, 1, 1]} : vector<8x14x4xf32> to vector<8x5x4xf32>
    %cst_14 = arith.constant dense<0.000000e+00> : vector<8x4xf32>
    %21 = vector.multi_reduction <add>, %20, %cst_14 [1] : vector<8x5x4xf32> to vector<8x4xf32>
    %c0_15 = arith.constant 0 : index
    %c6 = arith.constant 6 : index
    %c0_16 = arith.constant 0 : index
    %c0_17 = arith.constant 0 : index
    %22 = vector.load %arg1[%c0_15, %c6, %c0_16, %c0_17] : memref<8x14x14x4xbf16, #tpu.memory_space<vmem>>, vector<8x5x14x4xbf16>
    %23 = arith.extf %22 : vector<8x5x14x4xbf16> to vector<8x5x14x4xf32>
    %cst_18 = arith.constant dense<0.000000e+00> : vector<8x14x4xf32>
    %24 = vector.multi_reduction <add>, %23, %cst_18 [1] : vector<8x5x14x4xf32> to vector<8x14x4xf32>
    %25 = vector.extract_strided_slice %24 {offsets = [0, 0, 0], sizes = [8, 5, 4], strides = [1, 1, 1]} : vector<8x14x4xf32> to vector<8x5x4xf32>
    %cst_19 = arith.constant dense<0.000000e+00> : vector<8x4xf32>
    %26 = vector.multi_reduction <add>, %25, %cst_19 [1] : vector<8x5x4xf32> to vector<8x4xf32>
    %27 = vector.extract_strided_slice %24 {offsets = [0, 3, 0], sizes = [8, 5, 4], strides = [1, 1, 1]} : vector<8x14x4xf32> to vector<8x5x4xf32>
    %cst_20 = arith.constant dense<0.000000e+00> : vector<8x4xf32>
    %28 = vector.multi_reduction <add>, %27, %cst_20 [1] : vector<8x5x4xf32> to vector<8x4xf32>
    %29 = vector.extract_strided_slice %24 {offsets = [0, 6, 0], sizes = [8, 5, 4], strides = [1, 1, 1]} : vector<8x14x4xf32> to vector<8x5x4xf32>
    %cst_21 = arith.constant dense<0.000000e+00> : vector<8x4xf32>
    %30 = vector.multi_reduction <add>, %29, %cst_21 [1] : vector<8x5x4xf32> to vector<8x4xf32>
    %31 = vector.extract_strided_slice %24 {offsets = [0, 9, 0], sizes = [8, 5, 4], strides = [1, 1, 1]} : vector<8x14x4xf32> to vector<8x5x4xf32>
    %cst_22 = arith.constant dense<0.000000e+00> : vector<8x4xf32>
    %32 = vector.multi_reduction <add>, %31, %cst_22 [1] : vector<8x5x4xf32> to vector<8x4xf32>
    %c0_23 = arith.constant 0 : index
    %c9 = arith.constant 9 : index
    %c0_24 = arith.constant 0 : index
    %c0_25 = arith.constant 0 : index
    %33 = vector.load %arg1[%c0_23, %c9, %c0_24, %c0_25] : memref<8x14x14x4xbf16, #tpu.memory_space<vmem>>, vector<8x5x14x4xbf16>
    %34 = arith.extf %33 : vector<8x5x14x4xbf16> to vector<8x5x14x4xf32>
    %cst_26 = arith.constant dense<0.000000e+00> : vector<8x14x4xf32>
    %35 = vector.multi_reduction <add>, %34, %cst_26 [1] : vector<8x5x14x4xf32> to vector<8x14x4xf32>
    %36 = vector.extract_strided_slice %35 {offsets = [0, 0, 0], sizes = [8, 5, 4], strides = [1, 1, 1]} : vector<8x14x4xf32> to vector<8x5x4xf32>
    %cst_27 = arith.constant dense<0.000000e+00> : vector<8x4xf32>
    %37 = vector.multi_reduction <add>, %36, %cst_27 [1] : vector<8x5x4xf32> to vector<8x4xf32>
    %38 = vector.extract_strided_slice %35 {offsets = [0, 3, 0], sizes = [8, 5, 4], strides = [1, 1, 1]} : vector<8x14x4xf32> to vector<8x5x4xf32>
    %cst_28 = arith.constant dense<0.000000e+00> : vector<8x4xf32>
    %39 = vector.multi_reduction <add>, %38, %cst_28 [1] : vector<8x5x4xf32> to vector<8x4xf32>
    %40 = vector.extract_strided_slice %35 {offsets = [0, 6, 0], sizes = [8, 5, 4], strides = [1, 1, 1]} : vector<8x14x4xf32> to vector<8x5x4xf32>
    %cst_29 = arith.constant dense<0.000000e+00> : vector<8x4xf32>
    %41 = vector.multi_reduction <add>, %40, %cst_29 [1] : vector<8x5x4xf32> to vector<8x4xf32>
    %42 = vector.extract_strided_slice %35 {offsets = [0, 9, 0], sizes = [8, 5, 4], strides = [1, 1, 1]} : vector<8x14x4xf32> to vector<8x5x4xf32>
    %cst_30 = arith.constant dense<0.000000e+00> : vector<8x4xf32>
    %43 = vector.multi_reduction <add>, %42, %cst_30 [1] : vector<8x5x4xf32> to vector<8x4xf32>
    %44 = vector.shape_cast %4 : vector<8x4xf32> to vector<1x8x4xf32>
    %45 = vector.shape_cast %6 : vector<8x4xf32> to vector<1x8x4xf32>
    %46 = vector.shape_cast %8 : vector<8x4xf32> to vector<1x8x4xf32>
    %47 = vector.shape_cast %10 : vector<8x4xf32> to vector<1x8x4xf32>
    %48 = vector.shape_cast %15 : vector<8x4xf32> to vector<1x8x4xf32>
    %49 = vector.shape_cast %17 : vector<8x4xf32> to vector<1x8x4xf32>
    %50 = vector.shape_cast %19 : vector<8x4xf32> to vector<1x8x4xf32>
    %51 = vector.shape_cast %21 : vector<8x4xf32> to vector<1x8x4xf32>
    %52 = vector.shape_cast %26 : vector<8x4xf32> to vector<1x8x4xf32>
    %53 = vector.shape_cast %28 : vector<8x4xf32> to vector<1x8x4xf32>
    %54 = vector.shape_cast %30 : vector<8x4xf32> to vector<1x8x4xf32>
    %55 = vector.shape_cast %32 : vector<8x4xf32> to vector<1x8x4xf32>
    %56 = vector.shape_cast %37 : vector<8x4xf32> to vector<1x8x4xf32>
    %57 = vector.shape_cast %39 : vector<8x4xf32> to vector<1x8x4xf32>
    %58 = vector.shape_cast %41 : vector<8x4xf32> to vector<1x8x4xf32>
    %59 = vector.shape_cast %43 : vector<8x4xf32> to vector<1x8x4xf32>
    %60 = tpu.concatenate %44, %45, %46, %47, %48, %49, %50, %51, %52, %53, %54, %55, %56, %57, %58, %59 in 0 : vector<1x8x4xf32>, vector<1x8x4xf32>, vector<1x8x4xf32>, vector<1x8x4xf32>, vector<1x8x4xf32>, vector<1x8x4xf32>, vector<1x8x4xf32>, vector<1x8x4xf32>, vector<1x8x4xf32>, vector<1x8x4xf32>, vector<1x8x4xf32>, vector<1x8x4xf32>, vector<1x8x4xf32>, vector<1x8x4xf32>, vector<1x8x4xf32>, vector<1x8x4xf32> -> vector<16x8x4xf32>
    %61 = vector.shape_cast %60 : vector<16x8x4xf32> to vector<128x4xf32>
    %62 = arith.truncf %61 : vector<128x4xf32> to vector<128x4xbf16>
    %c0_31 = arith.constant 0 : index
    %c0_32 = arith.constant 0 : index
    %63 = vector.load %arg2[%c0_31, %c0_32] : memref<4x128xbf16, #tpu.memory_space<vmem>>, vector<4x128xbf16>
    %cst_33 = arith.constant dense<0.000000e+00> : vector<128x128xf32>
    %64 = tpu.matmul %62, %63, %cst_33 {dimension_numbers = #tpu.dot_dimension_numbers<[1], [0], [0], [1], [0, 0, 1, 1], [], []>} : vector<128x4xbf16>, vector<4x128xbf16>, vector<128x128xf32> -> vector<128x128xf32>
    %c0_34 = arith.constant 0 : index
    %c0_35 = arith.constant 0 : index
    %65 = vector.load %arg3[%c0_34, %c0_35] : memref<1x128xf32, #tpu.memory_space<vmem>>, vector<1x128xf32>
    %66 = vector.broadcast %65 : vector<1x128xf32> to vector<128x128xf32>
    %67 = arith.addf %64, %66 : vector<128x128xf32>
    %cst_36 = arith.constant 0.000000e+00 : f32
    %68 = vector.broadcast %cst_36 : f32 to vector<128x128xf32>
    %69 = arith.maximumf %67, %68 : vector<128x128xf32>
    %70 = arith.truncf %69 : vector<128x128xf32> to vector<128x128xbf16>
    %c0_37 = arith.constant 0 : index
    %c0_38 = arith.constant 0 : index
    %71 = vector.load %arg5[%c0_37, %c0_38] : memref<1x1024xf32, #tpu.memory_space<vmem>>, vector<1x1024xf32>
    %72 = vector.shape_cast %71 : vector<1x1024xf32> to vector<1x1024xf32>
    %73 = vector.broadcast %72 : vector<1x1024xf32> to vector<8x1024xf32>
    %74 = vector.extract_strided_slice %70 {offsets = [0, 0], sizes = [8, 128], strides = [1, 1]} : vector<128x128xbf16> to vector<8x128xbf16>
    %c0_39 = arith.constant 0 : index
    %c0_40 = arith.constant 0 : index
    %c0_41 = arith.constant 0 : index
    %75 = vector.load %arg4[%c0_39, %c0_40, %c0_41] : memref<16x128x1024xbf16, #tpu.memory_space<vmem>>, vector<1x128x1024xbf16>
    %76 = vector.shape_cast %75 : vector<1x128x1024xbf16> to vector<128x1024xbf16>
    %cst_42 = arith.constant dense<0.000000e+00> : vector<8x1024xf32>
    %77 = tpu.matmul %74, %76, %cst_42 {dimension_numbers = #tpu.dot_dimension_numbers<[1], [0], [0], [1], [0, 0, 1, 1], [], []>} : vector<8x128xbf16>, vector<128x1024xbf16>, vector<8x1024xf32> -> vector<8x1024xf32>
    %78 = arith.addf %73, %77 : vector<8x1024xf32>
    %79 = vector.extract_strided_slice %70 {offsets = [8, 0], sizes = [8, 128], strides = [1, 1]} : vector<128x128xbf16> to vector<8x128xbf16>
    %c1 = arith.constant 1 : index
    %c0_43 = arith.constant 0 : index
    %c0_44 = arith.constant 0 : index
    %80 = vector.load %arg4[%c1, %c0_43, %c0_44] : memref<16x128x1024xbf16, #tpu.memory_space<vmem>>, vector<1x128x1024xbf16>
    %81 = vector.shape_cast %80 : vector<1x128x1024xbf16> to vector<128x1024xbf16>
    %cst_45 = arith.constant dense<0.000000e+00> : vector<8x1024xf32>
    %82 = tpu.matmul %79, %81, %cst_45 {dimension_numbers = #tpu.dot_dimension_numbers<[1], [0], [0], [1], [0, 0, 1, 1], [], []>} : vector<8x128xbf16>, vector<128x1024xbf16>, vector<8x1024xf32> -> vector<8x1024xf32>
    %83 = arith.addf %78, %82 : vector<8x1024xf32>
    %84 = vector.extract_strided_slice %70 {offsets = [16, 0], sizes = [8, 128], strides = [1, 1]} : vector<128x128xbf16> to vector<8x128xbf16>
    %c2 = arith.constant 2 : index
    %c0_46 = arith.constant 0 : index
    %c0_47 = arith.constant 0 : index
    %85 = vector.load %arg4[%c2, %c0_46, %c0_47] : memref<16x128x1024xbf16, #tpu.memory_space<vmem>>, vector<1x128x1024xbf16>
    %86 = vector.shape_cast %85 : vector<1x128x1024xbf16> to vector<128x1024xbf16>
    %cst_48 = arith.constant dense<0.000000e+00> : vector<8x1024xf32>
    %87 = tpu.matmul %84, %86, %cst_48 {dimension_numbers = #tpu.dot_dimension_numbers<[1], [0], [0], [1], [0, 0, 1, 1], [], []>} : vector<8x128xbf16>, vector<128x1024xbf16>, vector<8x1024xf32> -> vector<8x1024xf32>
    %88 = arith.addf %83, %87 : vector<8x1024xf32>
    %89 = vector.extract_strided_slice %70 {offsets = [24, 0], sizes = [8, 128], strides = [1, 1]} : vector<128x128xbf16> to vector<8x128xbf16>
    %c3_49 = arith.constant 3 : index
    %c0_50 = arith.constant 0 : index
    %c0_51 = arith.constant 0 : index
    %90 = vector.load %arg4[%c3_49, %c0_50, %c0_51] : memref<16x128x1024xbf16, #tpu.memory_space<vmem>>, vector<1x128x1024xbf16>
    %91 = vector.shape_cast %90 : vector<1x128x1024xbf16> to vector<128x1024xbf16>
    %cst_52 = arith.constant dense<0.000000e+00> : vector<8x1024xf32>
    %92 = tpu.matmul %89, %91, %cst_52 {dimension_numbers = #tpu.dot_dimension_numbers<[1], [0], [0], [1], [0, 0, 1, 1], [], []>} : vector<8x128xbf16>, vector<128x1024xbf16>, vector<8x1024xf32> -> vector<8x1024xf32>
    %93 = arith.addf %88, %92 : vector<8x1024xf32>
    %94 = vector.extract_strided_slice %70 {offsets = [32, 0], sizes = [8, 128], strides = [1, 1]} : vector<128x128xbf16> to vector<8x128xbf16>
    %c4 = arith.constant 4 : index
    %c0_53 = arith.constant 0 : index
    %c0_54 = arith.constant 0 : index
    %95 = vector.load %arg4[%c4, %c0_53, %c0_54] : memref<16x128x1024xbf16, #tpu.memory_space<vmem>>, vector<1x128x1024xbf16>
    %96 = vector.shape_cast %95 : vector<1x128x1024xbf16> to vector<128x1024xbf16>
    %cst_55 = arith.constant dense<0.000000e+00> : vector<8x1024xf32>
    %97 = tpu.matmul %94, %96, %cst_55 {dimension_numbers = #tpu.dot_dimension_numbers<[1], [0], [0], [1], [0, 0, 1, 1], [], []>} : vector<8x128xbf16>, vector<128x1024xbf16>, vector<8x1024xf32> -> vector<8x1024xf32>
    %98 = arith.addf %93, %97 : vector<8x1024xf32>
    %99 = vector.extract_strided_slice %70 {offsets = [40, 0], sizes = [8, 128], strides = [1, 1]} : vector<128x128xbf16> to vector<8x128xbf16>
    %c5 = arith.constant 5 : index
    %c0_56 = arith.constant 0 : index
    %c0_57 = arith.constant 0 : index
    %100 = vector.load %arg4[%c5, %c0_56, %c0_57] : memref<16x128x1024xbf16, #tpu.memory_space<vmem>>, vector<1x128x1024xbf16>
    %101 = vector.shape_cast %100 : vector<1x128x1024xbf16> to vector<128x1024xbf16>
    %cst_58 = arith.constant dense<0.000000e+00> : vector<8x1024xf32>
    %102 = tpu.matmul %99, %101, %cst_58 {dimension_numbers = #tpu.dot_dimension_numbers<[1], [0], [0], [1], [0, 0, 1, 1], [], []>} : vector<8x128xbf16>, vector<128x1024xbf16>, vector<8x1024xf32> -> vector<8x1024xf32>
    %103 = arith.addf %98, %102 : vector<8x1024xf32>
    %104 = vector.extract_strided_slice %70 {offsets = [48, 0], sizes = [8, 128], strides = [1, 1]} : vector<128x128xbf16> to vector<8x128xbf16>
    %c6_59 = arith.constant 6 : index
    %c0_60 = arith.constant 0 : index
    %c0_61 = arith.constant 0 : index
    %105 = vector.load %arg4[%c6_59, %c0_60, %c0_61] : memref<16x128x1024xbf16, #tpu.memory_space<vmem>>, vector<1x128x1024xbf16>
    %106 = vector.shape_cast %105 : vector<1x128x1024xbf16> to vector<128x1024xbf16>
    %cst_62 = arith.constant dense<0.000000e+00> : vector<8x1024xf32>
    %107 = tpu.matmul %104, %106, %cst_62 {dimension_numbers = #tpu.dot_dimension_numbers<[1], [0], [0], [1], [0, 0, 1, 1], [], []>} : vector<8x128xbf16>, vector<128x1024xbf16>, vector<8x1024xf32> -> vector<8x1024xf32>
    %108 = arith.addf %103, %107 : vector<8x1024xf32>
    %109 = vector.extract_strided_slice %70 {offsets = [56, 0], sizes = [8, 128], strides = [1, 1]} : vector<128x128xbf16> to vector<8x128xbf16>
    %c7 = arith.constant 7 : index
    %c0_63 = arith.constant 0 : index
    %c0_64 = arith.constant 0 : index
    %110 = vector.load %arg4[%c7, %c0_63, %c0_64] : memref<16x128x1024xbf16, #tpu.memory_space<vmem>>, vector<1x128x1024xbf16>
    %111 = vector.shape_cast %110 : vector<1x128x1024xbf16> to vector<128x1024xbf16>
    %cst_65 = arith.constant dense<0.000000e+00> : vector<8x1024xf32>
    %112 = tpu.matmul %109, %111, %cst_65 {dimension_numbers = #tpu.dot_dimension_numbers<[1], [0], [0], [1], [0, 0, 1, 1], [], []>} : vector<8x128xbf16>, vector<128x1024xbf16>, vector<8x1024xf32> -> vector<8x1024xf32>
    %113 = arith.addf %108, %112 : vector<8x1024xf32>
    %114 = vector.extract_strided_slice %70 {offsets = [64, 0], sizes = [8, 128], strides = [1, 1]} : vector<128x128xbf16> to vector<8x128xbf16>
    %c8 = arith.constant 8 : index
    %c0_66 = arith.constant 0 : index
    %c0_67 = arith.constant 0 : index
    %115 = vector.load %arg4[%c8, %c0_66, %c0_67] : memref<16x128x1024xbf16, #tpu.memory_space<vmem>>, vector<1x128x1024xbf16>
    %116 = vector.shape_cast %115 : vector<1x128x1024xbf16> to vector<128x1024xbf16>
    %cst_68 = arith.constant dense<0.000000e+00> : vector<8x1024xf32>
    %117 = tpu.matmul %114, %116, %cst_68 {dimension_numbers = #tpu.dot_dimension_numbers<[1], [0], [0], [1], [0, 0, 1, 1], [], []>} : vector<8x128xbf16>, vector<128x1024xbf16>, vector<8x1024xf32> -> vector<8x1024xf32>
    %118 = arith.addf %113, %117 : vector<8x1024xf32>
    %119 = vector.extract_strided_slice %70 {offsets = [72, 0], sizes = [8, 128], strides = [1, 1]} : vector<128x128xbf16> to vector<8x128xbf16>
    %c9_69 = arith.constant 9 : index
    %c0_70 = arith.constant 0 : index
    %c0_71 = arith.constant 0 : index
    %120 = vector.load %arg4[%c9_69, %c0_70, %c0_71] : memref<16x128x1024xbf16, #tpu.memory_space<vmem>>, vector<1x128x1024xbf16>
    %121 = vector.shape_cast %120 : vector<1x128x1024xbf16> to vector<128x1024xbf16>
    %cst_72 = arith.constant dense<0.000000e+00> : vector<8x1024xf32>
    %122 = tpu.matmul %119, %121, %cst_72 {dimension_numbers = #tpu.dot_dimension_numbers<[1], [0], [0], [1], [0, 0, 1, 1], [], []>} : vector<8x128xbf16>, vector<128x1024xbf16>, vector<8x1024xf32> -> vector<8x1024xf32>
    %123 = arith.addf %118, %122 : vector<8x1024xf32>
    %124 = vector.extract_strided_slice %70 {offsets = [80, 0], sizes = [8, 128], strides = [1, 1]} : vector<128x128xbf16> to vector<8x128xbf16>
    %c10 = arith.constant 10 : index
    %c0_73 = arith.constant 0 : index
    %c0_74 = arith.constant 0 : index
    %125 = vector.load %arg4[%c10, %c0_73, %c0_74] : memref<16x128x1024xbf16, #tpu.memory_space<vmem>>, vector<1x128x1024xbf16>
    %126 = vector.shape_cast %125 : vector<1x128x1024xbf16> to vector<128x1024xbf16>
    %cst_75 = arith.constant dense<0.000000e+00> : vector<8x1024xf32>
    %127 = tpu.matmul %124, %126, %cst_75 {dimension_numbers = #tpu.dot_dimension_numbers<[1], [0], [0], [1], [0, 0, 1, 1], [], []>} : vector<8x128xbf16>, vector<128x1024xbf16>, vector<8x1024xf32> -> vector<8x1024xf32>
    %128 = arith.addf %123, %127 : vector<8x1024xf32>
    %129 = vector.extract_strided_slice %70 {offsets = [88, 0], sizes = [8, 128], strides = [1, 1]} : vector<128x128xbf16> to vector<8x128xbf16>
    %c11 = arith.constant 11 : index
    %c0_76 = arith.constant 0 : index
    %c0_77 = arith.constant 0 : index
    %130 = vector.load %arg4[%c11, %c0_76, %c0_77] : memref<16x128x1024xbf16, #tpu.memory_space<vmem>>, vector<1x128x1024xbf16>
    %131 = vector.shape_cast %130 : vector<1x128x1024xbf16> to vector<128x1024xbf16>
    %cst_78 = arith.constant dense<0.000000e+00> : vector<8x1024xf32>
    %132 = tpu.matmul %129, %131, %cst_78 {dimension_numbers = #tpu.dot_dimension_numbers<[1], [0], [0], [1], [0, 0, 1, 1], [], []>} : vector<8x128xbf16>, vector<128x1024xbf16>, vector<8x1024xf32> -> vector<8x1024xf32>
    %133 = arith.addf %128, %132 : vector<8x1024xf32>
    %134 = vector.extract_strided_slice %70 {offsets = [96, 0], sizes = [8, 128], strides = [1, 1]} : vector<128x128xbf16> to vector<8x128xbf16>
    %c12 = arith.constant 12 : index
    %c0_79 = arith.constant 0 : index
    %c0_80 = arith.constant 0 : index
    %135 = vector.load %arg4[%c12, %c0_79, %c0_80] : memref<16x128x1024xbf16, #tpu.memory_space<vmem>>, vector<1x128x1024xbf16>
    %136 = vector.shape_cast %135 : vector<1x128x1024xbf16> to vector<128x1024xbf16>
    %cst_81 = arith.constant dense<0.000000e+00> : vector<8x1024xf32>
    %137 = tpu.matmul %134, %136, %cst_81 {dimension_numbers = #tpu.dot_dimension_numbers<[1], [0], [0], [1], [0, 0, 1, 1], [], []>} : vector<8x128xbf16>, vector<128x1024xbf16>, vector<8x1024xf32> -> vector<8x1024xf32>
    %138 = arith.addf %133, %137 : vector<8x1024xf32>
    %139 = vector.extract_strided_slice %70 {offsets = [104, 0], sizes = [8, 128], strides = [1, 1]} : vector<128x128xbf16> to vector<8x128xbf16>
    %c13 = arith.constant 13 : index
    %c0_82 = arith.constant 0 : index
    %c0_83 = arith.constant 0 : index
    %140 = vector.load %arg4[%c13, %c0_82, %c0_83] : memref<16x128x1024xbf16, #tpu.memory_space<vmem>>, vector<1x128x1024xbf16>
    %141 = vector.shape_cast %140 : vector<1x128x1024xbf16> to vector<128x1024xbf16>
    %cst_84 = arith.constant dense<0.000000e+00> : vector<8x1024xf32>
    %142 = tpu.matmul %139, %141, %cst_84 {dimension_numbers = #tpu.dot_dimension_numbers<[1], [0], [0], [1], [0, 0, 1, 1], [], []>} : vector<8x128xbf16>, vector<128x1024xbf16>, vector<8x1024xf32> -> vector<8x1024xf32>
    %143 = arith.addf %138, %142 : vector<8x1024xf32>
    %144 = vector.extract_strided_slice %70 {offsets = [112, 0], sizes = [8, 128], strides = [1, 1]} : vector<128x128xbf16> to vector<8x128xbf16>
    %c14 = arith.constant 14 : index
    %c0_85 = arith.constant 0 : index
    %c0_86 = arith.constant 0 : index
    %145 = vector.load %arg4[%c14, %c0_85, %c0_86] : memref<16x128x1024xbf16, #tpu.memory_space<vmem>>, vector<1x128x1024xbf16>
    %146 = vector.shape_cast %145 : vector<1x128x1024xbf16> to vector<128x1024xbf16>
    %cst_87 = arith.constant dense<0.000000e+00> : vector<8x1024xf32>
    %147 = tpu.matmul %144, %146, %cst_87 {dimension_numbers = #tpu.dot_dimension_numbers<[1], [0], [0], [1], [0, 0, 1, 1], [], []>} : vector<8x128xbf16>, vector<128x1024xbf16>, vector<8x1024xf32> -> vector<8x1024xf32>
    %148 = arith.addf %143, %147 : vector<8x1024xf32>
    %149 = vector.extract_strided_slice %70 {offsets = [120, 0], sizes = [8, 128], strides = [1, 1]} : vector<128x128xbf16> to vector<8x128xbf16>
    %c15 = arith.constant 15 : index
    %c0_88 = arith.constant 0 : index
    %c0_89 = arith.constant 0 : index
    %150 = vector.load %arg4[%c15, %c0_88, %c0_89] : memref<16x128x1024xbf16, #tpu.memory_space<vmem>>, vector<1x128x1024xbf16>
    %151 = vector.shape_cast %150 : vector<1x128x1024xbf16> to vector<128x1024xbf16>
    %cst_90 = arith.constant dense<0.000000e+00> : vector<8x1024xf32>
    %152 = tpu.matmul %149, %151, %cst_90 {dimension_numbers = #tpu.dot_dimension_numbers<[1], [0], [0], [1], [0, 0, 1, 1], [], []>} : vector<8x128xbf16>, vector<128x1024xbf16>, vector<8x1024xf32> -> vector<8x1024xf32>
    %153 = arith.addf %148, %152 : vector<8x1024xf32>
    %cst_91 = arith.constant 0.000000e+00 : f32
    %154 = vector.broadcast %cst_91 : f32 to vector<8x1024xf32>
    %155 = arith.maximumf %153, %154 : vector<8x1024xf32>
    %156 = arith.truncf %155 : vector<8x1024xf32> to vector<8x1024xbf16>
    %c0_92 = arith.constant 0 : index
    %c0_93 = arith.constant 0 : index
    %157 = vector.load %arg6[%c0_92, %c0_93] : memref<1024x128xbf16, #tpu.memory_space<vmem>>, vector<1024x128xbf16>
    %cst_94 = arith.constant dense<0.000000e+00> : vector<8x128xf32>
    %158 = tpu.matmul %156, %157, %cst_94 {dimension_numbers = #tpu.dot_dimension_numbers<[1], [0], [0], [1], [0, 0, 1, 1], [], []>} : vector<8x1024xbf16>, vector<1024x128xbf16>, vector<8x128xf32> -> vector<8x128xf32>
    %c0_95 = arith.constant 0 : index
    %c0_96 = arith.constant 0 : index
    %159 = vector.load %arg7[%c0_95, %c0_96] : memref<1x128xf32, #tpu.memory_space<vmem>>, vector<1x128xf32>
    %160 = vector.broadcast %159 : vector<1x128xf32> to vector<8x128xf32>
    %161 = arith.addf %158, %160 : vector<8x128xf32>
    %c0_97 = arith.constant 0 : index
    %c0_98 = arith.constant 0 : index
    %162 = vector.load %arg8[%c0_97, %c0_98] : memref<8x128xf32, #tpu.memory_space<vmem>>, vector<8x128xf32>
    tpu.vector_store %arg8[%c0_97, %c0_98], %161 {strides = array<i32>} : memref<8x128xf32, #tpu.memory_space<vmem>>, vector<8x128xf32>,
    return
  }
  func.func @transform_0(%arg0: i32) -> (i32, i32, i32, i32) {
    %c0_i32 = arith.constant 0 : i32
    %c0_i32_0 = arith.constant 0 : i32
    %c0_i32_1 = arith.constant 0 : i32
    %c0_i32_2 = arith.constant 0 : i32
    return %arg0, %c0_i32, %c0_i32_0, %c0_i32_1 : i32, i32, i32, i32
  }
  func.func @transform_1(%arg0: i32) -> (i32, i32) {
    %c0_i32 = arith.constant 0 : i32
    %c0_i32_0 = arith.constant 0 : i32
    %c0_i32_1 = arith.constant 0 : i32
    return %c0_i32, %c0_i32_0 : i32, i32
  }
  func.func @transform_2(%arg0: i32) -> (i32, i32) {
    %c0_i32 = arith.constant 0 : i32
    %c0_i32_0 = arith.constant 0 : i32
    %c0_i32_1 = arith.constant 0 : i32
    return %c0_i32, %c0_i32_0 : i32, i32
  }
  func.func @transform_3(%arg0: i32) -> (i32, i32, i32) {
    %c0_i32 = arith.constant 0 : i32
    %c0_i32_0 = arith.constant 0 : i32
    %c0_i32_1 = arith.constant 0 : i32
    %c0_i32_2 = arith.constant 0 : i32
    return %c0_i32, %c0_i32_0, %c0_i32_1 : i32, i32, i32
  }
  func.func @transform_4(%arg0: i32) -> (i32, i32) {
    %c0_i32 = arith.constant 0 : i32
    %c0_i32_0 = arith.constant 0 : i32
    %c0_i32_1 = arith.constant 0 : i32
    return %c0_i32, %c0_i32_0 : i32, i32
  }
  func.func @transform_5(%arg0: i32) -> (i32, i32) {
    %c0_i32 = arith.constant 0 : i32
    %c0_i32_0 = arith.constant 0 : i32
    %c0_i32_1 = arith.constant 0 : i32
    return %c0_i32, %c0_i32_0 : i32, i32
  }
  func.func @transform_6(%arg0: i32) -> (i32, i32) {
    %c0_i32 = arith.constant 0 : i32
    %c0_i32_0 = arith.constant 0 : i32
    %c0_i32_1 = arith.constant 0 : i32
    return %c0_i32, %c0_i32_0 : i32, i32
  }
  func.func @transform_7(%arg0: i32) -> (i32, i32) {
    %c0_i32 = arith.constant 0 : i32
    %c0_i32_0 = arith.constant 0 : i32
    return %arg0, %c0_i32 : i32, i32
  }
}

</mosaic_0001>

<bundles_post_ra>
// kernel: tpu_custom_call.1
= control target key start
LH: loop header
LB: loop body
LE: loop exit
PB: predicated region body
PF: predicated region fallthrough
CT: control target
= control target key end

     0   :  { %12 = vsyncpa [#allocation3], 0  ;;  %s17279_s0 = inlined_call_operand.hbm [shape: bf16[8,14,14,4], index: 0, kind: input, shape index: {}]   ;;  %s17280_s1 = inlined_call_operand.hbm [shape: bf16[4,128], index: 1, kind: input, shape index: {}]   ;;  %s17281_s2 = inlined_call_operand.hbm [shape: f32[1,128], index: 2, kind: input, shape index: {}]   ;;  %s17282_s3 = inlined_call_operand.hbm [shape: bf16[16,128,1024], index: 3, kind: input, shape index: {}]   ;;  %s17283_s4 = inlined_call_operand.hbm [shape: f32[1,1024], index: 4, kind: input, shape index: {}]   ;;  %s17284_s5 = inlined_call_operand.hbm [shape: bf16[1024,128], index: 5, kind: input, shape index: {}]   ;;  %s17285_s6 = inlined_call_operand.hbm [shape: f32[1,128], index: 6, kind: input, shape index: {}]   ;;  %s17286_s7 = inlined_call_operand.hbm [shape: f32[8,128], index: 7, kind: output, shape index: {}]  }
   0x1   :  { %13 = vsyncpa [#allocation6], 0 }
   0x2   :  { %14 = vsyncpa [#allocation9], 0 }
   0x3   :  { %15 = vsyncpa [#allocation12], 0 }
   0x4   :  { %16 = vsyncpa [#allocation4], 0  ;;  %s14751_s24 = smov [#allocation5]   ;;  %s14752_s26 = smov [#allocation8]  }
   0x5   :  { %s35_s25 = sshll.u32 %s14751_s24, 4  ;;  %s54_s27 = sshll.u32 %s14752_s26, 4  ;;  %s36_s25 = int_to_ptr.vmem [resolvable:$true] %s35_s25  ;;  %s14804_s27 = int_to_ptr.vmem [resolvable:$true] %s54_s27 }
   0x6   :  { %s14565_s30 = scalar_lea.hbm %s17280_s1, 32 }
   0x7   :  { %p14566_p0 = scmp.ne.s32.totalorder %s17280_s1, %s14565_s30  ;;  %p14569_p1 = scmp.lt.u32.totalorder %s14565_s30, %s17280_s1 }
   0x9   :  { %p14571_p2 = pnand %p14569_p1, %p14566_p0 }
   0xb   :  { %14574 = shalt.err (!%p14571_p2)
}
   0xc   :  { %s14575_s12 = scalar_lea.vmem %s36_s25, 32  ;;  %p14580_p4 = scmp.lt.s32.totalorder %s36_s25, %s36_s25 }
   0xd   :  { %p14576_p3 = scmp.ne.s32.totalorder %s36_s25, %s14575_s12  ;;  %p14581_p5 = scmp.lt.s32.totalorder %s14575_s12, %s14575_s12 }
   0xf   :  { %p14582_p6 = por %p14581_p5, %p14580_p4 }
  0x11   :  { %p14583_p7 = pnand %p14582_p6, %p14576_p3 }
  0x13   :  { %14586 = shalt.err (!%p14583_p7)
}
  0x14   :  { %38 = dma.hbm_to_vmem [thread:$0]  %s17280_s1, 32, %s36_s25, [#allocation6]  }
  0x15   :  { %s14587_s17 = scalar_lea.hbm %s17282_s3, 131072 }
  0x16   :  { %p14588_p8 = scmp.ne.s32.totalorder %s17282_s3, %s14587_s17  ;;  %p14591_p9 = scmp.lt.u32.totalorder %s14587_s17, %s17282_s3 }
  0x18   :  { %p14593_p10 = pnand %p14591_p9, %p14588_p8 }
  0x1a   :  { %14596 = shalt.err (!%p14593_p10)
}
  0x1b   :  { %s14597_s22 = scalar_lea.vmem %s14804_s27, 131072  ;;  %p14602_p12 = scmp.lt.s32.totalorder %s14804_s27, %s14804_s27 }
  0x1c   :  { %p14598_p11 = scmp.ne.s32.totalorder %s14804_s27, %s14597_s22  ;;  %p14603_p13 = scmp.lt.s32.totalorder %s14597_s22, %s14597_s22 }
  0x1e   :  { %p14604_p0 = por %p14603_p13, %p14602_p12 }
  0x20   :  { %p14605_p1 = pnand %p14604_p0, %p14598_p11 }
  0x22   :  { %14608 = shalt.err (!%p14605_p1)
}
  0x23   :  { %s14753_s1 = smov 512   ;;  %s14754_s23 = smov 32  }
  0x24   :  { %60 = dma.hbm_to_vmem [thread:$0]  %s17282_s3, 131072, %s14804_s27, [#allocation9], %s14753_s1, %s14753_s1, %s14754_s23  }
  0x25   :  { %s14755_s26 = smov [#allocation11]   ;;  %s14756_s29 = smov [#allocation2]  }
  0x26   :  { %s76_s28 = sshll.u32 %s14755_s26, 4  ;;  %s22_s30 = sshll.u32 %s14756_s29, 4  ;;  %s77_s28 = int_to_ptr.vmem [resolvable:$true] %s76_s28  ;;  %s14835_s30 = int_to_ptr.vmem [resolvable:$true] %s22_s30 }
  0x27   :  { %s14609_s10 = scalar_lea.hbm %s17284_s5, 8192 }
  0x28   :  { %p14610_p2 = scmp.ne.s32.totalorder %s17284_s5, %s14609_s10  ;;  %p14613_p3 = scmp.lt.u32.totalorder %s14609_s10, %s17284_s5 }
  0x2a   :  { %p14615_p4 = pnand %p14613_p3, %p14610_p2 }
  0x2c   :  { %14618 = shalt.err (!%p14615_p4)
}
  0x2d   :  { %s14619_s3 = scalar_lea.vmem %s77_s28, 8192  ;;  %p14624_p6 = scmp.lt.s32.totalorder %s77_s28, %s77_s28 }
  0x2e   :  { %p14620_p5 = scmp.ne.s32.totalorder %s77_s28, %s14619_s3  ;;  %p14625_p7 = scmp.lt.s32.totalorder %s14619_s3, %s14619_s3 }
  0x30   :  { %p14626_p8 = por %p14625_p7, %p14624_p6 }
  0x32   :  { %p14627_p9 = pnand %p14626_p8, %p14620_p5 }
  0x34   :  { %14630 = shalt.err (!%p14627_p9)
}
  0x35   :  { %s14757_s27 = smov 64   ;;  %s14758_s15 = smov 4  }
  0x36   :  { %82 = dma.hbm_to_vmem [thread:$0]  %s17284_s5, 8192, %s77_s28, [#allocation12], %s14757_s27, %s14757_s27, %s14758_s15  }
  0x37   :  { %s14631_s20 = scalar_lea.hbm %s17279_s0, 14336 }
  0x38   :  { %p14632_p10 = scmp.ne.s32.totalorder %s17279_s0, %s14631_s20  ;;  %p14635_p11 = scmp.lt.u32.totalorder %s14631_s20, %s17279_s0 }
  0x3a   :  { %p14637_p12 = pnand %p14635_p11, %p14632_p10 }
  0x3c   :  { %14640 = shalt.err (!%p14637_p12)
}
  0x3d   :  { %s14641_s24 = scalar_lea.vmem %s14835_s30, 14336  ;;  %p14646_p0 = scmp.lt.s32.totalorder %s14835_s30, %s14835_s30 }
  0x3e   :  { %p14642_p13 = scmp.ne.s32.totalorder %s14835_s30, %s14641_s24  ;;  %p14647_p1 = scmp.lt.s32.totalorder %s14641_s24, %s14641_s24 }
  0x40   :  { %p14648_p2 = por %p14647_p1, %p14646_p0 }
  0x42   :  { %p14649_p3 = pnand %p14648_p2, %p14642_p13 }
  0x44   :  { %14652 = shalt.err (!%p14649_p3)
}
  0x45   :  { %28 = dma.hbm_to_vmem [thread:$0]  %s17279_s0, 14336, %s14835_s30, [#allocation3], %s14757_s27, %s14757_s27, %s14758_s15  }
  0x46   :  { %s14759_s26 = smov [#allocation7]   ;;  %s14760_s29 = smov [#allocation10]  }
  0x47   :  { %s45_s28 = sshll.u32 %s14759_s26, 4  ;;  %s67_s8 = sshll.u32 %s14760_s29, 4  ;;  %s46_s28 = int_to_ptr.vmem [resolvable:$true] %s45_s28  ;;  %s68_s8 = int_to_ptr.vmem [resolvable:$true] %s67_s8 }
  0x48   :  { %s14653_s11 = scalar_lea.hbm %s17281_s2, 16 }
  0x49   :  { %p14654_p4 = scmp.ne.s32.totalorder %s17281_s2, %s14653_s11  ;;  %p14657_p5 = scmp.lt.u32.totalorder %s14653_s11, %s17281_s2 }
  0x4b   :  { %p14659_p6 = pnand %p14657_p5, %p14654_p4 }
  0x4d   :  { %14662 = shalt.err (!%p14659_p6)
}
  0x4e   :  { %s14663_s0 = scalar_lea.vmem %s46_s28, 16  ;;  %s14667_s30 = scalar_lea.vmem %s46_s28, 32 }
  0x4f   :  { %p14664_p7 = scmp.ne.s32.totalorder %s46_s28, %s14663_s0  ;;  %p14668_p8 = scmp.lt.s32.totalorder %s46_s28, %s46_s28 }
  0x50   :  { %p14669_p9 = scmp.lt.s32.totalorder %s14667_s30, %s14663_s0 }
  0x52   :  { %p14670_p10 = por %p14669_p9, %p14668_p8 }
  0x54   :  { %p14671_p11 = pnand %p14670_p10, %p14664_p7 }
  0x56   :  { %14674 = shalt.err (!%p14671_p11)
}
  0x57   :  { %48 = dma.hbm_to_vmem [thread:$0]  %s17281_s2, 16, %s46_s28, [#allocation6]  }
  0x58   :  { %s14675_s18 = scalar_lea.hbm %s17283_s4, 128 }
  0x59   :  { %p14676_p12 = scmp.ne.s32.totalorder %s17283_s4, %s14675_s18  ;;  %p14679_p13 = scmp.lt.u32.totalorder %s14675_s18, %s17283_s4 }
  0x5b   :  { %p14681_p0 = pnand %p14679_p13, %p14676_p12 }
  0x5d   :  { %14684 = shalt.err (!%p14681_p0)
}
  0x5e   :  { %s14685_s1 = scalar_lea.vmem %s68_s8, 128  ;;  %p14690_p2 = scmp.lt.s32.totalorder %s68_s8, %s68_s8 }
  0x5f   :  { %p14686_p1 = scmp.ne.s32.totalorder %s68_s8, %s14685_s1  ;;  %p14691_p3 = scmp.lt.s32.totalorder %s14685_s1, %s14685_s1 }
  0x61   :  { %p14692_p4 = por %p14691_p3, %p14690_p2 }
  0x63   :  { %p14693_p5 = pnand %p14692_p4, %p14686_p1 }
  0x65   :  { %14696 = shalt.err (!%p14693_p5)
}
  0x66   :  { %70 = dma.hbm_to_vmem [thread:$0]  %s17283_s4, 128, %s68_s8, [#allocation9]  }
  0x67   :  { %s14761_s24 = smov [#allocation13]   ;;  %s14697_s28 = scalar_lea.hbm %s17285_s6, 16 }
  0x68   :  { %s89_s5 = sshll.u32 %s14761_s24, 4  ;;  %p14698_p6 = scmp.ne.s32.totalorder %s17285_s6, %s14697_s28  ;;  %s90_s5 = int_to_ptr.vmem [resolvable:$true] %s89_s5 }
  0x69   :  { %p14701_p7 = scmp.lt.u32.totalorder %s14697_s28, %s17285_s6 }
  0x6b   :  { %p14703_p8 = pnand %p14701_p7, %p14698_p6 }
  0x6d   :  { %14706 = shalt.err (!%p14703_p8)
}
  0x6e   :  { %s14707_s12 = scalar_lea.vmem %s90_s5, 16  ;;  %s14711_s4 = scalar_lea.vmem %s90_s5, 32 }
  0x6f   :  { %p14708_p9 = scmp.ne.s32.totalorder %s90_s5, %s14707_s12  ;;  %p14712_p10 = scmp.lt.s32.totalorder %s90_s5, %s90_s5 }
  0x70   :  { %p14713_p11 = scmp.lt.s32.totalorder %s14711_s4, %s14707_s12 }
  0x72   :  { %p14714_p12 = por %p14713_p11, %p14712_p10 }
  0x74   :  { %p14715_p13 = pnand %p14714_p12, %p14708_p9 }
  0x76   :  { %14718 = shalt.err (!%p14715_p13)
}
  0x77   :  { %92 = dma.hbm_to_vmem [thread:$0]  %s17285_s6, 16, %s90_s5, [#allocation12]  }
  0x78   :  { %14741 = dma.done.wait [#allocation3], 14336  }
  0x79   :  { %14742 = vsyncadd [#allocation3], 4294952960 }
  0x7a   :  { %14743 = dma.done.wait [#allocation6], 48  }
  0x7b   :  { %14744 = vsyncadd [#allocation6], 4294967248 }
  0x7c   :  { %14745 = dma.done.wait [#allocation9], 131200  }
  0x7d   :  { %14746 = vsyncadd [#allocation9], 4294836096 }
  0x7e   :  { %14747 = dma.done.wait [#allocation12], 8208  }
  0x7f   :  { %14748 = vsyncadd [#allocation12], 4294959088  ;;  %vm566_vm0 = vcmask 1041408   ;;  %v2682_v0 = vld [vmem:[#allocation5] sm:$0x3]  ;;  %vm275_vm1 = vcmask 31744  }
  0x80   :  { %v14902_v1 = vld [vmem:[#allocation2] ss:$8 sps:$4 sm:$0xff]   ;;  %v14904_v2 = vld [vmem:[#allocation2 + $0x10] ss:$8 sps:$4 sm:$0xff]   ;;  %14485 = vmatprep.subr.msk.bf16.mxu0 %vm566_vm0, %v2682_v0  ;;  %v3210_v3 = vsel %vm566_vm0, %v2682_v0, 0  ;;  %vm421_vm2 = vcmask 28672  }
  0x81   :  { %v14908_v4 = vld [vmem:[#allocation2 + $0x20] ss:$80 sps:$4 sm:$0xff]   ;;  %v195_v6 = vunpack.c.l.bf16 %v14902_v1  ;;  %v197_v7 = vunpack.c.h.bf16 %v14902_v1  ;;  %v199_v8 = vunpack.c.l.bf16 %v14904_v2  ;;  %14220 = vmatpush3.bf16.msra.mxu0 %v3210_v3  ;;  %v201_v12 = vunpack.c.h.bf16 %v14904_v2  ;;  %s14763_s6 = smov [#allocation14]  }
  0x82   :  { %v14910_v5 = vld [vmem:[#allocation2 + $0x78] ss:$8 sps:$4 sm:$0xff]   ;;  %v14915_v9 = vld [vmem:[#allocation2 + $0x88] ss:$8 sps:$4 sm:$0xff]   ;;  %v203_v13 = vunpack.c.l.bf16 %v14908_v4  ;;  %v205_v14 = vunpack.c.h.bf16 %v14908_v4  ;;  %vm2947_vm3 = vcmask 1041409   ;;  %vm2950_vm4 = vcmask 1042434  }
  0x83   :  { %v14917_v10 = vld [vmem:[#allocation2 + $0xe0] ss:$8 sps:$4 sm:$0xff]   ;;  %v14919_v11 = vld [vmem:[#allocation2 + $0xf0] ss:$8 sps:$4 sm:$0xff]   ;;  %v207_v15 = vunpack.c.l.bf16 %v14910_v5  ;;  %v209_v19 = vunpack.c.h.bf16 %v14910_v5  ;;  %v211_v20 = vunpack.c.l.bf16 %v14915_v9  ;;  %v213_v21 = vunpack.c.h.bf16 %v14915_v9  ;;  %s13012_s14 = sshll.u32 %s14763_s6, 4  ;;  %s13013_s14 = int_to_ptr.vmem [resolvable:$true] %s13012_s14 }
  0x84   :  { %v14925_v16 = vld [vmem:[#allocation2 + $0x100] ss:$80 sps:$4 sm:$0xff]   ;;  %v215_v22 = vunpack.c.l.bf16 %v14917_v10  ;;  %v217_v26 = vunpack.c.h.bf16 %v14917_v10  ;;  %v219_v27 = vunpack.c.l.bf16 %v14919_v11  ;;  %v221_v28 = vunpack.c.h.bf16 %v14919_v11  ;;  %s14719_s3 = scalar_lea.vmem %s13013_s14, 128  ;;  %p14724_p1 = scmp.lt.s32.totalorder %s13013_s14, %s13013_s14 }
  0x85   :  { %v14927_v17 = vld [vmem:[#allocation2 + $0x158] ss:$8 sps:$4 sm:$0xff]   ;;  %v14929_v18 = vld [vmem:[#allocation2 + $0x168] ss:$8 sps:$4 sm:$0xff]   ;;  %v223_v29 = vunpack.c.l.bf16 %v14925_v16  ;;  %v225_v33 = vunpack.c.h.bf16 %v14925_v16  ;;  %v276_v62 = vsel %vm275_vm1, %v195_v6, 0.0  ;;  %v277_v63 = vsel %vm275_vm1, %v197_v7, 0.0  ;;  %p14720_p0 = scmp.ne.s32.totalorder %s13013_s14, %s14719_s3  ;;  %p14725_p2 = scmp.lt.s32.totalorder %s14719_s3, %s14719_s3 }
  0x86   :  { %v14935_v23 = vld [vmem:[#allocation2 + $0x1c0] ss:$8 sps:$4 sm:$0xff]   ;;  %v14937_v24 = vld [vmem:[#allocation2 + $0x1d0] ss:$8 sps:$4 sm:$0xff]   ;;  %v227_v34 = vunpack.c.l.bf16 %v14927_v17  ;;  %v229_v35 = vunpack.c.h.bf16 %v14927_v17  ;;  %v231_v36 = vunpack.c.l.bf16 %v14929_v18  ;;  %v233_v38 = vunpack.c.h.bf16 %v14929_v18 }
  0x87   :  { %v14939_v25 = vld [vmem:[#allocation2 + $0x1e0] ss:$80 sps:$4 sm:$0xff]   ;;  %v235_v39 = vunpack.c.l.bf16 %v14935_v23  ;;  %v237_v40 = vunpack.c.h.bf16 %v14935_v23  ;;  %v239_v41 = vunpack.c.l.bf16 %v14937_v24  ;;  %v241_v45 = vunpack.c.h.bf16 %v14937_v24  ;;  %p14726_p3 = por %p14725_p2, %p14724_p1 }
  0x88   :  { %v14945_v30 = vld [vmem:[#allocation2 + $0x238] ss:$8 sps:$4 sm:$0xff]   ;;  %v14947_v31 = vld [vmem:[#allocation2 + $0x248] ss:$8 sps:$4 sm:$0xff]   ;;  %v243_v46 = vunpack.c.l.bf16 %v14939_v25  ;;  %v245_v47 = vunpack.c.h.bf16 %v14939_v25  ;;  %v279_v0 = vsel %vm275_vm1, %v199_v8, 0.0  ;;  %v278_v1 = vadd.f32 %v277_v63, %v276_v62 }
  0x89   :  { %v14949_v32 = vld [vmem:[#allocation2 + $0x2a0] ss:$8 sps:$4 sm:$0xff]   ;;  %v14955_v37 = vld [vmem:[#allocation2 + $0x2b0] ss:$8 sps:$4 sm:$0xff]   ;;  %v247_v48 = vunpack.c.l.bf16 %v14945_v30  ;;  %v249_v49 = vunpack.c.h.bf16 %v14945_v30  ;;  %v251_v50 = vunpack.c.l.bf16 %v14947_v31  ;;  %v253_v51 = vunpack.c.h.bf16 %v14947_v31  ;;  %p14727_p4 = pnand %p14726_p3, %p14720_p0 }
  0x8a   :  { %v14961_v42 = vld [vmem:[#allocation2 + $0x2c0] ss:$80 sps:$4 sm:$0xff]   ;;  %v255_v52 = vunpack.c.l.bf16 %v14949_v32  ;;  %v257_v53 = vunpack.c.h.bf16 %v14949_v32  ;;  %v259_v54 = vunpack.c.l.bf16 %v14955_v37  ;;  %v261_v55 = vunpack.c.h.bf16 %v14955_v37 }
  0x8b   :  { %v14963_v43 = vld [vmem:[#allocation2 + $0x318] ss:$8 sps:$4 sm:$0xff]   ;;  %v14965_v44 = vld [vmem:[#allocation2 + $0x328] ss:$8 sps:$4 sm:$0xff]   ;;  %v263_v56 = vunpack.c.l.bf16 %v14961_v42  ;;  %v265_v57 = vunpack.c.h.bf16 %v14961_v42  ;;  %v281_v2 = vsel %vm275_vm1, %v201_v12, 0.0  ;;  %v283_v3 = vsel %vm275_vm1, %v203_v13, 0.0 }
  0x8c   :  { %v267_v58 = vunpack.c.l.bf16 %v14963_v43  ;;  %v269_v59 = vunpack.c.h.bf16 %v14963_v43  ;;  %v271_v60 = vunpack.c.l.bf16 %v14965_v44  ;;  %v273_v61 = vunpack.c.h.bf16 %v14965_v44 }
  0x8d   :  { %v295_v4 = vsel %vm275_vm1, %v205_v14, 0.0  ;;  %v296_v5 = vsel %vm275_vm1, %v207_v15, 0.0  ;;  %v298_v9 = vsel %vm275_vm1, %v209_v19, 0.0  ;;  %v300_v10 = vsel %vm275_vm1, %v211_v20, 0.0 }
  0x8e   :  { %v302_v11 = vsel %vm275_vm1, %v213_v21, 0.0  ;;  %v280_v6 = vadd.f32 %v279_v0, %v278_v1  ;;  %v297_v16 = vadd.f32 %v296_v5, %v295_v4  ;;  %v313_v7 = vsel %vm275_vm1, %v215_v22, 0.0 }
  0x8f   :  { %v314_v8 = vsel %vm275_vm1, %v217_v26, 0.0  ;;  %v316_v12 = vsel %vm275_vm1, %v219_v27, 0.0  ;;  %v318_v13 = vsel %vm275_vm1, %v221_v28, 0.0  ;;  %v320_v14 = vsel %vm275_vm1, %v223_v29, 0.0 }
  0x90   :  { %v315_v17 = vadd.f32 %v314_v8, %v313_v7  ;;  %v282_v15 = vadd.f32 %v281_v2, %v280_v6  ;;  %v299_v18 = vadd.f32 %v298_v9, %v297_v16  ;;  %v331_v19 = vsel %vm275_vm1, %v225_v33, 0.0 }
  0x91   :  { %v332_v20 = vsel %vm275_vm1, %v227_v34, 0.0  ;;  %v334_v24 = vsel %vm275_vm1, %v229_v35, 0.0  ;;  %v336_v22 = vsel %vm275_vm1, %v231_v36, 0.0  ;;  %v338_v27 = vsel %vm275_vm1, %v233_v38, 0.0 }
  0x92   :  { %v317_v21 = vadd.f32 %v316_v12, %v315_v17  ;;  %v333_v23 = vadd.f32 %v332_v20, %v331_v19  ;;  %v15003_v25 = vadd.f32 %v283_v3, %v282_v15  ;;  %v301_v26 = vadd.f32 %v300_v10, %v299_v18 }
  0x93   :  { %v349_v28 = vsel %vm275_vm1, %v235_v39, 0.0  ;;  %v350_v31 = vsel %vm275_vm1, %v237_v40, 0.0  ;;  %v352_v32 = vsel %vm275_vm1, %v239_v41, 0.0  ;;  %v354_v35 = vsel %vm275_vm1, %v241_v45, 0.0 }
  0x94   :  { %v319_v29 = vadd.f32 %v318_v13, %v317_v21  ;;  %v335_v30 = vadd.f32 %v334_v24, %v333_v23  ;;  %v15009_v33 = vadd.f32 %v302_v11, %v301_v26  ;;  %v351_v34 = vadd.f32 %v350_v31, %v349_v28 }
  0x95   :  { %v356_v36 = vsel %vm275_vm1, %v243_v46, 0.0  ;;  %v367_v38 = vsel %vm275_vm1, %v245_v47, 0.0  ;;  %v368_v39 = vsel %vm275_vm1, %v247_v48, 0.0  ;;  %v370_v40 = vsel %vm275_vm1, %v249_v49, 0.0 }
  0x96   :  { %v15013_v62 = vadd.f32 %v320_v14, %v319_v29  ;;  %v337_v63 = vadd.f32 %v336_v22, %v335_v30  ;;  %v353_v0 = vadd.f32 %v352_v32, %v351_v34  ;;  %v369_v1 = vadd.f32 %v368_v39, %v367_v38 }
  0x97   :  { %v372_v41 = vsel %vm275_vm1, %v251_v50, 0.0  ;;  %v374_v3 = vsel %vm275_vm1, %v253_v51, 0.0  ;;  %v385_v45 = vsel %vm275_vm1, %v255_v52, 0.0  ;;  %v386_v46 = vsel %vm275_vm1, %v257_v53, 0.0 }
  0x98   :  { %v15019_v2 = vadd.f32 %v338_v27, %v337_v63  ;;  %v355_v4 = vadd.f32 %v354_v35, %v353_v0  ;;  %v371_v5 = vadd.f32 %v370_v40, %v369_v1  ;;  %v387_v9 = vadd.f32 %v386_v46, %v385_v45 }
  0x99   :  { %v388_v47 = vsel %vm275_vm1, %v259_v54, 0.0  ;;  %v390_v48 = vsel %vm275_vm1, %v261_v55, 0.0  ;;  %v392_v49 = vsel %vm275_vm1, %v263_v56, 0.0  ;;  %v403_v50 = vsel %vm275_vm1, %v265_v57, 0.0 }
  0x9a   :  { %v404_v51 = vsel %vm275_vm1, %v267_v58, 0.0  ;;  %v15039_v52 = vadd.f32 %v356_v36, %v355_v4  ;;  %v373_v53 = vadd.f32 %v372_v41, %v371_v5  ;;  %v389_v54 = vadd.f32 %v388_v47, %v387_v9 }
  0x9b   :  { %v405_v10 = vadd.f32 %v404_v51, %v403_v50  ;;  %v406_v37 = vsel %vm275_vm1, %v269_v59, 0.0  ;;  %v408_v55 = vsel %vm275_vm1, %v271_v60, 0.0  ;;  %v410_v42 = vsel %vm275_vm1, %v273_v61, 0.0 }
  0x9c   :  { %v422_v56 = vsel %vm421_vm2, %v15003_v25, 0.0  ;;  %v15052_v57 = vadd.f32 %v374_v3, %v373_v53  ;;  %v391_v58 = vadd.f32 %v390_v48, %v389_v54  ;;  %v429_v43 = vsel %vm421_vm2, %v15009_v33, 0.0 }
  0x9d   :  { %v407_v11 = vadd.f32 %v406_v37, %v405_v10  ;;  %v423_v6 = vrot.slane %v422_v56, 4  ;;  %v436_v59 = vsel %vm421_vm2, %v15013_v62, 0.0  ;;  %v443_v60 = vsel %vm421_vm2, %v15019_v2, 0.0 }
  0x9e   :  { %v450_v44 = vsel %vm421_vm2, %v15039_v52, 0.0  ;;  %v15062_v61 = vadd.f32 %v392_v49, %v391_v58  ;;  %v430_v8 = vrot.slane %v429_v43, 4  ;;  %v437_v17 = vrot.slane %v436_v59, 4 }
  0x9f   :  { %v409_v16 = vadd.f32 %v408_v55, %v407_v11  ;;  %v424_v7 = vadd.f32 %v423_v6, %v422_v56  ;;  %v444_v12 = vrot.slane %v443_v60, 4  ;;  %v451_v13 = vrot.slane %v450_v44, 4 }
  0xa0   :  { %v457_v14 = vsel %vm421_vm2, %v15052_v57, 0.0  ;;  %v431_v19 = vadd.f32 %v430_v8, %v429_v43  ;;  %v438_v21 = vadd.f32 %v437_v17, %v436_v59  ;;  %v464_v22 = vsel %vm421_vm2, %v15062_v61, 0.0 }
  0xa1   :  { %v15066_v15 = vadd.f32 %v410_v42, %v409_v16  ;;  %v425_v18 = vrot.slane %v424_v7, 2  ;;  %v458_v20 = vrot.slane %v457_v14, 4  ;;  %v445_v23 = vadd.f32 %v444_v12, %v443_v60 }
  0xa2   :  { %v452_v24 = vadd.f32 %v451_v13, %v450_v44  ;;  %v432_v27 = vrot.slane %v431_v19, 2  ;;  %v465_v29 = vrot.slane %v464_v22, 4  ;;  %v439_v30 = vrot.slane %v438_v21, 2 }
  0xa3   :  { %v426_v26 = vadd.f32 %v425_v18, %v424_v7  ;;  %v459_v28 = vadd.f32 %v458_v20, %v457_v14  ;;  %v446_v31 = vrot.slane %v445_v23, 2  ;;  %v471_v34 = vsel %vm421_vm2, %v15066_v15, 0.0 }
  0xa4   :  { %v453_v32 = vrot.slane %v452_v24, 2  ;;  %v433_v36 = vadd.f32 %v432_v27, %v431_v19  ;;  %v466_v38 = vadd.f32 %v465_v29, %v464_v22  ;;  %v440_v39 = vadd.f32 %v439_v30, %v438_v21 }
  0xa5   :  { %v427_v35 = vrot.slane %v426_v26, 1  ;;  %v460_v63 = vrot.slane %v459_v28, 2  ;;  %v447_v0 = vadd.f32 %v446_v31, %v445_v23  ;;  %v472_v40 = vrot.slane %v471_v34, 4 }
  0xa6   :  { %v454_v1 = vadd.f32 %v453_v32, %v452_v24  ;;  %v434_v3 = vrot.slane %v433_v36, 1  ;;  %v467_v46 = vrot.slane %v466_v38, 2  ;;  %v441_v4 = vrot.slane %v440_v39, 1 }
  0xa7   :  { %v15072_v41 = vadd.f32 %v427_v35, %v426_v26  ;;  %v461_v45 = vadd.f32 %v460_v63, %v459_v28  ;;  %v448_v5 = vrot.slane %v447_v0, 1  ;;  %v473_v47 = vadd.f32 %v472_v40, %v471_v34 }
  0xa8   :  { %v455_v9 = vrot.slane %v454_v1, 1  ;;  %v15074_v48 = vadd.f32 %v434_v3, %v433_v36  ;;  %v468_v50 = vadd.f32 %v467_v46, %v466_v38  ;;  %v486_v51 = vrot.slane %v15003_v25, 3 }
  0xa9   :  { %v462_v49 = vrot.slane %v461_v45, 1  ;;  %v15077_v53 = vadd.f32 %v441_v4, %v440_v39  ;;  %v15079_v54 = vadd.f32 %v448_v5, %v447_v0  ;;  %v474_v37 = vrot.slane %v473_v47, 2 }
  0xaa   :  { %v15081_v10 = vadd.f32 %v455_v9, %v454_v1  ;;  %v469_v42 = vrot.slane %v468_v50, 1  ;;  %v487_v56 = vrot.slane %v15009_v33, 3  ;;  %v488_v58 = vrot.slane %v15013_v62, 3 }
  0xab   :  { %v15083_v55 = vadd.f32 %v462_v49, %v461_v45  ;;  %v475_v11 = vadd.f32 %v474_v37, %v473_v47  ;;  %v489_v6 = vrot.slane %v15019_v2, 3  ;;  %v490_v43 = vrot.slane %v15039_v52, 3 }
  0xac   :  { %v491_v59 = vrot.slane %v15052_v57, 3  ;;  %v15090_v60 = vadd.f32 %v469_v42, %v468_v50  ;;  %v492_v44 = vrot.slane %v15062_v61, 3  ;;  %v493_v16 = vrot.slane %v15066_v15, 3 }
  0xad   :  { %v502_v7 = vsel %vm421_vm2, %v486_v51, 0.0  ;;  %v476_v8 = vrot.slane %v475_v11, 1  ;;  %v509_v12 = vsel %vm421_vm2, %v487_v56, 0.0  ;;  %v516_v13 = vsel %vm421_vm2, %v488_v58, 0.0 }
  0xae   :  { %v503_v17 = vrot.slane %v502_v7, 4  ;;  %v510_v14 = vrot.slane %v509_v12, 4  ;;  %v517_v18 = vrot.slane %v516_v13, 4  ;;  %v523_v19 = vsel %vm421_vm2, %v489_v6, 0.0 }
  0xaf   :  { %v530_v20 = vsel %vm421_vm2, %v490_v43, 0.0  ;;  %v15099_v21 = vadd.f32 %v476_v8, %v475_v11  ;;  %v524_v24 = vrot.slane %v523_v19, 4  ;;  %v537_v28 = vsel %vm421_vm2, %v491_v59, 0.0 }
  0xb0   :  { %v504_v23 = vadd.f32 %v503_v17, %v502_v7  ;;  %v531_v22 = vrot.slane %v530_v20, 4  ;;  %v511_v26 = vadd.f32 %v510_v14, %v509_v12  ;;  %v518_v27 = vadd.f32 %v517_v18, %v516_v13 }
  0xb1   :  { %v544_v29 = vsel %vm421_vm2, %v492_v44, 0.0  ;;  %v525_v31 = vadd.f32 %v524_v24, %v523_v19  ;;  %v538_v34 = vrot.slane %v537_v28, 4  ;;  %v551_v38 = vsel %vm421_vm2, %v493_v16, 0.0 }
  0xb2   :  { %v505_v30 = vrot.slane %v504_v23, 2  ;;  %v532_v32 = vadd.f32 %v531_v22, %v530_v20  ;;  %v512_v35 = vrot.slane %v511_v26, 2  ;;  %v519_v36 = vrot.slane %v518_v27, 2 }
  0xb3   :  { %v545_v63 = vrot.slane %v544_v29, 4  ;;  %v526_v0 = vrot.slane %v525_v31, 2  ;;  %v539_v40 = vadd.f32 %v538_v34, %v537_v28  ;;  %v552_v4 = vrot.slane %v551_v38, 4 }
  0xb4   :  { %v506_v39 = vadd.f32 %v505_v30, %v504_v23  ;;  %v533_v1 = vrot.slane %v532_v32, 2  ;;  %v513_v3 = vadd.f32 %v512_v35, %v511_v26  ;;  %v520_v45 = vadd.f32 %v519_v36, %v518_v27 }
  0xb5   :  { %v546_v46 = vadd.f32 %v545_v63, %v544_v29  ;;  %v527_v9 = vadd.f32 %v526_v0, %v525_v31  ;;  %v540_v49 = vrot.slane %v539_v40, 2  ;;  %v553_v42 = vadd.f32 %v552_v4, %v551_v38 }
  0xb6   :  { %v507_v5 = vrot.slane %v506_v39, 1  ;;  %v534_v47 = vadd.f32 %v533_v1, %v532_v32  ;;  %v514_v50 = vrot.slane %v513_v3, 1  ;;  %v521_v51 = vrot.slane %v520_v45, 1 }
  0xb7   :  { %v547_v37 = vrot.slane %v546_v46, 2  ;;  %v528_v58 = vrot.slane %v527_v9, 1  ;;  %v541_v6 = vadd.f32 %v540_v49, %v539_v40  ;;  %v554_v16 = vrot.slane %v553_v42, 2 }
  0xb8   :  { %v508_v56 = vadd.f32 %v507_v5, %v506_v39  ;;  %v535_v11 = vrot.slane %v534_v47, 1  ;;  %v515_v43 = vadd.f32 %v514_v50, %v513_v3  ;;  %v522_v59 = vadd.f32 %v521_v51, %v520_v45 }
  0xb9   :  { %v548_v44 = vadd.f32 %v547_v37, %v546_v46  ;;  %v529_v7 = vadd.f32 %v528_v58, %v527_v9  ;;  %v542_v17 = vrot.slane %v541_v6, 1  ;;  %v555_v14 = vadd.f32 %v554_v16, %v553_v42 }
  0xba   :  { %v536_v8 = vadd.f32 %v535_v11, %v534_v47  ;;  %v2554_v30 = vpack.c.bf16 %v15072_v41, %v15072_v41  ;;  %v2555_v31 = vpack.c.bf16 %v15074_v48, %v15074_v48  ;;  %v2556_v32 = vpack.c.bf16 %v15077_v53, %v15077_v53 }
  0xbb   :  { %v549_v13 = vrot.slane %v548_v44, 1  ;;  %v543_v20 = vadd.f32 %v542_v17, %v541_v6  ;;  %v556_v27 = vrot.slane %v555_v14, 1  ;;  %v2557_v34 = vpack.c.bf16 %v15079_v54, %v15079_v54 }
  0xbc   :  { %v2558_v36 = vpack.c.bf16 %v15081_v10, %v15081_v10  ;;  %v2559_v63 = vpack.c.bf16 %v15083_v55, %v15083_v55  ;;  %v2560_v41 = vpack.c.bf16 %v15090_v60, %v15090_v60  ;;  %vm2953_vm5 = vcmask 1043459  }
  0xbd   :  { %v550_v26 = vadd.f32 %v549_v13, %v548_v44  ;;  %v557_v35 = vadd.f32 %v556_v27, %v555_v14  ;;  %v2561_v48 = vpack.c.bf16 %v15099_v21, %v15099_v21  ;;  %v2562_v38 = vpack.c.bf16 %v508_v56, %v508_v56  ;;  %v15132_v56 = vld [vmem:[#allocation2 + $0x4] sm:$0x7]  ;;  %v15138_v44 = vld [vmem:[#allocation2 + $0x14] sm:$0x7]  ;;  %v15141_v13 = vld [vmem:[#allocation2 + $0x1c] sm:$0x7] }
  0xbe   :  { %v2563_v53 = vpack.c.bf16 %v515_v43, %v515_v43  ;;  %v2564_v39 = vpack.c.bf16 %v522_v59, %v522_v59  ;;  %vm2956_vm6 = vcmask 1044484   ;;  %v2565_v54 = vpack.c.bf16 %v529_v7, %v529_v7  ;;  %v15136_v59 = vld [vmem:[#allocation2 + $0xc] sm:$0x7]  ;;  %v15143_v14 = vld [vmem:[#allocation2 + $0x24] sm:$0x7] }
  0xbf   :  { %v2566_v0 = vpack.c.bf16 %v536_v8, %v536_v8  ;;  %v2567_v1 = vpack.c.bf16 %v543_v20, %v543_v20  ;;  %v2568_v40 = vpack.c.bf16 %v550_v26, %v550_v26  ;;  %vm2959_vm7 = vcmask 1045509  }
  0xc0   :  { %v2569_v10 = vpack.c.bf16 %v557_v35, %v557_v35  ;;  %v2818_v3 = vunpack.c.l.b16 %v2554_v30  ;;  %v2819_v45 = vunpack.c.l.b16 %v2555_v31  ;;  %v2820_v55 = vunpack.c.l.b16 %v2556_v32  ;;  %v15146_v31 = vld [vmem:[#allocation2 + $0x74] sm:$0x7]  ;;  %v15148_v32 = vld [vmem:[#allocation2 + $0x7c] sm:$0x7] }
  0xc1   :  { %vm2962_vm8 = vcmask 1046534   ;;  %v2821_v46 = vunpack.c.l.b16 %v2557_v34  ;;  %v2822_v60 = vunpack.c.l.b16 %v2558_v36  ;;  %v2823_v4 = vunpack.c.l.b16 %v2559_v63 }
  0xc2   :  { %v2824_v5 = vunpack.c.l.b16 %v2560_v41  ;;  %vm2965_vm9 = vcmask 1047559   ;;  %v15128_v21 = vunpack.c.l.b16 %v2561_v48  ;;  %v2826_v9 = vunpack.c.l.b16 %v2562_v38  ;;  %v15152_v41 = vld [vmem:[#allocation2 + $0x84] sm:$0x7]  ;;  %v15154_v48 = vld [vmem:[#allocation2 + $0x8c] sm:$0x7] }
  0xc3   :  { %v2827_v47 = vunpack.c.l.b16 %v2563_v53  ;;  %v2828_v49 = vunpack.c.l.b16 %v2564_v39  ;;  %v2829_v50 = vunpack.c.l.b16 %v2565_v54  ;;  %v2830_v51 = vunpack.c.l.b16 %v2566_v0  ;;  %v15159_v54 = vld [vmem:[#allocation2 + $0x94] sm:$0x7]  ;;  %v15161_v0 = vld [vmem:[#allocation2 + $0xe4] sm:$0x7] }
  0xc4   :  { %v2831_v37 = vunpack.c.l.b16 %v2567_v1  ;;  %v15130_v42 = vunpack.c.l.b16 %v2568_v40  ;;  %v15134_v58 = vunpack.c.l.b16 %v2569_v10  ;;  %v2946_v11 = vrot.slane %v2819_v45, 7  ;;  %v15163_v1 = vld [vmem:[#allocation2 + $0xec] sm:$0x7]  ;;  %v15168_v45 = vld [vmem:[#allocation2 + $0xf4] sm:$0x7] }
  0xc5   :  { %v2949_v6 = vrot.slane %v2820_v55, 6  ;;  %v2952_v43 = vrot.slane %v2821_v46, 5  ;;  %v2955_v16 = vrot.slane %v2822_v60, 4  ;;  %v2958_v7 = vrot.slane %v2823_v4, 3  ;;  %v15170_v55 = vld [vmem:[#allocation2 + $0xfc] sm:$0x7] }
  0xc6   :  { %v2961_v8 = vrot.slane %v2824_v5, 2  ;;  %v2964_v17 = vrot.slane %v15128_v21, 1  ;;  %v2948_v20 = vsel %vm2947_vm3, %v2946_v11, %v2818_v3  ;;  %v2967_v26 = vrot.slane %v2827_v47, 7  ;;  %v15172_v46 = vld [vmem:[#allocation2 + $0x104] sm:$0x7] }
  0xc7   :  { %v2969_v27 = vrot.slane %v2828_v49, 6  ;;  %v2971_v30 = vrot.slane %v2829_v50, 5  ;;  %v2951_v34 = vsel %vm2950_vm4, %v2949_v6, %v2948_v20  ;;  %v2973_v35 = vrot.slane %v2830_v51, 4  ;;  %v15180_v47 = vld [vmem:[#allocation2 + $0x15c] sm:$0x7] }
  0xc8   :  { %v2975_v36 = vrot.slane %v2831_v37, 3  ;;  %v2977_v63 = vrot.slane %v15130_v42, 2  ;;  %v2954_v38 = vsel %vm2953_vm5, %v2952_v43, %v2951_v34  ;;  %v2968_v53 = vsel %vm2947_vm3, %v2967_v26, %v2826_v9  ;;  %v15178_v9 = vld [vmem:[#allocation2 + $0x154] sm:$0x7]  ;;  %v15182_v49 = vld [vmem:[#allocation2 + $0x164] sm:$0x7] }
  0xc9   :  { %v2979_v39 = vrot.slane %v15134_v58, 1  ;;  %v196_v40 = vunpack.c.l.bf16 %v15132_v56  ;;  %v2957_v10 = vsel %vm2956_vm6, %v2955_v16, %v2954_v38  ;;  %v2970_v3 = vsel %vm2950_vm4, %v2969_v27, %v2968_v53  ;;  %v15188_v58 = vld [vmem:[#allocation2 + $0x16c] sm:$0x7]  ;;  %v15190_v11 = vld [vmem:[#allocation2 + $0x174] sm:$0x7] }
  0xca   :  { %v198_v60 = vunpack.c.l.bf16 %v15136_v59  ;;  %v200_v4 = vunpack.c.l.bf16 %v15138_v44  ;;  %v2960_v5 = vsel %vm2959_vm7, %v2958_v7, %v2957_v10  ;;  %v2972_v21 = vsel %vm2953_vm5, %v2971_v30, %v2970_v3  ;;  %v15192_v6 = vld [vmem:[#allocation2 + $0x1c4] sm:$0x7]  ;;  %v15194_v43 = vld [vmem:[#allocation2 + $0x1cc] sm:$0x7]  ;;  %v15200_v27 = vld [vmem:[#allocation2 + $0x1d4] sm:$0x7] }
  0xcb   :  { %v202_v50 = vunpack.c.l.bf16 %v15141_v13  ;;  %v204_v51 = vunpack.c.l.bf16 %v15143_v14  ;;  %v2963_v37 = vsel %vm2962_vm8, %v2961_v8, %v2960_v5  ;;  %v2974_v42 = vsel %vm2956_vm6, %v2973_v35, %v2972_v21  ;;  %v15202_v8 = vld [vmem:[#allocation2 + $0x1dc] sm:$0x7]  ;;  %v15204_v30 = vld [vmem:[#allocation2 + $0x1e4] sm:$0x7]  ;;  %v15206_v34 = vld [vmem:[#allocation2 + $0x234] sm:$0x7] }
  0xcc   :  { %v206_v16 = vunpack.c.l.bf16 %v15146_v31  ;;  %v2966_v20 = vsel %vm2965_vm9, %v2964_v17, %v2963_v37  ;;  %v2976_v26 = vsel %vm2959_vm7, %v2975_v36, %v2974_v42  ;;  %v210_v35 = vunpack.c.l.bf16 %v15152_v41  ;;  %v15211_v10 = vld [vmem:[#allocation2 + $0x23c] sm:$0x7]  ;;  %v15213_v17 = vld [vmem:[#allocation2 + $0x244] sm:$0x7]  ;;  %v15215_v36 = vld [vmem:[#allocation2 + $0x24c] sm:$0x7] }
  0xcd   :  { %v212_v38 = vunpack.c.l.bf16 %v15154_v48  ;;  %vm285_vm10 = vcmask 29696   ;;  %v2978_v53 = vsel %vm2962_vm8, %v2977_v63, %v2976_v26  ;;  %v15217_v3 = vld [vmem:[#allocation2 + $0x254] sm:$0x7]  ;;  %v214_v5 = vunpack.c.l.bf16 %v15159_v54  ;;  %v15223_v48 = vld [vmem:[#allocation2 + $0x2a4] sm:$0x7] }
  0xce   :  { %v216_v21 = vunpack.c.l.bf16 %v15161_v0  ;;  %v218_v37 = vunpack.c.l.bf16 %v15163_v1  ;;  %v2980_v41 = vsel %vm2965_vm9, %v2979_v39, %v2978_v53  ;;  %v15225_v42 = vld [vmem:[#allocation2 + $0x2ac] sm:$0x7]  ;;  %v15227_v63 = vld [vmem:[#allocation2 + $0x2b4] sm:$0x7]  ;;  %v15229_v26 = vld [vmem:[#allocation2 + $0x2bc] sm:$0x7]  ;;  %v220_v29 = vunpack.c.l.bf16 %v15168_v45 }
  0xcf   :  { %v222_v28 = vunpack.c.l.bf16 %v15170_v55  ;;  %v224_v54 = vunpack.c.l.bf16 %v15172_v46  ;;  %v3177_v22 = vpack.c.b16 %v2980_v41, %v2966_v20  ;;  %v15234_v0 = vld [vmem:[#allocation2 + $0x2c4] sm:$0x7]  ;;  %v15236_v1 = vld [vmem:[#allocation2 + $0x314] sm:$0x7]  ;;  %v15238_v39 = vld [vmem:[#allocation2 + $0x31c] sm:$0x7]  ;;  %v226_v24 = vunpack.c.l.bf16 %v15178_v9 }
  0xd0   :  { %v15240_v53 = vld [vmem:[#allocation2 + $0x324] sm:$0x7]  ;;  %v228_v23 = vunpack.c.l.bf16 %v15180_v47  ;;  %v230_v19 = vunpack.c.l.bf16 %v15182_v49  ;;  %v15245_v45 = vld [vmem:[#allocation2 + $0x32c] sm:$0x7]  ;;  %v15247_v55 = vld [vmem:[#allocation2 + $0x334] sm:$0x7]  ;;  %v232_v46 = vunpack.c.l.bf16 %v15188_v58  ;;  %v234_v20 = vunpack.c.l.bf16 %v15190_v11 }
  0xd1   :  { %v236_v41 = vunpack.c.l.bf16 %v15192_v6  ;;  %v238_v18 = vunpack.c.l.bf16 %v15194_v43  ;;  %14221 = vmatprep.mubr.msk.bf16.mxu0 %vm275_vm1, %v3177_v22  ;;  %v240_v9 = vunpack.c.l.bf16 %v15200_v27  ;;  %v242_v47 = vunpack.c.l.bf16 %v15202_v8 }
  0xd2   :  { %v244_v49 = vunpack.c.l.bf16 %v15204_v30  ;;  %v246_v12 = vunpack.c.l.bf16 %v15206_v34  ;;  %v248_v7 = vunpack.c.l.bf16 %v15211_v10  ;;  %v250_v58 = vunpack.c.l.bf16 %v15213_v17 }
  0xd3   :  { %v252_v11 = vunpack.c.l.bf16 %v15215_v36  ;;  %v254_v6 = vunpack.c.l.bf16 %v15217_v3  ;;  %v256_v43 = vunpack.c.l.bf16 %v15223_v48  ;;  %v258_v22 = vunpack.c.l.bf16 %v15225_v42 }
  0xd4   :  { %v260_v27 = vunpack.c.l.bf16 %v15227_v63  ;;  %v262_v8 = vunpack.c.l.bf16 %v15229_v26  ;;  %v264_v30 = vunpack.c.l.bf16 %v15234_v0  ;;  %v266_v34 = vunpack.c.l.bf16 %v15236_v1 }
  0xd5   :  { %v268_v10 = vunpack.c.l.bf16 %v15238_v39  ;;  %v270_v17 = vunpack.c.l.bf16 %v15240_v53  ;;  %v272_v36 = vunpack.c.l.bf16 %v15245_v45  ;;  %v274_v3 = vunpack.c.l.bf16 %v15247_v55 }
  0xd6   :  { %v286_v48 = vsel %vm285_vm10, %v196_v40, 0.0  ;;  %v287_v42 = vsel %vm285_vm10, %v198_v60, 0.0  ;;  %v289_v26 = vsel %vm285_vm10, %v200_v4, 0.0  ;;  %v291_v0 = vsel %vm285_vm10, %v202_v50, 0.0 }
  0xd7   :  { %v288_v63 = vadd.f32 %v287_v42, %v286_v48  ;;  %v293_v1 = vsel %vm285_vm10, %v204_v51, 0.0  ;;  %v304_v56 = vsel %vm285_vm10, %v206_v16, 0.0  ;;  %v17287_v59 = vunpack.c.l.bf16 %v15148_v32 }
  0xd8   :  { %v307_v44 = vsel %vm285_vm10, %v210_v35, 0.0  ;;  %v309_v60 = vsel %vm285_vm10, %v212_v38, 0.0  ;;  %v311_v50 = vsel %vm285_vm10, %v214_v5, 0.0  ;;  %v322_v14 = vsel %vm285_vm10, %v216_v21, 0.0 }
  0xd9   :  { %v305_v40 = vsel %vm285_vm10, %v17287_v59, 0.0  ;;  %v290_v4 = vadd.f32 %v289_v26, %v288_v63  ;;  %v323_v51 = vsel %vm285_vm10, %v218_v37, 0.0  ;;  %v325_v31 = vsel %vm285_vm10, %v220_v29, 0.0 }
  0xda   :  { %v306_v13 = vadd.f32 %v305_v40, %v304_v56  ;;  %v327_v16 = vsel %vm285_vm10, %v222_v28, 0.0  ;;  %v329_v32 = vsel %vm285_vm10, %v224_v54, 0.0  ;;  %v324_v59 = vadd.f32 %v323_v51, %v322_v14 }
  0xdb   :  { %v292_v48 = vadd.f32 %v291_v0, %v290_v4  ;;  %v340_v35 = vsel %vm285_vm10, %v226_v24, 0.0  ;;  %v341_v38 = vsel %vm285_vm10, %v228_v23, 0.0  ;;  %v343_v63 = vsel %vm285_vm10, %v230_v19, 0.0 }
  0xdc   :  { %v308_v42 = vadd.f32 %v307_v44, %v306_v13  ;;  %v345_v5 = vsel %vm285_vm10, %v232_v46, 0.0  ;;  %v347_v21 = vsel %vm285_vm10, %v234_v20, 0.0  ;;  %v326_v26 = vadd.f32 %v325_v31, %v324_v59 }
  0xdd   :  { %v15306_v37 = vadd.f32 %v293_v1, %v292_v48  ;;  %v342_v28 = vadd.f32 %v341_v38, %v340_v35  ;;  %v358_v54 = vsel %vm285_vm10, %v236_v41, 0.0  ;;  %v359_v0 = vsel %vm285_vm10, %v238_v18, 0.0 }
  0xde   :  { %v310_v29 = vadd.f32 %v309_v60, %v308_v42  ;;  %v361_v56 = vsel %vm285_vm10, %v240_v9, 0.0  ;;  %v363_v24 = vsel %vm285_vm10, %v242_v47, 0.0  ;;  %v328_v19 = vadd.f32 %v327_v16, %v326_v26 }
  0xdf   :  { %v344_v40 = vadd.f32 %v343_v63, %v342_v28  ;;  %v360_v46 = vadd.f32 %v359_v0, %v358_v54  ;;  %v365_v20 = vsel %vm285_vm10, %v244_v49, 0.0  ;;  %v376_v1 = vsel %vm285_vm10, %v246_v12, 0.0 }
  0xe0   :  { %v15312_v23 = vadd.f32 %v311_v50, %v310_v29  ;;  %v377_v44 = vsel %vm285_vm10, %v248_v7, 0.0  ;;  %v379_v60 = vsel %vm285_vm10, %v250_v58, 0.0  ;;  %v15318_v41 = vadd.f32 %v329_v32, %v328_v19 }
  0xe1   :  { %v346_v18 = vadd.f32 %v345_v5, %v344_v40  ;;  %v362_v4 = vadd.f32 %v361_v56, %v360_v46  ;;  %v378_v9 = vadd.f32 %v377_v44, %v376_v1  ;;  %v381_v47 = vsel %vm285_vm10, %v252_v11, 0.0 }
  0xe2   :  { %v383_v13 = vsel %vm285_vm10, %v254_v6, 0.0  ;;  %v394_v50 = vsel %vm285_vm10, %v256_v43, 0.0  ;;  %v395_v14 = vsel %vm285_vm10, %v258_v22, 0.0  ;;  %v397_v58 = vsel %vm285_vm10, %v260_v27, 0.0 }
  0xe3   :  { %v15324_v49 = vadd.f32 %v347_v21, %v346_v18  ;;  %v364_v12 = vadd.f32 %v363_v24, %v362_v4  ;;  %v380_v51 = vadd.f32 %v379_v60, %v378_v9  ;;  %v396_v7 = vadd.f32 %v395_v14, %v394_v50 }
  0xe4   :  { %v399_v31 = vsel %vm285_vm10, %v262_v8, 0.0  ;;  %v401_v16 = vsel %vm285_vm10, %v264_v30, 0.0  ;;  %v412_v32 = vsel %vm285_vm10, %v266_v34, 0.0  ;;  %v413_v43 = vsel %vm285_vm10, %v268_v10, 0.0 }
  0xe5   :  { %v15330_v11 = vadd.f32 %v365_v20, %v364_v12  ;;  %v382_v6 = vadd.f32 %v381_v47, %v380_v51  ;;  %v398_v48 = vadd.f32 %v397_v58, %v396_v7  ;;  %v414_v22 = vadd.f32 %v413_v43, %v412_v32 }
  0xe6   :  { %v415_v42 = vsel %vm285_vm10, %v270_v17, 0.0  ;;  %v417_v27 = vsel %vm285_vm10, %v272_v36, 0.0  ;;  %v419_v8 = vsel %vm285_vm10, %v274_v3, 0.0  ;;  %v568_v39 = vrot.slane %v15306_v37, 6 }
  0xe7   :  { %v15344_v30 = vadd.f32 %v383_v13, %v382_v6  ;;  %v400_v34 = vadd.f32 %v399_v31, %v398_v48  ;;  %v571_v10 = vrot.slane %v15312_v23, 6  ;;  %v416_v59 = vadd.f32 %v415_v42, %v414_v22 }
  0xe8   :  { %v574_v53 = vrot.slane %v15318_v41, 6  ;;  %v577_v17 = vrot.slane %v15324_v49, 6  ;;  %v580_v45 = vrot.slane %v15330_v11, 6  ;;  %v17288_v55 = vrot.slane %v15003_v25, 6 }
  0xe9   :  { %v15351_v35 = vadd.f32 %v401_v16, %v400_v34  ;;  %v17289_v3 = vrot.slane %v15009_v33, 6  ;;  %v583_v63 = vrot.slane %v15344_v30, 6  ;;  %v418_v5 = vadd.f32 %v417_v27, %v416_v59 }
  0xea   :  { %v569_v36 = vsel %vm566_vm0, %v17288_v55, %v568_v39  ;;  %v17290_v21 = vrot.slane %v15013_v62, 6  ;;  %v17291_v26 = vrot.slane %v15019_v2, 6  ;;  %v17292_v54 = vrot.slane %v15039_v52, 6 }
  0xeb   :  { %v572_v38 = vsel %vm566_vm0, %v17289_v3, %v571_v10  ;;  %v17293_v0 = vrot.slane %v15052_v57, 6  ;;  %v586_v56 = vrot.slane %v15351_v35, 6  ;;  %v599_v24 = vsel %vm421_vm2, %v569_v36, 0.0 }
  0xec   :  { %v575_v29 = vsel %vm566_vm0, %v17290_v21, %v574_v53  ;;  %v578_v28 = vsel %vm566_vm0, %v17291_v26, %v577_v17  ;;  %v581_v25 = vsel %vm566_vm0, %v17292_v54, %v580_v45  ;;  %v606_v62 = vsel %vm421_vm2, %v572_v38, 0.0 }
  0xed   :  { %v584_v33 = vsel %vm566_vm0, %v17293_v0, %v583_v63  ;;  %v15375_v19 = vadd.f32 %v419_v8, %v418_v5  ;;  %v600_v40 = vrot.slane %v599_v24, 4  ;;  %v607_v2 = vrot.slane %v606_v62, 4 }
  0xee   :  { %v613_v46 = vsel %vm421_vm2, %v575_v29, 0.0  ;;  %v17294_v52 = vrot.slane %v15062_v61, 6  ;;  %v620_v57 = vsel %vm421_vm2, %v578_v28, 0.0  ;;  %v627_v44 = vsel %vm421_vm2, %v581_v25, 0.0 }
  0xef   :  { %v614_v1 = vrot.slane %v613_v46, 4  ;;  %v589_v60 = vrot.slane %v15375_v19, 6  ;;  %v601_v18 = vadd.f32 %v600_v40, %v599_v24  ;;  %v608_v4 = vadd.f32 %v607_v2, %v606_v62 }
  0xf0   :  { %v587_v20 = vsel %vm566_vm0, %v17294_v52, %v586_v56  ;;  %v621_v9 = vrot.slane %v620_v57, 4  ;;  %v628_v13 = vrot.slane %v627_v44, 4  ;;  %v634_v50 = vsel %vm421_vm2, %v584_v33, 0.0 }
  0xf1   :  { %v615_v47 = vadd.f32 %v614_v1, %v613_v46  ;;  %v641_v14 = vsel %vm421_vm2, %v587_v20, 0.0  ;;  %v17295_v61 = vrot.slane %v15066_v15, 6  ;;  %v602_v51 = vrot.slane %v601_v18, 2 }
  0xf2   :  { %v609_v7 = vrot.slane %v608_v4, 2  ;;  %v622_v58 = vadd.f32 %v621_v9, %v620_v57  ;;  %v629_v16 = vadd.f32 %v628_v13, %v627_v44  ;;  %v635_v32 = vrot.slane %v634_v50, 4 }
  0xf3   :  { %v590_v12 = vsel %vm566_vm0, %v17295_v61, %v589_v60  ;;  %v616_v31 = vrot.slane %v615_v47, 2  ;;  %v642_v6 = vrot.slane %v641_v14, 4  ;;  %v603_v48 = vadd.f32 %v602_v51, %v601_v18 }
  0xf4   :  { %v610_v43 = vadd.f32 %v609_v7, %v608_v4  ;;  %v623_v22 = vrot.slane %v622_v58, 2  ;;  %v648_v42 = vsel %vm421_vm2, %v590_v12, 0.0  ;;  %v630_v8 = vrot.slane %v629_v16, 2 }
  0xf5   :  { %v617_v27 = vadd.f32 %v616_v31, %v615_v47  ;;  %v636_v34 = vadd.f32 %v635_v32, %v634_v50  ;;  %v643_v39 = vadd.f32 %v642_v6, %v641_v14  ;;  %v604_v10 = vrot.slane %v603_v48, 1 }
  0xf6   :  { %v611_v15 = vrot.slane %v610_v43, 1  ;;  %v624_v59 = vadd.f32 %v623_v22, %v622_v58  ;;  %v649_v53 = vrot.slane %v648_v42, 4  ;;  %v631_v45 = vadd.f32 %v630_v8, %v629_v16 }
  0xf7   :  { %v618_v17 = vrot.slane %v617_v27, 1  ;;  %v637_v55 = vrot.slane %v636_v34, 2  ;;  %v644_v36 = vrot.slane %v643_v39, 2  ;;  %v15390_v3 = vadd.f32 %v604_v10, %v603_v48 }
  0xf8   :  { %v15392_v38 = vadd.f32 %v611_v15, %v610_v43  ;;  %v625_v63 = vrot.slane %v624_v59, 1  ;;  %v650_v5 = vadd.f32 %v649_v53, %v648_v42  ;;  %v632_v29 = vrot.slane %v631_v45, 1 }
  0xf9   :  { %v15394_v21 = vadd.f32 %v618_v17, %v617_v27  ;;  %v638_v26 = vadd.f32 %v637_v55, %v636_v34  ;;  %v645_v28 = vadd.f32 %v644_v36, %v643_v39  ;;  %v655_v0 = vrot.slane %v15306_v37, 1 }
  0xfa   :  { %v15396_v54 = vadd.f32 %v625_v63, %v624_v59  ;;  %v651_v25 = vrot.slane %v650_v5, 2  ;;  %v656_v33 = vrot.slane %v15312_v23, 1  ;;  %v15400_v56 = vadd.f32 %v632_v29, %v631_v45 }
  0xfb   :  { %v639_v24 = vrot.slane %v638_v26, 1  ;;  %v646_v62 = vrot.slane %v645_v28, 1  ;;  %v657_v40 = vrot.slane %v15318_v41, 1  ;;  %v658_v46 = vrot.slane %v15324_v49, 1 }
  0xfc   :  { %v652_v2 = vadd.f32 %v651_v25, %v650_v5  ;;  %v659_v52 = vrot.slane %v15330_v11, 1  ;;  %v660_v20 = vrot.slane %v15344_v30, 1  ;;  %v661_v37 = vrot.slane %v15351_v35, 1 }
  0xfd   :  { %v15406_v1 = vadd.f32 %v639_v24, %v638_v26  ;;  %v15408_v57 = vadd.f32 %v646_v62, %v645_v28  ;;  %v662_v23 = vrot.slane %v15375_v19, 1  ;;  %v671_v60 = vsel %vm421_vm2, %v655_v0, 0.0 }
  0xfe   :  { %v653_v44 = vrot.slane %v652_v2, 1  ;;  %v678_v41 = vsel %vm421_vm2, %v656_v33, 0.0  ;;  %v685_v18 = vsel %vm421_vm2, %v657_v40, 0.0  ;;  %v672_v49 = vrot.slane %v671_v60, 4 }
  0xff   :  { %v679_v4 = vrot.slane %v678_v41, 4  ;;  %v686_v11 = vrot.slane %v685_v18, 4  ;;  %v692_v30 = vsel %vm421_vm2, %v658_v46, 0.0  ;;  %v699_v13 = vsel %vm421_vm2, %v659_v52, 0.0 }
 0x100   :  { %v15416_v9 = vadd.f32 %v653_v44, %v652_v2  ;;  %v693_v47 = vrot.slane %v692_v30, 4  ;;  %v706_v35 = vsel %vm421_vm2, %v660_v20, 0.0  ;;  %v673_v19 = vadd.f32 %v672_v49, %v671_v60 }
 0x101   :  { %v680_v50 = vadd.f32 %v679_v4, %v678_v41  ;;  %v687_v14 = vadd.f32 %v686_v11, %v685_v18  ;;  %v700_v61 = vrot.slane %v699_v13, 4  ;;  %v707_v51 = vrot.slane %v706_v35, 4 }
 0x102   :  { %v694_v12 = vadd.f32 %v693_v47, %v692_v30  ;;  %v713_v7 = vsel %vm421_vm2, %v661_v37, 0.0  ;;  %v720_v58 = vsel %vm421_vm2, %v662_v23, 0.0  ;;  %v674_v31 = vrot.slane %v673_v19, 2 }
 0x103   :  { %v681_v16 = vrot.slane %v680_v50, 2  ;;  %v688_v32 = vrot.slane %v687_v14, 2  ;;  %v701_v6 = vadd.f32 %v700_v61, %v699_v13  ;;  %v708_v43 = vadd.f32 %v707_v51, %v706_v35 }
 0x104   :  { %v695_v48 = vrot.slane %v694_v12, 2  ;;  %v714_v22 = vrot.slane %v713_v7, 4  ;;  %v721_v42 = vrot.slane %v720_v58, 4  ;;  %v675_v27 = vadd.f32 %v674_v31, %v673_v19 }
 0x105   :  { %v682_v8 = vadd.f32 %v681_v16, %v680_v50  ;;  %v689_v34 = vadd.f32 %v688_v32, %v687_v14  ;;  %v702_v39 = vrot.slane %v701_v6, 2  ;;  %v709_v15 = vrot.slane %v708_v43, 2 }
 0x106   :  { %v696_v10 = vadd.f32 %v695_v48, %v694_v12  ;;  %v715_v59 = vadd.f32 %v714_v22, %v713_v7  ;;  %v722_v53 = vadd.f32 %v721_v42, %v720_v58  ;;  %v676_v17 = vrot.slane %v675_v27, 1 }
 0x107   :  { %v683_v45 = vrot.slane %v682_v8, 1  ;;  %v690_v55 = vrot.slane %v689_v34, 1  ;;  %v703_v36 = vadd.f32 %v702_v39, %v701_v6  ;;  %v710_v5 = vadd.f32 %v709_v15, %v708_v43 }
 0x108   :  { %v697_v63 = vrot.slane %v696_v10, 1  ;;  %v716_v29 = vrot.slane %v715_v59, 2  ;;  %v723_v26 = vrot.slane %v722_v53, 2  ;;  %v677_v28 = vadd.f32 %v676_v17, %v675_v27 }
 0x109   :  { %v684_v25 = vadd.f32 %v683_v45, %v682_v8  ;;  %v691_v0 = vadd.f32 %v690_v55, %v689_v34  ;;  %v704_v33 = vrot.slane %v703_v36, 1  ;;  %v711_v62 = vrot.slane %v710_v5, 1  ;;  %v3379_v45 = vld [vmem:[#allocation8 + $0x20] sm:$0xff]  ;;  %v15439_v55 = vld [vmem:[#allocation8 + $0x8] sm:$0xff] }
 0x10a   :  { %v698_v24 = vadd.f32 %v697_v63, %v696_v10  ;;  %v717_v40 = vadd.f32 %v716_v29, %v715_v59  ;;  %v724_v2 = vadd.f32 %v723_v26, %v722_v53  ;;  %v2570_v52 = vpack.c.bf16 %v15390_v3, %v15390_v3  ;;  %v3375_v10 = vld [vmem:[#allocation8] sm:$0xff] }
 0x10b   :  { %v705_v46 = vadd.f32 %v704_v33, %v703_v36  ;;  %v2571_v20 = vpack.c.bf16 %v15392_v38, %v15392_v38  ;;  %v2572_v37 = vpack.c.bf16 %v15394_v21, %v15394_v21  ;;  %v712_v23 = vadd.f32 %v711_v62, %v710_v5  ;;  %v15441_v36 = vld [vmem:[#allocation8 + $0x28] sm:$0xff]  ;;  %v3387_v62 = vld [vmem:[#allocation8 + $0x60] sm:$0xff] }
 0x10c   :  { %v718_v44 = vrot.slane %v717_v40, 1  ;;  %v725_v60 = vrot.slane %v724_v2, 1  ;;  %v2573_v41 = vpack.c.bf16 %v15396_v54, %v15396_v54  ;;  %v2574_v18 = vpack.c.bf16 %v15400_v56, %v15400_v56 }
 0x10d   :  { %v2575_v49 = vpack.c.bf16 %v15406_v1, %v15406_v1  ;;  %v2576_v3 = vpack.c.bf16 %v15408_v57, %v15408_v57  ;;  %v2577_v38 = vpack.c.bf16 %v15416_v9, %v15416_v9  ;;  %v2578_v11 = vpack.c.bf16 %v677_v28, %v677_v28  ;;  %v3383_v28 = vld [vmem:[#allocation8 + $0x40] sm:$0xff] }
 0x10e   :  { %v719_v4 = vadd.f32 %v718_v44, %v717_v40  ;;  %v726_v21 = vadd.f32 %v725_v60, %v724_v2  ;;  %v2579_v30 = vpack.c.bf16 %v684_v25, %v684_v25  ;;  %v2580_v47 = vpack.c.bf16 %v691_v0, %v691_v0  ;;  %v15446_v40 = vld [vmem:[#allocation8 + $0x48] sm:$0xff] }
 0x10f   :  { %v2581_v13 = vpack.c.bf16 %v698_v24, %v698_v24  ;;  %v2582_v35 = vpack.c.bf16 %v705_v46, %v705_v46  ;;  %v2583_v54 = vpack.c.bf16 %v712_v23, %v712_v23  ;;  %v2834_v56 = vunpack.c.l.b16 %v2570_v52  ;;  %v15448_v2 = vld [vmem:[#allocation8 + $0x68] sm:$0xff]  ;;  %v15454_v23 = vld [vmem:[#allocation2 + $0x18] ss:$8 sps:$4 sm:$0xff]  }
 0x110   :  { %v2584_v19 = vpack.c.bf16 %v719_v4, %v719_v4  ;;  %v2585_v50 = vpack.c.bf16 %v726_v21, %v726_v21  ;;  %v2835_v14 = vunpack.c.l.b16 %v2571_v20  ;;  %v2836_v61 = vunpack.c.l.b16 %v2572_v37 }
 0x111   :  { %v2837_v1 = vunpack.c.l.b16 %v2573_v41  ;;  %v2838_v12 = vunpack.c.l.b16 %v2574_v18  ;;  %v2839_v51 = vunpack.c.l.b16 %v2575_v49  ;;  %v2840_v57 = vunpack.c.l.b16 %v2576_v3  ;;  %v15460_v49 = vld [vmem:[#allocation2 + $0x28] ss:$8 sps:$4 sm:$0xff]  }
 0x112   :  { %v2841_v7 = vunpack.c.l.b16 %v2577_v38  ;;  %v2842_v58 = vunpack.c.l.b16 %v2578_v11  ;;  %v2843_v9 = vunpack.c.l.b16 %v2579_v30  ;;  %v2844_v31 = vunpack.c.l.b16 %v2580_v47  ;;  %v15466_v11 = vld [vmem:[#allocation2 + $0x38] ss:$80 sps:$4 sm:$0xff]  }
 0x113   :  { %v2845_v16 = vunpack.c.l.b16 %v2581_v13  ;;  %v2846_v32 = vunpack.c.l.b16 %v2582_v35  ;;  %v2847_v6 = vunpack.c.l.b16 %v2583_v54  ;;  %v2848_v48 = vunpack.c.l.b16 %v2584_v19  ;;  %v15472_v35 = vld [vmem:[#allocation2 + $0x90] ss:$8 sps:$4 sm:$0xff]   ;;  %v15474_v54 = vld [vmem:[#allocation2 + $0xa0] ss:$8 sps:$4 sm:$0xff]  }
 0x114   :  { %v2849_v43 = vunpack.c.l.b16 %v2585_v50  ;;  %v2981_v22 = vrot.slane %v2835_v14, 7  ;;  %v2983_v42 = vrot.slane %v2836_v61, 6  ;;  %v2985_v27 = vrot.slane %v2837_v1, 5  ;;  %v15478_v14 = vld [vmem:[#allocation2 + $0xf8] ss:$8 sps:$4 sm:$0xff]  }
 0x115   :  { %v2987_v8 = vrot.slane %v2838_v12, 4  ;;  %v2989_v34 = vrot.slane %v2839_v51, 3  ;;  %v2991_v39 = vrot.slane %v2840_v57, 2  ;;  %v2993_v59 = vrot.slane %v2841_v7, 1  ;;  %v15480_v61 = vld [vmem:[#allocation2 + $0x108] ss:$8 sps:$4 sm:$0xff]  }
 0x116   :  { %v2982_v15 = vsel %vm2947_vm3, %v2981_v22, %v2834_v56  ;;  %v2995_v53 = vrot.slane %v2843_v9, 7  ;;  %v2997_v17 = vrot.slane %v2844_v31, 6  ;;  %v2999_v5 = vrot.slane %v2845_v16, 5  ;;  %v15485_v57 = vld [vmem:[#allocation2 + $0x118] ss:$80 sps:$4 sm:$0xff]  }
 0x117   :  { %v2984_v63 = vsel %vm2950_vm4, %v2983_v42, %v2982_v15  ;;  %v3001_v29 = vrot.slane %v2846_v32, 4  ;;  %v3003_v26 = vrot.slane %v2847_v6, 3  ;;  %v3005_v33 = vrot.slane %v2848_v48, 2  ;;  %v15487_v7 = vld [vmem:[#allocation2 + $0x170] ss:$8 sps:$4 sm:$0xff]  }
 0x118   :  { %v2986_v25 = vsel %vm2953_vm5, %v2985_v27, %v2984_v63  ;;  %v2996_v0 = vsel %vm2947_vm3, %v2995_v53, %v2842_v58  ;;  %v3007_v24 = vrot.slane %v2849_v43, 1  ;;  %v13034_v20 = vcombine.high %v3375_v10, %v3379_v45  ;;  %v15492_v32 = vld [vmem:[#allocation2 + $0x180] ss:$8 sps:$4 sm:$0xff]   ;;  %v15508_v15 = vld [vmem:[#allocation2 + $0x250] ss:$8 sps:$4 sm:$0xff]  }
 0x119   :  { %v2988_v46 = vsel %vm2956_vm6, %v2987_v8, %v2986_v25  ;;  %v2998_v52 = vsel %vm2950_vm4, %v2997_v17, %v2996_v0  ;;  %v13035_v37 = vcombine.low %v15439_v55, %v15441_v36  ;;  %v13036_v41 = vcombine.high %v15439_v55, %v15441_v36  ;;  %v15494_v6 = vld [vmem:[#allocation2 + $0x1d8] ss:$8 sps:$4 sm:$0xff]   ;;  %v15499_v42 = vld [vmem:[#allocation2 + $0x1e8] ss:$8 sps:$4 sm:$0xff]  }
 0x11a   :  { %v2990_v44 = vsel %vm2959_vm7, %v2989_v34, %v2988_v46  ;;  %v3000_v60 = vsel %vm2953_vm5, %v2999_v5, %v2998_v52  ;;  %v13033_v18 = vcombine.low %v3375_v10, %v3379_v45  ;;  %3759 = vmatprep.subr.bf16.mxu1 %v13034_v20  ;;  %v13042_v4 = vcombine.high %v3383_v28, %v3387_v62  ;;  %v15506_v10 = vld [vmem:[#allocation2 + $0x1f8] ss:$80 sps:$4 sm:$0xff]  }
 0x11b   :  { %v2992_v3 = vsel %vm2962_vm8, %v2991_v39, %v2990_v44  ;;  %v3002_v38 = vsel %vm2956_vm6, %v3001_v29, %v3000_v60  ;;  %v13043_v21 = vcombine.low %v15446_v40, %v15448_v2  ;;  %3800 = vmatprep.subr.bf16.mxu0 %v13036_v41  ;;  %v13044_v13 = vcombine.high %v15446_v40, %v15448_v2  ;;  %v15516_v36 = vld [vmem:[#allocation2 + $0x2b8] ss:$8 sps:$4 sm:$0xff]   ;;  %v15518_v63 = vld [vmem:[#allocation2 + $0x2c8] ss:$8 sps:$4 sm:$0xff]  }
 0x11c   :  { %v2994_v30 = vsel %vm2965_vm9, %v2993_v59, %v2992_v3  ;;  %v3004_v47 = vsel %vm2959_vm7, %v3003_v26, %v3002_v38  ;;  %3760 = vmatpush1.bf16.msra.mxu1 %v13033_v18  ;;  %v808_v19 = vunpack.c.l.bf16 %v15454_v23  ;;  %v13041_v56 = vcombine.low %v3383_v28, %v3387_v62  ;;  %v15510_v59 = vld [vmem:[#allocation2 + $0x260] ss:$8 sps:$4 sm:$0xff]   ;;  %v15526_v0 = vld [vmem:[#allocation2 + $0x330] ss:$8 sps:$4 sm:$0xff]  }
 0x11d   :  { %v3006_v50 = vsel %vm2962_vm8, %v3005_v33, %v3004_v47  ;;  %3761 = vmatprep.subr.bf16.mxu1 %v13042_v4  ;;  %v810_v1 = vunpack.c.h.bf16 %v15454_v23  ;;  %v812_v12 = vunpack.c.l.bf16 %v15460_v49  ;;  %v814_v58 = vunpack.c.h.bf16 %v15460_v49  ;;  %v15524_v25 = vld [vmem:[#allocation2 + $0x2d8] ss:$80 sps:$4 sm:$0xff]  }
 0x11e   :  { %v3008_v51 = vsel %vm2965_vm9, %v3007_v24, %v3006_v50  ;;  %v816_v9 = vunpack.c.l.bf16 %v15466_v11  ;;  %v818_v31 = vunpack.c.h.bf16 %v15466_v11  ;;  %v820_v48 = vunpack.c.l.bf16 %v15472_v35  ;;  %v15532_v52 = vld [vmem:[#allocation2 + $0x340] ss:$8 sps:$4 sm:$0xff]  }
 0x11f   :  { %v3178_v16 = vpack.c.b16 %v3008_v51, %v2994_v30  ;;  %v822_v43 = vunpack.c.h.bf16 %v15472_v35  ;;  %v824_v22 = vunpack.c.l.bf16 %v15474_v54  ;;  %v826_v27 = vunpack.c.h.bf16 %v15474_v54 }
 0x120   :  { %3762 = vmatpush1.bf16.msra.mxu1 %v13041_v56  ;;  %v828_v8 = vunpack.c.l.bf16 %v15478_v14  ;;  %v830_v34 = vunpack.c.h.bf16 %v15478_v14  ;;  %v832_v39 = vunpack.c.l.bf16 %v15480_v61  ;;  %v834_v53 = vunpack.c.h.bf16 %v15480_v61 }
 0x121   :  { %14222 = vmatmul.mubr.msk.bf16.vlgmr.msra.gmra.mrb[0].mxu0 %vm275_vm1, %v3178_v16  ;;  %v836_v17 = vunpack.c.l.bf16 %v15485_v57  ;;  %v838_v45 = vunpack.c.h.bf16 %v15485_v57  ;;  %v840_v55 = vunpack.c.l.bf16 %v15487_v7  ;;  %v842_v5 = vunpack.c.h.bf16 %v15487_v7 }
 0x122   :  { %3801 = vmatpush1.bf16.msra.mxu0 %v13035_v37  ;;  %v844_v29 = vunpack.c.l.bf16 %v15492_v32  ;;  %v846_v26 = vunpack.c.h.bf16 %v15492_v32  ;;  %v848_v28 = vunpack.c.l.bf16 %v15494_v6  ;;  %v850_v33 = vunpack.c.h.bf16 %v15494_v6 }
 0x123   :  { %3802 = vmatprep.subr.bf16.mxu0 %v13044_v13  ;;  %v852_v24 = vunpack.c.l.bf16 %v15499_v42  ;;  %v854_v62 = vunpack.c.h.bf16 %v15499_v42  ;;  %v856_v46 = vunpack.c.l.bf16 %v15506_v10  ;;  %v858_v20 = vunpack.c.h.bf16 %v15506_v10 }
 0x124   :  { %v860_v37 = vunpack.c.l.bf16 %v15508_v15  ;;  %v862_v44 = vunpack.c.h.bf16 %v15508_v15  ;;  %v864_v60 = vunpack.c.l.bf16 %v15510_v59  ;;  %v866_v41 = vunpack.c.h.bf16 %v15510_v59 }
 0x125   :  { %v868_v18 = vunpack.c.l.bf16 %v15516_v36  ;;  %v870_v49 = vunpack.c.h.bf16 %v15516_v36  ;;  %v872_v3 = vunpack.c.l.bf16 %v15518_v63  ;;  %v874_v38 = vunpack.c.h.bf16 %v15518_v63 }
 0x126   :  { %3803 = vmatpush1.bf16.msra.mxu0 %v13043_v21  ;;  %v876_v4 = vunpack.c.l.bf16 %v15524_v25  ;;  %v878_v11 = vunpack.c.h.bf16 %v15524_v25  ;;  %v880_v30 = vunpack.c.l.bf16 %v15526_v0  ;;  %v882_v47 = vunpack.c.h.bf16 %v15526_v0 }
 0x127   :  { %v884_v13 = vunpack.c.l.bf16 %v15532_v52  ;;  %v886_v35 = vunpack.c.h.bf16 %v15532_v52  ;;  %v888_v54 = vsel %vm275_vm1, %v808_v19, 0.0  ;;  %v889_v40 = vsel %vm275_vm1, %v810_v1, 0.0 }
 0x128   :  { %v891_v2 = vsel %vm275_vm1, %v812_v12, 0.0  ;;  %v893_v21 = vsel %vm275_vm1, %v814_v58, 0.0  ;;  %v895_v50 = vsel %vm275_vm1, %v816_v9, 0.0  ;;  %v890_v56 = vadd.f32 %v889_v40, %v888_v54 }
 0x129   :  { %v906_v14 = vsel %vm275_vm1, %v818_v31, 0.0  ;;  %v907_v61 = vsel %vm275_vm1, %v820_v48, 0.0  ;;  %v909_v51 = vsel %vm275_vm1, %v822_v43, 0.0  ;;  %v911_v23 = vsel %vm275_vm1, %v824_v22, 0.0 }
 0x12a   :  { %v908_v57 = vadd.f32 %v907_v61, %v906_v14  ;;  %v913_v19 = vsel %vm275_vm1, %v826_v27, 0.0  ;;  %v924_v1 = vsel %vm275_vm1, %v828_v8, 0.0  ;;  %v892_v7 = vadd.f32 %v891_v2, %v890_v56 }
 0x12b   :  { %v925_v12 = vsel %vm275_vm1, %v830_v34, 0.0  ;;  %v927_v58 = vsel %vm275_vm1, %v832_v39, 0.0  ;;  %v929_v9 = vsel %vm275_vm1, %v834_v53, 0.0  ;;  %v931_v32 = vsel %vm275_vm1, %v836_v17, 0.0 }
 0x12c   :  { %v910_v16 = vadd.f32 %v909_v51, %v908_v57  ;;  %v926_v31 = vadd.f32 %v925_v12, %v924_v1  ;;  %v942_v6 = vsel %vm275_vm1, %v838_v45, 0.0  ;;  %v894_v48 = vadd.f32 %v893_v21, %v892_v7 }
 0x12d   :  { %v943_v43 = vsel %vm275_vm1, %v840_v55, 0.0  ;;  %v945_v22 = vsel %vm275_vm1, %v842_v5, 0.0  ;;  %v947_v42 = vsel %vm275_vm1, %v844_v29, 0.0  ;;  %v949_v39 = vsel %vm275_vm1, %v846_v26, 0.0 }
 0x12e   :  { %v912_v27 = vadd.f32 %v911_v23, %v910_v16  ;;  %v928_v8 = vadd.f32 %v927_v58, %v926_v31  ;;  %v944_v34 = vadd.f32 %v943_v43, %v942_v6  ;;  %v15574_v10 = vadd.f32 %v895_v50, %v894_v48 }
 0x12f   :  { %v960_v15 = vsel %vm275_vm1, %v848_v28, 0.0  ;;  %v961_v59 = vsel %vm275_vm1, %v850_v33, 0.0  ;;  %v963_v53 = vsel %vm275_vm1, %v852_v24, 0.0  ;;  %v965_v5 = vsel %vm275_vm1, %v854_v62, 0.0 }
 0x130   :  { %v15579_v17 = vadd.f32 %v913_v19, %v912_v27  ;;  %v930_v45 = vadd.f32 %v929_v9, %v928_v8  ;;  %v946_v55 = vadd.f32 %v945_v22, %v944_v34  ;;  %v962_v36 = vadd.f32 %v961_v59, %v960_v15 }
 0x131   :  { %v967_v29 = vsel %vm275_vm1, %v856_v46, 0.0  ;;  %v978_v54 = vsel %vm275_vm1, %v858_v20, 0.0  ;;  %v979_v26 = vsel %vm275_vm1, %v860_v37, 0.0  ;;  %v981_v24 = vsel %vm275_vm1, %v862_v44, 0.0 }
 0x132   :  { %v15585_v40 = vadd.f32 %v931_v32, %v930_v45  ;;  %v948_v28 = vadd.f32 %v947_v42, %v946_v55  ;;  %v964_v2 = vadd.f32 %v963_v53, %v962_v36  ;;  %v980_v33 = vadd.f32 %v979_v26, %v978_v54 }
 0x133   :  { %v983_v21 = vsel %vm275_vm1, %v864_v60, 0.0  ;;  %v985_v50 = vsel %vm275_vm1, %v866_v41, 0.0  ;;  %v996_v56 = vsel %vm275_vm1, %v868_v18, 0.0  ;;  %v997_v20 = vsel %vm275_vm1, %v870_v49, 0.0 }
 0x134   :  { %v15591_v62 = vadd.f32 %v949_v39, %v948_v28  ;;  %v966_v46 = vadd.f32 %v965_v5, %v964_v2  ;;  %v982_v14 = vadd.f32 %v981_v24, %v980_v33  ;;  %v998_v37 = vadd.f32 %v997_v20, %v996_v56 }
 0x135   :  { %v999_v61 = vsel %vm275_vm1, %v872_v3, 0.0  ;;  %v1001_v51 = vsel %vm275_vm1, %v874_v38, 0.0  ;;  %v1003_v44 = vsel %vm275_vm1, %v876_v4, 0.0  ;;  %v1014_v18 = vsel %vm275_vm1, %v878_v11, 0.0 }
 0x136   :  { %v15599_v60 = vadd.f32 %v967_v29, %v966_v46  ;;  %v984_v41 = vadd.f32 %v983_v21, %v982_v14  ;;  %v1015_v49 = vsel %vm275_vm1, %v880_v30, 0.0  ;;  %v1000_v57 = vadd.f32 %v999_v61, %v998_v37 }
 0x137   :  { %v1016_v23 = vadd.f32 %v1015_v49, %v1014_v18  ;;  %v1017_v63 = vsel %vm275_vm1, %v882_v47, 0.0  ;;  %v1019_v3 = vsel %vm275_vm1, %v884_v13, 0.0  ;;  %v1021_v25 = vsel %vm275_vm1, %v886_v35, 0.0 }
 0x138   :  { %v15613_v38 = vadd.f32 %v985_v50, %v984_v41  ;;  %v1032_v4 = vsel %vm421_vm2, %v15574_v10, 0.0  ;;  %v1039_v11 = vsel %vm421_vm2, %v15579_v17, 0.0  ;;  %v1002_v30 = vadd.f32 %v1001_v51, %v1000_v57 }
 0x139   :  { %v1018_v0 = vadd.f32 %v1017_v63, %v1016_v23  ;;  %v1033_v19 = vrot.slane %v1032_v4, 4  ;;  %v1040_v47 = vrot.slane %v1039_v11, 4  ;;  %v1046_v1 = vsel %vm421_vm2, %v15585_v40, 0.0 }
 0x13a   :  { %v1053_v13 = vsel %vm421_vm2, %v15591_v62, 0.0  ;;  %v1060_v52 = vsel %vm421_vm2, %v15599_v60, 0.0  ;;  %v1067_v35 = vsel %vm421_vm2, %v15613_v38, 0.0  ;;  %v15630_v7 = vadd.f32 %v1003_v44, %v1002_v30 }
 0x13b   :  { %v1020_v12 = vadd.f32 %v1019_v3, %v1018_v0  ;;  %v1034_v58 = vadd.f32 %v1033_v19, %v1032_v4  ;;  %v1041_v9 = vadd.f32 %v1040_v47, %v1039_v11  ;;  %v1047_v16 = vrot.slane %v1046_v1, 4 }
 0x13c   :  { %v1054_v31 = vrot.slane %v1053_v13, 4  ;;  %v1061_v32 = vrot.slane %v1060_v52, 4  ;;  %v1068_v6 = vrot.slane %v1067_v35, 4  ;;  %v1074_v42 = vsel %vm421_vm2, %v15630_v7, 0.0 }
 0x13d   :  { %v15632_v48 = vadd.f32 %v1021_v25, %v1020_v12  ;;  %v1035_v43 = vrot.slane %v1034_v58, 2  ;;  %v1042_v22 = vrot.slane %v1041_v9, 2  ;;  %v1048_v27 = vadd.f32 %v1047_v16, %v1046_v1 }
 0x13e   :  { %v1055_v8 = vadd.f32 %v1054_v31, %v1053_v13  ;;  %v1062_v34 = vadd.f32 %v1061_v32, %v1060_v52  ;;  %v1069_v39 = vadd.f32 %v1068_v6, %v1067_v35  ;;  %v1075_v53 = vrot.slane %v1074_v42, 4 }
 0x13f   :  { %v1036_v15 = vadd.f32 %v1035_v43, %v1034_v58  ;;  %v1043_v59 = vadd.f32 %v1042_v22, %v1041_v9  ;;  %v1081_v45 = vsel %vm421_vm2, %v15632_v48, 0.0  ;;  %v1049_v55 = vrot.slane %v1048_v27, 2 }
 0x140   :  { %v1056_v36 = vrot.slane %v1055_v8, 2  ;;  %v1063_v5 = vrot.slane %v1062_v34, 2  ;;  %v1070_v29 = vrot.slane %v1069_v39, 2  ;;  %v1076_v28 = vadd.f32 %v1075_v53, %v1074_v42 }
 0x141   :  { %v1037_v54 = vrot.slane %v1036_v15, 1  ;;  %v1044_v26 = vrot.slane %v1043_v59, 1  ;;  %v1082_v2 = vrot.slane %v1081_v45, 4  ;;  %v1050_v33 = vadd.f32 %v1049_v55, %v1048_v27 }
 0x142   :  { %v1057_v24 = vadd.f32 %v1056_v36, %v1055_v8  ;;  %v1064_v21 = vadd.f32 %v1063_v5, %v1062_v34  ;;  %v1071_v50 = vadd.f32 %v1070_v29, %v1069_v39  ;;  %v1077_v14 = vrot.slane %v1076_v28, 2 }
 0x143   :  { %v15638_v56 = vadd.f32 %v1037_v54, %v1036_v15  ;;  %v15640_v46 = vadd.f32 %v1044_v26, %v1043_v59  ;;  %v1083_v20 = vadd.f32 %v1082_v2, %v1081_v45  ;;  %v1051_v37 = vrot.slane %v1050_v33, 1 }
 0x144   :  { %v1058_v61 = vrot.slane %v1057_v24, 1  ;;  %v1065_v51 = vrot.slane %v1064_v21, 1  ;;  %v1072_v44 = vrot.slane %v1071_v50, 1  ;;  %v1078_v41 = vadd.f32 %v1077_v14, %v1076_v28 }
 0x145   :  { %v1084_v18 = vrot.slane %v1083_v20, 2  ;;  %v1096_v49 = vrot.slane %v15574_v10, 3  ;;  %v1097_v57 = vrot.slane %v15579_v17, 3  ;;  %v15644_v23 = vadd.f32 %v1051_v37, %v1050_v33 }
 0x146   :  { %v15646_v63 = vadd.f32 %v1058_v61, %v1057_v24  ;;  %v15648_v3 = vadd.f32 %v1065_v51, %v1064_v21  ;;  %v15650_v25 = vadd.f32 %v1072_v44, %v1071_v50  ;;  %v1079_v4 = vrot.slane %v1078_v41, 1 }
 0x147   :  { %v1085_v11 = vadd.f32 %v1084_v18, %v1083_v20  ;;  %v1098_v30 = vrot.slane %v15585_v40, 3  ;;  %v1099_v0 = vrot.slane %v15591_v62, 3  ;;  %v1100_v19 = vrot.slane %v15599_v60, 3 }
 0x148   :  { %v1101_v47 = vrot.slane %v15613_v38, 3  ;;  %v1102_v1 = vrot.slane %v15630_v7, 3  ;;  %v1103_v13 = vrot.slane %v15632_v48, 3  ;;  %v15658_v52 = vadd.f32 %v1079_v4, %v1078_v41 }
 0x149   :  { %v1086_v35 = vrot.slane %v1085_v11, 1  ;;  %v1112_v12 = vsel %vm421_vm2, %v1096_v49, 0.0  ;;  %v1119_v58 = vsel %vm421_vm2, %v1097_v57, 0.0  ;;  %v1126_v31 = vsel %vm421_vm2, %v1098_v30, 0.0 }
 0x14a   :  { %v1113_v9 = vrot.slane %v1112_v12, 4  ;;  %v1120_v16 = vrot.slane %v1119_v58, 4  ;;  %v1133_v32 = vsel %vm421_vm2, %v1099_v0, 0.0  ;;  %v1127_v43 = vrot.slane %v1126_v31, 4 }
 0x14b   :  { %v15664_v6 = vadd.f32 %v1086_v35, %v1085_v11  ;;  %v1134_v22 = vrot.slane %v1133_v32, 4  ;;  %v1140_v42 = vsel %vm421_vm2, %v1100_v19, 0.0  ;;  %v1147_v39 = vsel %vm421_vm2, %v1101_v47, 0.0 }
 0x14c   :  { %v1114_v27 = vadd.f32 %v1113_v9, %v1112_v12  ;;  %v1121_v8 = vadd.f32 %v1120_v16, %v1119_v58  ;;  %v1141_v34 = vrot.slane %v1140_v42, 4  ;;  %v1128_v15 = vadd.f32 %v1127_v43, %v1126_v31 }
 0x14d   :  { %v1135_v59 = vadd.f32 %v1134_v22, %v1133_v32  ;;  %v1148_v53 = vrot.slane %v1147_v39, 4  ;;  %v1154_v45 = vsel %vm421_vm2, %v1102_v1, 0.0  ;;  %v1161_v2 = vsel %vm421_vm2, %v1103_v13, 0.0 }
 0x14e   :  { %v1115_v55 = vrot.slane %v1114_v27, 2  ;;  %v1122_v36 = vrot.slane %v1121_v8, 2  ;;  %v1142_v5 = vadd.f32 %v1141_v34, %v1140_v42  ;;  %v1155_v29 = vrot.slane %v1154_v45, 4 }
 0x14f   :  { %v1129_v54 = vrot.slane %v1128_v15, 2  ;;  %v1136_v26 = vrot.slane %v1135_v59, 2  ;;  %v1149_v28 = vadd.f32 %v1148_v53, %v1147_v39  ;;  %v1162_v61 = vrot.slane %v1161_v2, 4 }
 0x150   :  { %v1116_v33 = vadd.f32 %v1115_v55, %v1114_v27  ;;  %v1123_v24 = vadd.f32 %v1122_v36, %v1121_v8  ;;  %v1143_v21 = vrot.slane %v1142_v5, 2  ;;  %v1156_v50 = vadd.f32 %v1155_v29, %v1154_v45 }
 0x151   :  { %v1130_v14 = vadd.f32 %v1129_v54, %v1128_v15  ;;  %v1137_v20 = vadd.f32 %v1136_v26, %v1135_v59  ;;  %v1150_v37 = vrot.slane %v1149_v28, 2  ;;  %v1163_v11 = vadd.f32 %v1162_v61, %v1161_v2 }
 0x152   :  { %v1117_v51 = vrot.slane %v1116_v33, 1  ;;  %v1124_v44 = vrot.slane %v1123_v24, 1  ;;  %v1144_v41 = vadd.f32 %v1143_v21, %v1142_v5  ;;  %v1157_v18 = vrot.slane %v1156_v50, 2 }
 0x153   :  { %v1131_v49 = vrot.slane %v1130_v14, 1  ;;  %v1138_v57 = vrot.slane %v1137_v20, 1  ;;  %v1151_v4 = vadd.f32 %v1150_v37, %v1149_v28  ;;  %v1164_v12 = vrot.slane %v1163_v11, 2 }
 0x154   :  { %v1118_v30 = vadd.f32 %v1117_v51, %v1116_v33  ;;  %v1125_v0 = vadd.f32 %v1124_v44, %v1123_v24  ;;  %v1145_v19 = vrot.slane %v1144_v41, 1  ;;  %v1158_v47 = vadd.f32 %v1157_v18, %v1156_v50  ;;  %v15688_v51 = vld [vmem:[#allocation2 + $0x1c] sm:$0x7] }
 0x155   :  { %v1132_v1 = vadd.f32 %v1131_v49, %v1130_v14  ;;  %v1139_v13 = vadd.f32 %v1138_v57, %v1137_v20  ;;  %v1152_v35 = vrot.slane %v1151_v4, 1  ;;  %v2586_v16 = vpack.c.bf16 %v15638_v56, %v15638_v56  ;;  %v15690_v57 = vld [vmem:[#allocation2 + $0x24] sm:$0x7] }
 0x156   :  { %v1146_v58 = vadd.f32 %v1145_v19, %v1144_v41  ;;  %v1159_v9 = vrot.slane %v1158_v47, 1  ;;  %v2587_v31 = vpack.c.bf16 %v15640_v46, %v15640_v46  ;;  %v1165_v43 = vadd.f32 %v1164_v12, %v1163_v11 }
 0x157   :  { %v1153_v32 = vadd.f32 %v1152_v35, %v1151_v4  ;;  %v2588_v22 = vpack.c.bf16 %v15644_v23, %v15644_v23  ;;  %v2589_v42 = vpack.c.bf16 %v15646_v63, %v15646_v63  ;;  %v2590_v8 = vpack.c.bf16 %v15648_v3, %v15648_v3  ;;  %v15692_v4 = vld [vmem:[#allocation2 + $0x2c] sm:$0x7] }
 0x158   :  { %v1160_v27 = vadd.f32 %v1159_v9, %v1158_v47  ;;  %v2591_v34 = vpack.c.bf16 %v15650_v25, %v15650_v25  ;;  %v2592_v56 = vpack.c.bf16 %v15658_v52, %v15658_v52  ;;  %v1166_v39 = vrot.slane %v1165_v43, 1  ;;  %v15695_v47 = vld [vmem:[#allocation2 + $0x34] sm:$0x7]  ;;  %v15700_v9 = vld [vmem:[#allocation2 + $0x8c] sm:$0x7] }
 0x159   :  { %v2593_v46 = vpack.c.bf16 %v15664_v6, %v15664_v6  ;;  %v2594_v15 = vpack.c.bf16 %v1118_v30, %v1118_v30  ;;  %v2595_v59 = vpack.c.bf16 %v1125_v0, %v1125_v0  ;;  %v2596_v23 = vpack.c.bf16 %v1132_v1, %v1132_v1  ;;  %v15697_v1 = vld [vmem:[#allocation2 + $0x3c] sm:$0x7] }
 0x15a   :  { %v2597_v53 = vpack.c.bf16 %v1139_v13, %v1139_v13  ;;  %v2598_v45 = vpack.c.bf16 %v1146_v58, %v1146_v58  ;;  %v2599_v63 = vpack.c.bf16 %v1153_v32, %v1153_v32  ;;  %v1167_v55 = vadd.f32 %v1166_v39, %v1165_v43 }
 0x15b   :  { %v2600_v36 = vpack.c.bf16 %v1160_v27, %v1160_v27  ;;  %v2850_v5 = vunpack.c.l.b16 %v2586_v16  ;;  %v2851_v3 = vunpack.c.l.b16 %v2587_v31  ;;  %v2852_v29 = vunpack.c.l.b16 %v2588_v22  ;;  %v15702_v16 = vld [vmem:[#allocation2 + $0x94] sm:$0x7]  ;;  %v15708_v27 = vld [vmem:[#allocation2 + $0xa4] sm:$0x7] }
 0x15c   :  { %v2853_v54 = vunpack.c.l.b16 %v2589_v42  ;;  %v2854_v25 = vunpack.c.l.b16 %v2590_v8  ;;  %v2855_v26 = vunpack.c.l.b16 %v2591_v34  ;;  %v2601_v28 = vpack.c.bf16 %v1167_v55, %v1167_v55  ;;  %v15706_v42 = vld [vmem:[#allocation2 + $0x9c] sm:$0x7]  ;;  %v15710_v8 = vld [vmem:[#allocation2 + $0xac] sm:$0x7] }
 0x15d   :  { %v2856_v52 = vunpack.c.l.b16 %v2592_v56  ;;  %v2857_v2 = vunpack.c.l.b16 %v2593_v46  ;;  %v2858_v33 = vunpack.c.l.b16 %v2594_v15  ;;  %v2859_v24 = vunpack.c.l.b16 %v2595_v59  ;;  %v15715_v46 = vld [vmem:[#allocation2 + $0xfc] sm:$0x7]  ;;  %v15717_v15 = vld [vmem:[#allocation2 + $0x104] sm:$0x7]  ;;  %v15719_v59 = vld [vmem:[#allocation2 + $0x10c] sm:$0x7] }
 0x15e   :  { %v2860_v6 = vunpack.c.l.b16 %v2596_v23  ;;  %v2861_v21 = vunpack.c.l.b16 %v2597_v53  ;;  %v2862_v50 = vunpack.c.l.b16 %v2598_v45  ;;  %v2863_v14 = vunpack.c.l.b16 %v2599_v63  ;;  %v15724_v63 = vld [vmem:[#allocation2 + $0x114] sm:$0x7]  ;;  %v15726_v55 = vld [vmem:[#allocation2 + $0x11c] sm:$0x7] }
 0x15f   :  { %v2864_v20 = vunpack.c.l.b16 %v2600_v36  ;;  %v15686_v37 = vunpack.c.l.b16 %v2601_v28  ;;  %v3009_v61 = vrot.slane %v2851_v3, 7  ;;  %v3011_v44 = vrot.slane %v2852_v29, 6  ;;  %v15728_v36 = vld [vmem:[#allocation2 + $0x16c] sm:$0x7]  ;;  %v15738_v28 = vld [vmem:[#allocation2 + $0x184] sm:$0x7] }
 0x160   :  { %v3013_v41 = vrot.slane %v2853_v54, 5  ;;  %v3015_v18 = vrot.slane %v2854_v25, 4  ;;  %v3017_v49 = vrot.slane %v2855_v26, 3  ;;  %v3019_v30 = vrot.slane %v2856_v52, 2  ;;  %v15734_v25 = vld [vmem:[#allocation2 + $0x174] sm:$0x7] }
 0x161   :  { %v3010_v11 = vsel %vm2947_vm3, %v3009_v61, %v2850_v5  ;;  %v3021_v0 = vrot.slane %v2857_v2, 1  ;;  %v3023_v19 = vrot.slane %v2859_v24, 7  ;;  %v3025_v35 = vrot.slane %v2860_v6, 6  ;;  %v15736_v26 = vld [vmem:[#allocation2 + $0x17c] sm:$0x7] }
 0x162   :  { %v3012_v13 = vsel %vm2950_vm4, %v3011_v44, %v3010_v11  ;;  %v3027_v12 = vrot.slane %v2861_v21, 5  ;;  %v3029_v58 = vrot.slane %v2862_v50, 4  ;;  %v3031_v43 = vrot.slane %v2863_v14, 3  ;;  %v15744_v6 = vld [vmem:[#allocation2 + $0x18c] sm:$0x7] }
 0x163   :  { %v3014_v31 = vsel %vm2953_vm5, %v3013_v41, %v3012_v13  ;;  %v3024_v32 = vsel %vm2947_vm3, %v3023_v19, %v2858_v33  ;;  %v3033_v22 = vrot.slane %v2864_v20, 2  ;;  %v3035_v39 = vrot.slane %v15686_v37, 1  ;;  %v15746_v21 = vld [vmem:[#allocation2 + $0x1dc] sm:$0x7]  ;;  %v15748_v50 = vld [vmem:[#allocation2 + $0x1e4] sm:$0x7] }
 0x164   :  { %v3016_v34 = vsel %vm2956_vm6, %v3015_v18, %v3014_v31  ;;  %v3026_v56 = vsel %vm2950_vm4, %v3025_v35, %v3024_v32  ;;  %v809_v23 = vunpack.c.l.bf16 %v15688_v51  ;;  %v811_v5 = vunpack.c.l.bf16 %v15690_v57  ;;  %v15753_v61 = vld [vmem:[#allocation2 + $0x1ec] sm:$0x7]  ;;  %v15755_v44 = vld [vmem:[#allocation2 + $0x1f4] sm:$0x7]  ;;  %v15757_v41 = vld [vmem:[#allocation2 + $0x1fc] sm:$0x7] }
 0x165   :  { %v3018_v53 = vsel %vm2959_vm7, %v3017_v49, %v3016_v34  ;;  %v3028_v45 = vsel %vm2953_vm5, %v3027_v12, %v3026_v56  ;;  %v813_v3 = vunpack.c.l.bf16 %v15692_v4  ;;  %v815_v52 = vunpack.c.l.bf16 %v15695_v47  ;;  %v15765_v19 = vld [vmem:[#allocation2 + $0x254] sm:$0x7]  ;;  %v15767_v13 = vld [vmem:[#allocation2 + $0x25c] sm:$0x7]  ;;  %v15772_v32 = vld [vmem:[#allocation2 + $0x264] sm:$0x7] }
 0x166   :  { %v3020_v29 = vsel %vm2962_vm8, %v3019_v30, %v3018_v53  ;;  %v3030_v54 = vsel %vm2956_vm6, %v3029_v58, %v3028_v45  ;;  %v817_v2 = vunpack.c.l.bf16 %v15697_v1  ;;  %v819_v14 = vunpack.c.l.bf16 %v15700_v9  ;;  %v15781_v34 = vld [vmem:[#allocation2 + $0x2c4] sm:$0x7]  ;;  %v15783_v56 = vld [vmem:[#allocation2 + $0x2cc] sm:$0x7]  ;;  %v15792_v45 = vld [vmem:[#allocation2 + $0x2dc] sm:$0x7] }
 0x167   :  { %v3022_v33 = vsel %vm2965_vm9, %v3021_v0, %v3020_v29  ;;  %v3032_v24 = vsel %vm2959_vm7, %v3031_v43, %v3030_v54  ;;  %v823_v18 = vunpack.c.l.bf16 %v15706_v42  ;;  %v825_v49 = vunpack.c.l.bf16 %v15708_v27  ;;  %v15763_v0 = vld [vmem:[#allocation2 + $0x24c] sm:$0x7] }
 0x168   :  { %v3034_v37 = vsel %vm2962_vm8, %v3033_v22, %v3032_v24  ;;  %v827_v11 = vunpack.c.l.bf16 %v15710_v8  ;;  %v829_v35 = vunpack.c.l.bf16 %v15715_v46  ;;  %v831_v12 = vunpack.c.l.bf16 %v15717_v15  ;;  %v15774_v43 = vld [vmem:[#allocation2 + $0x26c] sm:$0x7]  ;;  %v15776_v22 = vld [vmem:[#allocation2 + $0x2bc] sm:$0x7] }
 0x169   :  { %v3036_v30 = vsel %vm2965_vm9, %v3035_v39, %v3034_v37  ;;  %v833_v58 = vunpack.c.l.bf16 %v15719_v59  ;;  %v835_v42 = vunpack.c.l.bf16 %v15724_v63  ;;  %v837_v27 = vunpack.c.l.bf16 %v15726_v55  ;;  %v15785_v39 = vld [vmem:[#allocation2 + $0x2d4] sm:$0x7]  ;;  %v15794_v63 = vld [vmem:[#allocation2 + $0x32c] sm:$0x7] }
 0x16a   :  { %v3179_v31 = vpack.c.b16 %v3036_v30, %v3022_v33  ;;  %v839_v8 = vunpack.c.l.bf16 %v15728_v36  ;;  %v841_v46 = vunpack.c.l.bf16 %v15734_v25  ;;  %v843_v15 = vunpack.c.l.bf16 %v15736_v26  ;;  %v15796_v55 = vld [vmem:[#allocation2 + $0x334] sm:$0x7]  ;;  %v15802_v26 = vld [vmem:[#allocation2 + $0x33c] sm:$0x7]  ;;  %v15806_v33 = vld [vmem:[#allocation2 + $0x34c] sm:$0x7] }
 0x16b   :  { %v845_v59 = vunpack.c.l.bf16 %v15738_v28  ;;  %v847_v53 = vunpack.c.l.bf16 %v15744_v6  ;;  %v849_v36 = vunpack.c.l.bf16 %v15746_v21  ;;  %v851_v29 = vunpack.c.l.bf16 %v15748_v50  ;;  %v15804_v28 = vld [vmem:[#allocation2 + $0x344] sm:$0x7] }
 0x16c   :  { %14225 = vmatprep.mubr.msk.bf16.mxu0 %vm275_vm1, %v3179_v31  ;;  %v853_v54 = vunpack.c.l.bf16 %v15753_v61  ;;  %v855_v25 = vunpack.c.l.bf16 %v15755_v44  ;;  %v857_v24 = vunpack.c.l.bf16 %v15757_v41  ;;  %v859_v6 = vunpack.c.l.bf16 %v15763_v0 }
 0x16d   :  { %v861_v37 = vunpack.c.l.bf16 %v15765_v19  ;;  %v863_v21 = vunpack.c.l.bf16 %v15767_v13  ;;  %v865_v50 = vunpack.c.l.bf16 %v15772_v32  ;;  %v867_v61 = vunpack.c.l.bf16 %v15774_v43 }
 0x16e   :  { %v869_v44 = vunpack.c.l.bf16 %v15776_v22  ;;  %v871_v30 = vunpack.c.l.bf16 %v15781_v34  ;;  %v873_v31 = vunpack.c.l.bf16 %v15783_v56  ;;  %v875_v20 = vunpack.c.l.bf16 %v15785_v39 }
 0x16f   :  { %v877_v41 = vunpack.c.l.bf16 %v15792_v45  ;;  %v879_v0 = vunpack.c.l.bf16 %v15794_v63  ;;  %v881_v19 = vunpack.c.l.bf16 %v15796_v55  ;;  %v885_v32 = vunpack.c.l.bf16 %v15804_v28 }
 0x170   :  { %v897_v22 = vsel %vm285_vm10, %v809_v23, 0.0  ;;  %v898_v34 = vsel %vm285_vm10, %v811_v5, 0.0  ;;  %v900_v56 = vsel %vm285_vm10, %v813_v3, 0.0  ;;  %v902_v39 = vsel %vm285_vm10, %v815_v52, 0.0 }
 0x171   :  { %v899_v13 = vadd.f32 %v898_v34, %v897_v22  ;;  %v904_v43 = vsel %vm285_vm10, %v817_v2, 0.0  ;;  %v915_v51 = vsel %vm285_vm10, %v819_v14, 0.0  ;;  %v17296_v57 = vunpack.c.l.bf16 %v15702_v16 }
 0x172   :  { %v918_v5 = vsel %vm285_vm10, %v823_v18, 0.0  ;;  %v920_v47 = vsel %vm285_vm10, %v825_v49, 0.0  ;;  %v922_v3 = vsel %vm285_vm10, %v827_v11, 0.0  ;;  %v933_v1 = vsel %vm285_vm10, %v829_v35, 0.0 }
 0x173   :  { %v916_v23 = vsel %vm285_vm10, %v17296_v57, 0.0  ;;  %v901_v52 = vadd.f32 %v900_v56, %v899_v13  ;;  %v934_v2 = vsel %vm285_vm10, %v831_v12, 0.0  ;;  %v936_v9 = vsel %vm285_vm10, %v833_v58, 0.0 }
 0x174   :  { %v917_v4 = vadd.f32 %v916_v23, %v915_v51  ;;  %v935_v14 = vadd.f32 %v934_v2, %v933_v1  ;;  %v938_v16 = vsel %vm285_vm10, %v835_v42, 0.0  ;;  %v940_v34 = vsel %vm285_vm10, %v837_v27, 0.0 }
 0x175   :  { %v903_v51 = vadd.f32 %v902_v39, %v901_v52  ;;  %v951_v18 = vsel %vm285_vm10, %v839_v8, 0.0  ;;  %v952_v49 = vsel %vm285_vm10, %v841_v46, 0.0  ;;  %v954_v11 = vsel %vm285_vm10, %v843_v15, 0.0 }
 0x176   :  { %v919_v22 = vadd.f32 %v918_v5, %v917_v4  ;;  %v937_v56 = vadd.f32 %v936_v9, %v935_v14  ;;  %v953_v35 = vadd.f32 %v952_v49, %v951_v18  ;;  %v956_v12 = vsel %vm285_vm10, %v845_v59, 0.0 }
 0x177   :  { %v15857_v57 = vadd.f32 %v904_v43, %v903_v51  ;;  %v958_v58 = vsel %vm285_vm10, %v847_v53, 0.0  ;;  %v969_v42 = vsel %vm285_vm10, %v849_v36, 0.0  ;;  %v970_v27 = vsel %vm285_vm10, %v851_v29, 0.0 }
 0x178   :  { %v921_v13 = vadd.f32 %v920_v47, %v919_v22  ;;  %v939_v8 = vadd.f32 %v938_v16, %v937_v56  ;;  %v955_v23 = vadd.f32 %v954_v11, %v953_v35  ;;  %v971_v46 = vadd.f32 %v970_v27, %v969_v42 }
 0x179   :  { %v972_v15 = vsel %vm285_vm10, %v853_v54, 0.0  ;;  %v974_v4 = vsel %vm285_vm10, %v855_v25, 0.0  ;;  %v976_v5 = vsel %vm285_vm10, %v857_v24, 0.0  ;;  %v987_v59 = vsel %vm285_vm10, %v859_v6, 0.0 }
 0x17a   :  { %v15862_v39 = vadd.f32 %v922_v3, %v921_v13  ;;  %v15868_v43 = vadd.f32 %v940_v34, %v939_v8  ;;  %v957_v53 = vadd.f32 %v956_v12, %v955_v23  ;;  %v973_v47 = vadd.f32 %v972_v15, %v971_v46 }
 0x17b   :  { %v988_v36 = vsel %vm285_vm10, %v861_v37, 0.0  ;;  %v990_v3 = vsel %vm285_vm10, %v863_v21, 0.0  ;;  %v992_v52 = vsel %vm285_vm10, %v865_v50, 0.0  ;;  %v994_v1 = vsel %vm285_vm10, %v867_v61, 0.0 }
 0x17c   :  { %v989_v29 = vadd.f32 %v988_v36, %v987_v59  ;;  %v15874_v54 = vadd.f32 %v958_v58, %v957_v53  ;;  %v975_v25 = vadd.f32 %v974_v4, %v973_v47  ;;  %v1005_v24 = vsel %vm285_vm10, %v869_v44, 0.0 }
 0x17d   :  { %v1006_v6 = vsel %vm285_vm10, %v871_v30, 0.0  ;;  %v1008_v22 = vsel %vm285_vm10, %v873_v31, 0.0  ;;  %v1010_v37 = vsel %vm285_vm10, %v875_v20, 0.0  ;;  %v1012_v21 = vsel %vm285_vm10, %v877_v41, 0.0 }
 0x17e   :  { %v991_v2 = vadd.f32 %v990_v3, %v989_v29  ;;  %v1007_v9 = vadd.f32 %v1006_v6, %v1005_v24  ;;  %v15880_v14 = vadd.f32 %v976_v5, %v975_v25  ;;  %v1023_v50 = vsel %vm285_vm10, %v879_v0, 0.0 }
 0x17f   :  { %v1024_v61 = vsel %vm285_vm10, %v881_v19, 0.0  ;;  %v17297_v31 = vunpack.c.l.bf16 %v15802_v26  ;;  %v1028_v45 = vsel %vm285_vm10, %v885_v32, 0.0  ;;  %v17298_v41 = vunpack.c.l.bf16 %v15806_v33 }
 0x180   :  { %v993_v44 = vadd.f32 %v992_v52, %v991_v2  ;;  %v1009_v30 = vadd.f32 %v1008_v22, %v1007_v9  ;;  %v1025_v16 = vadd.f32 %v1024_v61, %v1023_v50  ;;  %v1176_v0 = vrot.slane %v15574_v10, 6 }
 0x181   :  { %v1026_v20 = vsel %vm285_vm10, %v17297_v31, 0.0  ;;  %v1030_v63 = vsel %vm285_vm10, %v17298_v41, 0.0  ;;  %v1177_v55 = vrot.slane %v15857_v57, 6  ;;  %v1179_v26 = vrot.slane %v15579_v17, 6 }
 0x182   :  { %v15902_v19 = vadd.f32 %v994_v1, %v993_v44  ;;  %v1011_v34 = vadd.f32 %v1010_v37, %v1009_v30  ;;  %v1027_v51 = vadd.f32 %v1026_v20, %v1025_v16  ;;  %v1180_v28 = vrot.slane %v15862_v39, 6 }
 0x183   :  { %v1178_v18 = vsel %vm566_vm0, %v1176_v0, %v1177_v55  ;;  %v1182_v32 = vrot.slane %v15585_v40, 6  ;;  %v1183_v33 = vrot.slane %v15868_v43, 6  ;;  %v1185_v10 = vrot.slane %v15591_v62, 6 }
 0x184   :  { %v15909_v49 = vadd.f32 %v1012_v21, %v1011_v34  ;;  %v1029_v11 = vadd.f32 %v1028_v45, %v1027_v51  ;;  %v1186_v13 = vrot.slane %v15874_v54, 6  ;;  %v1181_v56 = vsel %vm566_vm0, %v1179_v26, %v1180_v28 }
 0x185   :  { %v1184_v35 = vsel %vm566_vm0, %v1182_v32, %v1183_v33  ;;  %v1188_v17 = vrot.slane %v15599_v60, 6  ;;  %v1189_v12 = vrot.slane %v15880_v14, 6  ;;  %v1191_v42 = vrot.slane %v15613_v38, 6 }
 0x186   :  { %v15917_v58 = vadd.f32 %v1030_v63, %v1029_v11  ;;  %v1187_v40 = vsel %vm566_vm0, %v1185_v10, %v1186_v13  ;;  %v1192_v27 = vrot.slane %v15902_v19, 6  ;;  %v1194_v8 = vrot.slane %v15630_v7, 6 }
 0x187   :  { %v1190_v62 = vsel %vm566_vm0, %v1188_v17, %v1189_v12  ;;  %v1195_v23 = vrot.slane %v15909_v49, 6  ;;  %v1197_v46 = vrot.slane %v15632_v48, 6  ;;  %v1208_v4 = vsel %vm421_vm2, %v1178_v18, 0.0 }
 0x188   :  { %v1193_v60 = vsel %vm566_vm0, %v1191_v42, %v1192_v27  ;;  %v1198_v15 = vrot.slane %v15917_v58, 6  ;;  %v1215_v5 = vsel %vm421_vm2, %v1181_v56, 0.0  ;;  %v1209_v59 = vrot.slane %v1208_v4, 4 }
 0x189   :  { %v1196_v38 = vsel %vm566_vm0, %v1194_v8, %v1195_v23  ;;  %v1216_v53 = vrot.slane %v1215_v5, 4  ;;  %v1222_v47 = vsel %vm421_vm2, %v1184_v35, 0.0  ;;  %v1229_v29 = vsel %vm421_vm2, %v1187_v40, 0.0 }
 0x18a   :  { %v1199_v7 = vsel %vm566_vm0, %v1197_v46, %v1198_v15  ;;  %v1223_v36 = vrot.slane %v1222_v47, 4  ;;  %v1236_v48 = vsel %vm421_vm2, %v1190_v62, 0.0  ;;  %v1210_v3 = vadd.f32 %v1209_v59, %v1208_v4 }
 0x18b   :  { %v1217_v52 = vadd.f32 %v1216_v53, %v1215_v5  ;;  %v1230_v1 = vrot.slane %v1229_v29, 4  ;;  %v1237_v25 = vrot.slane %v1236_v48, 4  ;;  %v1243_v6 = vsel %vm421_vm2, %v1193_v60, 0.0 }
 0x18c   :  { %v1224_v24 = vadd.f32 %v1223_v36, %v1222_v47  ;;  %v1250_v2 = vsel %vm421_vm2, %v1196_v38, 0.0  ;;  %v1257_v9 = vsel %vm421_vm2, %v1199_v7, 0.0  ;;  %v1211_v22 = vrot.slane %v1210_v3, 2 }
 0x18d   :  { %v1218_v37 = vrot.slane %v1217_v52, 2  ;;  %v1231_v21 = vadd.f32 %v1230_v1, %v1229_v29  ;;  %v1238_v50 = vadd.f32 %v1237_v25, %v1236_v48  ;;  %v1244_v44 = vrot.slane %v1243_v6, 4 }
 0x18e   :  { %v1225_v61 = vrot.slane %v1224_v24, 2  ;;  %v1251_v30 = vrot.slane %v1250_v2, 4  ;;  %v1258_v16 = vrot.slane %v1257_v9, 4  ;;  %v1212_v31 = vadd.f32 %v1211_v22, %v1210_v3 }
 0x18f   :  { %v1219_v20 = vadd.f32 %v1218_v37, %v1217_v52  ;;  %v1232_v45 = vrot.slane %v1231_v21, 2  ;;  %v1239_v41 = vrot.slane %v1238_v50, 2  ;;  %v1245_v0 = vadd.f32 %v1244_v44, %v1243_v6 }
 0x190   :  { %v1226_v63 = vadd.f32 %v1225_v61, %v1224_v24  ;;  %v1252_v55 = vadd.f32 %v1251_v30, %v1250_v2  ;;  %v1259_v34 = vadd.f32 %v1258_v16, %v1257_v9  ;;  %v1213_v51 = vrot.slane %v1212_v31, 1 }
 0x191   :  { %v1220_v26 = vrot.slane %v1219_v20, 1  ;;  %v1233_v18 = vadd.f32 %v1232_v45, %v1231_v21  ;;  %v1240_v28 = vadd.f32 %v1239_v41, %v1238_v50  ;;  %v1246_v33 = vrot.slane %v1245_v0, 2 }
 0x192   :  { %v1227_v32 = vrot.slane %v1226_v63, 1  ;;  %v1253_v11 = vrot.slane %v1252_v55, 2  ;;  %v1260_v10 = vrot.slane %v1259_v34, 2  ;;  %v15938_v13 = vadd.f32 %v1213_v51, %v1212_v31 }
 0x193   :  { %v15940_v56 = vadd.f32 %v1220_v26, %v1219_v20  ;;  %v1234_v35 = vrot.slane %v1233_v18, 1  ;;  %v1241_v17 = vrot.slane %v1240_v28, 1  ;;  %v1247_v40 = vadd.f32 %v1246_v33, %v1245_v0 }
 0x194   :  { %v15942_v12 = vadd.f32 %v1227_v32, %v1226_v63  ;;  %v1254_v42 = vadd.f32 %v1253_v11, %v1252_v55  ;;  %v1261_v27 = vadd.f32 %v1260_v10, %v1259_v34  ;;  %v1264_v23 = vrot.slane %v15857_v57, 1 }
 0x195   :  { %v15944_v62 = vadd.f32 %v1234_v35, %v1233_v18  ;;  %v15946_v8 = vadd.f32 %v1241_v17, %v1240_v28  ;;  %v1265_v46 = vrot.slane %v15862_v39, 1  ;;  %v1248_v60 = vrot.slane %v1247_v40, 1 }
 0x196   :  { %v1255_v15 = vrot.slane %v1254_v42, 1  ;;  %v1262_v4 = vrot.slane %v1261_v27, 1  ;;  %v1266_v5 = vrot.slane %v15868_v43, 1  ;;  %v1267_v38 = vrot.slane %v15874_v54, 1 }
 0x197   :  { %v1268_v59 = vrot.slane %v15880_v14, 1  ;;  %v1269_v53 = vrot.slane %v15902_v19, 1  ;;  %v1270_v47 = vrot.slane %v15909_v49, 1  ;;  %v15955_v7 = vadd.f32 %v1248_v60, %v1247_v40 }
 0x198   :  { %v15957_v36 = vadd.f32 %v1255_v15, %v1254_v42  ;;  %v15959_v57 = vadd.f32 %v1262_v4, %v1261_v27  ;;  %v1271_v39 = vrot.slane %v15917_v58, 1  ;;  %v1280_v29 = vsel %vm421_vm2, %v1264_v23, 0.0 }
 0x199   :  { %v1287_v43 = vsel %vm421_vm2, %v1265_v46, 0.0  ;;  %v1294_v54 = vsel %vm421_vm2, %v1266_v5, 0.0  ;;  %v1301_v14 = vsel %vm421_vm2, %v1267_v38, 0.0  ;;  %v1281_v48 = vrot.slane %v1280_v29, 4 }
 0x19a   :  { %v1288_v19 = vrot.slane %v1287_v43, 4  ;;  %v1295_v3 = vrot.slane %v1294_v54, 4  ;;  %v1302_v49 = vrot.slane %v1301_v14, 4  ;;  %v1308_v52 = vsel %vm421_vm2, %v1268_v59, 0.0 }
 0x19b   :  { %v1315_v1 = vsel %vm421_vm2, %v1269_v53, 0.0  ;;  %v1322_v25 = vsel %vm421_vm2, %v1270_v47, 0.0  ;;  %v1329_v58 = vsel %vm421_vm2, %v1271_v39, 0.0  ;;  %v1282_v24 = vadd.f32 %v1281_v48, %v1280_v29 }
 0x19c   :  { %v1289_v6 = vadd.f32 %v1288_v19, %v1287_v43  ;;  %v1296_v2 = vadd.f32 %v1295_v3, %v1294_v54  ;;  %v1303_v9 = vadd.f32 %v1302_v49, %v1301_v14  ;;  %v1309_v22 = vrot.slane %v1308_v52, 4 }
 0x19d   :  { %v1316_v37 = vrot.slane %v1315_v1, 4  ;;  %v1323_v21 = vrot.slane %v1322_v25, 4  ;;  %v1330_v50 = vrot.slane %v1329_v58, 4  ;;  %v1283_v61 = vrot.slane %v1282_v24, 2 }
 0x19e   :  { %v1290_v44 = vrot.slane %v1289_v6, 2  ;;  %v1297_v30 = vrot.slane %v1296_v2, 2  ;;  %v1304_v16 = vrot.slane %v1303_v9, 2  ;;  %v1310_v31 = vadd.f32 %v1309_v22, %v1308_v52 }
 0x19f   :  { %v1317_v20 = vadd.f32 %v1316_v37, %v1315_v1  ;;  %v1324_v45 = vadd.f32 %v1323_v21, %v1322_v25  ;;  %v1331_v41 = vadd.f32 %v1330_v50, %v1329_v58  ;;  %v1284_v63 = vadd.f32 %v1283_v61, %v1282_v24 }
 0x1a0   :  { %v1291_v0 = vadd.f32 %v1290_v44, %v1289_v6  ;;  %v1298_v55 = vadd.f32 %v1297_v30, %v1296_v2  ;;  %v1305_v34 = vadd.f32 %v1304_v16, %v1303_v9  ;;  %v1311_v51 = vrot.slane %v1310_v31, 2 }
 0x1a1   :  { %v1318_v26 = vrot.slane %v1317_v20, 2  ;;  %v1325_v18 = vrot.slane %v1324_v45, 2  ;;  %v1332_v28 = vrot.slane %v1331_v41, 2  ;;  %v1285_v32 = vrot.slane %v1284_v63, 1 }
 0x1a2   :  { %v1292_v33 = vrot.slane %v1291_v0, 1  ;;  %v1299_v11 = vrot.slane %v1298_v55, 1  ;;  %v1306_v10 = vrot.slane %v1305_v34, 1  ;;  %v1312_v35 = vadd.f32 %v1311_v51, %v1310_v31  ;;  %v3391_v51 = vld [vmem:[#allocation8 + $0x80] sm:$0xff] }
 0x1a3   :  { %v1319_v17 = vadd.f32 %v1318_v26, %v1317_v20  ;;  %v1326_v40 = vadd.f32 %v1325_v18, %v1324_v45  ;;  %v1333_v42 = vadd.f32 %v1332_v28, %v1331_v41  ;;  %v1286_v27 = vadd.f32 %v1285_v32, %v1284_v63  ;;  %v3395_v26 = vld [vmem:[#allocation8 + $0xa0] sm:$0xff] }
 0x1a4   :  { %v1293_v23 = vadd.f32 %v1292_v33, %v1291_v0  ;;  %v1300_v46 = vadd.f32 %v1299_v11, %v1298_v55  ;;  %v1307_v60 = vadd.f32 %v1306_v10, %v1305_v34  ;;  %v1313_v15 = vrot.slane %v1312_v35, 1  ;;  %v3392_v11 = vld [vmem:[#allocation8 + $0x88] sm:$0xff] }
 0x1a5   :  { %v1320_v4 = vrot.slane %v1319_v17, 1  ;;  %v1327_v5 = vrot.slane %v1326_v40, 1  ;;  %v1334_v38 = vrot.slane %v1333_v42, 1  ;;  %v2602_v59 = vpack.c.bf16 %v15938_v13, %v15938_v13  ;;  %v3396_v10 = vld [vmem:[#allocation8 + $0xa8] sm:$0xff] }
 0x1a6   :  { %v2603_v53 = vpack.c.bf16 %v15940_v56, %v15940_v56  ;;  %v2604_v47 = vpack.c.bf16 %v15942_v12, %v15942_v12  ;;  %v2605_v39 = vpack.c.bf16 %v15944_v62, %v15944_v62  ;;  %v1314_v29 = vadd.f32 %v1313_v15, %v1312_v35 }
 0x1a7   :  { %v1321_v43 = vadd.f32 %v1320_v4, %v1319_v17  ;;  %v1328_v54 = vadd.f32 %v1327_v5, %v1326_v40  ;;  %v1335_v14 = vadd.f32 %v1334_v38, %v1333_v42  ;;  %v2606_v48 = vpack.c.bf16 %v15946_v8, %v15946_v8  ;;  %v3400_v5 = vld [vmem:[#allocation8 + $0xc8] sm:$0xff] }
 0x1a8   :  { %v2607_v19 = vpack.c.bf16 %v15955_v7, %v15955_v7  ;;  %v2608_v13 = vpack.c.bf16 %v15957_v36, %v15957_v36  ;;  %v2609_v56 = vpack.c.bf16 %v15959_v57, %v15959_v57  ;;  %v2610_v12 = vpack.c.bf16 %v1286_v27, %v1286_v27  ;;  %v3399_v27 = vld [vmem:[#allocation8 + $0xc0] sm:$0xff]  ;;  %v3404_v38 = vld [vmem:[#allocation8 + $0xe8] sm:$0xff] }
 0x1a9   :  { %v2611_v3 = vpack.c.bf16 %v1293_v23, %v1293_v23  ;;  %v2612_v49 = vpack.c.bf16 %v1300_v46, %v1300_v46  ;;  %v2613_v62 = vpack.c.bf16 %v1307_v60, %v1307_v60  ;;  %v2614_v52 = vpack.c.bf16 %v1314_v29, %v1314_v29  ;;  %v3403_v23 = vld [vmem:[#allocation8 + $0xe0] sm:$0xff]  ;;  %v15993_v29 = vld [vmem:[#allocation2 + $0x30] ss:$8 sps:$4 sm:$0xff]  }
 0x1aa   :  { %v2615_v1 = vpack.c.bf16 %v1321_v43, %v1321_v43  ;;  %v2616_v25 = vpack.c.bf16 %v1328_v54, %v1328_v54  ;;  %v2617_v58 = vpack.c.bf16 %v1335_v14, %v1335_v14  ;;  %v2866_v24 = vunpack.c.l.b16 %v2602_v59 }
 0x1ab   :  { %v2867_v6 = vunpack.c.l.b16 %v2603_v53  ;;  %v2868_v8 = vunpack.c.l.b16 %v2604_v47  ;;  %v2869_v2 = vunpack.c.l.b16 %v2605_v39  ;;  %v2870_v9 = vunpack.c.l.b16 %v2606_v48 }
 0x1ac   :  { %v2871_v7 = vunpack.c.l.b16 %v2607_v19  ;;  %v2872_v22 = vunpack.c.l.b16 %v2608_v13  ;;  %v2873_v37 = vunpack.c.l.b16 %v2609_v56  ;;  %v2874_v36 = vunpack.c.l.b16 %v2610_v12  ;;  %v15997_v19 = vld [vmem:[#allocation2 + $0x40] ss:$8 sps:$4 sm:$0xff]  }
 0x1ad   :  { %v2875_v21 = vunpack.c.l.b16 %v2611_v3  ;;  %v2876_v50 = vunpack.c.l.b16 %v2612_v49  ;;  %v2877_v57 = vunpack.c.l.b16 %v2613_v62  ;;  %v2878_v61 = vunpack.c.l.b16 %v2614_v52  ;;  %v16001_v49 = vld [vmem:[#allocation2 + $0x50] ss:$80 sps:$4 sm:$0xff]  }
 0x1ae   :  { %v2879_v44 = vunpack.c.l.b16 %v2615_v1  ;;  %v2880_v30 = vunpack.c.l.b16 %v2616_v25  ;;  %v2881_v16 = vunpack.c.l.b16 %v2617_v58  ;;  %v3037_v31 = vrot.slane %v2867_v6, 7  ;;  %v16003_v62 = vld [vmem:[#allocation2 + $0xa8] ss:$8 sps:$4 sm:$0xff]   ;;  %v16007_v58 = vld [vmem:[#allocation2 + $0xb8] ss:$8 sps:$4 sm:$0xff]  }
 0x1af   :  { %v3039_v20 = vrot.slane %v2868_v8, 6  ;;  %v3041_v45 = vrot.slane %v2869_v2, 5  ;;  %v3043_v41 = vrot.slane %v2870_v9, 4  ;;  %v3045_v63 = vrot.slane %v2871_v7, 3  ;;  %v16013_v2 = vld [vmem:[#allocation2 + $0x120] ss:$8 sps:$4 sm:$0xff]  }
 0x1b0   :  { %v3047_v0 = vrot.slane %v2872_v22, 2  ;;  %v3049_v55 = vrot.slane %v2873_v37, 1  ;;  %v3051_v34 = vrot.slane %v2875_v21, 7  ;;  %v3038_v18 = vsel %vm2947_vm3, %v3037_v31, %v2866_v24  ;;  %v16009_v24 = vld [vmem:[#allocation2 + $0x110] ss:$8 sps:$4 sm:$0xff]  }
 0x1b1   :  { %v3053_v28 = vrot.slane %v2876_v50, 6  ;;  %v3055_v32 = vrot.slane %v2877_v57, 5  ;;  %v3057_v33 = vrot.slane %v2878_v61, 4  ;;  %v3040_v35 = vsel %vm2950_vm4, %v3039_v20, %v3038_v18  ;;  %v16020_v21 = vld [vmem:[#allocation2 + $0x188] ss:$8 sps:$4 sm:$0xff]  }
 0x1b2   :  { %v3052_v17 = vsel %vm2947_vm3, %v3051_v34, %v2874_v36  ;;  %v3059_v40 = vrot.slane %v2879_v44, 3  ;;  %v3061_v42 = vrot.slane %v2880_v30, 2  ;;  %v3042_v46 = vsel %vm2953_vm5, %v3041_v45, %v3040_v35  ;;  %v16018_v36 = vld [vmem:[#allocation2 + $0x130] ss:$80 sps:$4 sm:$0xff]  }
 0x1b3   :  { %v3054_v60 = vsel %vm2950_vm4, %v3053_v28, %v3052_v17  ;;  %v3063_v15 = vrot.slane %v2881_v16, 1  ;;  %v13050_v4 = vcombine.high %v3391_v51, %v3395_v26  ;;  %v3044_v59 = vsel %vm2956_vm6, %v3043_v41, %v3042_v46  ;;  %v16022_v50 = vld [vmem:[#allocation2 + $0x198] ss:$8 sps:$4 sm:$0xff]   ;;  %v16060_v46 = vld [vmem:[#allocation2 + $0x348] ss:$8 sps:$4 sm:$0xff]  }
 0x1b4   :  { %v3056_v53 = vsel %vm2953_vm5, %v3055_v32, %v3054_v60  ;;  %v13051_v47 = vcombine.low %v3392_v11, %v3396_v10  ;;  %v13052_v39 = vcombine.high %v3392_v11, %v3396_v10  ;;  %v3046_v43 = vsel %vm2959_vm7, %v3045_v63, %v3044_v59  ;;  %v16027_v30 = vld [vmem:[#allocation2 + $0x1f0] ss:$8 sps:$4 sm:$0xff]   ;;  %v16029_v16 = vld [vmem:[#allocation2 + $0x200] ss:$8 sps:$4 sm:$0xff]  }
 0x1b5   :  { %v3058_v54 = vsel %vm2956_vm6, %v3057_v33, %v3056_v53  ;;  %3763 = vmatprep.subr.bf16.mxu1 %v13050_v4  ;;  %v13049_v14 = vcombine.low %v3391_v51, %v3395_v26  ;;  %v13058_v48 = vcombine.high %v3399_v27, %v3403_v23  ;;  %v3048_v13 = vsel %vm2962_vm8, %v3047_v0, %v3046_v43  ;;  %v16036_v63 = vld [vmem:[#allocation2 + $0x210] ss:$80 sps:$4 sm:$0xff]  }
 0x1b6   :  { %v3060_v56 = vsel %vm2959_vm7, %v3059_v40, %v3058_v54  ;;  %3804 = vmatprep.subr.bf16.mxu0 %v13052_v39  ;;  %v13059_v12 = vcombine.low %v3400_v5, %v3404_v38  ;;  %v13060_v3 = vcombine.high %v3400_v5, %v3404_v38  ;;  %v3050_v52 = vsel %vm2965_vm9, %v3049_v55, %v3048_v13  ;;  %v16038_v0 = vld [vmem:[#allocation2 + $0x268] ss:$8 sps:$4 sm:$0xff]   ;;  %v16044_v18 = vld [vmem:[#allocation2 + $0x278] ss:$8 sps:$4 sm:$0xff]  }
 0x1b7   :  { %v3062_v1 = vsel %vm2962_vm8, %v3061_v42, %v3060_v56  ;;  %3764 = vmatpush1.bf16.msra.mxu1 %v13049_v14  ;;  %3805 = vmatpush1.bf16.msra.mxu0 %v13051_v47  ;;  %v13057_v25 = vcombine.low %v3399_v27, %v3403_v23  ;;  %v1417_v6 = vunpack.c.l.bf16 %v15993_v29  ;;  %v1419_v9 = vunpack.c.h.bf16 %v15993_v29  ;;  %v16046_v28 = vld [vmem:[#allocation2 + $0x2d0] ss:$8 sps:$4 sm:$0xff]   ;;  %v16052_v35 = vld [vmem:[#allocation2 + $0x2e0] ss:$8 sps:$4 sm:$0xff]  }
 0x1b8   :  { %v3064_v8 = vsel %vm2965_vm9, %v3063_v15, %v3062_v1  ;;  %3765 = vmatprep.subr.bf16.mxu1 %v13058_v48  ;;  %3806 = vmatprep.subr.bf16.mxu0 %v13060_v3  ;;  %v1421_v7 = vunpack.c.l.bf16 %v15997_v19  ;;  %v1423_v22 = vunpack.c.h.bf16 %v15997_v19  ;;  %v1425_v57 = vunpack.c.l.bf16 %v16001_v49  ;;  %v16058_v23 = vld [vmem:[#allocation2 + $0x2f0] ss:$80 sps:$4 sm:$0xff]  }
 0x1b9   :  { %v3180_v37 = vpack.c.b16 %v3064_v8, %v3050_v52  ;;  %v1427_v61 = vunpack.c.h.bf16 %v16001_v49  ;;  %v1429_v44 = vunpack.c.l.bf16 %v16003_v62  ;;  %v1431_v31 = vunpack.c.h.bf16 %v16003_v62  ;;  %v16062_v60 = vld [vmem:[#allocation2 + $0x358] ss:$8 sps:$4 sm:$0xff]  }
 0x1ba   :  { %v1433_v20 = vunpack.c.l.bf16 %v16007_v58  ;;  %v1435_v45 = vunpack.c.h.bf16 %v16007_v58  ;;  %v1437_v41 = vunpack.c.l.bf16 %v16009_v24  ;;  %v1439_v55 = vunpack.c.h.bf16 %v16009_v24 }
 0x1bb   :  { %14226 = vmatmul.mubr.msk.bf16.gmra.mrb[4].mxu0 %vm275_vm1, %v3180_v37  ;;  %3766 = vmatpush1.bf16.msra.mxu1 %v13057_v25  ;;  %v1441_v34 = vunpack.c.l.bf16 %v16013_v2  ;;  %v1443_v51 = vunpack.c.h.bf16 %v16013_v2  ;;  %v1445_v26 = vunpack.c.l.bf16 %v16018_v36  ;;  %v1447_v32 = vunpack.c.h.bf16 %v16018_v36 }
 0x1bc   :  { %3807 = vmatpush1.bf16.msra.mxu0 %v13059_v12  ;;  %v1449_v33 = vunpack.c.l.bf16 %v16020_v21  ;;  %v1451_v11 = vunpack.c.h.bf16 %v16020_v21  ;;  %v1453_v10 = vunpack.c.l.bf16 %v16022_v50  ;;  %v1455_v17 = vunpack.c.h.bf16 %v16022_v50 }
 0x1bd   :  { %v1457_v40 = vunpack.c.l.bf16 %v16027_v30  ;;  %v1459_v42 = vunpack.c.h.bf16 %v16027_v30  ;;  %v1461_v27 = vunpack.c.l.bf16 %v16029_v16  ;;  %v1463_v15 = vunpack.c.h.bf16 %v16029_v16 }
 0x1be   :  { %v1465_v4 = vunpack.c.l.bf16 %v16036_v63  ;;  %v1467_v5 = vunpack.c.h.bf16 %v16036_v63  ;;  %v1469_v38 = vunpack.c.l.bf16 %v16038_v0  ;;  %v1471_v59 = vunpack.c.h.bf16 %v16038_v0 }
 0x1bf   :  { %v1473_v53 = vunpack.c.l.bf16 %v16044_v18  ;;  %v1475_v47 = vunpack.c.h.bf16 %v16044_v18  ;;  %v1477_v39 = vunpack.c.l.bf16 %v16046_v28  ;;  %v1479_v29 = vunpack.c.h.bf16 %v16046_v28 }
 0x1c0   :  { %v1481_v43 = vunpack.c.l.bf16 %v16052_v35  ;;  %v1483_v54 = vunpack.c.h.bf16 %v16052_v35  ;;  %v1485_v14 = vunpack.c.l.bf16 %v16058_v23  ;;  %v1487_v48 = vunpack.c.h.bf16 %v16058_v23 }
 0x1c1   :  { %v1489_v19 = vunpack.c.l.bf16 %v16060_v46  ;;  %v1491_v13 = vunpack.c.h.bf16 %v16060_v46  ;;  %v1493_v56 = vunpack.c.l.bf16 %v16062_v60  ;;  %v1495_v12 = vunpack.c.h.bf16 %v16062_v60 }
 0x1c2   :  { %v1497_v3 = vsel %vm275_vm1, %v1417_v6, 0.0  ;;  %v1498_v49 = vsel %vm275_vm1, %v1419_v9, 0.0  ;;  %v1500_v62 = vsel %vm275_vm1, %v1421_v7, 0.0  ;;  %v1502_v1 = vsel %vm275_vm1, %v1423_v22, 0.0 }
 0x1c3   :  { %v1499_v52 = vadd.f32 %v1498_v49, %v1497_v3  ;;  %v1504_v25 = vsel %vm275_vm1, %v1425_v57, 0.0  ;;  %v1515_v58 = vsel %vm275_vm1, %v1427_v61, 0.0  ;;  %v1516_v24 = vsel %vm275_vm1, %v1429_v44, 0.0 }
 0x1c4   :  { %v1518_v8 = vsel %vm275_vm1, %v1431_v31, 0.0  ;;  %v1520_v2 = vsel %vm275_vm1, %v1433_v20, 0.0  ;;  %v1522_v37 = vsel %vm275_vm1, %v1435_v45, 0.0  ;;  %v1517_v36 = vadd.f32 %v1516_v24, %v1515_v58 }
 0x1c5   :  { %v1501_v6 = vadd.f32 %v1500_v62, %v1499_v52  ;;  %v1533_v9 = vsel %vm275_vm1, %v1437_v41, 0.0  ;;  %v1534_v7 = vsel %vm275_vm1, %v1439_v55, 0.0  ;;  %v1536_v22 = vsel %vm275_vm1, %v1441_v34, 0.0 }
 0x1c6   :  { %v1535_v21 = vadd.f32 %v1534_v7, %v1533_v9  ;;  %v1538_v50 = vsel %vm275_vm1, %v1443_v51, 0.0  ;;  %v1540_v57 = vsel %vm275_vm1, %v1445_v26, 0.0  ;;  %v1519_v44 = vadd.f32 %v1518_v8, %v1517_v36 }
 0x1c7   :  { %v1503_v61 = vadd.f32 %v1502_v1, %v1501_v6  ;;  %v1551_v30 = vsel %vm275_vm1, %v1447_v32, 0.0  ;;  %v1552_v16 = vsel %vm275_vm1, %v1449_v33, 0.0  ;;  %v1554_v45 = vsel %vm275_vm1, %v1451_v11, 0.0 }
 0x1c8   :  { %v1537_v31 = vadd.f32 %v1536_v22, %v1535_v21  ;;  %v1553_v20 = vadd.f32 %v1552_v16, %v1551_v30  ;;  %v1556_v41 = vsel %vm275_vm1, %v1453_v10, 0.0  ;;  %v1521_v0 = vadd.f32 %v1520_v2, %v1519_v44 }
 0x1c9   :  { %v16100_v63 = vadd.f32 %v1504_v25, %v1503_v61  ;;  %v1558_v55 = vsel %vm275_vm1, %v1455_v17, 0.0  ;;  %v1569_v34 = vsel %vm275_vm1, %v1457_v40, 0.0  ;;  %v1570_v18 = vsel %vm275_vm1, %v1459_v42, 0.0 }
 0x1ca   :  { %v1539_v51 = vadd.f32 %v1538_v50, %v1537_v31  ;;  %v1555_v26 = vadd.f32 %v1554_v45, %v1553_v20  ;;  %v1572_v28 = vsel %vm275_vm1, %v1461_v27, 0.0  ;;  %v16106_v32 = vadd.f32 %v1522_v37, %v1521_v0 }
 0x1cb   :  { %v1571_v33 = vadd.f32 %v1570_v18, %v1569_v34  ;;  %v1574_v11 = vsel %vm275_vm1, %v1463_v15, 0.0  ;;  %v1576_v10 = vsel %vm275_vm1, %v1465_v4, 0.0  ;;  %v1587_v17 = vsel %vm275_vm1, %v1467_v5, 0.0 }
 0x1cc   :  { %v16110_v35 = vadd.f32 %v1540_v57, %v1539_v51  ;;  %v1557_v23 = vadd.f32 %v1556_v41, %v1555_v26  ;;  %v1588_v40 = vsel %vm275_vm1, %v1469_v38, 0.0  ;;  %v1590_v42 = vsel %vm275_vm1, %v1471_v59, 0.0 }
 0x1cd   :  { %v1573_v3 = vadd.f32 %v1572_v28, %v1571_v33  ;;  %v1589_v49 = vadd.f32 %v1588_v40, %v1587_v17  ;;  %v1592_v27 = vsel %vm275_vm1, %v1473_v53, 0.0  ;;  %v1594_v52 = vsel %vm275_vm1, %v1475_v47, 0.0 }
 0x1ce   :  { %v16116_v62 = vadd.f32 %v1558_v55, %v1557_v23  ;;  %v1605_v15 = vsel %vm275_vm1, %v1477_v39, 0.0  ;;  %v1606_v4 = vsel %vm275_vm1, %v1479_v29, 0.0  ;;  %v1608_v5 = vsel %vm275_vm1, %v1481_v43, 0.0 }
 0x1cf   :  { %v1575_v1 = vadd.f32 %v1574_v11, %v1573_v3  ;;  %v1591_v25 = vadd.f32 %v1590_v42, %v1589_v49  ;;  %v1607_v58 = vadd.f32 %v1606_v4, %v1605_v15  ;;  %v1610_v38 = vsel %vm275_vm1, %v1483_v54, 0.0 }
 0x1d0   :  { %v1612_v24 = vsel %vm275_vm1, %v1485_v14, 0.0  ;;  %v1623_v59 = vsel %vm275_vm1, %v1487_v48, 0.0  ;;  %v1624_v53 = vsel %vm275_vm1, %v1489_v19, 0.0  ;;  %v1626_v29 = vsel %vm275_vm1, %v1491_v13, 0.0 }
 0x1d1   :  { %v16126_v8 = vadd.f32 %v1576_v10, %v1575_v1  ;;  %v1593_v47 = vadd.f32 %v1592_v27, %v1591_v25  ;;  %v1609_v2 = vadd.f32 %v1608_v5, %v1607_v58  ;;  %v1625_v39 = vadd.f32 %v1624_v53, %v1623_v59 }
 0x1d2   :  { %v1628_v43 = vsel %vm275_vm1, %v1493_v56, 0.0  ;;  %v1630_v54 = vsel %vm275_vm1, %v1495_v12, 0.0  ;;  %v1641_v14 = vsel %vm421_vm2, %v16100_v63, 0.0  ;;  %v1648_v46 = vsel %vm421_vm2, %v16106_v32, 0.0 }
 0x1d3   :  { %v16139_v48 = vadd.f32 %v1594_v52, %v1593_v47  ;;  %v1611_v19 = vadd.f32 %v1610_v38, %v1609_v2  ;;  %v1627_v37 = vadd.f32 %v1626_v29, %v1625_v39  ;;  %v1642_v6 = vrot.slane %v1641_v14, 4 }
 0x1d4   :  { %v1655_v13 = vsel %vm421_vm2, %v16110_v35, 0.0  ;;  %v1662_v56 = vsel %vm421_vm2, %v16116_v62, 0.0  ;;  %v1669_v60 = vsel %vm421_vm2, %v16126_v8, 0.0  ;;  %v1649_v7 = vrot.slane %v1648_v46, 4 }
 0x1d5   :  { %v16149_v12 = vadd.f32 %v1612_v24, %v1611_v19  ;;  %v1629_v36 = vadd.f32 %v1628_v43, %v1627_v37  ;;  %v1643_v9 = vadd.f32 %v1642_v6, %v1641_v14  ;;  %v1656_v21 = vrot.slane %v1655_v13, 4 }
 0x1d6   :  { %v1663_v22 = vrot.slane %v1662_v56, 4  ;;  %v1670_v50 = vrot.slane %v1669_v60, 4  ;;  %v1676_v57 = vsel %vm421_vm2, %v16139_v48, 0.0  ;;  %v1650_v30 = vadd.f32 %v1649_v7, %v1648_v46 }
 0x1d7   :  { %v16153_v61 = vadd.f32 %v1630_v54, %v1629_v36  ;;  %v1644_v44 = vrot.slane %v1643_v9, 2  ;;  %v1677_v16 = vrot.slane %v1676_v57, 4  ;;  %v1657_v31 = vadd.f32 %v1656_v21, %v1655_v13 }
 0x1d8   :  { %v1664_v20 = vadd.f32 %v1663_v22, %v1662_v56  ;;  %v1671_v45 = vadd.f32 %v1670_v50, %v1669_v60  ;;  %v1683_v41 = vsel %vm421_vm2, %v16149_v12, 0.0  ;;  %v1651_v55 = vrot.slane %v1650_v30, 2 }
 0x1d9   :  { %v1645_v0 = vadd.f32 %v1644_v44, %v1643_v9  ;;  %v1678_v34 = vadd.f32 %v1677_v16, %v1676_v57  ;;  %v1684_v51 = vrot.slane %v1683_v41, 4  ;;  %v1658_v26 = vrot.slane %v1657_v31, 2 }
 0x1da   :  { %v1665_v18 = vrot.slane %v1664_v20, 2  ;;  %v1672_v28 = vrot.slane %v1671_v45, 2  ;;  %v1690_v33 = vsel %vm421_vm2, %v16153_v61, 0.0  ;;  %v1652_v10 = vadd.f32 %v1651_v55, %v1650_v30 }
 0x1db   :  { %v1646_v11 = vrot.slane %v1645_v0, 1  ;;  %v1679_v23 = vrot.slane %v1678_v34, 2  ;;  %v1685_v17 = vadd.f32 %v1684_v51, %v1683_v41  ;;  %v1659_v40 = vadd.f32 %v1658_v26, %v1657_v31 }
 0x1dc   :  { %v1666_v3 = vadd.f32 %v1665_v18, %v1664_v20  ;;  %v1673_v49 = vadd.f32 %v1672_v28, %v1671_v45  ;;  %v1691_v42 = vrot.slane %v1690_v33, 4  ;;  %v1653_v52 = vrot.slane %v1652_v10, 1 }
 0x1dd   :  { %v16159_v27 = vadd.f32 %v1646_v11, %v1645_v0  ;;  %v1680_v15 = vadd.f32 %v1679_v23, %v1678_v34  ;;  %v1686_v4 = vrot.slane %v1685_v17, 2  ;;  %v1660_v1 = vrot.slane %v1659_v40, 1 }
 0x1de   :  { %v1667_v25 = vrot.slane %v1666_v3, 1  ;;  %v1674_v58 = vrot.slane %v1673_v49, 1  ;;  %v1692_v5 = vadd.f32 %v1691_v42, %v1690_v33  ;;  %v16161_v38 = vadd.f32 %v1653_v52, %v1652_v10 }
 0x1df   :  { %v1681_v24 = vrot.slane %v1680_v15, 1  ;;  %v1687_v59 = vadd.f32 %v1686_v4, %v1685_v17  ;;  %v1705_v53 = vrot.slane %v16100_v63, 3  ;;  %v16164_v47 = vadd.f32 %v1660_v1, %v1659_v40 }
 0x1e0   :  { %v16166_v2 = vadd.f32 %v1667_v25, %v1666_v3  ;;  %v16168_v39 = vadd.f32 %v1674_v58, %v1673_v49  ;;  %v1693_v29 = vrot.slane %v1692_v5, 2  ;;  %v1706_v14 = vrot.slane %v16106_v32, 3 }
 0x1e1   :  { %v16170_v43 = vadd.f32 %v1681_v24, %v1680_v15  ;;  %v1688_v54 = vrot.slane %v1687_v59, 1  ;;  %v1707_v19 = vrot.slane %v16110_v35, 3  ;;  %v1708_v6 = vrot.slane %v16116_v62, 3 }
 0x1e2   :  { %v1694_v37 = vadd.f32 %v1693_v29, %v1692_v5  ;;  %v1709_v46 = vrot.slane %v16126_v8, 3  ;;  %v1710_v13 = vrot.slane %v16139_v48, 3  ;;  %v1711_v60 = vrot.slane %v16149_v12, 3 }
 0x1e3   :  { %v16177_v56 = vadd.f32 %v1688_v54, %v1687_v59  ;;  %v1712_v36 = vrot.slane %v16153_v61, 3  ;;  %v1721_v9 = vsel %vm421_vm2, %v1705_v53, 0.0  ;;  %v1728_v22 = vsel %vm421_vm2, %v1706_v14, 0.0 }
 0x1e4   :  { %v1695_v7 = vrot.slane %v1694_v37, 1  ;;  %v1722_v21 = vrot.slane %v1721_v9, 4  ;;  %v1735_v50 = vsel %vm421_vm2, %v1707_v19, 0.0  ;;  %v1729_v57 = vrot.slane %v1728_v22, 4 }
 0x1e5   :  { %v1736_v44 = vrot.slane %v1735_v50, 4  ;;  %v1742_v30 = vsel %vm421_vm2, %v1708_v6, 0.0  ;;  %v1749_v16 = vsel %vm421_vm2, %v1709_v46, 0.0  ;;  %v1756_v34 = vsel %vm421_vm2, %v1710_v13, 0.0 }
 0x1e6   :  { %v16186_v31 = vadd.f32 %v1695_v7, %v1694_v37  ;;  %v1723_v20 = vadd.f32 %v1722_v21, %v1721_v9  ;;  %v1743_v45 = vrot.slane %v1742_v30, 4  ;;  %v1750_v41 = vrot.slane %v1749_v16, 4 }
 0x1e7   :  { %v1730_v0 = vadd.f32 %v1729_v57, %v1728_v22  ;;  %v1737_v55 = vadd.f32 %v1736_v44, %v1735_v50  ;;  %v1763_v51 = vsel %vm421_vm2, %v1711_v60, 0.0  ;;  %v1757_v33 = vrot.slane %v1756_v34, 4 }
 0x1e8   :  { %v1724_v26 = vrot.slane %v1723_v20, 2  ;;  %v1744_v18 = vadd.f32 %v1743_v45, %v1742_v30  ;;  %v1751_v28 = vadd.f32 %v1750_v41, %v1749_v16  ;;  %v1764_v23 = vrot.slane %v1763_v51, 4 }
 0x1e9   :  { %v1731_v11 = vrot.slane %v1730_v0, 2  ;;  %v1738_v10 = vrot.slane %v1737_v55, 2  ;;  %v1770_v17 = vsel %vm421_vm2, %v1712_v36, 0.0  ;;  %v1758_v42 = vadd.f32 %v1757_v33, %v1756_v34 }
 0x1ea   :  { %v1725_v40 = vadd.f32 %v1724_v26, %v1723_v20  ;;  %v1745_v3 = vrot.slane %v1744_v18, 2  ;;  %v1752_v49 = vrot.slane %v1751_v28, 2  ;;  %v1765_v4 = vadd.f32 %v1764_v23, %v1763_v51 }
 0x1eb   :  { %v1732_v52 = vadd.f32 %v1731_v11, %v1730_v0  ;;  %v1739_v15 = vadd.f32 %v1738_v10, %v1737_v55  ;;  %v1771_v1 = vrot.slane %v1770_v17, 4  ;;  %v1759_v24 = vrot.slane %v1758_v42, 2 }
 0x1ec   :  { %v1726_v25 = vrot.slane %v1725_v40, 1  ;;  %v1746_v58 = vadd.f32 %v1745_v3, %v1744_v18  ;;  %v1753_v5 = vadd.f32 %v1752_v49, %v1751_v28  ;;  %v1766_v29 = vrot.slane %v1765_v4, 2 }
 0x1ed   :  { %v1733_v59 = vrot.slane %v1732_v52, 1  ;;  %v1740_v53 = vrot.slane %v1739_v15, 1  ;;  %v1772_v54 = vadd.f32 %v1771_v1, %v1770_v17  ;;  %v1760_v6 = vadd.f32 %v1759_v24, %v1758_v42 }
 0x1ee   :  { %v1727_v14 = vadd.f32 %v1726_v25, %v1725_v40  ;;  %v1747_v19 = vrot.slane %v1746_v58, 1  ;;  %v1754_v37 = vrot.slane %v1753_v5, 1  ;;  %v1767_v60 = vadd.f32 %v1766_v29, %v1765_v4  ;;  %v16213_v29 = vld [vmem:[#allocation2 + $0x3c] sm:$0x7] }
 0x1ef   :  { %v1734_v46 = vadd.f32 %v1733_v59, %v1732_v52  ;;  %v1741_v13 = vadd.f32 %v1740_v53, %v1739_v15  ;;  %v1773_v36 = vrot.slane %v1772_v54, 2  ;;  %v1761_v21 = vrot.slane %v1760_v6, 1 }
 0x1f0   :  { %v1748_v9 = vadd.f32 %v1747_v19, %v1746_v58  ;;  %v1755_v7 = vadd.f32 %v1754_v37, %v1753_v5  ;;  %v2618_v22 = vpack.c.bf16 %v16159_v27, %v16159_v27  ;;  %v1768_v50 = vrot.slane %v1767_v60, 1  ;;  %v16209_v58 = vld [vmem:[#allocation2 + $0x34] sm:$0x7] }
 0x1f1   :  { %v1774_v57 = vadd.f32 %v1773_v36, %v1772_v54  ;;  %v2619_v44 = vpack.c.bf16 %v16161_v38, %v16161_v38  ;;  %v2620_v30 = vpack.c.bf16 %v16164_v47, %v16164_v47  ;;  %v1762_v16 = vadd.f32 %v1761_v21, %v1760_v6  ;;  %v16215_v6 = vld [vmem:[#allocation2 + $0x44] sm:$0x7]  ;;  %v16222_v21 = vld [vmem:[#allocation2 + $0xac] sm:$0x7] }
 0x1f2   :  { %v2621_v20 = vpack.c.bf16 %v16166_v2, %v16166_v2  ;;  %v2622_v45 = vpack.c.bf16 %v16168_v39, %v16168_v39  ;;  %v2623_v41 = vpack.c.bf16 %v16170_v43, %v16170_v43  ;;  %v1769_v0 = vadd.f32 %v1768_v50, %v1767_v60 }
 0x1f3   :  { %v1775_v27 = vrot.slane %v1774_v57, 1  ;;  %v2624_v55 = vpack.c.bf16 %v16177_v56, %v16177_v56  ;;  %v2625_v38 = vpack.c.bf16 %v16186_v31, %v16186_v31  ;;  %v2626_v34 = vpack.c.bf16 %v1727_v14, %v1727_v14 }
 0x1f4   :  { %v2627_v47 = vpack.c.bf16 %v1734_v46, %v1734_v46  ;;  %v2628_v51 = vpack.c.bf16 %v1741_v13, %v1741_v13  ;;  %v2629_v26 = vpack.c.bf16 %v1748_v9, %v1748_v9  ;;  %v16207_v18 = vpop.f32.mrb[0].mxu0  ;;  %v2630_v28 = vpack.c.bf16 %v1755_v7, %v1755_v7  ;;  %v16218_v9 = vld [vmem:[#allocation2 + $0x4c] sm:$0x7]  ;;  %v16220_v7 = vld [vmem:[#allocation2 + $0xa4] sm:$0x7] }
 0x1f5   :  { %v1776_v2 = vadd.f32 %v1775_v27, %v1774_v57  ;;  %v2631_v39 = vpack.c.bf16 %v1762_v16, %v1762_v16  ;;  %v2632_v33 = vpack.c.bf16 %v1769_v0, %v1769_v0  ;;  %v2882_v11 = vunpack.c.l.b16 %v2618_v22  ;;  %v16232_v0 = vld [vmem:[#allocation2 + $0xbc] sm:$0x7]  ;;  %v16234_v27 = vld [vmem:[#allocation2 + $0x114] sm:$0x7] }
 0x1f6   :  { %v2883_v43 = vunpack.c.l.b16 %v2619_v44  ;;  %v2884_v10 = vunpack.c.l.b16 %v2620_v30  ;;  %v2885_v23 = vunpack.c.l.b16 %v2621_v20  ;;  %v2886_v40 = vunpack.c.l.b16 %v2622_v45  ;;  %v16225_v30 = vld [vmem:[#allocation2 + $0x54] sm:$0x7] }
 0x1f7   :  { %v2633_v17 = vpack.c.bf16 %v1776_v2, %v1776_v2  ;;  %v2887_v56 = vunpack.c.l.b16 %v2623_v41  ;;  %v2888_v3 = vunpack.c.l.b16 %v2624_v55  ;;  %v2889_v49 = vunpack.c.l.b16 %v2625_v38  ;;  %v16230_v41 = vld [vmem:[#allocation2 + $0xb4] sm:$0x7]  ;;  %v16236_v55 = vld [vmem:[#allocation2 + $0x11c] sm:$0x7]  ;;  %v16245_v2 = vld [vmem:[#allocation2 + $0x12c] sm:$0x7] }
 0x1f8   :  { %v2890_v31 = vunpack.c.l.b16 %v2626_v34  ;;  %v2891_v42 = vunpack.c.l.b16 %v2627_v47  ;;  %v2892_v52 = vunpack.c.l.b16 %v2628_v51  ;;  %v2893_v15 = vunpack.c.l.b16 %v2629_v26  ;;  %v16241_v51 = vld [vmem:[#allocation2 + $0xc4] sm:$0x7] }
 0x1f9   :  { %v2894_v4 = vunpack.c.l.b16 %v2630_v28  ;;  %v2895_v1 = vunpack.c.l.b16 %v2631_v39  ;;  %v2896_v25 = vunpack.c.l.b16 %v2632_v33  ;;  %v16211_v5 = vunpack.c.l.b16 %v2633_v17  ;;  %v16243_v26 = vld [vmem:[#allocation2 + $0x124] sm:$0x7] }
 0x1fa   :  { %v3065_v24 = vrot.slane %v2883_v43, 7  ;;  %v3067_v59 = vrot.slane %v2884_v10, 6  ;;  %v3069_v53 = vrot.slane %v2885_v23, 5  ;;  %v3071_v54 = vrot.slane %v2886_v40, 4  ;;  %v16251_v43 = vld [vmem:[#allocation2 + $0x134] sm:$0x7] }
 0x1fb   :  { %v3073_v14 = vrot.slane %v2887_v56, 3  ;;  %v3075_v19 = vrot.slane %v2888_v3, 2  ;;  %v3077_v37 = vrot.slane %v2889_v49, 1  ;;  %v3079_v13 = vrot.slane %v2891_v42, 7  ;;  %v16253_v10 = vld [vmem:[#allocation2 + $0x184] sm:$0x7] }
 0x1fc   :  { %v3066_v46 = vsel %vm2947_vm3, %v3065_v24, %v2882_v11  ;;  %v3081_v60 = vrot.slane %v2892_v52, 6  ;;  %v3083_v36 = vrot.slane %v2893_v15, 5  ;;  %v3085_v50 = vrot.slane %v2894_v4, 4  ;;  %v16255_v23 = vld [vmem:[#allocation2 + $0x18c] sm:$0x7] }
 0x1fd   :  { %v3068_v22 = vsel %vm2950_vm4, %v3067_v59, %v3066_v46  ;;  %v3087_v57 = vrot.slane %v2895_v1, 3  ;;  %v3089_v44 = vrot.slane %v2896_v25, 2  ;;  %v3080_v20 = vsel %vm2947_vm3, %v3079_v13, %v2890_v31  ;;  %v16261_v49 = vld [vmem:[#allocation2 + $0x194] sm:$0x7]  ;;  %v16263_v31 = vld [vmem:[#allocation2 + $0x19c] sm:$0x7] }
 0x1fe   :  { %v3070_v16 = vsel %vm2953_vm5, %v3069_v53, %v3068_v22  ;;  %v3091_v45 = vrot.slane %v16211_v5, 1  ;;  %v1418_v38 = vunpack.c.l.bf16 %v16209_v58  ;;  %v3082_v47 = vsel %vm2950_vm4, %v3081_v60, %v3080_v20  ;;  %v16265_v42 = vld [vmem:[#allocation2 + $0x1a4] sm:$0x7]  ;;  %v16271_v25 = vld [vmem:[#allocation2 + $0x1f4] sm:$0x7] }
 0x1ff   :  { %v3072_v34 = vsel %vm2956_vm6, %v3071_v54, %v3070_v16  ;;  %v1420_v28 = vunpack.c.l.bf16 %v16213_v29  ;;  %v1422_v39 = vunpack.c.l.bf16 %v16215_v6  ;;  %v3084_v11 = vsel %vm2953_vm5, %v3083_v36, %v3082_v47  ;;  %v16273_v5 = vld [vmem:[#allocation2 + $0x1fc] sm:$0x7]  ;;  %v16275_v24 = vld [vmem:[#allocation2 + $0x204] sm:$0x7]  ;;  %v16290_v22 = vld [vmem:[#allocation2 + $0x26c] sm:$0x7] }
 0x200   :  { %v3074_v33 = vsel %vm2959_vm7, %v3073_v14, %v3072_v34  ;;  %v1424_v17 = vunpack.c.l.bf16 %v16218_v9  ;;  %v1426_v40 = vunpack.c.l.bf16 %v16225_v30  ;;  %v3086_v3 = vsel %vm2956_vm6, %v3085_v50, %v3084_v11  ;;  %v16280_v14 = vld [vmem:[#allocation2 + $0x20c] sm:$0x7]  ;;  %v16284_v46 = vld [vmem:[#allocation2 + $0x264] sm:$0x7]  ;;  %v16292_v50 = vld [vmem:[#allocation2 + $0x274] sm:$0x7] }
 0x201   :  { %v3076_v56 = vsel %vm2962_vm8, %v3075_v19, %v3074_v33  ;;  %v3088_v1 = vsel %vm2959_vm7, %v3087_v57, %v3086_v3  ;;  %v1432_v59 = vunpack.c.l.bf16 %v16230_v41  ;;  %v1434_v53 = vunpack.c.l.bf16 %v16232_v0  ;;  %v16282_v19 = vld [vmem:[#allocation2 + $0x214] sm:$0x7]  ;;  %v16294_v57 = vld [vmem:[#allocation2 + $0x27c] sm:$0x7]  ;;  %v16299_v0 = vld [vmem:[#allocation2 + $0x284] sm:$0x7] }
 0x202   :  { %v3078_v4 = vsel %vm2965_vm9, %v3077_v37, %v3076_v56  ;;  %v3090_v54 = vsel %vm2962_vm8, %v3089_v44, %v3088_v1  ;;  %v1436_v37 = vunpack.c.l.bf16 %v16241_v51  ;;  %v1438_v13 = vunpack.c.l.bf16 %v16234_v27  ;;  %v16301_v27 = vld [vmem:[#allocation2 + $0x2d4] sm:$0x7]  ;;  %v16308_v51 = vld [vmem:[#allocation2 + $0x2e4] sm:$0x7]  ;;  %v16329_v1 = vld [vmem:[#allocation2 + $0x35c] sm:$0x7] }
 0x203   :  { %v1440_v60 = vunpack.c.l.bf16 %v16236_v55  ;;  %v3092_v36 = vsel %vm2965_vm9, %v3091_v45, %v3090_v54  ;;  %v1442_v44 = vunpack.c.l.bf16 %v16243_v26  ;;  %v1444_v16 = vunpack.c.l.bf16 %v16245_v2  ;;  %v16303_v55 = vld [vmem:[#allocation2 + $0x2dc] sm:$0x7]  ;;  %v16310_v26 = vld [vmem:[#allocation2 + $0x2ec] sm:$0x7]  ;;  %v16312_v2 = vld [vmem:[#allocation2 + $0x2f4] sm:$0x7] }
 0x204   :  { %v1446_v20 = vunpack.c.l.bf16 %v16251_v43  ;;  %v3181_v41 = vpack.c.b16 %v3092_v36, %v3078_v4  ;;  %v1448_v45 = vunpack.c.l.bf16 %v16253_v10  ;;  %v1450_v34 = vunpack.c.l.bf16 %v16255_v23  ;;  %v16319_v10 = vld [vmem:[#allocation2 + $0x344] sm:$0x7]  ;;  %v16321_v23 = vld [vmem:[#allocation2 + $0x34c] sm:$0x7]  ;;  %v16323_v3 = vld [vmem:[#allocation2 + $0x354] sm:$0x7] }
 0x205   :  { %v1452_v47 = vunpack.c.l.bf16 %v16261_v49  ;;  %v1454_v33 = vunpack.c.l.bf16 %v16263_v31  ;;  %v1456_v11 = vunpack.c.l.bf16 %v16265_v42  ;;  %v1458_v43 = vunpack.c.l.bf16 %v16271_v25  ;;  %v16331_v25 = vld [vmem:[#allocation2 + $0x364] sm:$0x7] }
 0x206   :  { %v1460_v56 = vunpack.c.l.bf16 %v16273_v5  ;;  %14229 = vmatprep.mubr.msk.bf16.mxu0 %vm275_vm1, %v3181_v41  ;;  %v1462_v49 = vunpack.c.l.bf16 %v16275_v24  ;;  %v1464_v4 = vunpack.c.l.bf16 %v16280_v14  ;;  %v1466_v31 = vunpack.c.l.bf16 %v16282_v19 }
 0x207   :  { %v1468_v42 = vunpack.c.l.bf16 %v16284_v46  ;;  %v1470_v5 = vunpack.c.l.bf16 %v16290_v22  ;;  %v1472_v54 = vunpack.c.l.bf16 %v16292_v50  ;;  %v1474_v36 = vunpack.c.l.bf16 %v16294_v57 }
 0x208   :  { %v1476_v41 = vunpack.c.l.bf16 %v16299_v0  ;;  %v1478_v24 = vunpack.c.l.bf16 %v16301_v27  ;;  %v1480_v14 = vunpack.c.l.bf16 %v16303_v55  ;;  %v1482_v19 = vunpack.c.l.bf16 %v16308_v51 }
 0x209   :  { %v1484_v46 = vunpack.c.l.bf16 %v16310_v26  ;;  %v1486_v15 = vunpack.c.l.bf16 %v16312_v2  ;;  %v1488_v52 = vunpack.c.l.bf16 %v16319_v10  ;;  %v1490_v22 = vunpack.c.l.bf16 %v16321_v23 }
 0x20a   :  { %v1492_v50 = vunpack.c.l.bf16 %v16323_v3  ;;  %v1494_v57 = vunpack.c.l.bf16 %v16329_v1  ;;  %v1506_v27 = vsel %vm285_vm10, %v1418_v38, 0.0  ;;  %v1507_v55 = vsel %vm285_vm10, %v1420_v28, 0.0 }
 0x20b   :  { %v1508_v51 = vadd.f32 %v1507_v55, %v1506_v27  ;;  %v1509_v26 = vsel %vm285_vm10, %v1422_v39, 0.0  ;;  %v1511_v2 = vsel %vm285_vm10, %v1424_v17, 0.0  ;;  %v1513_v10 = vsel %vm285_vm10, %v1426_v40, 0.0 }
 0x20c   :  { %v17299_v58 = vunpack.c.l.bf16 %v16220_v7  ;;  %v17300_v29 = vunpack.c.l.bf16 %v16222_v21  ;;  %v1527_v6 = vsel %vm285_vm10, %v1432_v59, 0.0  ;;  %v1529_v39 = vsel %vm285_vm10, %v1434_v53, 0.0 }
 0x20d   :  { %v1510_v27 = vadd.f32 %v1509_v26, %v1508_v51  ;;  %v1531_v17 = vsel %vm285_vm10, %v1436_v37, 0.0  ;;  %v1542_v30 = vsel %vm285_vm10, %v1438_v13, 0.0  ;;  %v1543_v40 = vsel %vm285_vm10, %v1440_v60, 0.0 }
 0x20e   :  { %v1524_v38 = vsel %vm285_vm10, %v17299_v58, 0.0  ;;  %v1525_v28 = vsel %vm285_vm10, %v17300_v29, 0.0  ;;  %v1545_v7 = vsel %vm285_vm10, %v1442_v44, 0.0  ;;  %v1547_v55 = vsel %vm285_vm10, %v1444_v16, 0.0 }
 0x20f   :  { %v1526_v9 = vadd.f32 %v1525_v28, %v1524_v38  ;;  %v1549_v21 = vsel %vm285_vm10, %v1446_v20, 0.0  ;;  %v1512_v58 = vadd.f32 %v1511_v2, %v1510_v27  ;;  %v1544_v0 = vadd.f32 %v1543_v40, %v1542_v30 }
 0x210   :  { %v1560_v59 = vsel %vm285_vm10, %v1448_v45, 0.0  ;;  %v1561_v53 = vsel %vm285_vm10, %v1450_v34, 0.0  ;;  %v1563_v51 = vsel %vm285_vm10, %v1452_v47, 0.0  ;;  %v1565_v37 = vsel %vm285_vm10, %v1454_v33, 0.0 }
 0x211   :  { %v1528_v29 = vadd.f32 %v1527_v6, %v1526_v9  ;;  %v1567_v13 = vsel %vm285_vm10, %v1456_v11, 0.0  ;;  %v16381_v60 = vadd.f32 %v1513_v10, %v1512_v58  ;;  %v1546_v26 = vadd.f32 %v1545_v7, %v1544_v0 }
 0x212   :  { %v1562_v16 = vadd.f32 %v1561_v53, %v1560_v59  ;;  %v1578_v20 = vsel %vm285_vm10, %v1458_v43, 0.0  ;;  %v1579_v2 = vsel %vm285_vm10, %v1460_v56, 0.0  ;;  %v1581_v38 = vsel %vm285_vm10, %v1462_v49, 0.0 }
 0x213   :  { %v1530_v44 = vadd.f32 %v1529_v39, %v1528_v29  ;;  %v1583_v45 = vsel %vm285_vm10, %v1464_v4, 0.0  ;;  %v1548_v47 = vadd.f32 %v1547_v55, %v1546_v26  ;;  %v1580_v33 = vadd.f32 %v1579_v2, %v1578_v20 }
 0x214   :  { %v1564_v28 = vadd.f32 %v1563_v51, %v1562_v16  ;;  %v1585_v11 = vsel %vm285_vm10, %v1466_v31, 0.0  ;;  %v1596_v10 = vsel %vm285_vm10, %v1468_v42, 0.0  ;;  %v1597_v0 = vsel %vm285_vm10, %v1470_v5, 0.0 }
 0x215   :  { %v16387_v34 = vadd.f32 %v1531_v17, %v1530_v44  ;;  %v1599_v6 = vsel %vm285_vm10, %v1472_v54, 0.0  ;;  %v16393_v43 = vadd.f32 %v1549_v21, %v1548_v47  ;;  %v1582_v39 = vadd.f32 %v1581_v38, %v1580_v33  ;;  %v16447_v33 = vpop.f32.mrb[1].mxu0 }
 0x216   :  { %v1566_v56 = vadd.f32 %v1565_v37, %v1564_v28  ;;  %v1598_v49 = vadd.f32 %v1597_v0, %v1596_v10  ;;  %v1601_v4 = vsel %vm285_vm10, %v1474_v36, 0.0  ;;  %v1603_v27 = vsel %vm285_vm10, %v1476_v41, 0.0 }
 0x217   :  { %v1614_v9 = vsel %vm285_vm10, %v1478_v24, 0.0  ;;  %v1615_v17 = vsel %vm285_vm10, %v1480_v14, 0.0  ;;  %v1584_v42 = vadd.f32 %v1583_v45, %v1582_v39  ;;  %v1617_v54 = vsel %vm285_vm10, %v1482_v19, 0.0 }
 0x218   :  { %v16399_v31 = vadd.f32 %v1567_v13, %v1566_v56  ;;  %v1600_v30 = vadd.f32 %v1599_v6, %v1598_v49  ;;  %v1616_v5 = vadd.f32 %v1615_v17, %v1614_v9  ;;  %v1619_v40 = vsel %vm285_vm10, %v1484_v46, 0.0 }
 0x219   :  { %v1621_v7 = vsel %vm285_vm10, %v1486_v15, 0.0  ;;  %v1632_v55 = vsel %vm285_vm10, %v1488_v52, 0.0  ;;  %v16405_v36 = vadd.f32 %v1585_v11, %v1584_v42  ;;  %v1633_v24 = vsel %vm285_vm10, %v1490_v22, 0.0 }
 0x21a   :  { %v1602_v41 = vadd.f32 %v1601_v4, %v1600_v30  ;;  %v1618_v21 = vadd.f32 %v1617_v54, %v1616_v5  ;;  %v1634_v14 = vadd.f32 %v1633_v24, %v1632_v55  ;;  %v1635_v58 = vsel %vm285_vm10, %v1492_v50, 0.0 }
 0x21b   :  { %v1637_v19 = vsel %vm285_vm10, %v1494_v57, 0.0  ;;  %v17301_v15 = vunpack.c.l.bf16 %v16331_v25  ;;  %v1785_v23 = vrot.slane %v16100_v63, 6  ;;  %v1786_v22 = vrot.slane %v16381_v60, 6 }
 0x21c   :  { %v16419_v46 = vadd.f32 %v1603_v27, %v1602_v41  ;;  %v1620_v29 = vadd.f32 %v1619_v40, %v1618_v21  ;;  %v1636_v59 = vadd.f32 %v1635_v58, %v1634_v14  ;;  %v1788_v3 = vrot.slane %v16106_v32, 6 }
 0x21d   :  { %v1639_v52 = vsel %vm285_vm10, %v17301_v15, 0.0  ;;  %v1789_v50 = vrot.slane %v16387_v34, 6  ;;  %v1791_v1 = vrot.slane %v16110_v35, 6  ;;  %v1787_v25 = vsel %vm566_vm0, %v1785_v23, %v1786_v22 }
 0x21e   :  { %v16426_v53 = vadd.f32 %v1621_v7, %v1620_v29  ;;  %v1792_v57 = vrot.slane %v16393_v43, 6  ;;  %v1794_v51 = vrot.slane %v16116_v62, 6  ;;  %v1638_v37 = vadd.f32 %v1637_v19, %v1636_v59 }
 0x21f   :  { %v1790_v63 = vsel %vm566_vm0, %v1788_v3, %v1789_v50  ;;  %v1795_v13 = vrot.slane %v16399_v31, 6  ;;  %v1797_v44 = vrot.slane %v16126_v8, 6  ;;  %v1798_v26 = vrot.slane %v16405_v36, 6 }
 0x220   :  { %v1793_v32 = vsel %vm566_vm0, %v1791_v1, %v1792_v57  ;;  %v1800_v35 = vrot.slane %v16139_v48, 6  ;;  %v1801_v16 = vrot.slane %v16419_v46, 6  ;;  %v16438_v20 = vadd.f32 %v1639_v52, %v1638_v37 }
 0x221   :  { %v1796_v2 = vsel %vm566_vm0, %v1794_v51, %v1795_v13  ;;  %v1803_v62 = vrot.slane %v16149_v12, 6  ;;  %v1804_v38 = vrot.slane %v16426_v53, 6  ;;  %v1799_v45 = vsel %vm566_vm0, %v1797_v44, %v1798_v26 }
 0x222   :  { %v1802_v8 = vsel %vm566_vm0, %v1800_v35, %v1801_v16  ;;  %v1806_v47 = vrot.slane %v16153_v61, 6  ;;  %v1817_v28 = vsel %vm421_vm2, %v1787_v25, 0.0  ;;  %v1807_v11 = vrot.slane %v16438_v20, 6 }
 0x223   :  { %v1805_v48 = vsel %vm566_vm0, %v1803_v62, %v1804_v38  ;;  %v1818_v10 = vrot.slane %v1817_v28, 4  ;;  %v1824_v0 = vsel %vm421_vm2, %v1790_v63, 0.0  ;;  %v1831_v6 = vsel %vm421_vm2, %v1793_v32, 0.0 }
 0x224   :  { %v1825_v12 = vrot.slane %v1824_v0, 4  ;;  %v1838_v56 = vsel %vm421_vm2, %v1796_v2, 0.0  ;;  %v1845_v39 = vsel %vm421_vm2, %v1799_v45, 0.0  ;;  %v1808_v61 = vsel %vm566_vm0, %v1806_v47, %v1807_v11 }
 0x225   :  { %v1819_v49 = vadd.f32 %v1818_v10, %v1817_v28  ;;  %v1832_v4 = vrot.slane %v1831_v6, 4  ;;  %v1839_v27 = vrot.slane %v1838_v56, 4  ;;  %v1846_v17 = vrot.slane %v1845_v39, 4 }
 0x226   :  { %v1826_v9 = vadd.f32 %v1825_v12, %v1824_v0  ;;  %v1852_v42 = vsel %vm421_vm2, %v1802_v8, 0.0  ;;  %v1859_v30 = vsel %vm421_vm2, %v1805_v48, 0.0  ;;  %v1866_v24 = vsel %vm421_vm2, %v1808_v61, 0.0 }
 0x227   :  { %v1820_v5 = vrot.slane %v1819_v49, 2  ;;  %v1833_v54 = vadd.f32 %v1832_v4, %v1831_v6  ;;  %v1840_v40 = vadd.f32 %v1839_v27, %v1838_v56  ;;  %v1853_v7 = vrot.slane %v1852_v42, 4 }
 0x228   :  { %v1827_v55 = vrot.slane %v1826_v9, 2  ;;  %v1847_v41 = vadd.f32 %v1846_v17, %v1845_v39  ;;  %v1860_v21 = vrot.slane %v1859_v30, 4  ;;  %v1867_v22 = vrot.slane %v1866_v24, 4 }
 0x229   :  { %v1821_v14 = vadd.f32 %v1820_v5, %v1819_v49  ;;  %v1834_v58 = vrot.slane %v1833_v54, 2  ;;  %v1841_v19 = vrot.slane %v1840_v40, 2  ;;  %v1854_v15 = vadd.f32 %v1853_v7, %v1852_v42 }
 0x22a   :  { %v1828_v52 = vadd.f32 %v1827_v55, %v1826_v9  ;;  %v1848_v29 = vrot.slane %v1847_v41, 2  ;;  %v1861_v23 = vadd.f32 %v1860_v21, %v1859_v30  ;;  %v1868_v37 = vadd.f32 %v1867_v22, %v1866_v24 }
 0x22b   :  { %v1822_v59 = vrot.slane %v1821_v14, 1  ;;  %v1835_v3 = vadd.f32 %v1834_v58, %v1833_v54  ;;  %v1842_v50 = vadd.f32 %v1841_v19, %v1840_v40  ;;  %v1855_v1 = vrot.slane %v1854_v15, 2 }
 0x22c   :  { %v1829_v25 = vrot.slane %v1828_v52, 1  ;;  %v1849_v57 = vadd.f32 %v1848_v29, %v1847_v41  ;;  %v1862_v51 = vrot.slane %v1861_v23, 2  ;;  %v1869_v2 = vrot.slane %v1868_v37, 2 }
 0x22d   :  { %v16459_v63 = vadd.f32 %v1822_v59, %v1821_v14  ;;  %v1836_v13 = vrot.slane %v1835_v3, 1  ;;  %v1843_v44 = vrot.slane %v1842_v50, 1  ;;  %v1856_v32 = vadd.f32 %v1855_v1, %v1854_v15 }
 0x22e   :  { %v16461_v26 = vadd.f32 %v1829_v25, %v1828_v52  ;;  %v1850_v35 = vrot.slane %v1849_v57, 1  ;;  %v1863_v16 = vadd.f32 %v1862_v51, %v1861_v23  ;;  %v1873_v8 = vrot.slane %v16381_v60, 1 }
 0x22f   :  { %v16463_v62 = vadd.f32 %v1836_v13, %v1835_v3  ;;  %v16465_v38 = vadd.f32 %v1843_v44, %v1842_v50  ;;  %v1857_v45 = vrot.slane %v1856_v32, 1  ;;  %v1870_v48 = vadd.f32 %v1869_v2, %v1868_v37 }
 0x230   :  { %v16468_v47 = vadd.f32 %v1850_v35, %v1849_v57  ;;  %v1864_v28 = vrot.slane %v1863_v16, 1  ;;  %v1874_v11 = vrot.slane %v16387_v34, 1  ;;  %v1875_v0 = vrot.slane %v16393_v43, 1 }
 0x231   :  { %v16471_v10 = vadd.f32 %v1857_v45, %v1856_v32  ;;  %v1876_v12 = vrot.slane %v16399_v31, 1  ;;  %v1877_v6 = vrot.slane %v16405_v36, 1  ;;  %v1871_v39 = vrot.slane %v1870_v48, 1 }
 0x232   :  { %v16476_v56 = vadd.f32 %v1864_v28, %v1863_v16  ;;  %v1878_v61 = vrot.slane %v16419_v46, 1  ;;  %v1879_v60 = vrot.slane %v16426_v53, 1  ;;  %v1880_v49 = vrot.slane %v16438_v20, 1 }
 0x233   :  { %v1889_v4 = vsel %vm421_vm2, %v1873_v8, 0.0  ;;  %v1896_v34 = vsel %vm421_vm2, %v1874_v11, 0.0  ;;  %v1903_v27 = vsel %vm421_vm2, %v1875_v0, 0.0  ;;  %v16484_v43 = vadd.f32 %v1871_v39, %v1870_v48 }
 0x234   :  { %v1890_v31 = vrot.slane %v1889_v4, 4  ;;  %v1897_v9 = vrot.slane %v1896_v34, 4  ;;  %v1904_v36 = vrot.slane %v1903_v27, 4  ;;  %v1910_v17 = vsel %vm421_vm2, %v1876_v12, 0.0 }
 0x235   :  { %v1917_v42 = vsel %vm421_vm2, %v1877_v6, 0.0  ;;  %v1924_v46 = vsel %vm421_vm2, %v1878_v61, 0.0  ;;  %v1931_v53 = vsel %vm421_vm2, %v1879_v60, 0.0  ;;  %v1911_v54 = vrot.slane %v1910_v17, 4 }
 0x236   :  { %v1891_v20 = vadd.f32 %v1890_v31, %v1889_v4  ;;  %v1898_v30 = vadd.f32 %v1897_v9, %v1896_v34  ;;  %v1905_v5 = vadd.f32 %v1904_v36, %v1903_v27  ;;  %v1918_v40 = vrot.slane %v1917_v42, 4 }
 0x237   :  { %v1925_v7 = vrot.slane %v1924_v46, 4  ;;  %v1932_v55 = vrot.slane %v1931_v53, 4  ;;  %v1938_v41 = vsel %vm421_vm2, %v1880_v49, 0.0  ;;  %v1912_v58 = vadd.f32 %v1911_v54, %v1910_v17 }
 0x238   :  { %v1892_v21 = vrot.slane %v1891_v20, 2  ;;  %v1899_v24 = vrot.slane %v1898_v30, 2  ;;  %v1906_v14 = vrot.slane %v1905_v5, 2  ;;  %v1919_v19 = vadd.f32 %v1918_v40, %v1917_v42 }
 0x239   :  { %v1926_v15 = vadd.f32 %v1925_v7, %v1924_v46  ;;  %v1933_v52 = vadd.f32 %v1932_v55, %v1931_v53  ;;  %v1939_v29 = vrot.slane %v1938_v41, 4  ;;  %v1913_v3 = vrot.slane %v1912_v58, 2 }
 0x23a   :  { %v1893_v23 = vadd.f32 %v1892_v21, %v1891_v20  ;;  %v1900_v22 = vadd.f32 %v1899_v24, %v1898_v30  ;;  %v1907_v59 = vadd.f32 %v1906_v14, %v1905_v5  ;;  %v1920_v50 = vrot.slane %v1919_v19, 2 }
 0x23b   :  { %v1927_v1 = vrot.slane %v1926_v15, 2  ;;  %v1934_v25 = vrot.slane %v1933_v52, 2  ;;  %v1940_v57 = vadd.f32 %v1939_v29, %v1938_v41  ;;  %v1914_v44 = vadd.f32 %v1913_v3, %v1912_v58 }
 0x23c   :  { %v1894_v51 = vrot.slane %v1893_v23, 1  ;;  %v1901_v37 = vrot.slane %v1900_v22, 1  ;;  %v1908_v13 = vrot.slane %v1907_v59, 1  ;;  %v1921_v32 = vadd.f32 %v1920_v50, %v1919_v19 }
 0x23d   :  { %v1928_v35 = vadd.f32 %v1927_v1, %v1926_v15  ;;  %v1935_v16 = vadd.f32 %v1934_v25, %v1933_v52  ;;  %v1941_v2 = vrot.slane %v1940_v57, 2  ;;  %v1915_v48 = vrot.slane %v1914_v44, 1  ;;  %v3407_v25 = vld [vmem:[#allocation8 + $0x100] sm:$0xff] }
 0x23e   :  { %v1895_v45 = vadd.f32 %v1894_v51, %v1893_v23  ;;  %v1902_v8 = vadd.f32 %v1901_v37, %v1900_v22  ;;  %v1909_v28 = vadd.f32 %v1908_v13, %v1907_v59  ;;  %v1922_v11 = vrot.slane %v1921_v32, 1 }
 0x23f   :  { %v1929_v0 = vrot.slane %v1928_v35, 1  ;;  %v1936_v12 = vrot.slane %v1935_v16, 1  ;;  %v1942_v6 = vadd.f32 %v1941_v2, %v1940_v57  ;;  %v1916_v39 = vadd.f32 %v1915_v48, %v1914_v44  ;;  %v3411_v44 = vld [vmem:[#allocation8 + $0x120] sm:$0xff] }
 0x240   :  { %v2634_v61 = vpack.c.bf16 %v16459_v63, %v16459_v63  ;;  %v2635_v60 = vpack.c.bf16 %v16461_v26, %v16461_v26  ;;  %v2636_v49 = vpack.c.bf16 %v16463_v62, %v16463_v62  ;;  %v1923_v4 = vadd.f32 %v1922_v11, %v1921_v32  ;;  %v3408_v32 = vld [vmem:[#allocation8 + $0x108] sm:$0xff] }
 0x241   :  { %v1930_v34 = vadd.f32 %v1929_v0, %v1928_v35  ;;  %v1937_v27 = vadd.f32 %v1936_v12, %v1935_v16  ;;  %v1943_v31 = vrot.slane %v1942_v6, 1  ;;  %v2637_v9 = vpack.c.bf16 %v16465_v38, %v16465_v38  ;;  %v3412_v35 = vld [vmem:[#allocation8 + $0x128] sm:$0xff] }
 0x242   :  { %v2638_v36 = vpack.c.bf16 %v16468_v47, %v16468_v47  ;;  %v2639_v17 = vpack.c.bf16 %v16471_v10, %v16471_v10  ;;  %v2640_v63 = vpack.c.bf16 %v16476_v56, %v16476_v56  ;;  %v2641_v62 = vpack.c.bf16 %v16484_v43, %v16484_v43 }
 0x243   :  { %v1944_v26 = vadd.f32 %v1943_v31, %v1942_v6  ;;  %v2642_v42 = vpack.c.bf16 %v1895_v45, %v1895_v45  ;;  %v2643_v46 = vpack.c.bf16 %v1902_v8, %v1902_v8  ;;  %v2644_v53 = vpack.c.bf16 %v1909_v28, %v1909_v28  ;;  %v3415_v28 = vld [vmem:[#allocation8 + $0x140] sm:$0xff] }
 0x244   :  { %v2645_v20 = vpack.c.bf16 %v1916_v39, %v1916_v39  ;;  %v2646_v30 = vpack.c.bf16 %v1923_v4, %v1923_v4  ;;  %v2647_v5 = vpack.c.bf16 %v1930_v34, %v1930_v34  ;;  %v2648_v38 = vpack.c.bf16 %v1937_v27, %v1937_v27  ;;  %v3419_v6 = vld [vmem:[#allocation8 + $0x160] sm:$0xff]  ;;  %v3416_v39 = vld [vmem:[#allocation8 + $0x148] sm:$0xff] }
 0x245   :  { %v2649_v54 = vpack.c.bf16 %v1944_v26, %v1944_v26  ;;  %v2898_v40 = vunpack.c.l.b16 %v2634_v61  ;;  %v2899_v47 = vunpack.c.l.b16 %v2635_v60  ;;  %v2900_v7 = vunpack.c.l.b16 %v2636_v49  ;;  %v3420_v61 = vld [vmem:[#allocation8 + $0x168] sm:$0xff] }
 0x246   :  { %v2901_v55 = vunpack.c.l.b16 %v2637_v9  ;;  %v2902_v10 = vunpack.c.l.b16 %v2638_v36  ;;  %v2903_v41 = vunpack.c.l.b16 %v2639_v17  ;;  %v2904_v21 = vunpack.c.l.b16 %v2640_v63  ;;  %v16513_v27 = vld [vmem:[#allocation2 + $0x48] ss:$8 sps:$4 sm:$0xff]   ;;  %v16517_v63 = vld [vmem:[#allocation7] ss:$0 sm:$0xff] }
 0x247   :  { %v2905_v56 = vunpack.c.l.b16 %v2641_v62  ;;  %v2906_v24 = vunpack.c.l.b16 %v2642_v42  ;;  %v2907_v14 = vunpack.c.l.b16 %v2643_v46  ;;  %v2908_v58 = vunpack.c.l.b16 %v2644_v53  ;;  %v16521_v53 = vld [vmem:[#allocation2 + $0x58] ss:$8 sps:$4 sm:$0xff]  }
 0x248   :  { %v2909_v43 = vunpack.c.l.b16 %v2645_v20  ;;  %v2910_v19 = vunpack.c.l.b16 %v2646_v30  ;;  %v2911_v15 = vunpack.c.l.b16 %v2647_v5  ;;  %v2912_v52 = vunpack.c.l.b16 %v2648_v38  ;;  %v16525_v38 = vld [vmem:[#allocation2 + $0x68] ss:$80 sps:$4 sm:$0xff]  }
 0x249   :  { %v2913_v29 = vunpack.c.l.b16 %v2649_v54  ;;  %v3093_v23 = vrot.slane %v2899_v47, 7  ;;  %v3095_v22 = vrot.slane %v2900_v7, 6  ;;  %v3097_v59 = vrot.slane %v2901_v55, 5  ;;  %v16527_v54 = vld [vmem:[#allocation2 + $0xc0] ss:$8 sps:$4 sm:$0xff]  }
 0x24a   :  { %v3099_v3 = vrot.slane %v2902_v10, 4  ;;  %v3101_v50 = vrot.slane %v2903_v41, 3  ;;  %v3103_v1 = vrot.slane %v2904_v21, 2  ;;  %v3105_v51 = vrot.slane %v2905_v56, 1  ;;  %v16535_v10 = vld [vmem:[#allocation2 + $0xd0] ss:$8 sps:$4 sm:$0xff]  }
 0x24b   :  { %v3094_v57 = vsel %vm2947_vm3, %v3093_v23, %v2898_v40  ;;  %v3107_v37 = vrot.slane %v2907_v14, 7  ;;  %v3109_v13 = vrot.slane %v2908_v58, 6  ;;  %v3111_v2 = vrot.slane %v2909_v43, 5  ;;  %v16537_v41 = vld [vmem:[#allocation2 + $0x128] ss:$8 sps:$4 sm:$0xff]  }
 0x24c   :  { %v3096_v16 = vsel %vm2950_vm4, %v3095_v22, %v3094_v57  ;;  %v3113_v45 = vrot.slane %v2910_v19, 4  ;;  %v3115_v8 = vrot.slane %v2911_v15, 3  ;;  %v3117_v0 = vrot.slane %v2912_v52, 2  ;;  %v16543_v14 = vld [vmem:[#allocation2 + $0x148] ss:$80 sps:$4 sm:$0xff]  }
 0x24d   :  { %v3098_v48 = vsel %vm2953_vm5, %v3097_v59, %v3096_v16  ;;  %v3108_v11 = vsel %vm2947_vm3, %v3107_v37, %v2906_v24  ;;  %v3119_v12 = vrot.slane %v2913_v29, 1  ;;  %v13066_v4 = vcombine.high %v3407_v25, %v3411_v44  ;;  %v16541_v24 = vld [vmem:[#allocation2 + $0x138] ss:$8 sps:$4 sm:$0xff]   ;;  %v16555_v59 = vld [vmem:[#allocation2 + $0x208] ss:$8 sps:$4 sm:$0xff]  }
 0x24e   :  { %v3100_v60 = vsel %vm2956_vm6, %v3099_v3, %v3098_v48  ;;  %v3110_v49 = vsel %vm2950_vm4, %v3109_v13, %v3108_v11  ;;  %v13067_v34 = vcombine.low %v3408_v32, %v3412_v35  ;;  %v13068_v36 = vcombine.high %v3408_v32, %v3412_v35  ;;  %v16549_v52 = vld [vmem:[#allocation2 + $0x1a0] ss:$8 sps:$4 sm:$0xff]   ;;  %v16551_v29 = vld [vmem:[#allocation2 + $0x1b0] ss:$8 sps:$4 sm:$0xff]   ;;  %v16862_v15 = vld [vmem:[#allocation2 + $0x36c] sm:$0x7] }
 0x24f   :  { %v3102_v31 = vsel %vm2959_vm7, %v3101_v50, %v3100_v60  ;;  %v3112_v9 = vsel %vm2953_vm5, %v3111_v2, %v3110_v49  ;;  %v13065_v17 = vcombine.low %v3407_v25, %v3411_v44  ;;  %3767 = vmatprep.subr.bf16.mxu1 %v13066_v4  ;;  %v13074_v42 = vcombine.high %v3415_v28, %v3419_v6  ;;  %v16557_v3 = vld [vmem:[#allocation2 + $0x218] ss:$8 sps:$4 sm:$0xff]   ;;  %v16574_v2 = vld [vmem:[#allocation2 + $0x2e8] ss:$8 sps:$4 sm:$0xff]  }
 0x250   :  { %v3104_v26 = vsel %vm2962_vm8, %v3103_v1, %v3102_v31  ;;  %v3114_v62 = vsel %vm2956_vm6, %v3113_v45, %v3112_v9  ;;  %v13075_v46 = vcombine.low %v3416_v39, %v3420_v61  ;;  %3808 = vmatprep.subr.bf16.mxu0 %v13068_v36  ;;  %v13076_v5 = vcombine.high %v3416_v39, %v3420_v61  ;;  %v16566_v37 = vld [vmem:[#allocation2 + $0x280] ss:$8 sps:$4 sm:$0xff]   ;;  %v16572_v16 = vld [vmem:[#allocation2 + $0x290] ss:$8 sps:$4 sm:$0xff]  }
 0x251   :  { %v3106_v20 = vsel %vm2965_vm9, %v3105_v51, %v3104_v26  ;;  %v3116_v30 = vsel %vm2959_vm7, %v3115_v8, %v3114_v62  ;;  %3768 = vmatpush1.bf16.msra.mxu1 %v13065_v17  ;;  %v2026_v40 = vunpack.c.l.bf16 %v16513_v27  ;;  %3809 = vmatpush1.bf16.msra.mxu0 %v13067_v34  ;;  %v13073_v7 = vcombine.low %v3415_v28, %v3419_v6  ;;  %v16564_v51 = vld [vmem:[#allocation2 + $0x228] ss:$80 sps:$4 sm:$0xff]  }
 0x252   :  { %v3118_v47 = vsel %vm2962_vm8, %v3117_v0, %v3116_v30  ;;  %3769 = vmatprep.subr.bf16.mxu1 %v13074_v42  ;;  %v16533_v55 = vadd.f32 %v16207_v18, %v16517_v63  ;;  %v2028_v21 = vunpack.c.h.bf16 %v16513_v27  ;;  %3810 = vmatprep.subr.bf16.mxu0 %v13076_v5  ;;  %v2030_v58 = vunpack.c.l.bf16 %v16521_v53  ;;  %v16580_v11 = vld [vmem:[#allocation2 + $0x2f8] ss:$8 sps:$4 sm:$0xff]  }
 0x253   :  { %v3120_v56 = vsel %vm2965_vm9, %v3119_v12, %v3118_v47  ;;  %v2032_v43 = vunpack.c.h.bf16 %v16521_v53  ;;  %v2034_v18 = vunpack.c.l.bf16 %v16525_v38  ;;  %v2036_v23 = vunpack.c.h.bf16 %v16525_v38  ;;  %v16586_v61 = vld [vmem:[#allocation2 + $0x308] ss:$80 sps:$4 sm:$0xff]  }
 0x254   :  { %v3182_v19 = vpack.c.b16 %v3120_v56, %v3106_v20  ;;  %v2038_v22 = vunpack.c.l.bf16 %v16527_v54  ;;  %v2040_v50 = vunpack.c.h.bf16 %v16527_v54  ;;  %v2042_v1 = vunpack.c.l.bf16 %v16535_v10  ;;  %v16588_v60 = vld [vmem:[#allocation2 + $0x360] ss:$8 sps:$4 sm:$0xff]   ;;  %v16590_v49 = vld [vmem:[#allocation2 + $0x370] ss:$8 sps:$4 sm:$0xff]  }
 0x255   :  { %3770 = vmatpush1.bf16.msra.mxu1 %v13073_v7  ;;  %v2044_v25 = vunpack.c.h.bf16 %v16535_v10  ;;  %v2046_v57 = vunpack.c.l.bf16 %v16537_v41  ;;  %v2048_v13 = vunpack.c.h.bf16 %v16537_v41  ;;  %v2050_v44 = vunpack.c.l.bf16 %v16541_v24  ;;  %3811 = vmatpush1.bf16.msra.mxu0 %v13075_v46 }
 0x256   :  { %14230 = vmatmul.mubr.msk.bf16.gmra.mrb[8].mxu0 %vm275_vm1, %v3182_v19  ;;  %v2052_v32 = vunpack.c.h.bf16 %v16541_v24  ;;  %v2054_v35 = vunpack.c.l.bf16 %v16543_v14  ;;  %v2056_v45 = vunpack.c.h.bf16 %v16543_v14  ;;  %v2058_v8 = vunpack.c.l.bf16 %v16549_v52 }
 0x257   :  { %v2060_v28 = vunpack.c.h.bf16 %v16549_v52  ;;  %v2062_v48 = vunpack.c.l.bf16 %v16551_v29  ;;  %v2064_v0 = vunpack.c.h.bf16 %v16551_v29  ;;  %v2066_v12 = vunpack.c.l.bf16 %v16555_v59 }
 0x258   :  { %v2068_v6 = vunpack.c.h.bf16 %v16555_v59  ;;  %v2070_v39 = vunpack.c.l.bf16 %v16557_v3  ;;  %v2072_v4 = vunpack.c.h.bf16 %v16557_v3  ;;  %v2074_v34 = vunpack.c.l.bf16 %v16564_v51 }
 0x259   :  { %v2076_v31 = vunpack.c.h.bf16 %v16564_v51  ;;  %v2078_v9 = vunpack.c.l.bf16 %v16566_v37  ;;  %v2080_v36 = vunpack.c.h.bf16 %v16566_v37  ;;  %v2082_v17 = vunpack.c.l.bf16 %v16572_v16 }
 0x25a   :  { %v2084_v26 = vunpack.c.h.bf16 %v16572_v16  ;;  %v2086_v62 = vunpack.c.l.bf16 %v16574_v2  ;;  %v2088_v42 = vunpack.c.h.bf16 %v16574_v2  ;;  %v2090_v46 = vunpack.c.l.bf16 %v16580_v11 }
 0x25b   :  { %v2092_v53 = vunpack.c.h.bf16 %v16580_v11  ;;  %v2094_v20 = vunpack.c.l.bf16 %v16586_v61  ;;  %v2096_v30 = vunpack.c.h.bf16 %v16586_v61  ;;  %v2098_v5 = vunpack.c.l.bf16 %v16588_v60 }
 0x25c   :  { %v2100_v38 = vunpack.c.h.bf16 %v16588_v60  ;;  %v2102_v54 = vunpack.c.l.bf16 %v16590_v49  ;;  %v2104_v47 = vunpack.c.h.bf16 %v16590_v49  ;;  %v2106_v7 = vsel %vm275_vm1, %v2026_v40, 0.0 }
 0x25d   :  { %v2107_v10 = vsel %vm275_vm1, %v2028_v21, 0.0  ;;  %v2109_v41 = vsel %vm275_vm1, %v2030_v58, 0.0  ;;  %v2111_v24 = vsel %vm275_vm1, %v2032_v43, 0.0  ;;  %v2113_v14 = vsel %vm275_vm1, %v2034_v18, 0.0 }
 0x25e   :  { %v2108_v56 = vadd.f32 %v2107_v10, %v2106_v7  ;;  %v2124_v19 = vsel %vm275_vm1, %v2036_v23, 0.0  ;;  %v2125_v52 = vsel %vm275_vm1, %v2038_v22, 0.0  ;;  %v2127_v29 = vsel %vm275_vm1, %v2040_v50, 0.0 }
 0x25f   :  { %v2129_v59 = vsel %vm275_vm1, %v2042_v1, 0.0  ;;  %v2131_v27 = vsel %vm275_vm1, %v2044_v25, 0.0  ;;  %v2126_v3 = vadd.f32 %v2125_v52, %v2124_v19  ;;  %v2142_v21 = vsel %vm275_vm1, %v2046_v57, 0.0 }
 0x260   :  { %v2110_v40 = vadd.f32 %v2109_v41, %v2108_v56  ;;  %v2143_v58 = vsel %vm275_vm1, %v2048_v13, 0.0  ;;  %v2145_v43 = vsel %vm275_vm1, %v2050_v44, 0.0  ;;  %v2147_v18 = vsel %vm275_vm1, %v2052_v32, 0.0 }
 0x261   :  { %v2144_v51 = vadd.f32 %v2143_v58, %v2142_v21  ;;  %v2149_v23 = vsel %vm275_vm1, %v2054_v35, 0.0  ;;  %v2128_v37 = vadd.f32 %v2127_v29, %v2126_v3  ;;  %v2160_v50 = vsel %vm275_vm1, %v2056_v45, 0.0 }
 0x262   :  { %v2112_v22 = vadd.f32 %v2111_v24, %v2110_v40  ;;  %v2161_v1 = vsel %vm275_vm1, %v2058_v8, 0.0  ;;  %v2163_v2 = vsel %vm275_vm1, %v2060_v28, 0.0  ;;  %v2165_v57 = vsel %vm275_vm1, %v2062_v48, 0.0 }
 0x263   :  { %v2146_v25 = vadd.f32 %v2145_v43, %v2144_v51  ;;  %v2162_v16 = vadd.f32 %v2161_v1, %v2160_v50  ;;  %v2130_v11 = vadd.f32 %v2129_v59, %v2128_v37  ;;  %v2167_v44 = vsel %vm275_vm1, %v2064_v0, 0.0 }
 0x264   :  { %v16630_v13 = vadd.f32 %v2113_v14, %v2112_v22  ;;  %v2178_v32 = vsel %vm275_vm1, %v2066_v12, 0.0  ;;  %v2179_v7 = vsel %vm275_vm1, %v2068_v6, 0.0  ;;  %v2181_v45 = vsel %vm275_vm1, %v2070_v39, 0.0 }
 0x265   :  { %v2148_v35 = vadd.f32 %v2147_v18, %v2146_v25  ;;  %v2164_v61 = vadd.f32 %v2163_v2, %v2162_v16  ;;  %v16636_v8 = vadd.f32 %v2131_v27, %v2130_v11  ;;  %v2180_v10 = vadd.f32 %v2179_v7, %v2178_v32  ;;  %v16683_v25 = vpop.f32.mrb[2].mxu0 }
 0x266   :  { %v2183_v28 = vsel %vm275_vm1, %v2072_v4, 0.0  ;;  %v2185_v48 = vsel %vm275_vm1, %v2074_v34, 0.0  ;;  %v2196_v0 = vsel %vm275_vm1, %v2076_v31, 0.0  ;;  %v2197_v12 = vsel %vm275_vm1, %v2078_v9, 0.0 }
 0x267   :  { %v16640_v41 = vadd.f32 %v2149_v23, %v2148_v35  ;;  %v2166_v56 = vadd.f32 %v2165_v57, %v2164_v61  ;;  %v2182_v24 = vadd.f32 %v2181_v45, %v2180_v10  ;;  %v2198_v14 = vadd.f32 %v2197_v12, %v2196_v0 }
 0x268   :  { %v2199_v6 = vsel %vm275_vm1, %v2080_v36, 0.0  ;;  %v2201_v39 = vsel %vm275_vm1, %v2082_v17, 0.0  ;;  %v2203_v52 = vsel %vm275_vm1, %v2084_v26, 0.0  ;;  %v2214_v4 = vsel %vm275_vm1, %v2086_v62, 0.0 }
 0x269   :  { %v16646_v19 = vadd.f32 %v2167_v44, %v2166_v56  ;;  %v2215_v34 = vsel %vm275_vm1, %v2088_v42, 0.0  ;;  %v2184_v29 = vadd.f32 %v2183_v28, %v2182_v24  ;;  %v2200_v59 = vadd.f32 %v2199_v6, %v2198_v14  ;;  %v16687_v44 = vpop.f32.mrb[3].mxu0 }
 0x26a   :  { %v2216_v27 = vadd.f32 %v2215_v34, %v2214_v4  ;;  %v2217_v31 = vsel %vm275_vm1, %v2090_v46, 0.0  ;;  %v2219_v9 = vsel %vm275_vm1, %v2092_v53, 0.0  ;;  %v2221_v40 = vsel %vm275_vm1, %v2094_v20, 0.0 }
 0x26b   :  { %v2232_v36 = vsel %vm275_vm1, %v2096_v30, 0.0  ;;  %v2233_v17 = vsel %vm275_vm1, %v2098_v5, 0.0  ;;  %v16656_v3 = vadd.f32 %v2185_v48, %v2184_v29  ;;  %v2202_v26 = vadd.f32 %v2201_v39, %v2200_v59 }
 0x26c   :  { %v2218_v21 = vadd.f32 %v2217_v31, %v2216_v27  ;;  %v2234_v62 = vadd.f32 %v2233_v17, %v2232_v36  ;;  %v2235_v42 = vsel %vm275_vm1, %v2100_v38, 0.0  ;;  %v2237_v46 = vsel %vm275_vm1, %v2102_v54, 0.0 }
 0x26d   :  { %v2239_v53 = vsel %vm275_vm1, %v2104_v47, 0.0  ;;  %v2250_v20 = vsel %vm421_vm2, %v16630_v13, 0.0  ;;  %v16669_v30 = vadd.f32 %v2203_v52, %v2202_v26  ;;  %v2257_v60 = vsel %vm421_vm2, %v16636_v8, 0.0 }
 0x26e   :  { %v2220_v5 = vadd.f32 %v2219_v9, %v2218_v21  ;;  %v2236_v58 = vadd.f32 %v2235_v42, %v2234_v62  ;;  %v2251_v51 = vrot.slane %v2250_v20, 4  ;;  %v2264_v38 = vsel %vm421_vm2, %v16640_v41, 0.0 }
 0x26f   :  { %v2271_v54 = vsel %vm421_vm2, %v16646_v19, 0.0  ;;  %v2278_v49 = vsel %vm421_vm2, %v16656_v3, 0.0  ;;  %v2258_v23 = vrot.slane %v2257_v60, 4  ;;  %v2265_v22 = vrot.slane %v2264_v38, 4 }
 0x270   :  { %v16679_v47 = vadd.f32 %v2221_v40, %v2220_v5  ;;  %v2238_v43 = vadd.f32 %v2237_v46, %v2236_v58  ;;  %v2252_v18 = vadd.f32 %v2251_v51, %v2250_v20  ;;  %v2272_v37 = vrot.slane %v2271_v54, 4 }
 0x271   :  { %v2279_v50 = vrot.slane %v2278_v49, 4  ;;  %v2285_v1 = vsel %vm421_vm2, %v16669_v30, 0.0  ;;  %v2259_v57 = vadd.f32 %v2258_v23, %v2257_v60  ;;  %v2266_v32 = vadd.f32 %v2265_v22, %v2264_v38 }
 0x272   :  { %v16685_v16 = vadd.f32 %v2239_v53, %v2238_v43  ;;  %v2253_v2 = vrot.slane %v2252_v18, 2  ;;  %v2286_v11 = vrot.slane %v2285_v1, 4  ;;  %v2273_v35 = vadd.f32 %v2272_v37, %v2271_v54 }
 0x273   :  { %v2280_v61 = vadd.f32 %v2279_v50, %v2278_v49  ;;  %v2292_v7 = vsel %vm421_vm2, %v16679_v47, 0.0  ;;  %v2260_v10 = vrot.slane %v2259_v57, 2  ;;  %v2267_v56 = vrot.slane %v2266_v32, 2 }
 0x274   :  { %v2254_v45 = vadd.f32 %v2253_v2, %v2252_v18  ;;  %v2287_v28 = vadd.f32 %v2286_v11, %v2285_v1  ;;  %v2293_v48 = vrot.slane %v2292_v7, 4  ;;  %v2274_v0 = vrot.slane %v2273_v35, 2 }
 0x275   :  { %v2281_v12 = vrot.slane %v2280_v61, 2  ;;  %v2299_v24 = vsel %vm421_vm2, %v16685_v16, 0.0  ;;  %v2261_v6 = vadd.f32 %v2260_v10, %v2259_v57  ;;  %v2268_v4 = vadd.f32 %v2267_v56, %v2266_v32 }
 0x276   :  { %v2255_v14 = vrot.slane %v2254_v45, 1  ;;  %v2288_v39 = vrot.slane %v2287_v28, 2  ;;  %v2294_v52 = vadd.f32 %v2293_v48, %v2292_v7  ;;  %v2275_v34 = vadd.f32 %v2274_v0, %v2273_v35 }
 0x277   :  { %v2282_v29 = vadd.f32 %v2281_v12, %v2280_v61  ;;  %v2300_v59 = vrot.slane %v2299_v24, 4  ;;  %v2262_v31 = vrot.slane %v2261_v6, 1  ;;  %v2269_v36 = vrot.slane %v2268_v4, 1 }
 0x278   :  { %v16693_v27 = vadd.f32 %v2255_v14, %v2254_v45  ;;  %v2289_v9 = vadd.f32 %v2288_v39, %v2287_v28  ;;  %v2295_v40 = vrot.slane %v2294_v52, 2  ;;  %v2276_v17 = vrot.slane %v2275_v34, 1 }
 0x279   :  { %v2283_v26 = vrot.slane %v2282_v29, 1  ;;  %v2301_v21 = vadd.f32 %v2300_v59, %v2299_v24  ;;  %v16695_v62 = vadd.f32 %v2262_v31, %v2261_v6  ;;  %v2314_v53 = vrot.slane %v16630_v13, 3 }
 0x27a   :  { %v2290_v42 = vrot.slane %v2289_v9, 1  ;;  %v2296_v46 = vadd.f32 %v2295_v40, %v2294_v52  ;;  %v16698_v20 = vadd.f32 %v2269_v36, %v2268_v4  ;;  %v16700_v5 = vadd.f32 %v2276_v17, %v2275_v34 }
 0x27b   :  { %v16702_v58 = vadd.f32 %v2283_v26, %v2282_v29  ;;  %v2302_v51 = vrot.slane %v2301_v21, 2  ;;  %v2315_v54 = vrot.slane %v16636_v8, 3  ;;  %v2316_v49 = vrot.slane %v16640_v41, 3 }
 0x27c   :  { %v16704_v60 = vadd.f32 %v2290_v42, %v2289_v9  ;;  %v2297_v38 = vrot.slane %v2296_v46, 1  ;;  %v2317_v18 = vrot.slane %v16646_v19, 3  ;;  %v2318_v23 = vrot.slane %v16656_v3, 3 }
 0x27d   :  { %v2303_v43 = vadd.f32 %v2302_v51, %v2301_v21  ;;  %v2319_v22 = vrot.slane %v16669_v30, 3  ;;  %v2320_v50 = vrot.slane %v16679_v47, 3  ;;  %v2321_v1 = vrot.slane %v16685_v16, 3 }
 0x27e   :  { %v16711_v37 = vadd.f32 %v2297_v38, %v2296_v46  ;;  %v2330_v2 = vsel %vm421_vm2, %v2314_v53, 0.0  ;;  %v2337_v32 = vsel %vm421_vm2, %v2315_v54, 0.0  ;;  %v2344_v35 = vsel %vm421_vm2, %v2316_v49, 0.0 }
 0x27f   :  { %v2304_v57 = vrot.slane %v2303_v43, 1  ;;  %v2331_v11 = vrot.slane %v2330_v2, 4  ;;  %v2338_v61 = vrot.slane %v2337_v32, 4  ;;  %v2345_v7 = vrot.slane %v2344_v35, 4 }
 0x280   :  { %v2351_v45 = vsel %vm421_vm2, %v2317_v18, 0.0  ;;  %v2358_v10 = vsel %vm421_vm2, %v2318_v23, 0.0  ;;  %v2365_v14 = vsel %vm421_vm2, %v2319_v22, 0.0  ;;  %v2372_v6 = vsel %vm421_vm2, %v2320_v50, 0.0 }
 0x281   :  { %v16720_v28 = vadd.f32 %v2304_v57, %v2303_v43  ;;  %v2332_v48 = vadd.f32 %v2331_v11, %v2330_v2  ;;  %v2352_v56 = vrot.slane %v2351_v45, 4  ;;  %v2359_v0 = vrot.slane %v2358_v10, 4 }
 0x282   :  { %v2339_v12 = vadd.f32 %v2338_v61, %v2337_v32  ;;  %v2346_v24 = vadd.f32 %v2345_v7, %v2344_v35  ;;  %v2366_v34 = vrot.slane %v2365_v14, 4  ;;  %v2373_v31 = vrot.slane %v2372_v6, 4 }
 0x283   :  { %v2333_v39 = vrot.slane %v2332_v48, 2  ;;  %v2353_v52 = vadd.f32 %v2352_v56, %v2351_v45  ;;  %v2360_v4 = vadd.f32 %v2359_v0, %v2358_v10  ;;  %v2379_v9 = vsel %vm421_vm2, %v2321_v1, 0.0 }
 0x284   :  { %v2340_v29 = vrot.slane %v2339_v12, 2  ;;  %v2347_v59 = vrot.slane %v2346_v24, 2  ;;  %v2367_v26 = vadd.f32 %v2366_v34, %v2365_v14  ;;  %v2374_v46 = vadd.f32 %v2373_v31, %v2372_v6 }
 0x285   :  { %v2334_v40 = vadd.f32 %v2333_v39, %v2332_v48  ;;  %v2354_v36 = vrot.slane %v2353_v52, 2  ;;  %v2361_v17 = vrot.slane %v2360_v4, 2  ;;  %v2380_v53 = vrot.slane %v2379_v9, 4 }
 0x286   :  { %v2341_v21 = vadd.f32 %v2340_v29, %v2339_v12  ;;  %v2348_v42 = vadd.f32 %v2347_v59, %v2346_v24  ;;  %v2368_v49 = vrot.slane %v2367_v26, 2  ;;  %v2375_v23 = vrot.slane %v2374_v46, 2 }
 0x287   :  { %v2335_v51 = vrot.slane %v2334_v40, 1  ;;  %v2355_v38 = vadd.f32 %v2354_v36, %v2353_v52  ;;  %v2362_v54 = vadd.f32 %v2361_v17, %v2360_v4  ;;  %v2381_v22 = vadd.f32 %v2380_v53, %v2379_v9 }
 0x288   :  { %v2342_v43 = vrot.slane %v2341_v21, 1  ;;  %v2349_v18 = vrot.slane %v2348_v42, 1  ;;  %v2369_v1 = vadd.f32 %v2368_v49, %v2367_v26  ;;  %v2376_v35 = vadd.f32 %v2375_v23, %v2374_v46 }
 0x289   :  { %v2336_v50 = vadd.f32 %v2335_v51, %v2334_v40  ;;  %v2356_v2 = vrot.slane %v2355_v38, 1  ;;  %v2363_v57 = vrot.slane %v2362_v54, 1  ;;  %v2382_v61 = vrot.slane %v2381_v22, 2 }
 0x28a   :  { %v2343_v11 = vadd.f32 %v2342_v43, %v2341_v21  ;;  %v2350_v32 = vadd.f32 %v2349_v18, %v2348_v42  ;;  %v2370_v10 = vrot.slane %v2369_v1, 1  ;;  %v2650_v48 = vpack.c.bf16 %v16693_v27, %v16693_v27 }
 0x28b   :  { %v2357_v7 = vadd.f32 %v2356_v2, %v2355_v38  ;;  %v2364_v45 = vadd.f32 %v2363_v57, %v2362_v54  ;;  %v2377_v56 = vrot.slane %v2376_v35, 1  ;;  %v2383_v0 = vadd.f32 %v2382_v61, %v2381_v22 }
 0x28c   :  { %v2651_v12 = vpack.c.bf16 %v16695_v62, %v16695_v62  ;;  %v2652_v24 = vpack.c.bf16 %v16698_v20, %v16698_v20  ;;  %v2371_v14 = vadd.f32 %v2370_v10, %v2369_v1  ;;  %v2653_v6 = vpack.c.bf16 %v16700_v5, %v16700_v5 }
 0x28d   :  { %v2654_v39 = vpack.c.bf16 %v16702_v58, %v16702_v58  ;;  %v2655_v52 = vpack.c.bf16 %v16704_v60, %v16704_v60  ;;  %v2378_v4 = vadd.f32 %v2377_v56, %v2376_v35  ;;  %v2384_v27 = vrot.slane %v2383_v0, 1  ;;  %v16743_v35 = vld [vmem:[#allocation2 + $0x4c] sm:$0x7] }
 0x28e   :  { %v2656_v34 = vpack.c.bf16 %v16711_v37, %v16711_v37  ;;  %v2657_v62 = vpack.c.bf16 %v16720_v28, %v16720_v28  ;;  %v2658_v29 = vpack.c.bf16 %v2336_v50, %v2336_v50  ;;  %v2659_v20 = vpack.c.bf16 %v2343_v11, %v2343_v11 }
 0x28f   :  { %v2660_v59 = vpack.c.bf16 %v2350_v32, %v2350_v32  ;;  %v2661_v31 = vpack.c.bf16 %v2357_v7, %v2357_v7  ;;  %v2385_v9 = vadd.f32 %v2384_v27, %v2383_v0  ;;  %v2662_v5 = vpack.c.bf16 %v2364_v45, %v2364_v45 }
 0x290   :  { %v2663_v40 = vpack.c.bf16 %v2371_v14, %v2371_v14  ;;  %v2664_v36 = vpack.c.bf16 %v2378_v4, %v2378_v4  ;;  %v2914_v58 = vunpack.c.l.b16 %v2650_v48  ;;  %v2915_v17 = vunpack.c.l.b16 %v2651_v12  ;;  %v16746_v48 = vld [vmem:[#allocation2 + $0x54] sm:$0x7]  ;;  %v16749_v14 = vld [vmem:[#allocation2 + $0x5c] sm:$0x7] }
 0x291   :  { %v2916_v26 = vunpack.c.l.b16 %v2652_v24  ;;  %v2917_v60 = vunpack.c.l.b16 %v2653_v6  ;;  %v2665_v21 = vpack.c.bf16 %v2385_v9, %v2385_v9  ;;  %v2918_v42 = vunpack.c.l.b16 %v2654_v39  ;;  %v16751_v6 = vld [vmem:[#allocation2 + $0xbc] sm:$0x7]  ;;  %v16753_v39 = vld [vmem:[#allocation2 + $0xc4] sm:$0x7]  ;;  %v16770_v9 = vld [vmem:[#allocation2 + $0xd4] sm:$0x7] }
 0x292   :  { %v2919_v46 = vunpack.c.l.b16 %v2655_v52  ;;  %v2920_v53 = vunpack.c.l.b16 %v2656_v34  ;;  %v2921_v37 = vunpack.c.l.b16 %v2657_v62  ;;  %v2922_v51 = vunpack.c.l.b16 %v2658_v29  ;;  %v16762_v62 = vld [vmem:[#allocation2 + $0x64] sm:$0x7]  ;;  %v16764_v29 = vld [vmem:[#allocation2 + $0x6c] sm:$0x7] }
 0x293   :  { %v2923_v38 = vunpack.c.l.b16 %v2659_v20  ;;  %v2924_v28 = vunpack.c.l.b16 %v2660_v59  ;;  %v2925_v54 = vunpack.c.l.b16 %v2661_v31  ;;  %v2926_v49 = vunpack.c.l.b16 %v2662_v5  ;;  %v16766_v20 = vld [vmem:[#allocation2 + $0xcc] sm:$0x7]  ;;  %v16772_v5 = vld [vmem:[#allocation2 + $0xdc] sm:$0x7] }
 0x294   :  { %v2927_v43 = vunpack.c.l.b16 %v2663_v40  ;;  %v2928_v18 = vunpack.c.l.b16 %v2664_v36  ;;  %v16741_v23 = vunpack.c.l.b16 %v2665_v21  ;;  %v3121_v22 = vrot.slane %v2915_v17, 7  ;;  %v16774_v40 = vld [vmem:[#allocation2 + $0x12c] sm:$0x7]  ;;  %v16776_v36 = vld [vmem:[#allocation2 + $0x134] sm:$0x7] }
 0x295   :  { %v3123_v50 = vrot.slane %v2916_v26, 6  ;;  %v3125_v2 = vrot.slane %v2917_v60, 5  ;;  %v3127_v57 = vrot.slane %v2918_v42, 4  ;;  %v3129_v1 = vrot.slane %v2919_v46, 3  ;;  %v16785_v21 = vld [vmem:[#allocation2 + $0x144] sm:$0x7] }
 0x296   :  { %v3131_v11 = vrot.slane %v2920_v53, 2  ;;  %v3133_v32 = vrot.slane %v2921_v37, 1  ;;  %v3122_v61 = vsel %vm2947_vm3, %v3121_v22, %v2914_v58  ;;  %v3135_v7 = vrot.slane %v2923_v38, 7  ;;  %v16787_v42 = vld [vmem:[#allocation2 + $0x14c] sm:$0x7] }
 0x297   :  { %v3137_v45 = vrot.slane %v2924_v28, 6  ;;  %v3139_v10 = vrot.slane %v2925_v54, 5  ;;  %v3124_v56 = vsel %vm2950_vm4, %v3123_v50, %v3122_v61  ;;  %v3141_v0 = vrot.slane %v2926_v49, 4  ;;  %v16789_v46 = vld [vmem:[#allocation2 + $0x19c] sm:$0x7] }
 0x298   :  { %v3143_v12 = vrot.slane %v2927_v43, 3  ;;  %v3145_v24 = vrot.slane %v2928_v18, 2  ;;  %v3126_v52 = vsel %vm2953_vm5, %v3125_v2, %v3124_v56  ;;  %v3136_v4 = vsel %vm2947_vm3, %v3135_v7, %v2922_v51  ;;  %v16794_v38 = vld [vmem:[#allocation2 + $0x1a4] sm:$0x7]  ;;  %v16796_v28 = vld [vmem:[#allocation2 + $0x1ac] sm:$0x7] }
 0x299   :  { %v3147_v27 = vrot.slane %v16741_v23, 1  ;;  %v16760_v34 = vadd.f32 %v16517_v63, %v16447_v33  ;;  %v3128_v59 = vsel %vm2956_vm6, %v3127_v57, %v3126_v52  ;;  %v3138_v31 = vsel %vm2950_vm4, %v3137_v45, %v3136_v4  ;;  %v16778_v33 = vld [vmem:[#allocation2 + $0x13c] sm:$0x7]  ;;  %v16798_v54 = vld [vmem:[#allocation2 + $0x1b4] sm:$0x7] }
 0x29a   :  { %v2027_v63 = vunpack.c.l.bf16 %v16743_v35  ;;  %v2029_v58 = vunpack.c.l.bf16 %v16746_v48  ;;  %v3130_v17 = vsel %vm2959_vm7, %v3129_v1, %v3128_v59  ;;  %v3140_v26 = vsel %vm2953_vm5, %v3139_v10, %v3138_v31  ;;  %v16804_v22 = vld [vmem:[#allocation2 + $0x1bc] sm:$0x7]  ;;  %v16806_v50 = vld [vmem:[#allocation2 + $0x20c] sm:$0x7]  ;;  %v16808_v2 = vld [vmem:[#allocation2 + $0x214] sm:$0x7] }
 0x29b   :  { %v3132_v37 = vsel %vm2962_vm8, %v3131_v11, %v3130_v17  ;;  %v3142_v51 = vsel %vm2956_vm6, %v3141_v0, %v3140_v26  ;;  %v16813_v61 = vld [vmem:[#allocation2 + $0x21c] sm:$0x7]  ;;  %v16815_v7 = vld [vmem:[#allocation2 + $0x224] sm:$0x7]  ;;  %v16817_v45 = vld [vmem:[#allocation2 + $0x22c] sm:$0x7]  ;;  %v2043_v10 = vunpack.c.l.bf16 %v16770_v9  ;;  %v2045_v56 = vunpack.c.l.bf16 %v16772_v5 }
 0x29c   :  { %v3134_v18 = vsel %vm2965_vm9, %v3133_v32, %v3132_v37  ;;  %v3144_v23 = vsel %vm2959_vm7, %v3143_v12, %v3142_v51  ;;  %v2041_v32 = vunpack.c.l.bf16 %v16766_v20  ;;  %v16823_v12 = vld [vmem:[#allocation2 + $0x27c] sm:$0x7]  ;;  %v16825_v52 = vld [vmem:[#allocation2 + $0x284] sm:$0x7]  ;;  %v16827_v4 = vld [vmem:[#allocation2 + $0x28c] sm:$0x7]  ;;  %v2049_v59 = vunpack.c.l.bf16 %v16776_v36 }
 0x29d   :  { %v3146_v11 = vsel %vm2962_vm8, %v3145_v24, %v3144_v23  ;;  %v2047_v24 = vunpack.c.l.bf16 %v16774_v40  ;;  %v2051_v31 = vunpack.c.l.bf16 %v16778_v33  ;;  %v16832_v20 = vld [vmem:[#allocation2 + $0x294] sm:$0x7]  ;;  %v16834_v9 = vld [vmem:[#allocation2 + $0x29c] sm:$0x7]  ;;  %v16836_v5 = vld [vmem:[#allocation2 + $0x2ec] sm:$0x7]  ;;  %v2055_v26 = vunpack.c.l.bf16 %v16787_v42 }
 0x29e   :  { %v3148_v0 = vsel %vm2965_vm9, %v3147_v27, %v3146_v11  ;;  %v2053_v27 = vunpack.c.l.bf16 %v16785_v21  ;;  %v2057_v37 = vunpack.c.l.bf16 %v16789_v46  ;;  %v16841_v51 = vld [vmem:[#allocation2 + $0x2f4] sm:$0x7]  ;;  %v16843_v40 = vld [vmem:[#allocation2 + $0x2fc] sm:$0x7]  ;;  %v16845_v36 = vld [vmem:[#allocation2 + $0x304] sm:$0x7]  ;;  %v2059_v33 = vunpack.c.l.bf16 %v16794_v38 }
 0x29f   :  { %v3183_v17 = vpack.c.b16 %v3148_v0, %v3134_v18  ;;  %v2061_v18 = vunpack.c.l.bf16 %v16796_v28  ;;  %v2063_v23 = vunpack.c.l.bf16 %v16798_v54  ;;  %v2065_v11 = vunpack.c.l.bf16 %v16804_v22  ;;  %v16852_v21 = vld [vmem:[#allocation2 + $0x30c] sm:$0x7]  ;;  %v16854_v42 = vld [vmem:[#allocation2 + $0x35c] sm:$0x7]  ;;  %v16856_v46 = vld [vmem:[#allocation2 + $0x364] sm:$0x7] }
 0x2a0   :  { %v2067_v0 = vunpack.c.l.bf16 %v16806_v50  ;;  %v2069_v60 = vunpack.c.l.bf16 %v16808_v2  ;;  %v2071_v38 = vunpack.c.l.bf16 %v16813_v61  ;;  %v2073_v28 = vunpack.c.l.bf16 %v16815_v7  ;;  %v16864_v54 = vld [vmem:[#allocation2 + $0x374] sm:$0x7]  ;;  %v16866_v22 = vld [vmem:[#allocation2 + $0x37c] sm:$0x7] }
 0x2a1   :  { %14233 = vmatprep.mubr.msk.bf16.mxu0 %vm275_vm1, %v3183_v17  ;;  %v2075_v17 = vunpack.c.l.bf16 %v16817_v45  ;;  %v2077_v1 = vunpack.c.l.bf16 %v16823_v12  ;;  %v2079_v57 = vunpack.c.l.bf16 %v16825_v52  ;;  %v2081_v50 = vunpack.c.l.bf16 %v16827_v4 }
 0x2a2   :  { %v2083_v2 = vunpack.c.l.bf16 %v16832_v20  ;;  %v2085_v61 = vunpack.c.l.bf16 %v16834_v9  ;;  %v2087_v7 = vunpack.c.l.bf16 %v16836_v5  ;;  %v2089_v43 = vunpack.c.l.bf16 %v16841_v51 }
 0x2a3   :  { %v2091_v49 = vunpack.c.l.bf16 %v16843_v40  ;;  %v2093_v53 = vunpack.c.l.bf16 %v16845_v36  ;;  %v2095_v45 = vunpack.c.l.bf16 %v16852_v21  ;;  %v2115_v5 = vsel %vm285_vm10, %v2027_v63, 0.0 }
 0x2a4   :  { %v2116_v51 = vsel %vm285_vm10, %v2029_v58, 0.0  ;;  %v17302_v40 = vunpack.c.l.bf16 %v16749_v14  ;;  %v17303_v52 = vunpack.c.l.bf16 %v16762_v62  ;;  %v17304_v20 = vunpack.c.l.bf16 %v16764_v29 }
 0x2a5   :  { %v2117_v12 = vadd.f32 %v2116_v51, %v2115_v5  ;;  %v17305_v35 = vunpack.c.l.bf16 %v16751_v6  ;;  %v17306_v48 = vunpack.c.l.bf16 %v16753_v39  ;;  %v2138_v62 = vsel %vm285_vm10, %v2043_v10, 0.0 }
 0x2a6   :  { %v2118_v36 = vsel %vm285_vm10, %v17302_v40, 0.0  ;;  %v2120_v4 = vsel %vm285_vm10, %v17303_v52, 0.0  ;;  %v2122_v9 = vsel %vm285_vm10, %v17304_v20, 0.0  ;;  %v2136_v40 = vsel %vm285_vm10, %v2041_v32, 0.0 }
 0x2a7   :  { %v2133_v63 = vsel %vm285_vm10, %v17305_v35, 0.0  ;;  %v2134_v58 = vsel %vm285_vm10, %v17306_v48, 0.0  ;;  %v2140_v52 = vsel %vm285_vm10, %v2045_v56, 0.0  ;;  %v2119_v5 = vadd.f32 %v2118_v36, %v2117_v12 }
 0x2a8   :  { %v2135_v14 = vadd.f32 %v2134_v58, %v2133_v63  ;;  %v2151_v29 = vsel %vm285_vm10, %v2047_v24, 0.0  ;;  %v2152_v20 = vsel %vm285_vm10, %v2049_v59, 0.0  ;;  %v2154_v6 = vsel %vm285_vm10, %v2051_v31, 0.0 }
 0x2a9   :  { %v2153_v35 = vadd.f32 %v2152_v20, %v2151_v29  ;;  %v2156_v39 = vsel %vm285_vm10, %v2053_v27, 0.0  ;;  %v2158_v48 = vsel %vm285_vm10, %v2055_v26, 0.0  ;;  %v2121_v63 = vadd.f32 %v2120_v4, %v2119_v5 }
 0x2aa   :  { %v2137_v51 = vadd.f32 %v2136_v40, %v2135_v14  ;;  %v2169_v32 = vsel %vm285_vm10, %v2057_v37, 0.0  ;;  %v2170_v10 = vsel %vm285_vm10, %v2059_v33, 0.0  ;;  %v2172_v56 = vsel %vm285_vm10, %v2061_v18, 0.0 }
 0x2ab   :  { %v2155_v36 = vadd.f32 %v2154_v6, %v2153_v35  ;;  %v2171_v24 = vadd.f32 %v2170_v10, %v2169_v32  ;;  %v2174_v59 = vsel %vm285_vm10, %v2063_v23, 0.0  ;;  %v16917_v58 = vadd.f32 %v2122_v9, %v2121_v63 }
 0x2ac   :  { %v2139_v12 = vadd.f32 %v2138_v62, %v2137_v51  ;;  %v2176_v31 = vsel %vm285_vm10, %v2065_v11, 0.0  ;;  %v2187_v27 = vsel %vm285_vm10, %v2067_v0, 0.0  ;;  %v2188_v26 = vsel %vm285_vm10, %v2069_v60, 0.0 }
 0x2ad   :  { %v2157_v37 = vadd.f32 %v2156_v39, %v2155_v36  ;;  %v2173_v14 = vadd.f32 %v2172_v56, %v2171_v24  ;;  %v2189_v33 = vadd.f32 %v2188_v26, %v2187_v27  ;;  %v2190_v18 = vsel %vm285_vm10, %v2071_v38, 0.0 }
 0x2ae   :  { %v16922_v4 = vadd.f32 %v2140_v52, %v2139_v12  ;;  %v2192_v40 = vsel %vm285_vm10, %v2073_v28, 0.0  ;;  %v2194_v62 = vsel %vm285_vm10, %v2075_v17, 0.0  ;;  %v2205_v23 = vsel %vm285_vm10, %v2077_v1, 0.0 }
 0x2af   :  { %v16928_v9 = vadd.f32 %v2158_v48, %v2157_v37  ;;  %v2175_v11 = vadd.f32 %v2174_v59, %v2173_v14  ;;  %v2191_v5 = vadd.f32 %v2190_v18, %v2189_v33  ;;  %v2206_v0 = vsel %vm285_vm10, %v2079_v57, 0.0 }
 0x2b0   :  { %v2207_v60 = vadd.f32 %v2206_v0, %v2205_v23  ;;  %v2208_v52 = vsel %vm285_vm10, %v2081_v50, 0.0  ;;  %v2210_v29 = vsel %vm285_vm10, %v2083_v2, 0.0  ;;  %v2212_v20 = vsel %vm285_vm10, %v2085_v61, 0.0 }
 0x2b1   :  { %v16934_v38 = vadd.f32 %v2176_v31, %v2175_v11  ;;  %v2193_v28 = vadd.f32 %v2192_v40, %v2191_v5  ;;  %v2223_v17 = vsel %vm285_vm10, %v2087_v7, 0.0  ;;  %v2224_v1 = vsel %vm285_vm10, %v2089_v43, 0.0 }
 0x2b2   :  { %v2209_v6 = vadd.f32 %v2208_v52, %v2207_v60  ;;  %v2225_v51 = vadd.f32 %v2224_v1, %v2223_v17  ;;  %v2226_v35 = vsel %vm285_vm10, %v2091_v49, 0.0  ;;  %v2228_v57 = vsel %vm285_vm10, %v2093_v53, 0.0 }
 0x2b3   :  { %v16940_v39 = vadd.f32 %v2194_v62, %v2193_v28  ;;  %v2230_v50 = vsel %vm285_vm10, %v2095_v45, 0.0  ;;  %v17307_v2 = vunpack.c.l.bf16 %v16854_v42  ;;  %v17308_v7 = vunpack.c.l.bf16 %v16856_v46 }
 0x2b4   :  { %v2211_v48 = vadd.f32 %v2210_v29, %v2209_v6  ;;  %v2227_v63 = vadd.f32 %v2226_v35, %v2225_v51  ;;  %v17309_v49 = vunpack.c.l.bf16 %v16862_v15  ;;  %v17310_v10 = vunpack.c.l.bf16 %v16864_v54 }
 0x2b5   :  { %v2241_v61 = vsel %vm285_vm10, %v17307_v2, 0.0  ;;  %v2242_v43 = vsel %vm285_vm10, %v17308_v7, 0.0  ;;  %v17311_v45 = vunpack.c.l.bf16 %v16866_v22  ;;  %v2394_v56 = vrot.slane %v16630_v13, 6 }
 0x2b6   :  { %v2243_v32 = vadd.f32 %v2242_v43, %v2241_v61  ;;  %v2244_v53 = vsel %vm285_vm10, %v17309_v49, 0.0  ;;  %v2246_v21 = vsel %vm285_vm10, %v17310_v10, 0.0  ;;  %v2395_v46 = vrot.slane %v16917_v58, 6 }
 0x2b7   :  { %v2248_v42 = vsel %vm285_vm10, %v17311_v45, 0.0  ;;  %v16962_v12 = vadd.f32 %v2212_v20, %v2211_v48  ;;  %v2229_v36 = vadd.f32 %v2228_v57, %v2227_v63  ;;  %v2397_v15 = vrot.slane %v16636_v8, 6 }
 0x2b8   :  { %v2245_v24 = vadd.f32 %v2244_v53, %v2243_v32  ;;  %v2396_v59 = vsel %vm566_vm0, %v2394_v56, %v2395_v46  ;;  %v2398_v54 = vrot.slane %v16922_v4, 6  ;;  %v2400_v31 = vrot.slane %v16640_v41, 6 }
 0x2b9   :  { %v2401_v22 = vrot.slane %v16928_v9, 6  ;;  %v16969_v27 = vadd.f32 %v2230_v50, %v2229_v36  ;;  %v2403_v13 = vrot.slane %v16646_v19, 6  ;;  %v2404_v37 = vrot.slane %v16934_v38, 6 }
 0x2ba   :  { %v2247_v26 = vadd.f32 %v2246_v21, %v2245_v24  ;;  %v2399_v14 = vsel %vm566_vm0, %v2397_v15, %v2398_v54  ;;  %v2406_v8 = vrot.slane %v16656_v3, 6  ;;  %v2407_v18 = vrot.slane %v16940_v39, 6 }
 0x2bb   :  { %v2402_v33 = vsel %vm566_vm0, %v2400_v31, %v2401_v22  ;;  %v2405_v41 = vsel %vm566_vm0, %v2403_v13, %v2404_v37  ;;  %v2409_v62 = vrot.slane %v16669_v30, 6  ;;  %v2410_v23 = vrot.slane %v16962_v12, 6 }
 0x2bc   :  { %v16977_v40 = vadd.f32 %v2248_v42, %v2247_v26  ;;  %v2408_v19 = vsel %vm566_vm0, %v2406_v8, %v2407_v18  ;;  %v2412_v11 = vrot.slane %v16679_v47, 6  ;;  %v2413_v5 = vrot.slane %v16969_v27, 6 }
 0x2bd   :  { %v2415_v0 = vrot.slane %v16685_v16, 6  ;;  %v2411_v3 = vsel %vm566_vm0, %v2409_v62, %v2410_v23  ;;  %v2426_v52 = vsel %vm421_vm2, %v2396_v59, 0.0  ;;  %v2433_v29 = vsel %vm421_vm2, %v2399_v14, 0.0 }
 0x2be   :  { %v2416_v60 = vrot.slane %v16977_v40, 6  ;;  %v2414_v30 = vsel %vm566_vm0, %v2412_v11, %v2413_v5  ;;  %v2427_v20 = vrot.slane %v2426_v52, 4  ;;  %v2434_v28 = vrot.slane %v2433_v29, 4 }
 0x2bf   :  { %v2440_v17 = vsel %vm421_vm2, %v2402_v33, 0.0  ;;  %v2447_v6 = vsel %vm421_vm2, %v2405_v41, 0.0  ;;  %v2454_v16 = vsel %vm421_vm2, %v2408_v19, 0.0  ;;  %v2461_v61 = vsel %vm421_vm2, %v2411_v3, 0.0 }
 0x2c0   :  { %v2417_v47 = vsel %vm566_vm0, %v2415_v0, %v2416_v60  ;;  %v2441_v1 = vrot.slane %v2440_v17, 4  ;;  %v2428_v51 = vadd.f32 %v2427_v20, %v2426_v52  ;;  %v2435_v35 = vadd.f32 %v2434_v28, %v2433_v29 }
 0x2c1   :  { %v2448_v57 = vrot.slane %v2447_v6, 4  ;;  %v2455_v50 = vrot.slane %v2454_v16, 4  ;;  %v2468_v7 = vsel %vm421_vm2, %v2414_v30, 0.0  ;;  %v2475_v43 = vsel %vm421_vm2, %v2417_v47, 0.0 }
 0x2c2   :  { %v2442_v2 = vadd.f32 %v2441_v1, %v2440_v17  ;;  %v2429_v48 = vrot.slane %v2428_v51, 2  ;;  %v2436_v63 = vrot.slane %v2435_v35, 2  ;;  %v2462_v10 = vrot.slane %v2461_v61, 4 }
 0x2c3   :  { %v2449_v32 = vadd.f32 %v2448_v57, %v2447_v6  ;;  %v2456_v49 = vadd.f32 %v2455_v50, %v2454_v16  ;;  %v2469_v21 = vrot.slane %v2468_v7, 4  ;;  %v2476_v45 = vrot.slane %v2475_v43, 4 }
 0x2c4   :  { %v2443_v53 = vrot.slane %v2442_v2, 2  ;;  %v2430_v42 = vadd.f32 %v2429_v48, %v2428_v51  ;;  %v2437_v56 = vadd.f32 %v2436_v63, %v2435_v35  ;;  %v2463_v15 = vadd.f32 %v2462_v10, %v2461_v61 }
 0x2c5   :  { %v2450_v46 = vrot.slane %v2449_v32, 2  ;;  %v2457_v36 = vrot.slane %v2456_v49, 2  ;;  %v2470_v59 = vadd.f32 %v2469_v21, %v2468_v7  ;;  %v2477_v54 = vadd.f32 %v2476_v45, %v2475_v43 }
 0x2c6   :  { %v2444_v24 = vadd.f32 %v2443_v53, %v2442_v2  ;;  %v2431_v31 = vrot.slane %v2430_v42, 1  ;;  %v2438_v22 = vrot.slane %v2437_v56, 1  ;;  %v2464_v14 = vrot.slane %v2463_v15, 2 }
 0x2c7   :  { %v2451_v26 = vadd.f32 %v2450_v46, %v2449_v32  ;;  %v2458_v13 = vadd.f32 %v2457_v36, %v2456_v49  ;;  %v2471_v33 = vrot.slane %v2470_v59, 2  ;;  %v2478_v8 = vrot.slane %v2477_v54, 2 }
 0x2c8   :  { %v2445_v37 = vrot.slane %v2444_v24, 1  ;;  %v16998_v18 = vadd.f32 %v2431_v31, %v2430_v42  ;;  %v17000_v41 = vadd.f32 %v2438_v22, %v2437_v56  ;;  %v2465_v11 = vadd.f32 %v2464_v14, %v2463_v15 }
 0x2c9   :  { %v2452_v62 = vrot.slane %v2451_v26, 1  ;;  %v2459_v23 = vrot.slane %v2458_v13, 1  ;;  %v2472_v5 = vadd.f32 %v2471_v33, %v2470_v59  ;;  %v2479_v0 = vadd.f32 %v2478_v8, %v2477_v54 }
 0x2ca   :  { %v17002_v19 = vadd.f32 %v2445_v37, %v2444_v24  ;;  %v2482_v52 = vrot.slane %v16917_v58, 1  ;;  %v2483_v29 = vrot.slane %v16922_v4, 1  ;;  %v2466_v30 = vrot.slane %v2465_v11, 1 }
 0x2cb   :  { %v17004_v3 = vadd.f32 %v2452_v62, %v2451_v26  ;;  %v17006_v60 = vadd.f32 %v2459_v23, %v2458_v13  ;;  %v2473_v20 = vrot.slane %v2472_v5, 1  ;;  %v2480_v28 = vrot.slane %v2479_v0, 1 }
 0x2cc   :  { %v2484_v17 = vrot.slane %v16928_v9, 1  ;;  %v2485_v47 = vrot.slane %v16934_v38, 1  ;;  %v2486_v1 = vrot.slane %v16940_v39, 1  ;;  %v2487_v6 = vrot.slane %v16962_v12, 1 }
 0x2cd   :  { %v2488_v16 = vrot.slane %v16969_v27, 1  ;;  %v17015_v51 = vadd.f32 %v2466_v30, %v2465_v11  ;;  %v17017_v35 = vadd.f32 %v2473_v20, %v2472_v5  ;;  %v17019_v58 = vadd.f32 %v2480_v28, %v2479_v0 }
 0x2ce   :  { %v2489_v4 = vrot.slane %v16977_v40, 1  ;;  %v2498_v57 = vsel %vm421_vm2, %v2482_v52, 0.0  ;;  %v2505_v9 = vsel %vm421_vm2, %v2483_v29, 0.0  ;;  %v2512_v38 = vsel %vm421_vm2, %v2484_v17, 0.0 }
 0x2cf   :  { %v2519_v39 = vsel %vm421_vm2, %v2485_v47, 0.0  ;;  %v2499_v50 = vrot.slane %v2498_v57, 4  ;;  %v2506_v12 = vrot.slane %v2505_v9, 4  ;;  %v2513_v2 = vrot.slane %v2512_v38, 4 }
 0x2d0   :  { %v2520_v27 = vrot.slane %v2519_v39, 4  ;;  %v2526_v61 = vsel %vm421_vm2, %v2486_v1, 0.0  ;;  %v2533_v7 = vsel %vm421_vm2, %v2487_v6, 0.0  ;;  %v2540_v43 = vsel %vm421_vm2, %v2488_v16, 0.0 }
 0x2d1   :  { %v2547_v40 = vsel %vm421_vm2, %v2489_v4, 0.0  ;;  %v2500_v48 = vadd.f32 %v2499_v50, %v2498_v57  ;;  %v2507_v63 = vadd.f32 %v2506_v12, %v2505_v9  ;;  %v2514_v32 = vadd.f32 %v2513_v2, %v2512_v38 }
 0x2d2   :  { %v2521_v49 = vadd.f32 %v2520_v27, %v2519_v39  ;;  %v2527_v53 = vrot.slane %v2526_v61, 4  ;;  %v2534_v10 = vrot.slane %v2533_v7, 4  ;;  %v2541_v21 = vrot.slane %v2540_v43, 4 }
 0x2d3   :  { %v2548_v45 = vrot.slane %v2547_v40, 4  ;;  %v2501_v42 = vrot.slane %v2500_v48, 2  ;;  %v2508_v56 = vrot.slane %v2507_v63, 2  ;;  %v2515_v46 = vrot.slane %v2514_v32, 2 }
 0x2d4   :  { %v2522_v36 = vrot.slane %v2521_v49, 2  ;;  %v2528_v24 = vadd.f32 %v2527_v53, %v2526_v61  ;;  %v2535_v15 = vadd.f32 %v2534_v10, %v2533_v7  ;;  %v2542_v59 = vadd.f32 %v2541_v21, %v2540_v43 }
 0x2d5   :  { %v2549_v54 = vadd.f32 %v2548_v45, %v2547_v40  ;;  %v2502_v31 = vadd.f32 %v2501_v42, %v2500_v48  ;;  %v2509_v22 = vadd.f32 %v2508_v56, %v2507_v63  ;;  %v2516_v26 = vadd.f32 %v2515_v46, %v2514_v32 }
 0x2d6   :  { %v2523_v13 = vadd.f32 %v2522_v36, %v2521_v49  ;;  %v2529_v37 = vrot.slane %v2528_v24, 2  ;;  %v2536_v14 = vrot.slane %v2535_v15, 2  ;;  %v2543_v33 = vrot.slane %v2542_v59, 2 }
 0x2d7   :  { %v2550_v8 = vrot.slane %v2549_v54, 2  ;;  %v2503_v62 = vrot.slane %v2502_v31, 1  ;;  %v2510_v23 = vrot.slane %v2509_v22, 1  ;;  %v2517_v11 = vrot.slane %v2516_v26, 1 }
 0x2d8   :  { %v2524_v5 = vrot.slane %v2523_v13, 1  ;;  %v2530_v0 = vadd.f32 %v2529_v37, %v2528_v24  ;;  %v2537_v52 = vadd.f32 %v2536_v14, %v2535_v15  ;;  %v2544_v29 = vadd.f32 %v2543_v33, %v2542_v59 }
 0x2d9   :  { %v2551_v30 = vadd.f32 %v2550_v8, %v2549_v54  ;;  %v2504_v20 = vadd.f32 %v2503_v62, %v2502_v31  ;;  %v2511_v28 = vadd.f32 %v2510_v23, %v2509_v22  ;;  %v2518_v17 = vadd.f32 %v2517_v11, %v2516_v26  ;;  %v3423_v62 = vld [vmem:[#allocation8 + $0x180] sm:$0xff] }
 0x2da   :  { %v2525_v47 = vadd.f32 %v2524_v5, %v2523_v13  ;;  %v2531_v1 = vrot.slane %v2530_v0, 1  ;;  %v2538_v6 = vrot.slane %v2537_v52, 1  ;;  %v2545_v16 = vrot.slane %v2544_v29, 1  ;;  %v3427_v23 = vld [vmem:[#allocation8 + $0x1a0] sm:$0xff] }
 0x2db   :  { %v2552_v4 = vrot.slane %v2551_v30, 1  ;;  %v2666_v57 = vpack.c.bf16 %v16998_v18, %v16998_v18  ;;  %v2667_v9 = vpack.c.bf16 %v17000_v41, %v17000_v41  ;;  %v2668_v38 = vpack.c.bf16 %v17002_v19, %v17002_v19 }
 0x2dc   :  { %v2669_v39 = vpack.c.bf16 %v17004_v3, %v17004_v3  ;;  %v2532_v50 = vadd.f32 %v2531_v1, %v2530_v0  ;;  %v2539_v12 = vadd.f32 %v2538_v6, %v2537_v52  ;;  %v2546_v2 = vadd.f32 %v2545_v16, %v2544_v29  ;;  %v3424_v29 = vld [vmem:[#allocation8 + $0x188] sm:$0xff] }
 0x2dd   :  { %v2553_v27 = vadd.f32 %v2552_v4, %v2551_v30  ;;  %v2670_v61 = vpack.c.bf16 %v17006_v60, %v17006_v60  ;;  %v2671_v7 = vpack.c.bf16 %v17015_v51, %v17015_v51  ;;  %v2672_v18 = vpack.c.bf16 %v17017_v35, %v17017_v35  ;;  %v3428_v30 = vld [vmem:[#allocation8 + $0x1a8] sm:$0xff] }
 0x2de   :  { %v2673_v41 = vpack.c.bf16 %v17019_v58, %v17019_v58  ;;  %v2674_v19 = vpack.c.bf16 %v2504_v20, %v2504_v20  ;;  %v2675_v43 = vpack.c.bf16 %v2511_v28, %v2511_v28  ;;  %v2676_v40 = vpack.c.bf16 %v2518_v17, %v2518_v17 }
 0x2df   :  { %v2677_v3 = vpack.c.bf16 %v2525_v47, %v2525_v47  ;;  %v2678_v48 = vpack.c.bf16 %v2532_v50, %v2532_v50  ;;  %v2679_v63 = vpack.c.bf16 %v2539_v12, %v2539_v12  ;;  %v2680_v32 = vpack.c.bf16 %v2546_v2, %v2546_v2  ;;  %v3432_v2 = vld [vmem:[#allocation8 + $0x1c8] sm:$0xff] }
 0x2e0   :  { %v2681_v49 = vpack.c.bf16 %v2553_v27, %v2553_v27  ;;  %v2930_v53 = vunpack.c.l.b16 %v2666_v57  ;;  %v2931_v10 = vunpack.c.l.b16 %v2667_v9  ;;  %v2932_v60 = vunpack.c.l.b16 %v2668_v38  ;;  %v3431_v57 = vld [vmem:[#allocation8 + $0x1c0] sm:$0xff]  ;;  %v3436_v27 = vld [vmem:[#allocation8 + $0x1e8] sm:$0xff] }
 0x2e1   :  { %v2933_v21 = vunpack.c.l.b16 %v2669_v39  ;;  %v2934_v45 = vunpack.c.l.b16 %v2670_v61  ;;  %v2935_v51 = vunpack.c.l.b16 %v2671_v7  ;;  %v2936_v42 = vunpack.c.l.b16 %v2672_v18  ;;  %v3435_v9 = vld [vmem:[#allocation8 + $0x1e0] sm:$0xff]  ;;  %v17055_v18 = vld [vmem:[#allocation7] ss:$0 sm:$0xff] }
 0x2e2   :  { %v2937_v56 = vunpack.c.l.b16 %v2673_v41  ;;  %v2938_v35 = vunpack.c.l.b16 %v2674_v19  ;;  %v2939_v46 = vunpack.c.l.b16 %v2675_v43  ;;  %v2940_v36 = vunpack.c.l.b16 %v2676_v40 }
 0x2e3   :  { %v2941_v58 = vunpack.c.l.b16 %v2677_v3  ;;  %v2942_v24 = vunpack.c.l.b16 %v2678_v48  ;;  %v2943_v15 = vunpack.c.l.b16 %v2679_v63  ;;  %v2944_v59 = vunpack.c.l.b16 %v2680_v32 }
 0x2e4   :  { %v2945_v54 = vunpack.c.l.b16 %v2681_v49  ;;  %v3149_v31 = vrot.slane %v2931_v10, 7  ;;  %v3151_v22 = vrot.slane %v2932_v60, 6  ;;  %v3153_v26 = vrot.slane %v2933_v21, 5  ;;  %v3377_v10 = vld [vmem:[#allocation8 + $0x10] sm:$0xff] }
 0x2e5   :  { %v3155_v13 = vrot.slane %v2934_v45, 4  ;;  %v3157_v37 = vrot.slane %v2935_v51, 3  ;;  %v3159_v14 = vrot.slane %v2936_v42, 2  ;;  %v3161_v33 = vrot.slane %v2937_v56, 1  ;;  %v3378_v42 = vld [vmem:[#allocation8 + $0x18] sm:$0xff] }
 0x2e6   :  { %v3163_v8 = vrot.slane %v2939_v46, 7  ;;  %v3150_v11 = vsel %vm2947_vm3, %v3149_v31, %v2930_v53  ;;  %v3165_v5 = vrot.slane %v2940_v36, 6  ;;  %v3167_v0 = vrot.slane %v2941_v58, 5  ;;  %v3382_v56 = vld [vmem:[#allocation8 + $0x38] sm:$0xff]  ;;  %v3385_v36 = vld [vmem:[#allocation8 + $0x50] sm:$0xff] }
 0x2e7   :  { %v3169_v52 = vrot.slane %v2942_v24, 4  ;;  %v3152_v20 = vsel %vm2950_vm4, %v3151_v22, %v3150_v11  ;;  %v3171_v17 = vrot.slane %v2943_v15, 3  ;;  %v3173_v47 = vrot.slane %v2944_v59, 2  ;;  %v3389_v58 = vld [vmem:[#allocation8 + $0x70] sm:$0xff] }
 0x2e8   :  { %v3164_v28 = vsel %vm2947_vm3, %v3163_v8, %v2938_v35  ;;  %v3154_v1 = vsel %vm2953_vm5, %v3153_v26, %v3152_v20  ;;  %v3175_v16 = vrot.slane %v2945_v54, 1  ;;  %v13082_v4 = vcombine.high %v3423_v62, %v3427_v23  ;;  %v3393_v26 = vld [vmem:[#allocation8 + $0x90] sm:$0xff] }
 0x2e9   :  { %v3166_v6 = vsel %vm2950_vm4, %v3165_v5, %v3164_v28  ;;  %v3156_v38 = vsel %vm2956_vm6, %v3155_v13, %v3154_v1  ;;  %v13083_v50 = vcombine.low %v3424_v29, %v3428_v30  ;;  %v13084_v12 = vcombine.high %v3424_v29, %v3428_v30  ;;  %v3386_v13 = vld [vmem:[#allocation8 + $0x58] sm:$0xff]  ;;  %v3405_v11 = vld [vmem:[#allocation8 + $0xf0] sm:$0xff] }
 0x2ea   :  { %v3168_v39 = vsel %vm2953_vm5, %v3167_v0, %v3166_v6  ;;  %v3158_v61 = vsel %vm2959_vm7, %v3157_v37, %v3156_v38  ;;  %3771 = vmatprep.subr.bf16.mxu1 %v13082_v4  ;;  %v3258_v41 = vadd.f32 %v17055_v18, %v16683_v25  ;;  %v13081_v19 = vcombine.low %v3423_v62, %v3427_v23  ;;  %v3381_v25 = vld [vmem:[#allocation8 + $0x30] sm:$0xff]  ;;  %v3390_v37 = vld [vmem:[#allocation8 + $0x78] sm:$0xff] }
 0x2eb   :  { %v3170_v7 = vsel %vm2956_vm6, %v3169_v52, %v3168_v39  ;;  %v3160_v43 = vsel %vm2962_vm8, %v3159_v14, %v3158_v61  ;;  %3812 = vmatprep.subr.bf16.mxu0 %v13084_v12  ;;  %v3250_v3 = vadd.f32 %v17055_v18, %v16687_v44  ;;  %v13090_v48 = vcombine.high %v3431_v57, %v3435_v9  ;;  %v3401_v23 = vld [vmem:[#allocation8 + $0xd0] sm:$0xff]  ;;  %v3394_v5 = vld [vmem:[#allocation8 + $0x98] sm:$0xff] }
 0x2ec   :  { %v3172_v40 = vsel %vm2959_vm7, %v3171_v17, %v3170_v7  ;;  %v3162_v63 = vsel %vm2965_vm9, %v3161_v33, %v3160_v43  ;;  %v3312_v49 = vmax.f32 %v3258_v41, 0.0  ;;  %3772 = vmatpush1.bf16.msra.mxu1 %v13081_v19  ;;  %3813 = vmatpush1.bf16.msra.mxu0 %v13083_v50  ;;  %v13091_v53 = vcombine.low %v3432_v2, %v3436_v27  ;;  %v3398_v0 = vld [vmem:[#allocation8 + $0xb8] sm:$0xff]  ;;  %v3409_v28 = vld [vmem:[#allocation8 + $0x110] sm:$0xff] }
 0x2ed   :  { %v3174_v32 = vsel %vm2962_vm8, %v3173_v47, %v3172_v40  ;;  %v3310_v21 = vmax.f32 %v3250_v3, 0.0  ;;  %3773 = vmatprep.subr.bf16.mxu1 %v13090_v48  ;;  %v13092_v45 = vcombine.high %v3432_v2, %v3436_v27  ;;  %v13089_v51 = vcombine.low %v3431_v57, %v3435_v9  ;;  %v3413_v17 = vld [vmem:[#allocation8 + $0x130] sm:$0xff]  ;;  %v3402_v47 = vld [vmem:[#allocation8 + $0xd8] sm:$0xff] }
 0x2ee   :  { %v3176_v60 = vsel %vm2965_vm9, %v3175_v16, %v3174_v32  ;;  %v17312_v35 = vmax.f32 %v16533_v55, 0.0  ;;  %v17313_v24 = vmax.f32 %v16760_v34, 0.0  ;;  %v14762_v59 = vmov 0   ;;  %v3397_v34 = vld [vmem:[#allocation8 + $0xb0] sm:$0xff]  ;;  %v3406_v1 = vld [vmem:[#allocation8 + $0xf8] sm:$0xff] }
 0x2ef   :  { %v3184_v44 = vpack.c.b16 %v3176_v60, %v3162_v63  ;;  %3814 = vmatprep.subr.bf16.mxu0 %v13092_v45  ;;  %3791 = vmatprep.mubr.bf16.mxu1 %v14762_v59  ;;  %v13038_v54 = vcombine.high %v3377_v10, %v3381_v25  ;;  %v13037_v31 = vcombine.low %v3377_v10, %v3381_v25  ;;  %v3417_v9 = vld [vmem:[#allocation8 + $0x150] sm:$0xff]  ;;  %v3410_v39 = vld [vmem:[#allocation8 + $0x118] sm:$0xff] }
 0x2f0   :  { %v17068_v46 = vpack.c.bf16 %v3312_v49, %v17312_v35  ;;  %v17072_v15 = vpack.c.bf16 %v3310_v21, %v17313_v24  ;;  %3774 = vmatpush1.bf16.msra.mxu1 %v13089_v51  ;;  %v13040_v22 = vcombine.high %v3378_v42, %v3382_v56  ;;  %3815 = vmatpush1.bf16.msra.mxu0 %v13091_v53  ;;  %v3421_v38 = vld [vmem:[#allocation8 + $0x170] sm:$0xff]  ;;  %v3414_v50 = vld [vmem:[#allocation8 + $0x138] sm:$0xff]  ;;  %v3932_v51 = vld [vmem:[#allocation8 + $0x200] sm:$0xff] }
 0x2f1   :  { %14234 = vmatmul.mubr.msk.bf16.gmra.mrb[12].mxu0 %vm275_vm1, %v3184_v44  ;;  %v13046_v55 = vcombine.high %v3385_v36, %v3389_v58  ;;  %3841 = vmatprep.subr.bf16.mxu1 %v13038_v54  ;;  %v13045_v14 = vcombine.low %v3385_v36, %v3389_v58  ;;  %v13039_v33 = vcombine.low %v3378_v42, %v3382_v56  ;;  %v3425_v7 = vld [vmem:[#allocation8 + $0x190] sm:$0xff]  ;;  %v3418_v19 = vld [vmem:[#allocation8 + $0x158] sm:$0xff]  ;;  %v3936_v42 = vld [vmem:[#allocation8 + $0x220] sm:$0xff] }
 0x2f2   :  { %3832 = vmatprep.mubr.bf16.mxu0 %v14762_v59  ;;  %3882 = vmatprep.subr.bf16.mxu0 %v13040_v22  ;;  %v13054_v8 = vcombine.high %v3393_v26, %v3397_v34  ;;  %v13048_v62 = vcombine.high %v3386_v13, %v3390_v37  ;;  %v13053_v52 = vcombine.low %v3393_v26, %v3397_v34  ;;  %v3429_v41 = vld [vmem:[#allocation8 + $0x1b0] sm:$0xff]  ;;  %v3422_v43 = vld [vmem:[#allocation8 + $0x178] sm:$0xff]  ;;  %v3940_v54 = vld [vmem:[#allocation8 + $0x240] sm:$0xff] }
 0x2f3   :  { %3792 = vmatmul.mubr.bf16.vlgmr.msra.gmra.mrb[0].mxu1 %v17072_v15  ;;  %v13047_v29 = vcombine.low %v3386_v13, %v3390_v37  ;;  %v13062_v30 = vcombine.high %v3401_v23, %v3405_v11  ;;  %v13056_v20 = vcombine.high %v3394_v5, %v3398_v0  ;;  %v13061_v6 = vcombine.low %v3401_v23, %v3405_v11  ;;  %v3433_v32 = vld [vmem:[#allocation8 + $0x1d0] sm:$0xff]  ;;  %v3426_v53 = vld [vmem:[#allocation8 + $0x198] sm:$0xff]  ;;  %v3933_v22 = vld [vmem:[#allocation8 + $0x208] sm:$0xff] }
 0x2f4   :  { %3842 = vmatpush1.bf16.msra.mxu1 %v13037_v31  ;;  %3873 = vmatprep.mubr.bf16.mxu1 %v14762_v59  ;;  %v13055_v16 = vcombine.low %v3394_v5, %v3398_v0  ;;  %v13070_v4 = vcombine.high %v3409_v28, %v3413_v17  ;;  %v13064_v57 = vcombine.high %v3402_v47, %v3406_v1  ;;  %v3437_v49 = vld [vmem:[#allocation8 + $0x1f0] sm:$0xff]  ;;  %v3430_v10 = vld [vmem:[#allocation8 + $0x1b8] sm:$0xff]  ;;  %v3944_v31 = vld [vmem:[#allocation8 + $0x260] sm:$0xff] }
 0x2f5   :  { %3843 = vmatprep.subr.bf16.mxu1 %v13046_v55  ;;  %v13069_v12 = vcombine.low %v3409_v28, %v3413_v17  ;;  %v13063_v2 = vcombine.low %v3402_v47, %v3406_v1  ;;  %v13078_v27 = vcombine.high %v3417_v9, %v3421_v38  ;;  %v13072_v61 = vcombine.high %v3410_v39, %v3414_v50  ;;  %v3434_v56 = vld [vmem:[#allocation8 + $0x1d8] sm:$0xff]  ;;  %v3937_v55 = vld [vmem:[#allocation8 + $0x228] sm:$0xff] }
 0x2f6   :  { %v13077_v40 = vcombine.low %v3417_v9, %v3421_v38  ;;  %v13071_v3 = vcombine.low %v3410_v39, %v3414_v50  ;;  %v13086_v48 = vcombine.high %v3425_v7, %v3429_v41  ;;  %v13080_v63 = vcombine.high %v3418_v19, %v3422_v43  ;;  %v3438_v44 = vld [vmem:[#allocation8 + $0x1f8] sm:$0xff] }
 0x2f7   :  { %v13085_v25 = vcombine.low %v3425_v7, %v3429_v41  ;;  %v13079_v60 = vcombine.low %v3418_v19, %v3422_v43  ;;  %v13094_v21 = vcombine.high %v3433_v32, %v3437_v49  ;;  %v13088_v45 = vcombine.high %v3426_v53, %v3430_v10 }
 0x2f8   :  { %3844 = vmatpush1.bf16.msra.mxu1 %v13045_v14  ;;  %v13093_v35 = vcombine.low %v3433_v32, %v3437_v49  ;;  %v13087_v36 = vcombine.low %v3426_v53, %v3430_v10  ;;  %v13098_v58 = vcombine.high %v3932_v51, %v3936_v42  ;;  %v13096_v24 = vcombine.high %v3434_v56, %v3438_v44  ;;  %v3948_v14 = vld [vmem:[#allocation8 + $0x280] sm:$0xff] }
 0x2f9   :  { %3833 = vmatmul.mubr.bf16.vlgmr.msra.gmra.mrb[16].mxu0 %v17072_v15  ;;  %3845 = vmatprep.subr.bf16.mxu1 %v13054_v8  ;;  %v13097_v26 = vcombine.low %v3932_v51, %v3936_v42  ;;  %v13095_v34 = vcombine.low %v3434_v56, %v3438_v44  ;;  %v13106_v13 = vcombine.high %v3940_v54, %v3944_v31  ;;  %v3941_v8 = vld [vmem:[#allocation8 + $0x248] sm:$0xff] }
 0x2fa   :  { %3883 = vmatpush1.bf16.msra.mxu0 %v13039_v33  ;;  %3914 = vmatprep.mubr.bf16.mxu0 %v14762_v59  ;;  %v13100_v37 = vcombine.high %v3933_v22, %v3937_v55  ;;  %v3952_v33 = vld [vmem:[#allocation8 + $0x2a0] sm:$0xff]  ;;  %v13105_v23 = vcombine.low %v3940_v54, %v3944_v31  ;;  %v13099_v11 = vcombine.low %v3933_v22, %v3937_v55 }
 0x2fb   :  { %3884 = vmatprep.subr.bf16.mxu0 %v13048_v62  ;;  %v3945_v62 = vld [vmem:[#allocation8 + $0x268] sm:$0xff]  ;;  %v13114_v5 = vcombine.high %v3948_v14, %v3952_v33  ;;  %v13113_v28 = vcombine.low %v3948_v14, %v3952_v33 }
 0x2fc   :  { %3846 = vmatpush1.bf16.msra.mxu1 %v13053_v52  ;;  %v13108_v0 = vcombine.high %v3941_v8, %v3945_v62  ;;  %v3956_v52 = vld [vmem:[#allocation8 + $0x2c0] sm:$0xff]  ;;  %v13107_v17 = vcombine.low %v3941_v8, %v3945_v62  ;;  %v17086_v8 = vrot.slane %v17072_v15, 4 }
 0x2fd   :  { %3847 = vmatprep.subr.bf16.mxu1 %v13062_v30  ;;  %v3949_v30 = vld [vmem:[#allocation8 + $0x288] sm:$0xff] }
 0x2fe   :  { %3885 = vmatpush1.bf16.msra.mxu0 %v13047_v29  ;;  %v3960_v29 = vld [vmem:[#allocation8 + $0x2e0] sm:$0xff] }
 0x2ff   :  { %3886 = vmatprep.subr.bf16.mxu0 %v13056_v20  ;;  %v3953_v20 = vld [vmem:[#allocation8 + $0x2a8] sm:$0xff]  ;;  %v13122_v47 = vcombine.high %v3956_v52, %v3960_v29  ;;  %v13121_v9 = vcombine.low %v3956_v52, %v3960_v29 }
 0x300   :  { %3848 = vmatpush1.bf16.msra.mxu1 %v13061_v6  ;;  %v13116_v1 = vcombine.high %v3949_v30, %v3953_v20  ;;  %v3964_v6 = vld [vmem:[#allocation8 + $0x300] sm:$0xff]  ;;  %v13115_v38 = vcombine.low %v3949_v30, %v3953_v20  ;;  %v3943_v30 = vld [vmem:[#allocation8 + $0x258] sm:$0xff] }
 0x301   :  { %3849 = vmatprep.subr.bf16.mxu1 %v13070_v4  ;;  %v3957_v4 = vld [vmem:[#allocation8 + $0x2c8] sm:$0xff]  ;;  %v3947_v20 = vld [vmem:[#allocation8 + $0x278] sm:$0xff] }
 0x302   :  { %3887 = vmatpush1.bf16.msra.mxu0 %v13055_v16  ;;  %v3968_v16 = vld [vmem:[#allocation8 + $0x320] sm:$0xff] }
 0x303   :  { %3888 = vmatprep.subr.bf16.mxu0 %v13064_v57  ;;  %v3961_v57 = vld [vmem:[#allocation8 + $0x2e8] sm:$0xff]  ;;  %v13130_v39 = vcombine.high %v3964_v6, %v3968_v16  ;;  %v13129_v7 = vcombine.low %v3964_v6, %v3968_v16 }
 0x304   :  { %3850 = vmatpush1.bf16.msra.mxu1 %v13069_v12  ;;  %v13124_v50 = vcombine.high %v3957_v4, %v3961_v57  ;;  %v3972_v12 = vld [vmem:[#allocation8 + $0x340] sm:$0xff]  ;;  %v13123_v41 = vcombine.low %v3957_v4, %v3961_v57  ;;  %v13112_v57 = vcombine.high %v3943_v30, %v3947_v20 }
 0x305   :  { %3851 = vmatprep.subr.bf16.mxu1 %v13078_v27  ;;  %v3965_v27 = vld [vmem:[#allocation8 + $0x308] sm:$0xff] }
 0x306   :  { %3889 = vmatpush1.bf16.msra.mxu0 %v13063_v2  ;;  %v3976_v2 = vld [vmem:[#allocation8 + $0x360] sm:$0xff] }
 0x307   :  { %3890 = vmatprep.subr.bf16.mxu0 %v13072_v61  ;;  %v3969_v61 = vld [vmem:[#allocation8 + $0x328] sm:$0xff]  ;;  %v13138_v19 = vcombine.high %v3972_v12, %v3976_v2  ;;  %v13137_v32 = vcombine.low %v3972_v12, %v3976_v2  ;;  %v3951_v2 = vld [vmem:[#allocation8 + $0x298] sm:$0xff] }
 0x308   :  { %3852 = vmatpush1.bf16.msra.mxu1 %v13077_v40  ;;  %v13132_v43 = vcombine.high %v3965_v27, %v3969_v61  ;;  %v3980_v40 = vld [vmem:[#allocation8 + $0x380] sm:$0xff]  ;;  %v13131_v49 = vcombine.low %v3965_v27, %v3969_v61  ;;  %v3955_v27 = vld [vmem:[#allocation8 + $0x2b8] sm:$0xff] }
 0x309   :  { %3853 = vmatprep.subr.bf16.mxu1 %v13086_v48  ;;  %v3973_v48 = vld [vmem:[#allocation8 + $0x348] sm:$0xff] }
 0x30a   :  { %3891 = vmatpush1.bf16.msra.mxu0 %v13071_v3  ;;  %v3984_v3 = vld [vmem:[#allocation8 + $0x3a0] sm:$0xff] }
 0x30b   :  { %3892 = vmatprep.subr.bf16.mxu0 %v13080_v63  ;;  %v3977_v63 = vld [vmem:[#allocation8 + $0x368] sm:$0xff]  ;;  %v13146_v53 = vcombine.high %v3980_v40, %v3984_v3  ;;  %v13145_v51 = vcombine.low %v3980_v40, %v3984_v3  ;;  %v13120_v3 = vcombine.high %v3951_v2, %v3955_v27 }
 0x30c   :  { %3854 = vmatpush1.bf16.msra.mxu1 %v13085_v25  ;;  %v13140_v10 = vcombine.high %v3973_v48, %v3977_v63  ;;  %v3988_v25 = vld [vmem:[#allocation8 + $0x3c0] sm:$0xff]  ;;  %v13139_v42 = vcombine.low %v3973_v48, %v3977_v63  ;;  %v3966_v48 = vld [vmem:[#allocation8 + $0x310] sm:$0xff] }
 0x30d   :  { %3855 = vmatprep.subr.bf16.mxu1 %v13094_v21  ;;  %v3981_v21 = vld [vmem:[#allocation8 + $0x388] sm:$0xff]  ;;  %v3970_v63 = vld [vmem:[#allocation8 + $0x330] sm:$0xff] }
 0x30e   :  { %3893 = vmatpush1.bf16.msra.mxu0 %v13079_v60  ;;  %v3992_v60 = vld [vmem:[#allocation8 + $0x3e0] sm:$0xff] }
 0x30f   :  { %3894 = vmatprep.subr.bf16.mxu0 %v13088_v45  ;;  %v3985_v45 = vld [vmem:[#allocation8 + $0x3a8] sm:$0xff]  ;;  %v13154_v56 = vcombine.high %v3988_v25, %v3992_v60  ;;  %v13153_v54 = vcombine.low %v3988_v25, %v3992_v60  ;;  %v3963_v25 = vld [vmem:[#allocation8 + $0x2f8] sm:$0xff] }
 0x310   :  { %3856 = vmatpush1.bf16.msra.mxu1 %v13093_v35  ;;  %v13148_v44 = vcombine.high %v3981_v21, %v3985_v45  ;;  %v3934_v35 = vld [vmem:[#allocation8 + $0x210] sm:$0xff]  ;;  %v13147_v31 = vcombine.low %v3981_v21, %v3985_v45 }
 0x311   :  { %4319 = vmatprep.subr.bf16.mxu1 %v13098_v58  ;;  %v3989_v58 = vld [vmem:[#allocation8 + $0x3c8] sm:$0xff] }
 0x312   :  { %3895 = vmatpush1.bf16.msra.mxu0 %v13087_v36  ;;  %v3938_v36 = vld [vmem:[#allocation8 + $0x230] sm:$0xff] }
 0x313   :  { %3896 = vmatprep.subr.bf16.mxu0 %v13096_v24  ;;  %3874 = vmatmul.mubr.bf16.vlgmr.msra.gmra.mrb[4].mxu1 %v17072_v15  ;;  %v3993_v24 = vld [vmem:[#allocation8 + $0x3e8] sm:$0xff]  ;;  %v13102_v22 = vcombine.high %v3934_v35, %v3938_v36  ;;  %v13101_v14 = vcombine.low %v3934_v35, %v3938_v36 }
 0x314   :  { %4320 = vmatpush1.bf16.msra.mxu1 %v13097_v26  ;;  %4351 = vmatprep.mubr.bf16.mxu1 %v14762_v59  ;;  %v13156_v55 = vcombine.high %v3989_v58, %v3993_v24  ;;  %v3942_v26 = vld [vmem:[#allocation8 + $0x250] sm:$0xff]  ;;  %v13155_v33 = vcombine.low %v3989_v58, %v3993_v24 }
 0x315   :  { %4321 = vmatprep.subr.bf16.mxu1 %v13106_v13  ;;  %v3935_v13 = vld [vmem:[#allocation8 + $0x218] sm:$0xff]  ;;  %v3974_v58 = vld [vmem:[#allocation8 + $0x350] sm:$0xff] }
 0x316   :  { %3897 = vmatpush1.bf16.msra.mxu0 %v13095_v34  ;;  %v3946_v34 = vld [vmem:[#allocation8 + $0x270] sm:$0xff] }
 0x317   :  { %4360 = vmatprep.subr.bf16.mxu0 %v13100_v37  ;;  %v3939_v37 = vld [vmem:[#allocation8 + $0x238] sm:$0xff]  ;;  %v13110_v62 = vcombine.high %v3942_v26, %v3946_v34  ;;  %v3978_v24 = vld [vmem:[#allocation8 + $0x370] sm:$0xff] }
 0x318   :  { %4322 = vmatpush1.bf16.msra.mxu1 %v13105_v23  ;;  %v14227_v23 = vpop.f32.mrb[4].mxu0  ;;  %v13103_v6 = vcombine.low %v3935_v13, %v3939_v37 }
 0x319   :  { %3915 = vmatmul.mubr.bf16.vlgmr.msra.gmra.mrb[20].mxu0 %v17072_v15  ;;  %4323 = vmatprep.subr.bf16.mxu1 %v13114_v5  ;;  %v3950_v5 = vld [vmem:[#allocation8 + $0x290] sm:$0xff]  ;;  %v3271_v52 = vadd.f32 %v17055_v18, %v14227_v23  ;;  %v3262_v29 = vpop.f32.mrb[5].mxu0  ;;  %v13109_v15 = vcombine.low %v3942_v26, %v3946_v34  ;;  %v3971_v26 = vld [vmem:[#allocation8 + $0x338] sm:$0xff]  ;;  %v13133_v34 = vcombine.low %v3966_v48, %v3970_v63 }
 0x31a   :  { %4361 = vmatpush1.bf16.msra.mxu0 %v13099_v11  ;;  %4392 = vmatprep.mubr.bf16.mxu0 %v14762_v59  ;;  %v13104_v11 = vcombine.high %v3935_v13, %v3939_v37  ;;  %v3982_v23 = vld [vmem:[#allocation8 + $0x390] sm:$0xff] }
 0x31b   :  { %4362 = vmatprep.subr.bf16.mxu0 %v13108_v0  ;;  %v3954_v0 = vld [vmem:[#allocation8 + $0x2b0] sm:$0xff] }
 0x31c   :  { %4324 = vmatpush1.bf16.msra.mxu1 %v13113_v28  ;;  %v3263_v28 = vadd.f32 %v17055_v18, %v3262_v29  ;;  %v13118_v16 = vcombine.high %v3950_v5, %v3954_v0  ;;  %v13117_v61 = vcombine.low %v3950_v5, %v3954_v0  ;;  %v3975_v0 = vld [vmem:[#allocation8 + $0x358] sm:$0xff] }
 0x31d   :  { %4325 = vmatprep.subr.bf16.mxu1 %v13122_v47  ;;  %v3315_v47 = vmax.f32 %v3271_v52, 0.0  ;;  %v3979_v52 = vld [vmem:[#allocation8 + $0x378] sm:$0xff] }
 0x31e   :  { %4363 = vmatpush1.bf16.msra.mxu0 %v13107_v17  ;;  %v14228_v17 = vpop.f32.mrb[6].mxu0 }
 0x31f   :  { %4364 = vmatprep.subr.bf16.mxu0 %v13116_v1  ;;  %v3274_v1 = vadd.f32 %v17055_v18, %v14228_v17  ;;  %v3265_v4 = vpop.f32.mrb[7].mxu0  ;;  %v3994_v17 = vld [vmem:[#allocation8 + $0x3f0] sm:$0xff] }
 0x320   :  { %4326 = vmatpush1.bf16.msra.mxu1 %v13121_v9  ;;  %v3958_v9 = vld [vmem:[#allocation8 + $0x2d0] sm:$0xff]  ;;  %v3266_v12 = vadd.f32 %v17055_v18, %v3265_v4 }
 0x321   :  { %4327 = vmatprep.subr.bf16.mxu1 %v13130_v39  ;;  %v3313_v39 = vmax.f32 %v3263_v28, 0.0  ;;  %v3990_v28 = vld [vmem:[#allocation8 + $0x3d0] sm:$0xff] }
 0x322   :  { %4365 = vmatpush1.bf16.msra.mxu0 %v13115_v38  ;;  %v3962_v38 = vld [vmem:[#allocation8 + $0x2f0] sm:$0xff] }
 0x323   :  { %4366 = vmatprep.subr.bf16.mxu0 %v13124_v50  ;;  %v3316_v50 = vmax.f32 %v3274_v1, 0.0  ;;  %v13125_v45 = vcombine.low %v3958_v9, %v3962_v38 }
 0x324   :  { %4328 = vmatpush1.bf16.msra.mxu1 %v13129_v7 }
 0x325   :  { %4329 = vmatprep.subr.bf16.mxu1 %v13138_v19  ;;  %v17095_v7 = vpack.c.bf16 %v3316_v50, %v3315_v47  ;;  %v13111_v19 = vcombine.low %v3943_v30, %v3947_v20  ;;  %v13144_v20 = vcombine.high %v3975_v0, %v3979_v52  ;;  %v3987_v47 = vld [vmem:[#allocation8 + $0x3b8] sm:$0xff]  ;;  %v13157_v50 = vcombine.low %v3990_v28, %v3994_v17 }
 0x326   :  { %4367 = vmatpush1.bf16.msra.mxu0 %v13123_v41  ;;  %v3314_v41 = vmax.f32 %v3266_v12, 0.0 }
 0x327   :  { %4368 = vmatprep.subr.bf16.mxu0 %v13132_v43  ;;  %v13126_v43 = vcombine.high %v3958_v9, %v3962_v38  ;;  %v4496_v9 = vld [vmem:[#allocation8 + $0x420] sm:$0xff]  ;;  %v3991_v38 = vld [vmem:[#allocation8 + $0x3d8] sm:$0xff] }
 0x328   :  { %4330 = vmatpush1.bf16.msra.mxu1 %v13137_v32  ;;  %v17098_v32 = vpack.c.bf16 %v3314_v41, %v3313_v39  ;;  %v3995_v39 = vld [vmem:[#allocation8 + $0x3f8] sm:$0xff]  ;;  %v4504_v41 = vld [vmem:[#allocation8 + $0x460] sm:$0xff] }
 0x329   :  { %4331 = vmatprep.subr.bf16.mxu1 %v13146_v53  ;;  %v14231_v40 = vpop.f32.mrb[8].mxu0 }
 0x32a   :  { %4369 = vmatpush1.bf16.msra.mxu0 %v13131_v49  ;;  %v3287_v49 = vadd.f32 %v17055_v18, %v14231_v40  ;;  %v3278_v53 = vpop.f32.mrb[9].mxu0 }
 0x32b   :  { %4370 = vmatprep.subr.bf16.mxu0 %v13140_v10  ;;  %v3959_v10 = vld [vmem:[#allocation8 + $0x2d8] sm:$0xff]  ;;  %v3279_v60 = vadd.f32 %v17055_v18, %v3278_v53  ;;  %v14232_v21 = vpop.f32.mrb[10].mxu0  ;;  %v4512_v53 = vld [vmem:[#allocation8 + $0x4a0] sm:$0xff] }
 0x32c   :  { %4332 = vmatpush1.bf16.msra.mxu1 %v13145_v51  ;;  %v3319_v51 = vmax.f32 %v3287_v49, 0.0  ;;  %v3281_v35 = vpop.f32.mrb[11].mxu0  ;;  %v13128_v36 = vcombine.high %v3959_v10, %v3963_v25  ;;  %v4508_v49 = vld [vmem:[#allocation8 + $0x480] sm:$0xff] }
 0x32d   :  { %4333 = vmatprep.subr.bf16.mxu1 %v13154_v56  ;;  %v13119_v56 = vcombine.low %v3951_v2, %v3955_v27  ;;  %v13160_v27 = vcombine.high %v3991_v38, %v3995_v39 }
 0x32e   :  { %4371 = vmatpush1.bf16.msra.mxu0 %v13139_v42  ;;  %v3290_v42 = vadd.f32 %v17055_v18, %v14232_v21 }
 0x32f   :  { %4372 = vmatprep.subr.bf16.mxu0 %v13148_v44  ;;  %v13134_v44 = vcombine.high %v3966_v48, %v3970_v63 }
 0x330   :  { %4334 = vmatpush1.bf16.msra.mxu1 %v13153_v54  ;;  %v3317_v54 = vmax.f32 %v3279_v60, 0.0 }
 0x331   :  { %4401 = vmatprep.subr.bf16.mxu1 %v13102_v22  ;;  %v3282_v22 = vadd.f32 %v17055_v18, %v3281_v35  ;;  %v13141_v18 = vcombine.low %v3974_v58, %v3978_v24  ;;  %v4513_v35 = vld [vmem:[#allocation8 + $0x4a8] sm:$0xff] }
 0x332   :  { %4373 = vmatpush1.bf16.msra.mxu0 %v13147_v31  ;;  %v3320_v31 = vmax.f32 %v3290_v42, 0.0  ;;  %v4516_v42 = vld [vmem:[#allocation8 + $0x4c0] sm:$0xff] }
 0x333   :  { %4374 = vmatprep.subr.bf16.mxu0 %v13156_v55  ;;  %4352 = vmatmul.mubr.bf16.vlgmr.msra.gmra.mrb[0].mxu1 %v17086_v8  ;;  %v3967_v55 = vld [vmem:[#allocation8 + $0x318] sm:$0xff]  ;;  %v3318_v37 = vmax.f32 %v3282_v22, 0.0  ;;  %v4528_v22 = vld [vmem:[#allocation8 + $0x520] sm:$0xff] }
 0x334   :  { %4402 = vmatpush1.bf16.msra.mxu1 %v13101_v14  ;;  %4433 = vmatprep.mubr.bf16.mxu1 %v14762_v59  ;;  %v17104_v13 = vpack.c.bf16 %v3320_v31, %v3319_v51  ;;  %v13127_v14 = vcombine.low %v3959_v10, %v3963_v25  ;;  %v13135_v29 = vcombine.low %v3967_v55, %v3971_v26  ;;  %v4501_v10 = vld [vmem:[#allocation8 + $0x448] sm:$0xff]  ;;  %v4524_v31 = vld [vmem:[#allocation8 + $0x500] sm:$0xff] }
 0x335   :  { %4403 = vmatprep.subr.bf16.mxu1 %v13110_v62  ;;  %v13136_v62 = vcombine.high %v3967_v55, %v3971_v26  ;;  %v17106_v5 = vpack.c.bf16 %v3318_v37, %v3317_v54  ;;  %v4505_v25 = vld [vmem:[#allocation8 + $0x468] sm:$0xff] }
 0x336   :  { %4375 = vmatpush1.bf16.msra.mxu0 %v13155_v33  ;;  %v13142_v33 = vcombine.high %v3974_v58, %v3978_v24  ;;  %v13172_v51 = vcombine.high %v4501_v10, %v4505_v25  ;;  %v13171_v58 = vcombine.low %v4501_v10, %v4505_v25  ;;  %v4517_v55 = vld [vmem:[#allocation8 + $0x4c8] sm:$0xff] }
 0x337   :  { %4442 = vmatprep.subr.bf16.mxu0 %v13104_v11  ;;  %v3986_v11 = vld [vmem:[#allocation8 + $0x3b0] sm:$0xff]  ;;  %v4521_v26 = vld [vmem:[#allocation8 + $0x4e8] sm:$0xff] }
 0x338   :  { %4404 = vmatpush1.bf16.msra.mxu1 %v13109_v15  ;;  %v13150_v30 = vcombine.high %v3982_v23, %v3986_v11  ;;  %v3983_v15 = vld [vmem:[#allocation8 + $0x398] sm:$0xff]  ;;  %v13149_v1 = vcombine.low %v3982_v23, %v3986_v11  ;;  %v4525_v23 = vld [vmem:[#allocation8 + $0x508] sm:$0xff] }
 0x339   :  { %4393 = vmatmul.mubr.bf16.vlgmr.msra.gmra.mrb[16].mxu0 %v17086_v8  ;;  %4405 = vmatprep.subr.bf16.mxu1 %v13118_v16  ;;  %v13158_v16 = vcombine.high %v3990_v28, %v3994_v17  ;;  %v13152_v4 = vcombine.high %v3983_v15, %v3987_v47  ;;  %v13151_v12 = vcombine.low %v3983_v15, %v3987_v47  ;;  %v4529_v11 = vld [vmem:[#allocation8 + $0x528] sm:$0xff] }
 0x33a   :  { %4443 = vmatpush1.bf16.msra.mxu0 %v13103_v6  ;;  %4474 = vmatprep.mubr.bf16.mxu0 %v14762_v59  ;;  %v13143_v6 = vcombine.low %v3975_v0, %v3979_v52  ;;  %v13193_v0 = vcombine.low %v4524_v31, %v4528_v22  ;;  %v13187_v52 = vcombine.low %v4517_v55, %v4521_v26  ;;  %v4533_v28 = vld [vmem:[#allocation8 + $0x548] sm:$0xff] }
 0x33b   :  { %4444 = vmatprep.subr.bf16.mxu0 %v13112_v57  ;;  %v4492_v57 = vld [vmem:[#allocation8 + $0x400] sm:$0xff]  ;;  %v4537_v17 = vld [vmem:[#allocation8 + $0x568] sm:$0xff]  ;;  %v13195_v47 = vcombine.low %v4525_v23, %v4529_v11 }
 0x33c   :  { %4406 = vmatpush1.bf16.msra.mxu1 %v13117_v61  ;;  %v13162_v2 = vcombine.high %v4492_v57, %v4496_v9  ;;  %v4500_v61 = vld [vmem:[#allocation8 + $0x440] sm:$0xff]  ;;  %v13161_v40 = vcombine.low %v4492_v57, %v4496_v9  ;;  %v4541_v57 = vld [vmem:[#allocation8 + $0x588] sm:$0xff] }
 0x33d   :  { %4407 = vmatprep.subr.bf16.mxu1 %v13126_v43  ;;  %v4497_v43 = vld [vmem:[#allocation8 + $0x428] sm:$0xff]  ;;  %v13170_v48 = vcombine.high %v4500_v61, %v4504_v41  ;;  %v13169_v60 = vcombine.low %v4500_v61, %v4504_v41 }
 0x33e   :  { %4445 = vmatpush1.bf16.msra.mxu0 %v13111_v19  ;;  %v4493_v19 = vld [vmem:[#allocation8 + $0x408] sm:$0xff] }
 0x33f   :  { %4446 = vmatprep.subr.bf16.mxu0 %v13120_v3  ;;  %v13159_v3 = vcombine.low %v3991_v38, %v3995_v39  ;;  %v13164_v63 = vcombine.high %v4493_v19, %v4497_v43  ;;  %v13163_v21 = vcombine.low %v4493_v19, %v4497_v43  ;;  %v4545_v9 = vld [vmem:[#allocation8 + $0x5a8] sm:$0xff]  ;;  %v13203_v39 = vcombine.low %v4533_v28, %v4537_v17 }
 0x340   :  { %4408 = vmatpush1.bf16.msra.mxu1 %v13125_v45  ;;  %v13178_v45 = vcombine.high %v4508_v49, %v4512_v53  ;;  %v4549_v61 = vld [vmem:[#allocation8 + $0x5c8] sm:$0xff]  ;;  %v13211_v43 = vcombine.low %v4541_v57, %v4545_v9 }
 0x341   :  { %4409 = vmatprep.subr.bf16.mxu1 %v13134_v44  ;;  %v4509_v44 = vld [vmem:[#allocation8 + $0x488] sm:$0xff] }
 0x342   :  { %4447 = vmatpush1.bf16.msra.mxu0 %v13119_v56  ;;  %v4520_v56 = vld [vmem:[#allocation8 + $0x4e0] sm:$0xff]  ;;  %v13180_v54 = vcombine.high %v4509_v44, %v4513_v35  ;;  %v13179_v37 = vcombine.low %v4509_v44, %v4513_v35  ;;  %v4553_v41 = vld [vmem:[#allocation8 + $0x5e8] sm:$0xff] }
 0x343   :  { %4448 = vmatprep.subr.bf16.mxu0 %v13128_v36  ;;  %v13177_v36 = vcombine.low %v4508_v49, %v4512_v53  ;;  %v13186_v24 = vcombine.high %v4516_v42, %v4520_v56  ;;  %v4495_v49 = vld [vmem:[#allocation8 + $0x418] sm:$0xff]  ;;  %v13219_v25 = vcombine.low %v4549_v61, %v4553_v41 }
 0x344   :  { %4410 = vmatpush1.bf16.msra.mxu1 %v13133_v34  ;;  %v13185_v34 = vcombine.low %v4516_v42, %v4520_v56  ;;  %v4499_v53 = vld [vmem:[#allocation8 + $0x438] sm:$0xff] }
 0x345   :  { %4411 = vmatprep.subr.bf16.mxu1 %v13142_v33  ;;  %v4532_v33 = vld [vmem:[#allocation8 + $0x540] sm:$0xff]  ;;  %v4503_v42 = vld [vmem:[#allocation8 + $0x458] sm:$0xff]  ;;  %v13167_v35 = vcombine.low %v4495_v49, %v4499_v53 }
 0x346   :  { %4449 = vmatpush1.bf16.msra.mxu0 %v13127_v14  ;;  %v13188_v14 = vcombine.high %v4517_v55, %v4521_v26  ;;  %v4507_v56 = vld [vmem:[#allocation8 + $0x478] sm:$0xff] }
 0x347   :  { %4450 = vmatprep.subr.bf16.mxu0 %v13136_v62  ;;  %v4536_v62 = vld [vmem:[#allocation8 + $0x560] sm:$0xff]  ;;  %v13175_v26 = vcombine.low %v4503_v42, %v4507_v56 }
 0x348   :  { %4412 = vmatpush1.bf16.msra.mxu1 %v13141_v18  ;;  %v13202_v18 = vcombine.high %v4532_v33, %v4536_v62  ;;  %v13201_v15 = vcombine.low %v4532_v33, %v4536_v62  ;;  %v4519_v33 = vld [vmem:[#allocation8 + $0x4d8] sm:$0xff] }
 0x349   :  { %4413 = vmatprep.subr.bf16.mxu1 %v13150_v30  ;;  %v4540_v30 = vld [vmem:[#allocation8 + $0x580] sm:$0xff]  ;;  %v4523_v62 = vld [vmem:[#allocation8 + $0x4f8] sm:$0xff] }
 0x34a   :  { %4451 = vmatpush1.bf16.msra.mxu0 %v13135_v29  ;;  %v13196_v29 = vcombine.high %v4525_v23, %v4529_v11 }
 0x34b   :  { %4452 = vmatprep.subr.bf16.mxu0 %v13144_v20  ;;  %v4544_v20 = vld [vmem:[#allocation8 + $0x5a0] sm:$0xff] }
 0x34c   :  { %4414 = vmatpush1.bf16.msra.mxu1 %v13149_v1  ;;  %v13210_v1 = vcombine.high %v4540_v30, %v4544_v20  ;;  %v13209_v38 = vcombine.low %v4540_v30, %v4544_v20  ;;  %v4527_v30 = vld [vmem:[#allocation8 + $0x518] sm:$0xff] }
 0x34d   :  { %4415 = vmatprep.subr.bf16.mxu1 %v13158_v16  ;;  %v4548_v16 = vld [vmem:[#allocation8 + $0x5c0] sm:$0xff]  ;;  %v4531_v20 = vld [vmem:[#allocation8 + $0x538] sm:$0xff] }
 0x34e   :  { %4453 = vmatpush1.bf16.msra.mxu0 %v13143_v6  ;;  %v13204_v6 = vcombine.high %v4533_v28, %v4537_v17  ;;  %v13191_v17 = vcombine.low %v4519_v33, %v4523_v62 }
 0x34f   :  { %4454 = vmatprep.subr.bf16.mxu0 %v13152_v4  ;;  %v4552_v4 = vld [vmem:[#allocation8 + $0x5e0] sm:$0xff] }
 0x350   :  { %4416 = vmatpush1.bf16.msra.mxu1 %v13157_v50  ;;  %v13218_v50 = vcombine.high %v4548_v16, %v4552_v4  ;;  %v13217_v19 = vcombine.low %v4548_v16, %v4552_v4  ;;  %v4535_v16 = vld [vmem:[#allocation8 + $0x558] sm:$0xff] }
 0x351   :  { %4876 = vmatprep.subr.bf16.mxu1 %v13162_v2  ;;  %v4494_v2 = vld [vmem:[#allocation8 + $0x410] sm:$0xff]  ;;  %v4539_v4 = vld [vmem:[#allocation8 + $0x578] sm:$0xff] }
 0x352   :  { %4455 = vmatpush1.bf16.msra.mxu0 %v13151_v12  ;;  %v13212_v12 = vcombine.high %v4541_v57, %v4545_v9  ;;  %v13199_v9 = vcombine.low %v4527_v30, %v4531_v20 }
 0x353   :  { %4456 = vmatprep.subr.bf16.mxu0 %v13160_v27  ;;  %4434 = vmatmul.mubr.bf16.vlgmr.msra.gmra.mrb[4].mxu1 %v17086_v8  ;;  %v4498_v27 = vld [vmem:[#allocation8 + $0x430] sm:$0xff] }
 0x354   :  { %4877 = vmatpush1.bf16.msra.mxu1 %v13161_v40  ;;  %4908 = vmatprep.mubr.bf16.mxu1 %v14762_v59  ;;  %v13166_v40 = vcombine.high %v4494_v2, %v4498_v27  ;;  %v13165_v10 = vcombine.low %v4494_v2, %v4498_v27  ;;  %v4543_v2 = vld [vmem:[#allocation8 + $0x598] sm:$0xff] }
 0x355   :  { %4878 = vmatprep.subr.bf16.mxu1 %v13170_v48  ;;  %v4502_v48 = vld [vmem:[#allocation8 + $0x450] sm:$0xff]  ;;  %v4547_v27 = vld [vmem:[#allocation8 + $0x5b8] sm:$0xff] }
 0x356   :  { %4457 = vmatpush1.bf16.msra.mxu0 %v13159_v3  ;;  %v13220_v3 = vcombine.high %v4549_v61, %v4553_v41  ;;  %v13207_v41 = vcombine.low %v4535_v16, %v4539_v4 }
 0x357   :  { %4917 = vmatprep.subr.bf16.mxu0 %v13164_v63  ;;  %v4506_v63 = vld [vmem:[#allocation8 + $0x470] sm:$0xff] }
 0x358   :  { %4879 = vmatpush1.bf16.msra.mxu1 %v13169_v60  ;;  %v13174_v60 = vcombine.high %v4502_v48, %v4506_v63  ;;  %v13173_v44 = vcombine.low %v4502_v48, %v4506_v63  ;;  %v4551_v48 = vld [vmem:[#allocation8 + $0x5d8] sm:$0xff] }
 0x359   :  { %4475 = vmatmul.mubr.bf16.vlgmr.msra.gmra.mrb[20].mxu0 %v17086_v8  ;;  %4880 = vmatprep.subr.bf16.mxu1 %v13178_v45  ;;  %v13194_v8 = vcombine.high %v4524_v31, %v4528_v22  ;;  %v4510_v45 = vld [vmem:[#allocation8 + $0x490] sm:$0xff]  ;;  %v4511_v31 = vld [vmem:[#allocation8 + $0x498] sm:$0xff] }
 0x35a   :  { %4918 = vmatpush1.bf16.msra.mxu0 %v13163_v21  ;;  %4949 = vmatprep.mubr.bf16.mxu0 %v14762_v59  ;;  %v13168_v21 = vcombine.high %v4495_v49, %v4499_v53  ;;  %v4515_v22 = vld [vmem:[#allocation8 + $0x4b8] sm:$0xff]  ;;  %v13215_v53 = vcombine.low %v4543_v2, %v4547_v27 }
 0x35b   :  { %4919 = vmatprep.subr.bf16.mxu0 %v13172_v51  ;;  %v4514_v51 = vld [vmem:[#allocation8 + $0x4b0] sm:$0xff]  ;;  %v13183_v11 = vcombine.low %v4511_v31, %v4515_v22  ;;  %v4555_v63 = vld [vmem:[#allocation8 + $0x5f8] sm:$0xff] }
 0x35c   :  { %4881 = vmatpush1.bf16.msra.mxu1 %v13177_v36  ;;  %v13182_v36 = vcombine.high %v4510_v45, %v4514_v51  ;;  %v13181_v55 = vcombine.low %v4510_v45, %v4514_v51  ;;  %v5050_v45 = vld [vmem:[#allocation8 + $0x608] sm:$0xff] }
 0x35d   :  { %4882 = vmatprep.subr.bf16.mxu1 %v13186_v24  ;;  %v4518_v24 = vld [vmem:[#allocation8 + $0x4d0] sm:$0xff]  ;;  %v5054_v51 = vld [vmem:[#allocation8 + $0x628] sm:$0xff] }
 0x35e   :  { %4920 = vmatpush1.bf16.msra.mxu0 %v13171_v58  ;;  %v13176_v58 = vcombine.high %v4503_v42, %v4507_v56  ;;  %v13223_v56 = vcombine.low %v4551_v48, %v4555_v63 }
 0x35f   :  { %4921 = vmatprep.subr.bf16.mxu0 %v13180_v54  ;;  %v4522_v54 = vld [vmem:[#allocation8 + $0x4f0] sm:$0xff] }
 0x360   :  { %4883 = vmatpush1.bf16.msra.mxu1 %v13185_v34  ;;  %v13190_v34 = vcombine.high %v4518_v24, %v4522_v54  ;;  %v13189_v23 = vcombine.low %v4518_v24, %v4522_v54  ;;  %v5058_v24 = vld [vmem:[#allocation8 + $0x648] sm:$0xff] }
 0x361   :  { %4884 = vmatprep.subr.bf16.mxu1 %v13194_v8  ;;  %v4526_v8 = vld [vmem:[#allocation8 + $0x510] sm:$0xff]  ;;  %v5062_v54 = vld [vmem:[#allocation8 + $0x668] sm:$0xff] }
 0x362   :  { %4922 = vmatpush1.bf16.msra.mxu0 %v13179_v37  ;;  %v13184_v37 = vcombine.high %v4511_v31, %v4515_v22  ;;  %v13227_v22 = vcombine.low %v5050_v45, %v5054_v51 }
 0x363   :  { %4923 = vmatprep.subr.bf16.mxu0 %v13188_v14  ;;  %v4530_v14 = vld [vmem:[#allocation8 + $0x530] sm:$0xff] }
 0x364   :  { %4885 = vmatpush1.bf16.msra.mxu1 %v13193_v0  ;;  %v13198_v0 = vcombine.high %v4526_v8, %v4530_v14  ;;  %v13197_v28 = vcombine.low %v4526_v8, %v4530_v14  ;;  %v5066_v8 = vld [vmem:[#allocation8 + $0x688] sm:$0xff] }
 0x365   :  { %4886 = vmatprep.subr.bf16.mxu1 %v13202_v18  ;;  %v4534_v18 = vld [vmem:[#allocation8 + $0x550] sm:$0xff]  ;;  %v5070_v14 = vld [vmem:[#allocation8 + $0x6a8] sm:$0xff] }
 0x366   :  { %4924 = vmatpush1.bf16.msra.mxu0 %v13187_v52  ;;  %v13192_v52 = vcombine.high %v4519_v33, %v4523_v62  ;;  %v13235_v62 = vcombine.low %v5058_v24, %v5062_v54 }
 0x367   :  { %4925 = vmatprep.subr.bf16.mxu0 %v13196_v29  ;;  %v4538_v29 = vld [vmem:[#allocation8 + $0x570] sm:$0xff] }
 0x368   :  { %4887 = vmatpush1.bf16.msra.mxu1 %v13201_v15  ;;  %v13206_v15 = vcombine.high %v4534_v18, %v4538_v29  ;;  %v13205_v57 = vcombine.low %v4534_v18, %v4538_v29  ;;  %v5074_v18 = vld [vmem:[#allocation8 + $0x6c8] sm:$0xff] }
 0x369   :  { %4888 = vmatprep.subr.bf16.mxu1 %v13210_v1  ;;  %v4542_v1 = vld [vmem:[#allocation8 + $0x590] sm:$0xff]  ;;  %v5078_v29 = vld [vmem:[#allocation8 + $0x6e8] sm:$0xff] }
 0x36a   :  { %4926 = vmatpush1.bf16.msra.mxu0 %v13195_v47  ;;  %v13200_v47 = vcombine.high %v4527_v30, %v4531_v20  ;;  %v13243_v20 = vcombine.low %v5066_v8, %v5070_v14 }
 0x36b   :  { %4927 = vmatprep.subr.bf16.mxu0 %v13204_v6  ;;  %v4546_v6 = vld [vmem:[#allocation8 + $0x5b0] sm:$0xff] }
 0x36c   :  { %4889 = vmatpush1.bf16.msra.mxu1 %v13209_v38  ;;  %v13214_v38 = vcombine.high %v4542_v1, %v4546_v6  ;;  %v13213_v61 = vcombine.low %v4542_v1, %v4546_v6  ;;  %v5082_v1 = vld [vmem:[#allocation8 + $0x708] sm:$0xff] }
 0x36d   :  { %4890 = vmatprep.subr.bf16.mxu1 %v13218_v50  ;;  %v4550_v50 = vld [vmem:[#allocation8 + $0x5d0] sm:$0xff]  ;;  %v5086_v6 = vld [vmem:[#allocation8 + $0x728] sm:$0xff] }
 0x36e   :  { %4928 = vmatpush1.bf16.msra.mxu0 %v13203_v39  ;;  %v13208_v39 = vcombine.high %v4535_v16, %v4539_v4  ;;  %v13251_v4 = vcombine.low %v5074_v18, %v5078_v29 }
 0x36f   :  { %4929 = vmatprep.subr.bf16.mxu0 %v13212_v12  ;;  %v4554_v12 = vld [vmem:[#allocation8 + $0x5f0] sm:$0xff] }
 0x370   :  { %4891 = vmatpush1.bf16.msra.mxu1 %v13217_v19  ;;  %v13222_v19 = vcombine.high %v4550_v50, %v4554_v12  ;;  %v13221_v49 = vcombine.low %v4550_v50, %v4554_v12  ;;  %v5090_v50 = vld [vmem:[#allocation8 + $0x748] sm:$0xff] }
 0x371   :  { %4958 = vmatprep.subr.bf16.mxu1 %v13166_v40  ;;  %v5049_v40 = vld [vmem:[#allocation8 + $0x600] sm:$0xff]  ;;  %v5094_v12 = vld [vmem:[#allocation8 + $0x768] sm:$0xff] }
 0x372   :  { %4930 = vmatpush1.bf16.msra.mxu0 %v13211_v43  ;;  %v13216_v43 = vcombine.high %v4543_v2, %v4547_v27  ;;  %v13259_v27 = vcombine.low %v5082_v1, %v5086_v6 }
 0x373   :  { %4931 = vmatprep.subr.bf16.mxu0 %v13220_v3  ;;  %4909 = vmatmul.mubr.bf16.vlgmr.msra.gmra.mrb[0].mxu1 %v17068_v46  ;;  %v5053_v3 = vld [vmem:[#allocation8 + $0x620] sm:$0xff] }
 0x374   :  { %4959 = vmatpush1.bf16.msra.mxu1 %v13165_v10  ;;  %4990 = vmatprep.mubr.bf16.mxu1 %v14762_v59  ;;  %v13226_v10 = vcombine.high %v5049_v40, %v5053_v3  ;;  %v13225_v42 = vcombine.low %v5049_v40, %v5053_v3  ;;  %v5098_v40 = vld [vmem:[#allocation8 + $0x788] sm:$0xff] }
 0x375   :  { %4960 = vmatprep.subr.bf16.mxu1 %v13174_v60  ;;  %v5057_v60 = vld [vmem:[#allocation8 + $0x640] sm:$0xff]  ;;  %v5102_v3 = vld [vmem:[#allocation8 + $0x7a8] sm:$0xff] }
 0x376   :  { %4932 = vmatpush1.bf16.msra.mxu0 %v13219_v25  ;;  %v13224_v25 = vcombine.high %v4551_v48, %v4555_v63  ;;  %v13267_v63 = vcombine.low %v5090_v50, %v5094_v12 }
 0x377   :  { %4999 = vmatprep.subr.bf16.mxu0 %v13168_v21  ;;  %v5061_v21 = vld [vmem:[#allocation8 + $0x660] sm:$0xff] }
 0x378   :  { %4961 = vmatpush1.bf16.msra.mxu1 %v13173_v44  ;;  %v13234_v44 = vcombine.high %v5057_v60, %v5061_v21  ;;  %v13233_v31 = vcombine.low %v5057_v60, %v5061_v21  ;;  %v5106_v60 = vld [vmem:[#allocation8 + $0x7c8] sm:$0xff] }
 0x379   :  { %4950 = vmatmul.mubr.bf16.vlgmr.msra.gmra.mrb[16].mxu0 %v17068_v46  ;;  %4962 = vmatprep.subr.bf16.mxu1 %v13182_v36  ;;  %v5065_v36 = vld [vmem:[#allocation8 + $0x680] sm:$0xff]  ;;  %v5110_v21 = vld [vmem:[#allocation8 + $0x7e8] sm:$0xff] }
 0x37a   :  { %5000 = vmatpush1.bf16.msra.mxu0 %v13167_v35  ;;  %5031 = vmatprep.mubr.bf16.mxu0 %v14762_v59  ;;  %v13228_v35 = vcombine.high %v5050_v45, %v5054_v51  ;;  %v13275_v51 = vcombine.low %v5098_v40, %v5102_v3 }
 0x37b   :  { %5001 = vmatprep.subr.bf16.mxu0 %v13176_v58  ;;  %v5069_v58 = vld [vmem:[#allocation8 + $0x6a0] sm:$0xff] }
 0x37c   :  { %4963 = vmatpush1.bf16.msra.mxu1 %v13181_v55  ;;  %v13242_v55 = vcombine.high %v5065_v36, %v5069_v58  ;;  %v13241_v33 = vcombine.low %v5065_v36, %v5069_v58  ;;  %v5052_v36 = vld [vmem:[#allocation8 + $0x618] sm:$0xff] }
 0x37d   :  { %4964 = vmatprep.subr.bf16.mxu1 %v13190_v34  ;;  %v5073_v34 = vld [vmem:[#allocation8 + $0x6c0] sm:$0xff]  ;;  %v5056_v58 = vld [vmem:[#allocation8 + $0x638] sm:$0xff] }
 0x37e   :  { %5002 = vmatpush1.bf16.msra.mxu0 %v13175_v26  ;;  %v13236_v26 = vcombine.high %v5058_v24, %v5062_v54  ;;  %v13283_v54 = vcombine.low %v5106_v60, %v5110_v21 }
 0x37f   :  { %5003 = vmatprep.subr.bf16.mxu0 %v13184_v37  ;;  %v5077_v37 = vld [vmem:[#allocation8 + $0x6e0] sm:$0xff] }
 0x380   :  { %4965 = vmatpush1.bf16.msra.mxu1 %v13189_v23  ;;  %v13250_v23 = vcombine.high %v5073_v34, %v5077_v37  ;;  %v13249_v30 = vcombine.low %v5073_v34, %v5077_v37  ;;  %v5071_v34 = vld [vmem:[#allocation8 + $0x6b0] sm:$0xff]  ;;  %v5060_v37 = vld [vmem:[#allocation8 + $0x658] sm:$0xff] }
 0x381   :  { %4966 = vmatprep.subr.bf16.mxu1 %v13198_v0  ;;  %v5081_v0 = vld [vmem:[#allocation8 + $0x700] sm:$0xff] }
 0x382   :  { %5004 = vmatpush1.bf16.msra.mxu0 %v13183_v11  ;;  %v13244_v11 = vcombine.high %v5066_v8, %v5070_v14  ;;  %v5064_v8 = vld [vmem:[#allocation8 + $0x678] sm:$0xff] }
 0x383   :  { %5005 = vmatprep.subr.bf16.mxu0 %v13192_v52  ;;  %v5085_v52 = vld [vmem:[#allocation8 + $0x720] sm:$0xff] }
 0x384   :  { %4967 = vmatpush1.bf16.msra.mxu1 %v13197_v28  ;;  %v13258_v28 = vcombine.high %v5081_v0, %v5085_v52  ;;  %v13257_v16 = vcombine.low %v5081_v0, %v5085_v52  ;;  %v5068_v0 = vld [vmem:[#allocation8 + $0x698] sm:$0xff] }
 0x385   :  { %4968 = vmatprep.subr.bf16.mxu1 %v13206_v15  ;;  %v5089_v15 = vld [vmem:[#allocation8 + $0x740] sm:$0xff]  ;;  %v5072_v52 = vld [vmem:[#allocation8 + $0x6b8] sm:$0xff] }
 0x386   :  { %5006 = vmatpush1.bf16.msra.mxu0 %v13191_v17  ;;  %v13252_v17 = vcombine.high %v5074_v18, %v5078_v29  ;;  %v13239_v29 = vcombine.low %v5060_v37, %v5064_v8 }
 0x387   :  { %5007 = vmatprep.subr.bf16.mxu0 %v13200_v47  ;;  %v5093_v47 = vld [vmem:[#allocation8 + $0x760] sm:$0xff] }
 0x388   :  { %4969 = vmatpush1.bf16.msra.mxu1 %v13205_v57  ;;  %v13266_v57 = vcombine.high %v5089_v15, %v5093_v47  ;;  %v13265_v2 = vcombine.low %v5089_v15, %v5093_v47  ;;  %v5076_v15 = vld [vmem:[#allocation8 + $0x6d8] sm:$0xff] }
 0x389   :  { %4970 = vmatprep.subr.bf16.mxu1 %v13214_v38  ;;  %v5097_v38 = vld [vmem:[#allocation8 + $0x780] sm:$0xff]  ;;  %v5080_v47 = vld [vmem:[#allocation8 + $0x6f8] sm:$0xff] }
 0x38a   :  { %5008 = vmatpush1.bf16.msra.mxu0 %v13199_v9  ;;  %v13260_v9 = vcombine.high %v5082_v1, %v5086_v6  ;;  %v13247_v6 = vcombine.low %v5068_v0, %v5072_v52 }
 0x38b   :  { %5009 = vmatprep.subr.bf16.mxu0 %v13208_v39  ;;  %v5101_v39 = vld [vmem:[#allocation8 + $0x7a0] sm:$0xff] }
 0x38c   :  { %4971 = vmatpush1.bf16.msra.mxu1 %v13213_v61  ;;  %v13274_v61 = vcombine.high %v5097_v38, %v5101_v39  ;;  %v13273_v48 = vcombine.low %v5097_v38, %v5101_v39  ;;  %v5084_v38 = vld [vmem:[#allocation8 + $0x718] sm:$0xff] }
 0x38d   :  { %4972 = vmatprep.subr.bf16.mxu1 %v13222_v19  ;;  %v5105_v19 = vld [vmem:[#allocation8 + $0x7c0] sm:$0xff]  ;;  %v5088_v39 = vld [vmem:[#allocation8 + $0x738] sm:$0xff] }
 0x38e   :  { %5010 = vmatpush1.bf16.msra.mxu0 %v13207_v41  ;;  %v13268_v41 = vcombine.high %v5090_v50, %v5094_v12  ;;  %v13255_v12 = vcombine.low %v5076_v15, %v5080_v47 }
 0x38f   :  { %5011 = vmatprep.subr.bf16.mxu0 %v13216_v43  ;;  %v5109_v43 = vld [vmem:[#allocation8 + $0x7e0] sm:$0xff] }
 0x390   :  { %4973 = vmatpush1.bf16.msra.mxu1 %v13221_v49  ;;  %v13282_v49 = vcombine.high %v5105_v19, %v5109_v43  ;;  %v13281_v45 = vcombine.low %v5105_v19, %v5109_v43  ;;  %v5092_v43 = vld [vmem:[#allocation8 + $0x758] sm:$0xff] }
 0x391   :  { %5436 = vmatprep.subr.bf16.mxu1 %v13226_v10  ;;  %v5051_v10 = vld [vmem:[#allocation8 + $0x610] sm:$0xff] }
 0x392   :  { %5012 = vmatpush1.bf16.msra.mxu0 %v13215_v53  ;;  %v13276_v53 = vcombine.high %v5098_v40, %v5102_v3  ;;  %v5096_v40 = vld [vmem:[#allocation8 + $0x778] sm:$0xff] }
 0x393   :  { %5013 = vmatprep.subr.bf16.mxu0 %v13224_v25  ;;  %4991 = vmatmul.mubr.bf16.vlgmr.msra.gmra.mrb[4].mxu1 %v17068_v46  ;;  %v5055_v25 = vld [vmem:[#allocation8 + $0x630] sm:$0xff]  ;;  %v14564_v3 = vld [vmem:[#allocation7] ss:$0 sm:$0xff] }
 0x394   :  { %5437 = vmatpush1.bf16.msra.mxu1 %v13225_v42  ;;  %5468 = vmatprep.mubr.bf16.mxu1 %v14762_v59  ;;  %v13230_v42 = vcombine.high %v5051_v10, %v5055_v25  ;;  %v13229_v24 = vcombine.low %v5051_v10, %v5055_v25  ;;  %v13263_v25 = vcombine.low %v5084_v38, %v5088_v39 }
 0x395   :  { %5438 = vmatprep.subr.bf16.mxu1 %v13234_v44  ;;  %v5059_v44 = vld [vmem:[#allocation8 + $0x650] sm:$0xff] }
 0x396   :  { %5014 = vmatpush1.bf16.msra.mxu0 %v13223_v56  ;;  %v13284_v56 = vcombine.high %v5106_v60, %v5110_v21 }
 0x397   :  { %5477 = vmatprep.subr.bf16.mxu0 %v13228_v35  ;;  %v5063_v35 = vld [vmem:[#allocation8 + $0x670] sm:$0xff] }
 0x398   :  { %5439 = vmatpush1.bf16.msra.mxu1 %v13233_v31  ;;  %v17121_v31 = vrot.slane %v17068_v46, 4  ;;  %v13237_v14 = vcombine.low %v5059_v44, %v5063_v35 }
 0x399   :  { %5032 = vmatmul.mubr.bf16.vlgmr.msra.gmra.mrb[20].mxu0 %v17068_v46  ;;  %5440 = vmatprep.subr.bf16.mxu1 %v13242_v55  ;;  %v13232_v55 = vcombine.high %v5052_v36, %v5056_v58  ;;  %v13240_v46 = vcombine.high %v5060_v37, %v5064_v8 }
 0x39a   :  { %5478 = vmatpush1.bf16.msra.mxu0 %v13227_v22  ;;  %5509 = vmatprep.mubr.bf16.mxu0 %v14762_v59  ;;  %v13238_v22 = vcombine.high %v5059_v44, %v5063_v35  ;;  %v5111_v44 = vld [vmem:[#allocation8 + $0x7f0] sm:$0xff] }
 0x39b   :  { %5479 = vmatprep.subr.bf16.mxu0 %v13236_v26  ;;  %v5067_v26 = vld [vmem:[#allocation8 + $0x690] sm:$0xff] }
 0x39c   :  { %5441 = vmatpush1.bf16.msra.mxu1 %v13241_v33  ;;  %v13231_v33 = vcombine.low %v5052_v36, %v5056_v58  ;;  %v13245_v18 = vcombine.low %v5067_v26, %v5071_v34  ;;  %v5100_v58 = vld [vmem:[#allocation8 + $0x798] sm:$0xff] }
 0x39d   :  { %5442 = vmatprep.subr.bf16.mxu1 %v13250_v23  ;;  %v5075_v23 = vld [vmem:[#allocation8 + $0x6d0] sm:$0xff] }
 0x39e   :  { %5480 = vmatpush1.bf16.msra.mxu0 %v13235_v62  ;;  %v13246_v62 = vcombine.high %v5067_v26, %v5071_v34  ;;  %v13271_v26 = vcombine.low %v5092_v43, %v5096_v40 }
 0x39f   :  { %5481 = vmatprep.subr.bf16.mxu0 %v13244_v11  ;;  %v5079_v11 = vld [vmem:[#allocation8 + $0x6f0] sm:$0xff] }
 0x3a0   :  { %5443 = vmatpush1.bf16.msra.mxu1 %v13249_v30  ;;  %v13254_v30 = vcombine.high %v5075_v23, %v5079_v11  ;;  %v13253_v1 = vcombine.low %v5075_v23, %v5079_v11  ;;  %v5112_v23 = vld [vmem:[#allocation8 + $0x7f8] sm:$0xff] }
 0x3a1   :  { %5444 = vmatprep.subr.bf16.mxu1 %v13258_v28  ;;  %v5083_v28 = vld [vmem:[#allocation8 + $0x710] sm:$0xff] }
 0x3a2   :  { %5482 = vmatpush1.bf16.msra.mxu0 %v13243_v20  ;;  %v13248_v20 = vcombine.high %v5068_v0, %v5072_v52 }
 0x3a3   :  { %5483 = vmatprep.subr.bf16.mxu0 %v13252_v17  ;;  %v5087_v17 = vld [vmem:[#allocation8 + $0x730] sm:$0xff] }
 0x3a4   :  { %5445 = vmatpush1.bf16.msra.mxu1 %v13257_v16  ;;  %v13262_v16 = vcombine.high %v5083_v28, %v5087_v17  ;;  %v13261_v50 = vcombine.low %v5083_v28, %v5087_v17  ;;  %v5614_v28 = vld [vmem:[#allocation8 + $0x828] sm:$0xff] }
 0x3a5   :  { %5446 = vmatprep.subr.bf16.mxu1 %v13266_v57  ;;  %v5091_v57 = vld [vmem:[#allocation8 + $0x750] sm:$0xff] }
 0x3a6   :  { %5484 = vmatpush1.bf16.msra.mxu0 %v13251_v4  ;;  %v13256_v4 = vcombine.high %v5076_v15, %v5080_v47 }
 0x3a7   :  { %5485 = vmatprep.subr.bf16.mxu0 %v13260_v9  ;;  %v5095_v9 = vld [vmem:[#allocation8 + $0x770] sm:$0xff] }
 0x3a8   :  { %5447 = vmatpush1.bf16.msra.mxu1 %v13265_v2  ;;  %v13270_v2 = vcombine.high %v5091_v57, %v5095_v9 }
 0x3a9   :  { %5448 = vmatprep.subr.bf16.mxu1 %v13274_v61  ;;  %v5099_v61 = vld [vmem:[#allocation8 + $0x790] sm:$0xff] }
 0x3aa   :  { %5486 = vmatpush1.bf16.msra.mxu0 %v13259_v27  ;;  %v13264_v27 = vcombine.high %v5084_v38, %v5088_v39 }
 0x3ab   :  { %5487 = vmatprep.subr.bf16.mxu0 %v13268_v41  ;;  %v5103_v41 = vld [vmem:[#allocation8 + $0x7b0] sm:$0xff] }
 0x3ac   :  { %5449 = vmatpush1.bf16.msra.mxu1 %v13273_v48  ;;  %v13278_v60 = vcombine.high %v5099_v61, %v5103_v41 }
 0x3ad   :  { %5450 = vmatprep.subr.bf16.mxu1 %v13282_v49  ;;  %v13269_v49 = vcombine.low %v5091_v57, %v5095_v9  ;;  %v5622_v57 = vld [vmem:[#allocation8 + $0x868] sm:$0xff] }
 0x3ae   :  { %5488 = vmatpush1.bf16.msra.mxu0 %v13267_v63 }
 0x3af   :  { %5489 = vmatprep.subr.bf16.mxu0 %v13276_v53 }
 0x3b0   :  { %5451 = vmatpush1.bf16.msra.mxu1 %v13281_v45 }
 0x3b1   :  { %5518 = vmatprep.subr.bf16.mxu1 %v13230_v42  ;;  %v13272_v42 = vcombine.high %v5092_v43, %v5096_v40 }
 0x3b2   :  { %5490 = vmatpush1.bf16.msra.mxu0 %v13275_v51 }
 0x3b3   :  { %5491 = vmatprep.subr.bf16.mxu0 %v13284_v56  ;;  %5469 = vmatmul.mubr.bf16.vlgmr.msra.gmra.mrb[0].mxu1 %v17121_v31  ;;  %v5107_v56 = vld [vmem:[#allocation8 + $0x7d0] sm:$0xff] }
 0x3b4   :  { %5519 = vmatpush1.bf16.msra.mxu1 %v13229_v24  ;;  %5550 = vmatprep.mubr.bf16.mxu1 %v14762_v59  ;;  %v5104_v24 = vld [vmem:[#allocation8 + $0x7b8] sm:$0xff]  ;;  %v13286_v34 = vcombine.high %v5107_v56, %v5111_v44  ;;  %v13285_v11 = vcombine.low %v5107_v56, %v5111_v44 }
 0x3b5   :  { %5520 = vmatprep.subr.bf16.mxu1 %v13238_v22  ;;  %v13277_v22 = vcombine.low %v5099_v61, %v5103_v41  ;;  %v13280_v8 = vcombine.high %v5100_v58, %v5104_v24  ;;  %v13279_v0 = vcombine.low %v5100_v58, %v5104_v24  ;;  %v5630_v61 = vld [vmem:[#allocation8 + $0x8a8] sm:$0xff]  ;;  %v5661_v58 = vld [vmem:[#allocation8 + $0x9a0] sm:$0xff] }
 0x3b6   :  { %5492 = vmatpush1.bf16.msra.mxu0 %v13283_v54  ;;  %v5650_v24 = vld [vmem:[#allocation8 + $0x948] sm:$0xff] }
 0x3b7   :  { %5559 = vmatprep.subr.bf16.mxu0 %v13232_v55 }
 0x3b8   :  { %5521 = vmatpush1.bf16.msra.mxu1 %v13237_v14  ;;  %v5609_v14 = vld [vmem:[#allocation8 + $0x800] sm:$0xff] }
 0x3b9   :  { %5510 = vmatmul.mubr.bf16.vlgmr.msra.gmra.mrb[16].mxu0 %v17121_v31  ;;  %5522 = vmatprep.subr.bf16.mxu1 %v13246_v62 }
 0x3ba   :  { %5560 = vmatpush1.bf16.msra.mxu0 %v13231_v33  ;;  %5591 = vmatprep.mubr.bf16.mxu0 %v14762_v59  ;;  %v5613_v33 = vld [vmem:[#allocation8 + $0x820] sm:$0xff] }
 0x3bb   :  { %5561 = vmatprep.subr.bf16.mxu0 %v13240_v46  ;;  %v5108_v46 = vld [vmem:[#allocation8 + $0x7d8] sm:$0xff]  ;;  %v13290_v52 = vcombine.high %v5609_v14, %v5613_v33  ;;  %v13289_v17 = vcombine.low %v5609_v14, %v5613_v33  ;;  %v5669_v14 = vld [vmem:[#allocation8 + $0x9e0] sm:$0xff]  ;;  %v5658_v33 = vld [vmem:[#allocation8 + $0x988] sm:$0xff] }
 0x3bc   :  { %5523 = vmatpush1.bf16.msra.mxu1 %v13245_v18  ;;  %v13288_v18 = vcombine.high %v5108_v46, %v5112_v23  ;;  %v13287_v15 = vcombine.low %v5108_v46, %v5112_v23  ;;  %v5662_v46 = vld [vmem:[#allocation8 + $0x9a8] sm:$0xff] }
 0x3bd   :  { %5524 = vmatprep.subr.bf16.mxu1 %v13254_v30  ;;  %v5621_v30 = vld [vmem:[#allocation8 + $0x860] sm:$0xff] }
 0x3be   :  { %5562 = vmatpush1.bf16.msra.mxu0 %v13239_v29  ;;  %v5617_v29 = vld [vmem:[#allocation8 + $0x840] sm:$0xff] }
 0x3bf   :  { %5563 = vmatprep.subr.bf16.mxu0 %v13248_v20  ;;  %v5610_v20 = vld [vmem:[#allocation8 + $0x808] sm:$0xff]  ;;  %v13298_v47 = vcombine.high %v5617_v29, %v5621_v30  ;;  %v13297_v9 = vcombine.low %v5617_v29, %v5621_v30  ;;  %v5615_v29 = vld [vmem:[#allocation8 + $0x830] sm:$0xff] }
 0x3c0   :  { %5525 = vmatpush1.bf16.msra.mxu1 %v13253_v1  ;;  %v13292_v1 = vcombine.high %v5610_v20, %v5614_v28  ;;  %v13291_v38 = vcombine.low %v5610_v20, %v5614_v28  ;;  %v5666_v30 = vld [vmem:[#allocation8 + $0x9c8] sm:$0xff] }
 0x3c1   :  { %5526 = vmatprep.subr.bf16.mxu1 %v13262_v16  ;;  %v5629_v16 = vld [vmem:[#allocation8 + $0x8a0] sm:$0xff]  ;;  %v5670_v20 = vld [vmem:[#allocation8 + $0x9e8] sm:$0xff] }
 0x3c2   :  { %5564 = vmatpush1.bf16.msra.mxu0 %v13247_v6  ;;  %v5625_v6 = vld [vmem:[#allocation8 + $0x880] sm:$0xff] }
 0x3c3   :  { %5565 = vmatprep.subr.bf16.mxu0 %v13256_v4  ;;  %v5618_v4 = vld [vmem:[#allocation8 + $0x848] sm:$0xff]  ;;  %v13306_v39 = vcombine.high %v5625_v6, %v5629_v16  ;;  %v13305_v41 = vcombine.low %v5625_v6, %v5629_v16  ;;  %v5623_v6 = vld [vmem:[#allocation8 + $0x870] sm:$0xff]  ;;  %v5612_v16 = vld [vmem:[#allocation8 + $0x818] sm:$0xff] }
 0x3c4   :  { %v14235_v19 = vpop.f32.mrb[12].mxu0  ;;  %5527 = vmatpush1.bf16.msra.mxu1 %v13261_v50  ;;  %v13300_v50 = vcombine.high %v5618_v4, %v5622_v57 }
 0x3c5   :  { %v3303_v48 = vadd.f32 %v14564_v3, %v14235_v19  ;;  %v3294_v63 = vpop.f32.mrb[13].mxu0  ;;  %5528 = vmatprep.subr.bf16.mxu1 %v13270_v2  ;;  %v5637_v2 = vld [vmem:[#allocation8 + $0x8e0] sm:$0xff]  ;;  %v13299_v19 = vcombine.low %v5618_v4, %v5622_v57  ;;  %v5616_v4 = vld [vmem:[#allocation8 + $0x838] sm:$0xff] }
 0x3c6   :  { %v3295_v53 = vadd.f32 %v14564_v3, %v3294_v63  ;;  %v14236_v10 = vpop.f32.mrb[14].mxu0  ;;  %5566 = vmatpush1.bf16.msra.mxu0 %v13255_v12  ;;  %v5633_v12 = vld [vmem:[#allocation8 + $0x8c0] sm:$0xff]  ;;  %v5634_v63 = vld [vmem:[#allocation8 + $0x8c8] sm:$0xff] }
 0x3c7   :  { %v3323_v21 = vmax.f32 %v3303_v48, 0.0  ;;  %v3306_v45 = vadd.f32 %v14564_v3, %v14236_v10  ;;  %v3297_v51 = vpop.f32.mrb[15].mxu0  ;;  %5567 = vmatprep.subr.bf16.mxu0 %v13264_v27  ;;  %v5626_v27 = vld [vmem:[#allocation8 + $0x888] sm:$0xff]  ;;  %v13314_v43 = vcombine.high %v5633_v12, %v5637_v2  ;;  %v5645_v48 = vld [vmem:[#allocation8 + $0x920] sm:$0xff] }
 0x3c8   :  { %v3321_v35 = vmax.f32 %v3295_v53, 0.0  ;;  %v3298_v36 = vadd.f32 %v14564_v3, %v3297_v51  ;;  %5529 = vmatpush1.bf16.msra.mxu1 %v13269_v49  ;;  %v13308_v40 = vcombine.high %v5626_v27, %v5630_v61  ;;  %v5641_v3 = vld [vmem:[#allocation8 + $0x900] sm:$0xff]  ;;  %v5638_v49 = vld [vmem:[#allocation8 + $0x8e8] sm:$0xff]  ;;  %v13313_v53 = vcombine.low %v5633_v12, %v5637_v2  ;;  %v5631_v12 = vld [vmem:[#allocation8 + $0x8b0] sm:$0xff] }
 0x3c9   :  { %v3324_v54 = vmax.f32 %v3306_v45, 0.0  ;;  %5530 = vmatprep.subr.bf16.mxu1 %v13278_v60  ;;  %v13307_v10 = vcombine.low %v5626_v27, %v5630_v61  ;;  %v5649_v60 = vld [vmem:[#allocation8 + $0x940] sm:$0xff]  ;;  %v5642_v45 = vld [vmem:[#allocation8 + $0x908] sm:$0xff]  ;;  %v13315_v56 = vcombine.low %v5634_v63, %v5638_v49  ;;  %v5620_v2 = vld [vmem:[#allocation8 + $0x858] sm:$0xff] }
 0x3ca   :  { %v3322_v55 = vmax.f32 %v3298_v36, 0.0  ;;  %5568 = vmatpush1.bf16.msra.mxu0 %v13263_v25  ;;  %v13316_v25 = vcombine.high %v5634_v63, %v5638_v49  ;;  %v5646_v51 = vld [vmem:[#allocation8 + $0x928] sm:$0xff]  ;;  %v5657_v36 = vld [vmem:[#allocation8 + $0x980] sm:$0xff]  ;;  %v5624_v27 = vld [vmem:[#allocation8 + $0x878] sm:$0xff] }
 0x3cb   :  { %v17127_v37 = vpack.c.bf16 %v3324_v54, %v3323_v21  ;;  %5569 = vmatprep.subr.bf16.mxu0 %v13272_v42  ;;  %v5653_v21 = vld [vmem:[#allocation8 + $0x960] sm:$0xff]  ;;  %v13321_v42 = vcombine.low %v5641_v3, %v5645_v48  ;;  %v5654_v54 = vld [vmem:[#allocation8 + $0x968] sm:$0xff]  ;;  %v13337_v23 = vcombine.low %v5657_v36, %v5661_v58  ;;  %v5632_v63 = vld [vmem:[#allocation8 + $0x8b8] sm:$0xff] }
 0x3cc   :  { %v17129_v62 = vpack.c.bf16 %v3322_v55, %v3321_v35  ;;  %5531 = vmatpush1.bf16.msra.mxu1 %v13277_v22  ;;  %v13330_v44 = vcombine.high %v5649_v60, %v5653_v21  ;;  %v13324_v35 = vcombine.high %v5642_v45, %v5646_v51  ;;  %v13329_v22 = vcombine.low %v5649_v60, %v5653_v21  ;;  %v5647_v60 = vld [vmem:[#allocation8 + $0x930] sm:$0xff]  ;;  %v5636_v21 = vld [vmem:[#allocation8 + $0x8d8] sm:$0xff] }
 0x3cd   :  { %5532 = vmatprep.subr.bf16.mxu1 %v13286_v34  ;;  %v13323_v55 = vcombine.low %v5642_v45, %v5646_v51  ;;  %v13332_v34 = vcombine.high %v5650_v24, %v5654_v54  ;;  %v5640_v45 = vld [vmem:[#allocation8 + $0x8f8] sm:$0xff] }
 0x3ce   :  { %5570 = vmatpush1.bf16.msra.mxu0 %v13271_v26  ;;  %v13338_v26 = vcombine.high %v5657_v36, %v5661_v58  ;;  %v5655_v36 = vld [vmem:[#allocation8 + $0x970] sm:$0xff]  ;;  %v5644_v58 = vld [vmem:[#allocation8 + $0x918] sm:$0xff] }
 0x3cf   :  { %5571 = vmatprep.subr.bf16.mxu0 %v13280_v8  ;;  %v5665_v8 = vld [vmem:[#allocation8 + $0x9c0] sm:$0xff] }
 0x3d0   :  { %5533 = vmatpush1.bf16.msra.mxu1 %v13285_v11  ;;  %v13331_v11 = vcombine.low %v5650_v24, %v5654_v54  ;;  %v13345_v28 = vcombine.low %v5665_v8, %v5669_v14  ;;  %v5648_v24 = vld [vmem:[#allocation8 + $0x938] sm:$0xff] }
 0x3d1   :  { %5993 = vmatprep.subr.bf16.mxu1 %v13290_v52  ;;  %v13340_v52 = vcombine.high %v5658_v33, %v5662_v46 }
 0x3d2   :  { %5572 = vmatpush1.bf16.msra.mxu0 %v13279_v0  ;;  %v13346_v0 = vcombine.high %v5665_v8, %v5669_v14  ;;  %v5663_v8 = vld [vmem:[#allocation8 + $0x9b0] sm:$0xff]  ;;  %v5652_v14 = vld [vmem:[#allocation8 + $0x958] sm:$0xff] }
 0x3d3   :  { %5573 = vmatprep.subr.bf16.mxu0 %v13288_v18  ;;  %5551 = vmatmul.mubr.bf16.vlgmr.msra.gmra.mrb[4].mxu1 %v17121_v31  ;;  %v5611_v18 = vld [vmem:[#allocation8 + $0x810] sm:$0xff] }
 0x3d4   :  { %5994 = vmatpush1.bf16.msra.mxu1 %v13289_v17  ;;  %6025 = vmatprep.mubr.bf16.mxu1 %v14762_v59  ;;  %v13339_v17 = vcombine.low %v5658_v33, %v5662_v46  ;;  %v13293_v57 = vcombine.low %v5611_v18, %v5615_v29  ;;  %v5656_v33 = vld [vmem:[#allocation8 + $0x978] sm:$0xff] }
 0x3d5   :  { %5995 = vmatprep.subr.bf16.mxu1 %v13298_v47  ;;  %v13348_v47 = vcombine.high %v5666_v30, %v5670_v20 }
 0x3d6   :  { %5574 = vmatpush1.bf16.msra.mxu0 %v13287_v15  ;;  %v13294_v15 = vcombine.high %v5611_v18, %v5615_v29  ;;  %v5671_v18 = vld [vmem:[#allocation8 + $0x9f0] sm:$0xff]  ;;  %v5660_v29 = vld [vmem:[#allocation8 + $0x998] sm:$0xff] }
 0x3d7   :  { %6034 = vmatprep.subr.bf16.mxu0 %v13292_v1  ;;  %v5619_v1 = vld [vmem:[#allocation8 + $0x850] sm:$0xff] }
 0x3d8   :  { %5996 = vmatpush1.bf16.msra.mxu1 %v13297_v9  ;;  %v13347_v9 = vcombine.low %v5666_v30, %v5670_v20  ;;  %v13301_v61 = vcombine.low %v5619_v1, %v5623_v6  ;;  %v5664_v30 = vld [vmem:[#allocation8 + $0x9b8] sm:$0xff] }
 0x3d9   :  { %5592 = vmatmul.mubr.bf16.vlgmr.msra.gmra.mrb[20].mxu0 %v17121_v31  ;;  %5997 = vmatprep.subr.bf16.mxu1 %v13306_v39  ;;  %v13322_v31 = vcombine.high %v5641_v3, %v5645_v48  ;;  %v13296_v39 = vcombine.high %v5612_v16, %v5616_v4  ;;  %v5639_v3 = vld [vmem:[#allocation8 + $0x8f0] sm:$0xff]  ;;  %v5628_v48 = vld [vmem:[#allocation8 + $0x898] sm:$0xff] }
 0x3da   :  { %6035 = vmatpush1.bf16.msra.mxu0 %v13291_v38  ;;  %6066 = vmatprep.mubr.bf16.mxu0 %v14762_v59  ;;  %v13302_v38 = vcombine.high %v5619_v1, %v5623_v6  ;;  %v6170_v1 = vld [vmem:[#allocation8 + $0xa20] sm:$0xff]  ;;  %v5668_v6 = vld [vmem:[#allocation8 + $0x9d8] sm:$0xff] }
 0x3db   :  { %6036 = vmatprep.subr.bf16.mxu0 %v13300_v50  ;;  %v5627_v50 = vld [vmem:[#allocation8 + $0x890] sm:$0xff] }
 0x3dc   :  { %5998 = vmatpush1.bf16.msra.mxu1 %v13305_v41  ;;  %v13295_v41 = vcombine.low %v5612_v16, %v5616_v4  ;;  %v13309_v49 = vcombine.low %v5627_v50, %v5631_v12  ;;  %v5672_v16 = vld [vmem:[#allocation8 + $0x9f8] sm:$0xff] }
 0x3dd   :  { %5999 = vmatprep.subr.bf16.mxu1 %v13314_v43  ;;  %v13304_v43 = vcombine.high %v5620_v2, %v5624_v27 }
 0x3de   :  { %6037 = vmatpush1.bf16.msra.mxu0 %v13299_v19  ;;  %v13310_v19 = vcombine.high %v5627_v50, %v5631_v12  ;;  %v6178_v50 = vld [vmem:[#allocation8 + $0xa60] sm:$0xff]  ;;  %v6167_v12 = vld [vmem:[#allocation8 + $0xa08] sm:$0xff] }
 0x3df   :  { %6038 = vmatprep.subr.bf16.mxu0 %v13308_v40  ;;  %v5635_v40 = vld [vmem:[#allocation8 + $0x8d0] sm:$0xff] }
 0x3e0   :  { %6000 = vmatpush1.bf16.msra.mxu1 %v13313_v53  ;;  %v13303_v53 = vcombine.low %v5620_v2, %v5624_v27  ;;  %v13317_v51 = vcombine.low %v5635_v40, %v5639_v3  ;;  %v6171_v2 = vld [vmem:[#allocation8 + $0xa28] sm:$0xff] }
 0x3e1   :  { %6001 = vmatprep.subr.bf16.mxu1 %v13322_v31  ;;  %v13312_v31 = vcombine.high %v5628_v48, %v5632_v63 }
 0x3e2   :  { %6039 = vmatpush1.bf16.msra.mxu0 %v13307_v10  ;;  %v13318_v10 = vcombine.high %v5635_v40, %v5639_v3  ;;  %v6186_v40 = vld [vmem:[#allocation8 + $0xaa0] sm:$0xff]  ;;  %v6175_v3 = vld [vmem:[#allocation8 + $0xa48] sm:$0xff] }
 0x3e3   :  { %6040 = vmatprep.subr.bf16.mxu0 %v13316_v25  ;;  %v5643_v25 = vld [vmem:[#allocation8 + $0x910] sm:$0xff] }
 0x3e4   :  { %6002 = vmatpush1.bf16.msra.mxu1 %v13321_v42  ;;  %v13311_v42 = vcombine.low %v5628_v48, %v5632_v63  ;;  %v13325_v54 = vcombine.low %v5643_v25, %v5647_v60  ;;  %v6179_v48 = vld [vmem:[#allocation8 + $0xa68] sm:$0xff] }
 0x3e5   :  { %6003 = vmatprep.subr.bf16.mxu1 %v13330_v44  ;;  %v13320_v44 = vcombine.high %v5636_v21, %v5640_v45 }
 0x3e6   :  { %6041 = vmatpush1.bf16.msra.mxu0 %v13315_v56  ;;  %v13326_v56 = vcombine.high %v5643_v25, %v5647_v60  ;;  %v6194_v25 = vld [vmem:[#allocation8 + $0xae0] sm:$0xff]  ;;  %v6183_v60 = vld [vmem:[#allocation8 + $0xa88] sm:$0xff] }
 0x3e7   :  { %6042 = vmatprep.subr.bf16.mxu0 %v13324_v35  ;;  %v5651_v35 = vld [vmem:[#allocation8 + $0x950] sm:$0xff] }
 0x3e8   :  { %6004 = vmatpush1.bf16.msra.mxu1 %v13329_v22  ;;  %v13319_v22 = vcombine.low %v5636_v21, %v5640_v45  ;;  %v13333_v46 = vcombine.low %v5651_v35, %v5655_v36  ;;  %v6187_v21 = vld [vmem:[#allocation8 + $0xaa8] sm:$0xff] }
 0x3e9   :  { %6005 = vmatprep.subr.bf16.mxu1 %v13338_v26  ;;  %v13328_v26 = vcombine.high %v5644_v58, %v5648_v24 }
 0x3ea   :  { %6043 = vmatpush1.bf16.msra.mxu0 %v13323_v55  ;;  %v13334_v55 = vcombine.high %v5651_v35, %v5655_v36  ;;  %v6202_v35 = vld [vmem:[#allocation8 + $0xb20] sm:$0xff]  ;;  %v6191_v36 = vld [vmem:[#allocation8 + $0xac8] sm:$0xff] }
 0x3eb   :  { %6044 = vmatprep.subr.bf16.mxu0 %v13332_v34  ;;  %v5659_v34 = vld [vmem:[#allocation8 + $0x990] sm:$0xff] }
 0x3ec   :  { %6006 = vmatpush1.bf16.msra.mxu1 %v13337_v23  ;;  %v13327_v23 = vcombine.low %v5644_v58, %v5648_v24  ;;  %v13341_v20 = vcombine.low %v5659_v34, %v5663_v8  ;;  %v6195_v58 = vld [vmem:[#allocation8 + $0xae8] sm:$0xff] }
 0x3ed   :  { %6007 = vmatprep.subr.bf16.mxu1 %v13346_v0  ;;  %v13336_v0 = vcombine.high %v5652_v14, %v5656_v33 }
 0x3ee   :  { %6045 = vmatpush1.bf16.msra.mxu0 %v13331_v11  ;;  %v13342_v11 = vcombine.high %v5659_v34, %v5663_v8  ;;  %v6210_v34 = vld [vmem:[#allocation8 + $0xb60] sm:$0xff]  ;;  %v6199_v8 = vld [vmem:[#allocation8 + $0xb08] sm:$0xff] }
 0x3ef   :  { %6046 = vmatprep.subr.bf16.mxu0 %v13340_v52  ;;  %v5667_v52 = vld [vmem:[#allocation8 + $0x9d0] sm:$0xff] }
 0x3f0   :  { %6008 = vmatpush1.bf16.msra.mxu1 %v13345_v28  ;;  %v13335_v28 = vcombine.low %v5652_v14, %v5656_v33  ;;  %v13349_v4 = vcombine.low %v5667_v52, %v5671_v18  ;;  %v6203_v14 = vld [vmem:[#allocation8 + $0xb28] sm:$0xff] }
 0x3f1   :  { %6075 = vmatprep.subr.bf16.mxu1 %v13294_v15  ;;  %v13344_v15 = vcombine.high %v5660_v29, %v5664_v30 }
 0x3f2   :  { %6047 = vmatpush1.bf16.msra.mxu0 %v13339_v17  ;;  %v13350_v17 = vcombine.high %v5667_v52, %v5671_v18  ;;  %v6218_v52 = vld [vmem:[#allocation8 + $0xba0] sm:$0xff]  ;;  %v6207_v18 = vld [vmem:[#allocation8 + $0xb48] sm:$0xff] }
 0x3f3   :  { %6048 = vmatprep.subr.bf16.mxu0 %v13348_v47  ;;  %6026 = vmatmul.mubr.bf16.vlgmr.msra.gmra.mrb[0].mxu1 %v17098_v32  ;;  %v6166_v47 = vld [vmem:[#allocation8 + $0xa00] sm:$0xff] }
 0x3f4   :  { %6076 = vmatpush1.bf16.msra.mxu1 %v13293_v57  ;;  %6107 = vmatprep.mubr.bf16.mxu1 %v14762_v59  ;;  %v13343_v57 = vcombine.low %v5660_v29, %v5664_v30  ;;  %v13353_v27 = vcombine.low %v6166_v47, %v6170_v1  ;;  %v6211_v29 = vld [vmem:[#allocation8 + $0xb68] sm:$0xff] }
 0x3f5   :  { %6077 = vmatprep.subr.bf16.mxu1 %v13302_v38  ;;  %v13352_v38 = vcombine.high %v5668_v6, %v5672_v16 }
 0x3f6   :  { %6049 = vmatpush1.bf16.msra.mxu0 %v13347_v9  ;;  %v13354_v9 = vcombine.high %v6166_v47, %v6170_v1  ;;  %v6226_v47 = vld [vmem:[#allocation8 + $0xbe0] sm:$0xff]  ;;  %v6215_v1 = vld [vmem:[#allocation8 + $0xb88] sm:$0xff] }
 0x3f7   :  { %6116 = vmatprep.subr.bf16.mxu0 %v13296_v39  ;;  %v6174_v39 = vld [vmem:[#allocation8 + $0xa40] sm:$0xff] }
 0x3f8   :  { %6078 = vmatpush1.bf16.msra.mxu1 %v13301_v61  ;;  %v13351_v61 = vcombine.low %v5668_v6, %v5672_v16  ;;  %v13361_v63 = vcombine.low %v6174_v39, %v6178_v50  ;;  %v6219_v6 = vld [vmem:[#allocation8 + $0xba8] sm:$0xff] }
 0x3f9   :  { %6067 = vmatmul.mubr.bf16.vlgmr.msra.gmra.mrb[16].mxu0 %v17098_v32  ;;  %6079 = vmatprep.subr.bf16.mxu1 %v13310_v19  ;;  %v13356_v19 = vcombine.high %v6167_v12, %v6171_v2 }
 0x3fa   :  { %6117 = vmatpush1.bf16.msra.mxu0 %v13295_v41  ;;  %6148 = vmatprep.mubr.bf16.mxu0 %v14762_v59  ;;  %v13362_v41 = vcombine.high %v6174_v39, %v6178_v50  ;;  %v6172_v39 = vld [vmem:[#allocation8 + $0xa30] sm:$0xff]  ;;  %v6223_v50 = vld [vmem:[#allocation8 + $0xbc8] sm:$0xff] }
 0x3fb   :  { %6118 = vmatprep.subr.bf16.mxu0 %v13304_v43  ;;  %v6182_v43 = vld [vmem:[#allocation8 + $0xa80] sm:$0xff] }
 0x3fc   :  { %6080 = vmatpush1.bf16.msra.mxu1 %v13309_v49  ;;  %v13355_v49 = vcombine.low %v6167_v12, %v6171_v2  ;;  %v13369_v45 = vcombine.low %v6182_v43, %v6186_v40  ;;  %v6227_v12 = vld [vmem:[#allocation8 + $0xbe8] sm:$0xff] }
 0x3fd   :  { %6081 = vmatprep.subr.bf16.mxu1 %v13318_v10  ;;  %v13364_v10 = vcombine.high %v6175_v3, %v6179_v48 }
 0x3fe   :  { %6119 = vmatpush1.bf16.msra.mxu0 %v13303_v53  ;;  %v13370_v53 = vcombine.high %v6182_v43, %v6186_v40  ;;  %v6180_v43 = vld [vmem:[#allocation8 + $0xa70] sm:$0xff]  ;;  %v6169_v40 = vld [vmem:[#allocation8 + $0xa18] sm:$0xff] }
 0x3ff   :  { %6120 = vmatprep.subr.bf16.mxu0 %v13312_v31  ;;  %v6190_v31 = vld [vmem:[#allocation8 + $0xac0] sm:$0xff] }
 0x400   :  { %6082 = vmatpush1.bf16.msra.mxu1 %v13317_v51  ;;  %v13363_v51 = vcombine.low %v6175_v3, %v6179_v48  ;;  %v13377_v24 = vcombine.low %v6190_v31, %v6194_v25  ;;  %v6173_v3 = vld [vmem:[#allocation8 + $0xa38] sm:$0xff] }
 0x401   :  { %6083 = vmatprep.subr.bf16.mxu1 %v13326_v56  ;;  %v13372_v56 = vcombine.high %v6183_v60, %v6187_v21 }
 0x402   :  { %6121 = vmatpush1.bf16.msra.mxu0 %v13311_v42  ;;  %v13378_v42 = vcombine.high %v6190_v31, %v6194_v25  ;;  %v6184_v31 = vld [vmem:[#allocation8 + $0xa90] sm:$0xff] }
 0x403   :  { %6122 = vmatprep.subr.bf16.mxu0 %v13320_v44  ;;  %v6198_v44 = vld [vmem:[#allocation8 + $0xb00] sm:$0xff]  ;;  %v6188_v25 = vld [vmem:[#allocation8 + $0xab0] sm:$0xff] }
 0x404   :  { %6084 = vmatpush1.bf16.msra.mxu1 %v13325_v54  ;;  %v13371_v54 = vcombine.low %v6183_v60, %v6187_v21  ;;  %v13385_v33 = vcombine.low %v6198_v44, %v6202_v35  ;;  %v6177_v60 = vld [vmem:[#allocation8 + $0xa58] sm:$0xff] }
 0x405   :  { %6085 = vmatprep.subr.bf16.mxu1 %v13334_v55  ;;  %v13380_v55 = vcombine.high %v6191_v36, %v6195_v58  ;;  %v6181_v21 = vld [vmem:[#allocation8 + $0xa78] sm:$0xff] }
 0x406   :  { %6123 = vmatpush1.bf16.msra.mxu0 %v13319_v22  ;;  %v13386_v22 = vcombine.high %v6198_v44, %v6202_v35  ;;  %v6196_v44 = vld [vmem:[#allocation8 + $0xaf0] sm:$0xff]  ;;  %v6185_v35 = vld [vmem:[#allocation8 + $0xa98] sm:$0xff] }
 0x407   :  { %6124 = vmatprep.subr.bf16.mxu0 %v13328_v26  ;;  %v6206_v26 = vld [vmem:[#allocation8 + $0xb40] sm:$0xff] }
 0x408   :  { %6086 = vmatpush1.bf16.msra.mxu1 %v13333_v46  ;;  %v13379_v46 = vcombine.low %v6191_v36, %v6195_v58  ;;  %v13393_v30 = vcombine.low %v6206_v26, %v6210_v34  ;;  %v6189_v36 = vld [vmem:[#allocation8 + $0xab8] sm:$0xff]  ;;  %v13373_v58 = vcombine.low %v6184_v31, %v6188_v25 }
 0x409   :  { %6087 = vmatprep.subr.bf16.mxu1 %v13342_v11  ;;  %v13388_v11 = vcombine.high %v6199_v8, %v6203_v14 }
 0x40a   :  { %6125 = vmatpush1.bf16.msra.mxu0 %v13327_v23  ;;  %v13394_v23 = vcombine.high %v6206_v26, %v6210_v34  ;;  %v6204_v26 = vld [vmem:[#allocation8 + $0xb30] sm:$0xff]  ;;  %v6193_v34 = vld [vmem:[#allocation8 + $0xad8] sm:$0xff] }
 0x40b   :  { %6126 = vmatprep.subr.bf16.mxu0 %v13336_v0  ;;  %v6214_v0 = vld [vmem:[#allocation8 + $0xb80] sm:$0xff] }
 0x40c   :  { %6088 = vmatpush1.bf16.msra.mxu1 %v13341_v20  ;;  %v13387_v20 = vcombine.low %v6199_v8, %v6203_v14  ;;  %v13401_v16 = vcombine.low %v6214_v0, %v6218_v52  ;;  %v6197_v8 = vld [vmem:[#allocation8 + $0xaf8] sm:$0xff] }
 0x40d   :  { %6089 = vmatprep.subr.bf16.mxu1 %v13350_v17  ;;  %v13396_v17 = vcombine.high %v6207_v18, %v6211_v29 }
 0x40e   :  { %6127 = vmatpush1.bf16.msra.mxu0 %v13335_v28  ;;  %v13402_v28 = vcombine.high %v6214_v0, %v6218_v52  ;;  %v6212_v0 = vld [vmem:[#allocation8 + $0xb70] sm:$0xff]  ;;  %v6201_v52 = vld [vmem:[#allocation8 + $0xb18] sm:$0xff] }
 0x40f   :  { %6128 = vmatprep.subr.bf16.mxu0 %v13344_v15  ;;  %v6222_v15 = vld [vmem:[#allocation8 + $0xbc0] sm:$0xff] }
 0x410   :  { %6090 = vmatpush1.bf16.msra.mxu1 %v13349_v4  ;;  %v13395_v4 = vcombine.low %v6207_v18, %v6211_v29  ;;  %v13409_v2 = vcombine.low %v6222_v15, %v6226_v47  ;;  %v6205_v18 = vld [vmem:[#allocation8 + $0xb38] sm:$0xff] }
 0x411   :  { %6553 = vmatprep.subr.bf16.mxu1 %v13354_v9  ;;  %v13404_v9 = vcombine.high %v6215_v1, %v6219_v6 }
 0x412   :  { %6129 = vmatpush1.bf16.msra.mxu0 %v13343_v57  ;;  %v13410_v57 = vcombine.high %v6222_v15, %v6226_v47  ;;  %v6220_v15 = vld [vmem:[#allocation8 + $0xbb0] sm:$0xff]  ;;  %v6209_v47 = vld [vmem:[#allocation8 + $0xb58] sm:$0xff] }
 0x413   :  { %6130 = vmatprep.subr.bf16.mxu0 %v13352_v38  ;;  %6108 = vmatmul.mubr.bf16.vlgmr.msra.gmra.mrb[4].mxu1 %v17098_v32  ;;  %v6168_v38 = vld [vmem:[#allocation8 + $0xa10] sm:$0xff] }
 0x414   :  { %6554 = vmatpush1.bf16.msra.mxu1 %v13353_v27  ;;  %6585 = vmatprep.mubr.bf16.mxu1 %v14762_v59  ;;  %v13403_v27 = vcombine.low %v6215_v1, %v6219_v6  ;;  %v13357_v48 = vcombine.low %v6168_v38, %v6172_v39  ;;  %v6213_v1 = vld [vmem:[#allocation8 + $0xb78] sm:$0xff] }
 0x415   :  { %6555 = vmatprep.subr.bf16.mxu1 %v13362_v41  ;;  %v13412_v41 = vcombine.high %v6223_v50, %v6227_v12 }
 0x416   :  { %6131 = vmatpush1.bf16.msra.mxu0 %v13351_v61  ;;  %v13358_v61 = vcombine.high %v6168_v38, %v6172_v39  ;;  %v6228_v38 = vld [vmem:[#allocation8 + $0xbf0] sm:$0xff]  ;;  %v6217_v39 = vld [vmem:[#allocation8 + $0xb98] sm:$0xff] }
 0x417   :  { %6594 = vmatprep.subr.bf16.mxu0 %v13356_v19  ;;  %v6176_v19 = vld [vmem:[#allocation8 + $0xa50] sm:$0xff] }
 0x418   :  { %6556 = vmatpush1.bf16.msra.mxu1 %v13361_v63  ;;  %v13411_v63 = vcombine.low %v6223_v50, %v6227_v12  ;;  %v6221_v50 = vld [vmem:[#allocation8 + $0xbb8] sm:$0xff] }
 0x419   :  { %6149 = vmatmul.mubr.bf16.vlgmr.msra.gmra.mrb[20].mxu0 %v17098_v32  ;;  %6557 = vmatprep.subr.bf16.mxu1 %v13370_v53  ;;  %v13366_v53 = vcombine.high %v6176_v19, %v6180_v43 }
 0x41a   :  { %6595 = vmatpush1.bf16.msra.mxu0 %v13355_v49  ;;  %6626 = vmatprep.mubr.bf16.mxu0 %v14762_v59  ;;  %v17144_v49 = vrot.slane %v17098_v32, 4  ;;  %v13368_v32 = vcombine.high %v6177_v60, %v6181_v21 }
 0x41b   :  { %6596 = vmatprep.subr.bf16.mxu0 %v13364_v10  ;;  %v13360_v10 = vcombine.high %v6169_v40, %v6173_v3 }
 0x41c   :  { %6558 = vmatpush1.bf16.msra.mxu1 %v13369_v45  ;;  %v13365_v45 = vcombine.low %v6176_v19, %v6180_v43  ;;  %v6730_v19 = vld [vmem:[#allocation8 + $0xc20] sm:$0xff]  ;;  %v6225_v43 = vld [vmem:[#allocation8 + $0xbd8] sm:$0xff] }
 0x41d   :  { %6559 = vmatprep.subr.bf16.mxu1 %v13378_v42  ;;  %v13374_v42 = vcombine.high %v6184_v31, %v6188_v25  ;;  %v6738_v31 = vld [vmem:[#allocation8 + $0xc60] sm:$0xff]  ;;  %v6727_v25 = vld [vmem:[#allocation8 + $0xc08] sm:$0xff] }
 0x41e   :  { %6597 = vmatpush1.bf16.msra.mxu0 %v13363_v51  ;;  %v13359_v51 = vcombine.low %v6169_v40, %v6173_v3  ;;  %v6229_v40 = vld [vmem:[#allocation8 + $0xbf8] sm:$0xff] }
 0x41f   :  { %6598 = vmatprep.subr.bf16.mxu0 %v13372_v56  ;;  %v6192_v56 = vld [vmem:[#allocation8 + $0xad0] sm:$0xff] }
 0x420   :  { %6560 = vmatpush1.bf16.msra.mxu1 %v13377_v24  ;;  %v13367_v24 = vcombine.low %v6177_v60, %v6181_v21  ;;  %v13381_v14 = vcombine.low %v6192_v56, %v6196_v44  ;;  %v6731_v60 = vld [vmem:[#allocation8 + $0xc28] sm:$0xff] }
 0x421   :  { %6561 = vmatprep.subr.bf16.mxu1 %v13386_v22  ;;  %v13376_v22 = vcombine.high %v6185_v35, %v6189_v36 }
 0x422   :  { %6599 = vmatpush1.bf16.msra.mxu0 %v13371_v54  ;;  %v13382_v54 = vcombine.high %v6192_v56, %v6196_v44  ;;  %v6746_v56 = vld [vmem:[#allocation8 + $0xca0] sm:$0xff]  ;;  %v6735_v44 = vld [vmem:[#allocation8 + $0xc48] sm:$0xff] }
 0x423   :  { %6600 = vmatprep.subr.bf16.mxu0 %v13380_v55  ;;  %v6200_v55 = vld [vmem:[#allocation8 + $0xb10] sm:$0xff] }
 0x424   :  { %6562 = vmatpush1.bf16.msra.mxu1 %v13385_v33  ;;  %v13375_v33 = vcombine.low %v6185_v35, %v6189_v36  ;;  %v13389_v29 = vcombine.low %v6200_v55, %v6204_v26  ;;  %v6739_v35 = vld [vmem:[#allocation8 + $0xc68] sm:$0xff] }
 0x425   :  { %6563 = vmatprep.subr.bf16.mxu1 %v13394_v23  ;;  %v13384_v23 = vcombine.high %v6193_v34, %v6197_v8 }
 0x426   :  { %6601 = vmatpush1.bf16.msra.mxu0 %v13379_v46  ;;  %v13390_v46 = vcombine.high %v6200_v55, %v6204_v26  ;;  %v6754_v55 = vld [vmem:[#allocation8 + $0xce0] sm:$0xff]  ;;  %v6743_v26 = vld [vmem:[#allocation8 + $0xc88] sm:$0xff] }
 0x427   :  { %6602 = vmatprep.subr.bf16.mxu0 %v13388_v11  ;;  %v6208_v11 = vld [vmem:[#allocation8 + $0xb50] sm:$0xff] }
 0x428   :  { %6564 = vmatpush1.bf16.msra.mxu1 %v13393_v30  ;;  %v13383_v30 = vcombine.low %v6193_v34, %v6197_v8  ;;  %v13397_v6 = vcombine.low %v6208_v11, %v6212_v0  ;;  %v6747_v34 = vld [vmem:[#allocation8 + $0xca8] sm:$0xff] }
 0x429   :  { %6565 = vmatprep.subr.bf16.mxu1 %v13402_v28  ;;  %v13392_v28 = vcombine.high %v6201_v52, %v6205_v18 }
 0x42a   :  { %6603 = vmatpush1.bf16.msra.mxu0 %v13387_v20  ;;  %v13398_v20 = vcombine.high %v6208_v11, %v6212_v0  ;;  %v6762_v11 = vld [vmem:[#allocation8 + $0xd20] sm:$0xff]  ;;  %v6751_v0 = vld [vmem:[#allocation8 + $0xcc8] sm:$0xff] }
 0x42b   :  { %6604 = vmatprep.subr.bf16.mxu0 %v13396_v17  ;;  %v6216_v17 = vld [vmem:[#allocation8 + $0xb90] sm:$0xff] }
 0x42c   :  { %6566 = vmatpush1.bf16.msra.mxu1 %v13401_v16  ;;  %v13391_v16 = vcombine.low %v6201_v52, %v6205_v18  ;;  %v13405_v12 = vcombine.low %v6216_v17, %v6220_v15  ;;  %v6755_v52 = vld [vmem:[#allocation8 + $0xce8] sm:$0xff] }
 0x42d   :  { %6567 = vmatprep.subr.bf16.mxu1 %v13410_v57  ;;  %v13400_v57 = vcombine.high %v6209_v47, %v6213_v1 }
 0x42e   :  { %6605 = vmatpush1.bf16.msra.mxu0 %v13395_v4  ;;  %v13406_v4 = vcombine.high %v6216_v17, %v6220_v15  ;;  %v6759_v17 = vld [vmem:[#allocation8 + $0xd08] sm:$0xff] }
 0x42f   :  { %6606 = vmatprep.subr.bf16.mxu0 %v13404_v9  ;;  %v6224_v9 = vld [vmem:[#allocation8 + $0xbd0] sm:$0xff]  ;;  %v6763_v15 = vld [vmem:[#allocation8 + $0xd28] sm:$0xff] }
 0x430   :  { %6568 = vmatpush1.bf16.msra.mxu1 %v13409_v2  ;;  %v13399_v2 = vcombine.low %v6209_v47, %v6213_v1  ;;  %v13413_v3 = vcombine.low %v6224_v9, %v6228_v38  ;;  %v13443_v1 = vcombine.low %v6751_v0, %v6755_v52 }
 0x431   :  { %6635 = vmatprep.subr.bf16.mxu1 %v13358_v61  ;;  %v13408_v61 = vcombine.high %v6217_v39, %v6221_v50 }
 0x432   :  { %6607 = vmatpush1.bf16.msra.mxu0 %v13403_v27  ;;  %v13414_v27 = vcombine.high %v6224_v9, %v6228_v38  ;;  %v6767_v9 = vld [vmem:[#allocation8 + $0xd48] sm:$0xff] }
 0x433   :  { %6608 = vmatprep.subr.bf16.mxu0 %v13412_v41  ;;  %6586 = vmatmul.mubr.bf16.vlgmr.msra.gmra.mrb[0].mxu1 %v17144_v49  ;;  %v6726_v41 = vld [vmem:[#allocation8 + $0xc00] sm:$0xff]  ;;  %v6771_v38 = vld [vmem:[#allocation8 + $0xd68] sm:$0xff] }
 0x434   :  { %6636 = vmatpush1.bf16.msra.mxu1 %v13357_v48  ;;  %6667 = vmatprep.mubr.bf16.mxu1 %v14762_v59  ;;  %v13407_v48 = vcombine.low %v6217_v39, %v6221_v50  ;;  %v13417_v21 = vcombine.low %v6726_v41, %v6730_v19  ;;  %v13451_v50 = vcombine.low %v6759_v17, %v6763_v15 }
 0x435   :  { %6637 = vmatprep.subr.bf16.mxu1 %v13366_v53  ;;  %v13416_v53 = vcombine.high %v6225_v43, %v6229_v40 }
 0x436   :  { %6609 = vmatpush1.bf16.msra.mxu0 %v13411_v63  ;;  %v13418_v63 = vcombine.high %v6726_v41, %v6730_v19  ;;  %v6775_v41 = vld [vmem:[#allocation8 + $0xd88] sm:$0xff] }
 0x437   :  { %6676 = vmatprep.subr.bf16.mxu0 %v13360_v10  ;;  %v6734_v10 = vld [vmem:[#allocation8 + $0xc40] sm:$0xff]  ;;  %v6779_v19 = vld [vmem:[#allocation8 + $0xda8] sm:$0xff] }
 0x438   :  { %6638 = vmatpush1.bf16.msra.mxu1 %v13365_v45  ;;  %v13415_v45 = vcombine.low %v6225_v43, %v6229_v40  ;;  %v13425_v36 = vcombine.low %v6734_v10, %v6738_v31  ;;  %v13459_v40 = vcombine.low %v6767_v9, %v6771_v38 }
 0x439   :  { %6627 = vmatmul.mubr.bf16.vlgmr.msra.gmra.mrb[16].mxu0 %v17144_v49  ;;  %6639 = vmatprep.subr.bf16.mxu1 %v13374_v42  ;;  %v13420_v42 = vcombine.high %v6727_v25, %v6731_v60 }
 0x43a   :  { %6677 = vmatpush1.bf16.msra.mxu0 %v13359_v51  ;;  %6708 = vmatprep.mubr.bf16.mxu0 %v14762_v59  ;;  %v13426_v51 = vcombine.high %v6734_v10, %v6738_v31  ;;  %v6783_v10 = vld [vmem:[#allocation8 + $0xdc8] sm:$0xff] }
 0x43b   :  { %6678 = vmatprep.subr.bf16.mxu0 %v13368_v32  ;;  %v6742_v32 = vld [vmem:[#allocation8 + $0xc80] sm:$0xff]  ;;  %v6787_v31 = vld [vmem:[#allocation8 + $0xde8] sm:$0xff] }
 0x43c   :  { %6640 = vmatpush1.bf16.msra.mxu1 %v13373_v58  ;;  %v13419_v58 = vcombine.low %v6727_v25, %v6731_v60  ;;  %v13433_v8 = vcombine.low %v6742_v32, %v6746_v56  ;;  %v13467_v60 = vcombine.low %v6775_v41, %v6779_v19 }
 0x43d   :  { %6641 = vmatprep.subr.bf16.mxu1 %v13382_v54  ;;  %v13428_v54 = vcombine.high %v6735_v44, %v6739_v35 }
 0x43e   :  { %6679 = vmatpush1.bf16.msra.mxu0 %v13367_v24  ;;  %v13434_v24 = vcombine.high %v6742_v32, %v6746_v56  ;;  %v6729_v32 = vld [vmem:[#allocation8 + $0xc18] sm:$0xff] }
 0x43f   :  { %6680 = vmatprep.subr.bf16.mxu0 %v13376_v22  ;;  %v6750_v22 = vld [vmem:[#allocation8 + $0xcc0] sm:$0xff]  ;;  %v6733_v56 = vld [vmem:[#allocation8 + $0xc38] sm:$0xff] }
 0x440   :  { %6642 = vmatpush1.bf16.msra.mxu1 %v13381_v14  ;;  %v13427_v14 = vcombine.low %v6735_v44, %v6739_v35  ;;  %v13441_v18 = vcombine.low %v6750_v22, %v6754_v55  ;;  %v13475_v35 = vcombine.low %v6783_v10, %v6787_v31 }
 0x441   :  { %6643 = vmatprep.subr.bf16.mxu1 %v13390_v46  ;;  %v13436_v46 = vcombine.high %v6743_v26, %v6747_v34 }
 0x442   :  { %6681 = vmatpush1.bf16.msra.mxu0 %v13375_v33  ;;  %v13442_v33 = vcombine.high %v6750_v22, %v6754_v55  ;;  %v6737_v22 = vld [vmem:[#allocation8 + $0xc58] sm:$0xff] }
 0x443   :  { %6682 = vmatprep.subr.bf16.mxu0 %v13384_v23  ;;  %v6758_v23 = vld [vmem:[#allocation8 + $0xd00] sm:$0xff]  ;;  %v6741_v55 = vld [vmem:[#allocation8 + $0xc78] sm:$0xff] }
 0x444   :  { %6644 = vmatpush1.bf16.msra.mxu1 %v13389_v29  ;;  %v13435_v29 = vcombine.low %v6743_v26, %v6747_v34  ;;  %v13449_v47 = vcombine.low %v6758_v23, %v6762_v11  ;;  %v13423_v34 = vcombine.low %v6729_v32, %v6733_v56 }
 0x445   :  { %6645 = vmatprep.subr.bf16.mxu1 %v13398_v20  ;;  %v6766_v20 = vld [vmem:[#allocation8 + $0xd40] sm:$0xff] }
 0x446   :  { %6683 = vmatpush1.bf16.msra.mxu0 %v13383_v30  ;;  %v13444_v30 = vcombine.high %v6751_v0, %v6755_v52  ;;  %v13431_v52 = vcombine.low %v6737_v22, %v6741_v55 }
 0x447   :  { %6684 = vmatprep.subr.bf16.mxu0 %v13392_v28  ;;  %v6770_v28 = vld [vmem:[#allocation8 + $0xd60] sm:$0xff] }
 0x448   :  { %6646 = vmatpush1.bf16.msra.mxu1 %v13397_v6  ;;  %v13458_v6 = vcombine.high %v6766_v20, %v6770_v28  ;;  %v13457_v39 = vcombine.low %v6766_v20, %v6770_v28  ;;  %v6753_v20 = vld [vmem:[#allocation8 + $0xcd8] sm:$0xff] }
 0x449   :  { %6647 = vmatprep.subr.bf16.mxu1 %v13406_v4  ;;  %v6774_v4 = vld [vmem:[#allocation8 + $0xd80] sm:$0xff]  ;;  %v6757_v28 = vld [vmem:[#allocation8 + $0xcf8] sm:$0xff] }
 0x44a   :  { %6685 = vmatpush1.bf16.msra.mxu0 %v13391_v16  ;;  %v13452_v16 = vcombine.high %v6759_v17, %v6763_v15 }
 0x44b   :  { %6686 = vmatprep.subr.bf16.mxu0 %v13400_v57  ;;  %v6778_v57 = vld [vmem:[#allocation8 + $0xda0] sm:$0xff] }
 0x44c   :  { %6648 = vmatpush1.bf16.msra.mxu1 %v13405_v12  ;;  %v13466_v12 = vcombine.high %v6774_v4, %v6778_v57  ;;  %v13465_v43 = vcombine.low %v6774_v4, %v6778_v57  ;;  %v6761_v4 = vld [vmem:[#allocation8 + $0xd18] sm:$0xff] }
 0x44d   :  { %6649 = vmatprep.subr.bf16.mxu1 %v13414_v27  ;;  %v6782_v27 = vld [vmem:[#allocation8 + $0xdc0] sm:$0xff]  ;;  %v6765_v57 = vld [vmem:[#allocation8 + $0xd38] sm:$0xff] }
 0x44e   :  { %6687 = vmatpush1.bf16.msra.mxu0 %v13399_v2  ;;  %v13460_v2 = vcombine.high %v6767_v9, %v6771_v38  ;;  %v13447_v38 = vcombine.low %v6753_v20, %v6757_v28 }
 0x44f   :  { %6688 = vmatprep.subr.bf16.mxu0 %v13408_v61  ;;  %v6786_v61 = vld [vmem:[#allocation8 + $0xde0] sm:$0xff] }
 0x450   :  { %6650 = vmatpush1.bf16.msra.mxu1 %v13413_v3  ;;  %v13474_v3 = vcombine.high %v6782_v27, %v6786_v61  ;;  %v13473_v25 = vcombine.low %v6782_v27, %v6786_v61  ;;  %v6769_v27 = vld [vmem:[#allocation8 + $0xd58] sm:$0xff] }
 0x451   :  { %7110 = vmatprep.subr.bf16.mxu1 %v13418_v63  ;;  %v6728_v63 = vld [vmem:[#allocation8 + $0xc10] sm:$0xff]  ;;  %v6773_v61 = vld [vmem:[#allocation8 + $0xd78] sm:$0xff] }
 0x452   :  { %6689 = vmatpush1.bf16.msra.mxu0 %v13407_v48  ;;  %v13468_v48 = vcombine.high %v6775_v41, %v6779_v19  ;;  %v13455_v19 = vcombine.low %v6761_v4, %v6765_v57 }
 0x453   :  { %6690 = vmatprep.subr.bf16.mxu0 %v13416_v53  ;;  %6668 = vmatmul.mubr.bf16.vlgmr.msra.gmra.mrb[4].mxu1 %v17144_v49  ;;  %v6732_v53 = vld [vmem:[#allocation8 + $0xc30] sm:$0xff] }
 0x454   :  { %7111 = vmatpush1.bf16.msra.mxu1 %v13417_v21  ;;  %7142 = vmatprep.mubr.bf16.mxu1 %v14762_v59  ;;  %v13422_v21 = vcombine.high %v6728_v63, %v6732_v53  ;;  %v13421_v44 = vcombine.low %v6728_v63, %v6732_v53  ;;  %v6777_v63 = vld [vmem:[#allocation8 + $0xd98] sm:$0xff] }
 0x455   :  { %7112 = vmatprep.subr.bf16.mxu1 %v13426_v51  ;;  %v6736_v51 = vld [vmem:[#allocation8 + $0xc50] sm:$0xff]  ;;  %v6781_v53 = vld [vmem:[#allocation8 + $0xdb8] sm:$0xff] }
 0x456   :  { %6691 = vmatpush1.bf16.msra.mxu0 %v13415_v45  ;;  %v13476_v45 = vcombine.high %v6783_v10, %v6787_v31  ;;  %v13463_v31 = vcombine.low %v6769_v27, %v6773_v61 }
 0x457   :  { %7151 = vmatprep.subr.bf16.mxu0 %v13420_v42  ;;  %v6740_v42 = vld [vmem:[#allocation8 + $0xc70] sm:$0xff] }
 0x458   :  { %7113 = vmatpush1.bf16.msra.mxu1 %v13425_v36  ;;  %v13430_v36 = vcombine.high %v6736_v51, %v6740_v42  ;;  %v13429_v26 = vcombine.low %v6736_v51, %v6740_v42  ;;  %v6785_v51 = vld [vmem:[#allocation8 + $0xdd8] sm:$0xff] }
 0x459   :  { %6709 = vmatmul.mubr.bf16.vlgmr.msra.gmra.mrb[20].mxu0 %v17144_v49  ;;  %7114 = vmatprep.subr.bf16.mxu1 %v13434_v24  ;;  %v13450_v49 = vcombine.high %v6758_v23, %v6762_v11  ;;  %v6744_v24 = vld [vmem:[#allocation8 + $0xc90] sm:$0xff]  ;;  %v6745_v23 = vld [vmem:[#allocation8 + $0xc98] sm:$0xff] }
 0x45a   :  { %7152 = vmatpush1.bf16.msra.mxu0 %v13419_v58  ;;  %7183 = vmatprep.mubr.bf16.mxu0 %v14762_v59  ;;  %v13424_v58 = vcombine.high %v6729_v32, %v6733_v56  ;;  %v6749_v11 = vld [vmem:[#allocation8 + $0xcb8] sm:$0xff]  ;;  %v13471_v56 = vcombine.low %v6777_v63, %v6781_v53 }
 0x45b   :  { %7153 = vmatprep.subr.bf16.mxu0 %v13428_v54  ;;  %v6748_v54 = vld [vmem:[#allocation8 + $0xcb0] sm:$0xff]  ;;  %v13439_v15 = vcombine.low %v6745_v23, %v6749_v11  ;;  %v6789_v42 = vld [vmem:[#allocation8 + $0xdf8] sm:$0xff] }
 0x45c   :  { %7115 = vmatpush1.bf16.msra.mxu1 %v13433_v8  ;;  %v13438_v8 = vcombine.high %v6744_v24, %v6748_v54  ;;  %v13437_v0 = vcombine.low %v6744_v24, %v6748_v54  ;;  %v7284_v24 = vld [vmem:[#allocation8 + $0xe08] sm:$0xff] }
 0x45d   :  { %7116 = vmatprep.subr.bf16.mxu1 %v13442_v33  ;;  %v6752_v33 = vld [vmem:[#allocation8 + $0xcd0] sm:$0xff]  ;;  %v7288_v54 = vld [vmem:[#allocation8 + $0xe28] sm:$0xff] }
 0x45e   :  { %7154 = vmatpush1.bf16.msra.mxu0 %v13427_v14  ;;  %v13432_v14 = vcombine.high %v6737_v22, %v6741_v55  ;;  %v13479_v55 = vcombine.low %v6785_v51, %v6789_v42 }
 0x45f   :  { %7155 = vmatprep.subr.bf16.mxu0 %v13436_v46  ;;  %v6756_v46 = vld [vmem:[#allocation8 + $0xcf0] sm:$0xff] }
 0x460   :  { %7117 = vmatpush1.bf16.msra.mxu1 %v13441_v18  ;;  %v13446_v18 = vcombine.high %v6752_v33, %v6756_v46  ;;  %v13445_v17 = vcombine.low %v6752_v33, %v6756_v46  ;;  %v7292_v33 = vld [vmem:[#allocation8 + $0xe48] sm:$0xff] }
 0x461   :  { %7118 = vmatprep.subr.bf16.mxu1 %v13450_v49  ;;  %v6760_v49 = vld [vmem:[#allocation8 + $0xd10] sm:$0xff]  ;;  %v7296_v46 = vld [vmem:[#allocation8 + $0xe68] sm:$0xff] }
 0x462   :  { %7156 = vmatpush1.bf16.msra.mxu0 %v13435_v29  ;;  %v13440_v29 = vcombine.high %v6745_v23, %v6749_v11  ;;  %v13483_v11 = vcombine.low %v7284_v24, %v7288_v54 }
 0x463   :  { %7157 = vmatprep.subr.bf16.mxu0 %v13444_v30  ;;  %v6764_v30 = vld [vmem:[#allocation8 + $0xd30] sm:$0xff] }
 0x464   :  { %7119 = vmatpush1.bf16.msra.mxu1 %v13449_v47  ;;  %v13454_v47 = vcombine.high %v6760_v49, %v6764_v30  ;;  %v13453_v9 = vcombine.low %v6760_v49, %v6764_v30  ;;  %v7300_v49 = vld [vmem:[#allocation8 + $0xe88] sm:$0xff] }
 0x465   :  { %7120 = vmatprep.subr.bf16.mxu1 %v13458_v6  ;;  %v6768_v6 = vld [vmem:[#allocation8 + $0xd50] sm:$0xff]  ;;  %v7304_v30 = vld [vmem:[#allocation8 + $0xea8] sm:$0xff] }
 0x466   :  { %7158 = vmatpush1.bf16.msra.mxu0 %v13443_v1  ;;  %v13448_v1 = vcombine.high %v6753_v20, %v6757_v28  ;;  %v13491_v28 = vcombine.low %v7292_v33, %v7296_v46 }
 0x467   :  { %7159 = vmatprep.subr.bf16.mxu0 %v13452_v16  ;;  %v6772_v16 = vld [vmem:[#allocation8 + $0xd70] sm:$0xff] }
 0x468   :  { %7121 = vmatpush1.bf16.msra.mxu1 %v13457_v39  ;;  %v13462_v39 = vcombine.high %v6768_v6, %v6772_v16  ;;  %v13461_v41 = vcombine.low %v6768_v6, %v6772_v16  ;;  %v7308_v6 = vld [vmem:[#allocation8 + $0xec8] sm:$0xff] }
 0x469   :  { %7122 = vmatprep.subr.bf16.mxu1 %v13466_v12  ;;  %v6776_v12 = vld [vmem:[#allocation8 + $0xd90] sm:$0xff]  ;;  %v7312_v16 = vld [vmem:[#allocation8 + $0xee8] sm:$0xff] }
 0x46a   :  { %7160 = vmatpush1.bf16.msra.mxu0 %v13451_v50  ;;  %v13456_v50 = vcombine.high %v6761_v4, %v6765_v57  ;;  %v13499_v57 = vcombine.low %v7300_v49, %v7304_v30 }
 0x46b   :  { %7161 = vmatprep.subr.bf16.mxu0 %v13460_v2  ;;  %v6780_v2 = vld [vmem:[#allocation8 + $0xdb0] sm:$0xff] }
 0x46c   :  { %7123 = vmatpush1.bf16.msra.mxu1 %v13465_v43  ;;  %v13470_v43 = vcombine.high %v6776_v12, %v6780_v2  ;;  %v13469_v10 = vcombine.low %v6776_v12, %v6780_v2  ;;  %v7316_v12 = vld [vmem:[#allocation8 + $0xf08] sm:$0xff] }
 0x46d   :  { %7124 = vmatprep.subr.bf16.mxu1 %v13474_v3  ;;  %v6784_v3 = vld [vmem:[#allocation8 + $0xdd0] sm:$0xff]  ;;  %v7320_v2 = vld [vmem:[#allocation8 + $0xf28] sm:$0xff] }
 0x46e   :  { %7162 = vmatpush1.bf16.msra.mxu0 %v13459_v40  ;;  %v13464_v40 = vcombine.high %v6769_v27, %v6773_v61  ;;  %v13507_v61 = vcombine.low %v7308_v6, %v7312_v16 }
 0x46f   :  { %7163 = vmatprep.subr.bf16.mxu0 %v13468_v48  ;;  %v6788_v48 = vld [vmem:[#allocation8 + $0xdf0] sm:$0xff] }
 0x470   :  { %7125 = vmatpush1.bf16.msra.mxu1 %v13473_v25  ;;  %v13478_v25 = vcombine.high %v6784_v3, %v6788_v48  ;;  %v13477_v32 = vcombine.low %v6784_v3, %v6788_v48  ;;  %v7324_v3 = vld [vmem:[#allocation8 + $0xf48] sm:$0xff] }
 0x471   :  { %7192 = vmatprep.subr.bf16.mxu1 %v13422_v21  ;;  %v7283_v21 = vld [vmem:[#allocation8 + $0xe00] sm:$0xff]  ;;  %v7328_v48 = vld [vmem:[#allocation8 + $0xf68] sm:$0xff] }
 0x472   :  { %7164 = vmatpush1.bf16.msra.mxu0 %v13467_v60  ;;  %v13472_v60 = vcombine.high %v6777_v63, %v6781_v53  ;;  %v13515_v53 = vcombine.low %v7316_v12, %v7320_v2 }
 0x473   :  { %7165 = vmatprep.subr.bf16.mxu0 %v13476_v45  ;;  %7143 = vmatmul.mubr.bf16.vlgmr.msra.gmra.mrb[0].mxu1 %v17095_v7  ;;  %v7287_v45 = vld [vmem:[#allocation8 + $0xe20] sm:$0xff] }
 0x474   :  { %7193 = vmatpush1.bf16.msra.mxu1 %v13421_v44  ;;  %7224 = vmatprep.mubr.bf16.mxu1 %v14762_v59  ;;  %v13482_v44 = vcombine.high %v7283_v21, %v7287_v45  ;;  %v13481_v22 = vcombine.low %v7283_v21, %v7287_v45  ;;  %v7332_v21 = vld [vmem:[#allocation8 + $0xf88] sm:$0xff] }
 0x475   :  { %7194 = vmatprep.subr.bf16.mxu1 %v13430_v36  ;;  %v7291_v36 = vld [vmem:[#allocation8 + $0xe40] sm:$0xff]  ;;  %v7336_v45 = vld [vmem:[#allocation8 + $0xfa8] sm:$0xff] }
 0x476   :  { %7166 = vmatpush1.bf16.msra.mxu0 %v13475_v35  ;;  %v13480_v35 = vcombine.high %v6785_v51, %v6789_v42  ;;  %v13523_v42 = vcombine.low %v7324_v3, %v7328_v48 }
 0x477   :  { %7233 = vmatprep.subr.bf16.mxu0 %v13424_v58  ;;  %v7295_v58 = vld [vmem:[#allocation8 + $0xe60] sm:$0xff] }
 0x478   :  { %7195 = vmatpush1.bf16.msra.mxu1 %v13429_v26  ;;  %v13490_v26 = vcombine.high %v7291_v36, %v7295_v58  ;;  %v13489_v23 = vcombine.low %v7291_v36, %v7295_v58  ;;  %v7340_v36 = vld [vmem:[#allocation8 + $0xfc8] sm:$0xff] }
 0x479   :  { %7184 = vmatmul.mubr.bf16.vlgmr.msra.gmra.mrb[16].mxu0 %v17095_v7  ;;  %7196 = vmatprep.subr.bf16.mxu1 %v13438_v8  ;;  %v7299_v8 = vld [vmem:[#allocation8 + $0xe80] sm:$0xff]  ;;  %v7344_v58 = vld [vmem:[#allocation8 + $0xfe8] sm:$0xff] }
 0x47a   :  { %7234 = vmatpush1.bf16.msra.mxu0 %v13423_v34  ;;  %7265 = vmatprep.mubr.bf16.mxu0 %v14762_v59  ;;  %v13484_v34 = vcombine.high %v7284_v24, %v7288_v54  ;;  %v13531_v54 = vcombine.low %v7332_v21, %v7336_v45 }
 0x47b   :  { %7235 = vmatprep.subr.bf16.mxu0 %v13432_v14  ;;  %v7303_v14 = vld [vmem:[#allocation8 + $0xea0] sm:$0xff] }
 0x47c   :  { %7197 = vmatpush1.bf16.msra.mxu1 %v13437_v0  ;;  %v13498_v0 = vcombine.high %v7299_v8, %v7303_v14  ;;  %v13497_v20 = vcombine.low %v7299_v8, %v7303_v14  ;;  %v7286_v8 = vld [vmem:[#allocation8 + $0xe18] sm:$0xff] }
 0x47d   :  { %7198 = vmatprep.subr.bf16.mxu1 %v13446_v18  ;;  %v7307_v18 = vld [vmem:[#allocation8 + $0xec0] sm:$0xff]  ;;  %v7290_v14 = vld [vmem:[#allocation8 + $0xe38] sm:$0xff] }
 0x47e   :  { %7236 = vmatpush1.bf16.msra.mxu0 %v13431_v52  ;;  %v13492_v52 = vcombine.high %v7292_v33, %v7296_v46  ;;  %v13539_v46 = vcombine.low %v7340_v36, %v7344_v58 }
 0x47f   :  { %7237 = vmatprep.subr.bf16.mxu0 %v13440_v29  ;;  %v7311_v29 = vld [vmem:[#allocation8 + $0xee0] sm:$0xff] }
 0x480   :  { %7199 = vmatpush1.bf16.msra.mxu1 %v13445_v17  ;;  %v13506_v17 = vcombine.high %v7307_v18, %v7311_v29  ;;  %v13505_v4 = vcombine.low %v7307_v18, %v7311_v29  ;;  %v7305_v18 = vld [vmem:[#allocation8 + $0xeb0] sm:$0xff]  ;;  %v7294_v29 = vld [vmem:[#allocation8 + $0xe58] sm:$0xff] }
 0x481   :  { %7200 = vmatprep.subr.bf16.mxu1 %v13454_v47  ;;  %v7315_v47 = vld [vmem:[#allocation8 + $0xf00] sm:$0xff] }
 0x482   :  { %7238 = vmatpush1.bf16.msra.mxu0 %v13439_v15  ;;  %v13500_v15 = vcombine.high %v7300_v49, %v7304_v30  ;;  %v7298_v49 = vld [vmem:[#allocation8 + $0xe78] sm:$0xff] }
 0x483   :  { %7239 = vmatprep.subr.bf16.mxu0 %v13448_v1  ;;  %v7319_v1 = vld [vmem:[#allocation8 + $0xf20] sm:$0xff] }
 0x484   :  { %7201 = vmatpush1.bf16.msra.mxu1 %v13453_v9  ;;  %v13514_v9 = vcombine.high %v7315_v47, %v7319_v1  ;;  %v13513_v27 = vcombine.low %v7315_v47, %v7319_v1  ;;  %v7302_v47 = vld [vmem:[#allocation8 + $0xe98] sm:$0xff] }
 0x485   :  { %7202 = vmatprep.subr.bf16.mxu1 %v13462_v39  ;;  %v7323_v39 = vld [vmem:[#allocation8 + $0xf40] sm:$0xff]  ;;  %v7306_v1 = vld [vmem:[#allocation8 + $0xeb8] sm:$0xff] }
 0x486   :  { %7240 = vmatpush1.bf16.msra.mxu0 %v13447_v38  ;;  %v13508_v38 = vcombine.high %v7308_v6, %v7312_v16  ;;  %v13495_v16 = vcombine.low %v7294_v29, %v7298_v49 }
 0x487   :  { %7241 = vmatprep.subr.bf16.mxu0 %v13456_v50  ;;  %v7327_v50 = vld [vmem:[#allocation8 + $0xf60] sm:$0xff] }
 0x488   :  { %7203 = vmatpush1.bf16.msra.mxu1 %v13461_v41  ;;  %v13522_v41 = vcombine.high %v7323_v39, %v7327_v50  ;;  %v13521_v63 = vcombine.low %v7323_v39, %v7327_v50  ;;  %v7310_v39 = vld [vmem:[#allocation8 + $0xed8] sm:$0xff] }
 0x489   :  { %7204 = vmatprep.subr.bf16.mxu1 %v13470_v43  ;;  %v7331_v43 = vld [vmem:[#allocation8 + $0xf80] sm:$0xff]  ;;  %v7314_v50 = vld [vmem:[#allocation8 + $0xef8] sm:$0xff] }
 0x48a   :  { %7242 = vmatpush1.bf16.msra.mxu0 %v13455_v19  ;;  %v13516_v19 = vcombine.high %v7316_v12, %v7320_v2  ;;  %v13503_v2 = vcombine.low %v7302_v47, %v7306_v1 }
 0x48b   :  { %7243 = vmatprep.subr.bf16.mxu0 %v13464_v40  ;;  %v7335_v40 = vld [vmem:[#allocation8 + $0xfa0] sm:$0xff] }
 0x48c   :  { %7205 = vmatpush1.bf16.msra.mxu1 %v13469_v10  ;;  %v13530_v10 = vcombine.high %v7331_v43, %v7335_v40  ;;  %v13529_v51 = vcombine.low %v7331_v43, %v7335_v40  ;;  %v7318_v43 = vld [vmem:[#allocation8 + $0xf18] sm:$0xff] }
 0x48d   :  { %7206 = vmatprep.subr.bf16.mxu1 %v13478_v25  ;;  %v7339_v25 = vld [vmem:[#allocation8 + $0xfc0] sm:$0xff]  ;;  %v7322_v40 = vld [vmem:[#allocation8 + $0xf38] sm:$0xff] }
 0x48e   :  { %7244 = vmatpush1.bf16.msra.mxu0 %v13463_v31  ;;  %v13524_v31 = vcombine.high %v7324_v3, %v7328_v48  ;;  %v13511_v48 = vcombine.low %v7310_v39, %v7314_v50 }
 0x48f   :  { %7245 = vmatprep.subr.bf16.mxu0 %v13472_v60  ;;  %v7343_v60 = vld [vmem:[#allocation8 + $0xfe0] sm:$0xff] }
 0x490   :  { %7207 = vmatpush1.bf16.msra.mxu1 %v13477_v32  ;;  %v13538_v32 = vcombine.high %v7339_v25, %v7343_v60  ;;  %v13537_v24 = vcombine.low %v7339_v25, %v7343_v60  ;;  %v7326_v25 = vld [vmem:[#allocation8 + $0xf58] sm:$0xff] }
 0x491   :  { %7670 = vmatprep.subr.bf16.mxu1 %v13482_v44  ;;  %v7285_v44 = vld [vmem:[#allocation8 + $0xe10] sm:$0xff]  ;;  %v7330_v60 = vld [vmem:[#allocation8 + $0xf78] sm:$0xff] }
 0x492   :  { %7246 = vmatpush1.bf16.msra.mxu0 %v13471_v56  ;;  %v13532_v56 = vcombine.high %v7332_v21, %v7336_v45  ;;  %v13519_v45 = vcombine.low %v7318_v43, %v7322_v40 }
 0x493   :  { %7247 = vmatprep.subr.bf16.mxu0 %v13480_v35  ;;  %7225 = vmatmul.mubr.bf16.vlgmr.msra.gmra.mrb[4].mxu1 %v17095_v7  ;;  %v7289_v35 = vld [vmem:[#allocation8 + $0xe30] sm:$0xff] }
 0x494   :  { %7671 = vmatpush1.bf16.msra.mxu1 %v13481_v22  ;;  %7702 = vmatprep.mubr.bf16.mxu1 %v14762_v59  ;;  %v13486_v22 = vcombine.high %v7285_v44, %v7289_v35  ;;  %v13485_v33 = vcombine.low %v7285_v44, %v7289_v35  ;;  %v7334_v44 = vld [vmem:[#allocation8 + $0xf98] sm:$0xff] }
 0x495   :  { %7672 = vmatprep.subr.bf16.mxu1 %v13490_v26  ;;  %v7293_v26 = vld [vmem:[#allocation8 + $0xe50] sm:$0xff]  ;;  %v7338_v35 = vld [vmem:[#allocation8 + $0xfb8] sm:$0xff] }
 0x496   :  { %7248 = vmatpush1.bf16.msra.mxu0 %v13479_v55  ;;  %v13540_v55 = vcombine.high %v7340_v36, %v7344_v58  ;;  %v13527_v58 = vcombine.low %v7326_v25, %v7330_v60 }
 0x497   :  { %7711 = vmatprep.subr.bf16.mxu0 %v13484_v34  ;;  %v7297_v34 = vld [vmem:[#allocation8 + $0xe70] sm:$0xff] }
 0x498   :  { %7673 = vmatpush1.bf16.msra.mxu1 %v13489_v23  ;;  %v17163_v23 = vrot.slane %v17095_v7, 4  ;;  %v13493_v30 = vcombine.low %v7293_v26, %v7297_v34 }
 0x499   :  { %7266 = vmatmul.mubr.bf16.vlgmr.msra.gmra.mrb[20].mxu0 %v17095_v7  ;;  %7674 = vmatprep.subr.bf16.mxu1 %v13498_v0  ;;  %v13488_v0 = vcombine.high %v7286_v8, %v7290_v14  ;;  %v13496_v7 = vcombine.high %v7294_v29, %v7298_v49 }
 0x49a   :  { %7712 = vmatpush1.bf16.msra.mxu0 %v13483_v11  ;;  %7743 = vmatprep.mubr.bf16.mxu0 %v14762_v59  ;;  %v13494_v11 = vcombine.high %v7293_v26, %v7297_v34  ;;  %v7342_v26 = vld [vmem:[#allocation8 + $0xfd8] sm:$0xff] }
 0x49b   :  { %7713 = vmatprep.subr.bf16.mxu0 %v13492_v52  ;;  %v7301_v52 = vld [vmem:[#allocation8 + $0xe90] sm:$0xff]  ;;  %v7346_v34 = vld [vmem:[#allocation8 + $0xff8] sm:$0xff] }
 0x49c   :  { %7675 = vmatpush1.bf16.msra.mxu1 %v13497_v20  ;;  %v13487_v20 = vcombine.low %v7286_v8, %v7290_v14  ;;  %v13501_v6 = vcombine.low %v7301_v52, %v7305_v18  ;;  %v13535_v14 = vcombine.low %v7334_v44, %v7338_v35  ;;  %v13543_v49 = vcombine.low %v7342_v26, %v7346_v34 }
 0x49d   :  { %7676 = vmatprep.subr.bf16.mxu1 %v13506_v17  ;;  %v7309_v17 = vld [vmem:[#allocation8 + $0xed0] sm:$0xff] }
 0x49e   :  { %7714 = vmatpush1.bf16.msra.mxu0 %v13491_v28  ;;  %v13502_v28 = vcombine.high %v7301_v52, %v7305_v18  ;;  %v7844_v52 = vld [vmem:[#allocation8 + $0x1008] sm:$0xff] }
 0x49f   :  { %7715 = vmatprep.subr.bf16.mxu0 %v13500_v15  ;;  %v7313_v15 = vld [vmem:[#allocation8 + $0xef0] sm:$0xff]  ;;  %v7848_v18 = vld [vmem:[#allocation8 + $0x1028] sm:$0xff] }
 0x4a0   :  { %7677 = vmatpush1.bf16.msra.mxu1 %v13505_v4  ;;  %v13510_v4 = vcombine.high %v7309_v17, %v7313_v15  ;;  %v13509_v12 = vcombine.low %v7309_v17, %v7313_v15  ;;  %v7852_v17 = vld [vmem:[#allocation8 + $0x1048] sm:$0xff] }
 0x4a1   :  { %7678 = vmatprep.subr.bf16.mxu1 %v13514_v9  ;;  %v7317_v9 = vld [vmem:[#allocation8 + $0xf10] sm:$0xff]  ;;  %v7856_v15 = vld [vmem:[#allocation8 + $0x1068] sm:$0xff] }
 0x4a2   :  { %7716 = vmatpush1.bf16.msra.mxu0 %v13499_v57  ;;  %v13504_v57 = vcombine.high %v7302_v47, %v7306_v1  ;;  %v13547_v1 = vcombine.low %v7844_v52, %v7848_v18 }
 0x4a3   :  { %7717 = vmatprep.subr.bf16.mxu0 %v13508_v38  ;;  %v7321_v38 = vld [vmem:[#allocation8 + $0xf30] sm:$0xff] }
 0x4a4   :  { %7679 = vmatpush1.bf16.msra.mxu1 %v13513_v27  ;;  %v13518_v27 = vcombine.high %v7317_v9, %v7321_v38  ;;  %v13517_v3 = vcombine.low %v7317_v9, %v7321_v38  ;;  %v7860_v9 = vld [vmem:[#allocation8 + $0x1088] sm:$0xff] }
 0x4a5   :  { %7680 = vmatprep.subr.bf16.mxu1 %v13522_v41  ;;  %v7325_v41 = vld [vmem:[#allocation8 + $0xf50] sm:$0xff]  ;;  %v7864_v38 = vld [vmem:[#allocation8 + $0x10a8] sm:$0xff] }
 0x4a6   :  { %7718 = vmatpush1.bf16.msra.mxu0 %v13507_v61  ;;  %v13512_v61 = vcombine.high %v7310_v39, %v7314_v50  ;;  %v13555_v50 = vcombine.low %v7852_v17, %v7856_v15 }
 0x4a7   :  { %7719 = vmatprep.subr.bf16.mxu0 %v13516_v19  ;;  %v7329_v19 = vld [vmem:[#allocation8 + $0xf70] sm:$0xff] }
 0x4a8   :  { %7681 = vmatpush1.bf16.msra.mxu1 %v13521_v63  ;;  %v13526_v63 = vcombine.high %v7325_v41, %v7329_v19  ;;  %v13525_v21 = vcombine.low %v7325_v41, %v7329_v19  ;;  %v7868_v41 = vld [vmem:[#allocation8 + $0x10c8] sm:$0xff] }
 0x4a9   :  { %7682 = vmatprep.subr.bf16.mxu1 %v13530_v10  ;;  %v7333_v10 = vld [vmem:[#allocation8 + $0xf90] sm:$0xff]  ;;  %v7872_v19 = vld [vmem:[#allocation8 + $0x10e8] sm:$0xff] }
 0x4aa   :  { %7720 = vmatpush1.bf16.msra.mxu0 %v13515_v53  ;;  %v13520_v53 = vcombine.high %v7318_v43, %v7322_v40  ;;  %v13563_v40 = vcombine.low %v7860_v9, %v7864_v38 }
 0x4ab   :  { %7721 = vmatprep.subr.bf16.mxu0 %v13524_v31  ;;  %v7337_v31 = vld [vmem:[#allocation8 + $0xfb0] sm:$0xff] }
 0x4ac   :  { %7683 = vmatpush1.bf16.msra.mxu1 %v13529_v51  ;;  %v13534_v51 = vcombine.high %v7333_v10, %v7337_v31  ;;  %v13533_v36 = vcombine.low %v7333_v10, %v7337_v31  ;;  %v7880_v10 = vld [vmem:[#allocation8 + $0x1128] sm:$0xff] }
 0x4ad   :  { %7684 = vmatprep.subr.bf16.mxu1 %v13538_v32  ;;  %v7341_v32 = vld [vmem:[#allocation8 + $0xfd0] sm:$0xff] }
 0x4ae   :  { %7722 = vmatpush1.bf16.msra.mxu0 %v13523_v42  ;;  %v13528_v42 = vcombine.high %v7326_v25, %v7330_v60  ;;  %v13571_v25 = vcombine.low %v7868_v41, %v7872_v19 }
 0x4af   :  { %7723 = vmatprep.subr.bf16.mxu0 %v13532_v56  ;;  %v7345_v56 = vld [vmem:[#allocation8 + $0xff0] sm:$0xff] }
 0x4b0   :  { %7685 = vmatpush1.bf16.msra.mxu1 %v13537_v24  ;;  %v13542_v24 = vcombine.high %v7341_v32, %v7345_v56  ;;  %v13541_v8 = vcombine.low %v7341_v32, %v7345_v56  ;;  %v7888_v32 = vld [vmem:[#allocation8 + $0x1168] sm:$0xff] }
 0x4b1   :  { %7752 = vmatprep.subr.bf16.mxu1 %v13486_v22  ;;  %v7843_v22 = vld [vmem:[#allocation8 + $0x1000] sm:$0xff] }
 0x4b2   :  { %7724 = vmatpush1.bf16.msra.mxu0 %v13531_v54  ;;  %v13536_v54 = vcombine.high %v7334_v44, %v7338_v35 }
 0x4b3   :  { %7725 = vmatprep.subr.bf16.mxu0 %v13540_v55  ;;  %7703 = vmatmul.mubr.bf16.vlgmr.msra.gmra.mrb[0].mxu1 %v17163_v23  ;;  %v7847_v55 = vld [vmem:[#allocation8 + $0x1020] sm:$0xff] }
 0x4b4   :  { %7753 = vmatpush1.bf16.msra.mxu1 %v13485_v33  ;;  %7784 = vmatprep.mubr.bf16.mxu1 %v14762_v59  ;;  %v13546_v33 = vcombine.high %v7843_v22, %v7847_v55  ;;  %v13545_v29 = vcombine.low %v7843_v22, %v7847_v55  ;;  %v7896_v22 = vld [vmem:[#allocation8 + $0x11a8] sm:$0xff] }
 0x4b5   :  { %7754 = vmatprep.subr.bf16.mxu1 %v13494_v11  ;;  %v7851_v11 = vld [vmem:[#allocation8 + $0x1040] sm:$0xff] }
 0x4b6   :  { %7726 = vmatpush1.bf16.msra.mxu0 %v13539_v46  ;;  %v13544_v46 = vcombine.high %v7342_v26, %v7346_v34 }
 0x4b7   :  { %7793 = vmatprep.subr.bf16.mxu0 %v13488_v0  ;;  %v7855_v0 = vld [vmem:[#allocation8 + $0x1060] sm:$0xff] }
 0x4b8   :  { %7755 = vmatpush1.bf16.msra.mxu1 %v13493_v30  ;;  %v13554_v30 = vcombine.high %v7851_v11, %v7855_v0  ;;  %v13553_v47 = vcombine.low %v7851_v11, %v7855_v0  ;;  %v7904_v11 = vld [vmem:[#allocation8 + $0x11e8] sm:$0xff] }
 0x4b9   :  { %7744 = vmatmul.mubr.bf16.vlgmr.msra.gmra.mrb[16].mxu0 %v17163_v23  ;;  %7756 = vmatprep.subr.bf16.mxu1 %v13502_v28  ;;  %v7859_v28 = vld [vmem:[#allocation8 + $0x1080] sm:$0xff] }
 0x4ba   :  { %7794 = vmatpush1.bf16.msra.mxu0 %v13487_v20  ;;  %7825 = vmatprep.mubr.bf16.mxu0 %v14762_v59  ;;  %v13548_v20 = vcombine.high %v7844_v52, %v7848_v18 }
 0x4bb   :  { %7795 = vmatprep.subr.bf16.mxu0 %v13496_v7  ;;  %v7863_v7 = vld [vmem:[#allocation8 + $0x10a0] sm:$0xff] }
 0x4bc   :  { %7757 = vmatpush1.bf16.msra.mxu1 %v13501_v6  ;;  %v13562_v6 = vcombine.high %v7859_v28, %v7863_v7  ;;  %v13561_v39 = vcombine.low %v7859_v28, %v7863_v7  ;;  %v7850_v28 = vld [vmem:[#allocation8 + $0x1038] sm:$0xff] }
 0x4bd   :  { %7758 = vmatprep.subr.bf16.mxu1 %v13510_v4  ;;  %v7867_v4 = vld [vmem:[#allocation8 + $0x10c0] sm:$0xff] }
 0x4be   :  { %7796 = vmatpush1.bf16.msra.mxu0 %v13495_v16  ;;  %v13556_v16 = vcombine.high %v7852_v17, %v7856_v15 }
 0x4bf   :  { %7797 = vmatprep.subr.bf16.mxu0 %v13504_v57  ;;  %v7871_v57 = vld [vmem:[#allocation8 + $0x10e0] sm:$0xff] }
 0x4c0   :  { %7759 = vmatpush1.bf16.msra.mxu1 %v13509_v12  ;;  %v13570_v12 = vcombine.high %v7867_v4, %v7871_v57  ;;  %v13569_v43 = vcombine.low %v7867_v4, %v7871_v57  ;;  %v7858_v4 = vld [vmem:[#allocation8 + $0x1078] sm:$0xff] }
 0x4c1   :  { %7760 = vmatprep.subr.bf16.mxu1 %v13518_v27  ;;  %v7875_v27 = vld [vmem:[#allocation8 + $0x1100] sm:$0xff] }
 0x4c2   :  { %7798 = vmatpush1.bf16.msra.mxu0 %v13503_v2  ;;  %v13564_v2 = vcombine.high %v7860_v9, %v7864_v38 }
 0x4c3   :  { %7799 = vmatprep.subr.bf16.mxu0 %v13512_v61  ;;  %v7879_v61 = vld [vmem:[#allocation8 + $0x1120] sm:$0xff] }
 0x4c4   :  { %7761 = vmatpush1.bf16.msra.mxu1 %v13517_v3  ;;  %v13572_v3 = vcombine.high %v7868_v41, %v7872_v19  ;;  %v13577_v31 = vcombine.low %v7875_v27, %v7879_v61 }
 0x4c5   :  { %7762 = vmatprep.subr.bf16.mxu1 %v13526_v63  ;;  %v7887_v63 = vld [vmem:[#allocation8 + $0x1160] sm:$0xff] }
 0x4c6   :  { %7800 = vmatpush1.bf16.msra.mxu0 %v13511_v48  ;;  %v7883_v48 = vld [vmem:[#allocation8 + $0x1140] sm:$0xff] }
 0x4c7   :  { %7801 = vmatprep.subr.bf16.mxu0 %v13520_v53  ;;  %v7876_v53 = vld [vmem:[#allocation8 + $0x1108] sm:$0xff]  ;;  %v13586_v60 = vcombine.high %v7883_v48, %v7887_v63  ;;  %v13585_v56 = vcombine.low %v7883_v48, %v7887_v63  ;;  %v7874_v48 = vld [vmem:[#allocation8 + $0x10f8] sm:$0xff] }
 0x4c8   :  { %7763 = vmatpush1.bf16.msra.mxu1 %v13525_v21  ;;  %v13580_v21 = vcombine.high %v7876_v53, %v7880_v10  ;;  %v13579_v44 = vcombine.low %v7876_v53, %v7880_v10 }
 0x4c9   :  { %7764 = vmatprep.subr.bf16.mxu1 %v13534_v51  ;;  %v7895_v51 = vld [vmem:[#allocation8 + $0x11a0] sm:$0xff] }
 0x4ca   :  { %7802 = vmatpush1.bf16.msra.mxu0 %v13519_v45  ;;  %v7891_v45 = vld [vmem:[#allocation8 + $0x1180] sm:$0xff] }
 0x4cb   :  { %7803 = vmatprep.subr.bf16.mxu0 %v13528_v42  ;;  %v7884_v42 = vld [vmem:[#allocation8 + $0x1148] sm:$0xff]  ;;  %v13594_v35 = vcombine.high %v7891_v45, %v7895_v51  ;;  %v13593_v55 = vcombine.low %v7891_v45, %v7895_v51  ;;  %v7882_v45 = vld [vmem:[#allocation8 + $0x1138] sm:$0xff] }
 0x4cc   :  { %7765 = vmatpush1.bf16.msra.mxu1 %v13533_v36  ;;  %v13588_v36 = vcombine.high %v7884_v42, %v7888_v32  ;;  %v13587_v26 = vcombine.low %v7884_v42, %v7888_v32 }
 0x4cd   :  { %7766 = vmatprep.subr.bf16.mxu1 %v13542_v24  ;;  %v7903_v24 = vld [vmem:[#allocation8 + $0x11e0] sm:$0xff] }
 0x4ce   :  { %7804 = vmatpush1.bf16.msra.mxu0 %v13527_v58  ;;  %v7899_v58 = vld [vmem:[#allocation8 + $0x11c0] sm:$0xff] }
 0x4cf   :  { %7805 = vmatprep.subr.bf16.mxu0 %v13536_v54  ;;  %v7892_v54 = vld [vmem:[#allocation8 + $0x1188] sm:$0xff]  ;;  %v13602_v34 = vcombine.high %v7899_v58, %v7903_v24  ;;  %v13601_v0 = vcombine.low %v7899_v58, %v7903_v24  ;;  %v7890_v58 = vld [vmem:[#allocation8 + $0x1178] sm:$0xff] }
 0x4d0   :  { %7767 = vmatpush1.bf16.msra.mxu1 %v13541_v8  ;;  %v13596_v8 = vcombine.high %v7892_v54, %v7896_v22  ;;  %v13595_v52 = vcombine.low %v7892_v54, %v7896_v22 }
 0x4d1   :  { %8227 = vmatprep.subr.bf16.mxu1 %v13546_v33  ;;  %v7849_v33 = vld [vmem:[#allocation8 + $0x1030] sm:$0xff] }
 0x4d2   :  { %7806 = vmatpush1.bf16.msra.mxu0 %v13535_v14  ;;  %v7845_v14 = vld [vmem:[#allocation8 + $0x1010] sm:$0xff] }
 0x4d3   :  { %7807 = vmatprep.subr.bf16.mxu0 %v13544_v46  ;;  %7785 = vmatmul.mubr.bf16.vlgmr.msra.gmra.mrb[4].mxu1 %v17163_v23  ;;  %v7900_v46 = vld [vmem:[#allocation8 + $0x11c8] sm:$0xff]  ;;  %v13550_v18 = vcombine.high %v7845_v14, %v7849_v33  ;;  %v13549_v7 = vcombine.low %v7845_v14, %v7849_v33  ;;  %v7898_v14 = vld [vmem:[#allocation8 + $0x11b8] sm:$0xff] }
 0x4d4   :  { %8228 = vmatpush1.bf16.msra.mxu1 %v13545_v29  ;;  %8259 = vmatprep.mubr.bf16.mxu1 %v14762_v59  ;;  %v13604_v29 = vcombine.high %v7900_v46, %v7904_v11  ;;  %v13603_v17 = vcombine.low %v7900_v46, %v7904_v11 }
 0x4d5   :  { %8229 = vmatprep.subr.bf16.mxu1 %v13554_v30  ;;  %v7857_v30 = vld [vmem:[#allocation8 + $0x1070] sm:$0xff] }
 0x4d6   :  { %7808 = vmatpush1.bf16.msra.mxu0 %v13543_v49  ;;  %v7853_v49 = vld [vmem:[#allocation8 + $0x1050] sm:$0xff] }
 0x4d7   :  { %8268 = vmatprep.subr.bf16.mxu0 %v13548_v20  ;;  %v7846_v20 = vld [vmem:[#allocation8 + $0x1018] sm:$0xff]  ;;  %v13558_v15 = vcombine.high %v7853_v49, %v7857_v30  ;;  %v13557_v57 = vcombine.low %v7853_v49, %v7857_v30 }
 0x4d8   :  { %8230 = vmatpush1.bf16.msra.mxu1 %v13553_v47  ;;  %v13552_v47 = vcombine.high %v7846_v20, %v7850_v28  ;;  %v13551_v9 = vcombine.low %v7846_v20, %v7850_v28  ;;  %v7906_v49 = vld [vmem:[#allocation8 + $0x11f8] sm:$0xff] }
 0x4d9   :  { %7826 = vmatmul.mubr.bf16.vlgmr.msra.gmra.mrb[20].mxu0 %v17163_v23  ;;  %8231 = vmatprep.subr.bf16.mxu1 %v13562_v6  ;;  %v13578_v23 = vcombine.high %v7875_v27, %v7879_v61  ;;  %v7865_v6 = vld [vmem:[#allocation8 + $0x10b0] sm:$0xff]  ;;  %v7866_v27 = vld [vmem:[#allocation8 + $0x10b8] sm:$0xff] }
 0x4da   :  { %8269 = vmatpush1.bf16.msra.mxu0 %v13547_v1  ;;  %8300 = vmatprep.mubr.bf16.mxu0 %v14762_v59  ;;  %v7861_v1 = vld [vmem:[#allocation8 + $0x1090] sm:$0xff] }
 0x4db   :  { %8270 = vmatprep.subr.bf16.mxu0 %v13556_v16  ;;  %v7854_v16 = vld [vmem:[#allocation8 + $0x1058] sm:$0xff]  ;;  %v13566_v38 = vcombine.high %v7861_v1, %v7865_v6  ;;  %v13565_v61 = vcombine.low %v7861_v1, %v7865_v6  ;;  %v8405_v1 = vld [vmem:[#allocation8 + $0x1228] sm:$0xff] }
 0x4dc   :  { %8232 = vmatpush1.bf16.msra.mxu1 %v13561_v39  ;;  %v13560_v39 = vcombine.high %v7854_v16, %v7858_v4  ;;  %v13559_v41 = vcombine.low %v7854_v16, %v7858_v4 }
 0x4dd   :  { %8233 = vmatprep.subr.bf16.mxu1 %v13570_v12  ;;  %v7873_v12 = vld [vmem:[#allocation8 + $0x10f0] sm:$0xff] }
 0x4de   :  { %8271 = vmatpush1.bf16.msra.mxu0 %v13555_v50  ;;  %v7869_v50 = vld [vmem:[#allocation8 + $0x10d0] sm:$0xff] }
 0x4df   :  { %8272 = vmatprep.subr.bf16.mxu0 %v13564_v2  ;;  %v7862_v2 = vld [vmem:[#allocation8 + $0x1098] sm:$0xff]  ;;  %v13574_v19 = vcombine.high %v7869_v50, %v7873_v12  ;;  %v13573_v63 = vcombine.low %v7869_v50, %v7873_v12  ;;  %v8413_v50 = vld [vmem:[#allocation8 + $0x1268] sm:$0xff] }
 0x4e0   :  { %8234 = vmatpush1.bf16.msra.mxu1 %v13569_v43  ;;  %v13568_v43 = vcombine.high %v7862_v2, %v7866_v27  ;;  %v13567_v53 = vcombine.low %v7862_v2, %v7866_v27 }
 0x4e1   :  { %8235 = vmatprep.subr.bf16.mxu1 %v13578_v23  ;;  %v7881_v23 = vld [vmem:[#allocation8 + $0x1130] sm:$0xff] }
 0x4e2   :  { %8273 = vmatpush1.bf16.msra.mxu0 %v13563_v40  ;;  %v7877_v40 = vld [vmem:[#allocation8 + $0x1110] sm:$0xff] }
 0x4e3   :  { %8274 = vmatprep.subr.bf16.mxu0 %v13572_v3  ;;  %v7870_v3 = vld [vmem:[#allocation8 + $0x10d8] sm:$0xff]  ;;  %v13582_v10 = vcombine.high %v7877_v40, %v7881_v23  ;;  %v13581_v51 = vcombine.low %v7877_v40, %v7881_v23  ;;  %v8421_v40 = vld [vmem:[#allocation8 + $0x12a8] sm:$0xff] }
 0x4e4   :  { %8236 = vmatpush1.bf16.msra.mxu1 %v13577_v31  ;;  %v13576_v31 = vcombine.high %v7870_v3, %v7874_v48  ;;  %v13575_v42 = vcombine.low %v7870_v3, %v7874_v48 }
 0x4e5   :  { %8237 = vmatprep.subr.bf16.mxu1 %v13586_v60  ;;  %v7889_v60 = vld [vmem:[#allocation8 + $0x1170] sm:$0xff] }
 0x4e6   :  { %8275 = vmatpush1.bf16.msra.mxu0 %v13571_v25  ;;  %v7885_v25 = vld [vmem:[#allocation8 + $0x1150] sm:$0xff] }
 0x4e7   :  { %8276 = vmatprep.subr.bf16.mxu0 %v13580_v21  ;;  %v7878_v21 = vld [vmem:[#allocation8 + $0x1118] sm:$0xff]  ;;  %v13590_v32 = vcombine.high %v7885_v25, %v7889_v60  ;;  %v13589_v24 = vcombine.low %v7885_v25, %v7889_v60  ;;  %v8429_v25 = vld [vmem:[#allocation8 + $0x12e8] sm:$0xff] }
 0x4e8   :  { %8238 = vmatpush1.bf16.msra.mxu1 %v13585_v56  ;;  %v13584_v56 = vcombine.high %v7878_v21, %v7882_v45  ;;  %v13583_v54 = vcombine.low %v7878_v21, %v7882_v45 }
 0x4e9   :  { %8239 = vmatprep.subr.bf16.mxu1 %v13594_v35  ;;  %v7897_v35 = vld [vmem:[#allocation8 + $0x11b0] sm:$0xff] }
 0x4ea   :  { %8277 = vmatpush1.bf16.msra.mxu0 %v13579_v44  ;;  %v7893_v44 = vld [vmem:[#allocation8 + $0x1190] sm:$0xff] }
 0x4eb   :  { %8278 = vmatprep.subr.bf16.mxu0 %v13588_v36  ;;  %v7886_v36 = vld [vmem:[#allocation8 + $0x1158] sm:$0xff]  ;;  %v13598_v22 = vcombine.high %v7893_v44, %v7897_v35  ;;  %v13597_v33 = vcombine.low %v7893_v44, %v7897_v35  ;;  %v8437_v44 = vld [vmem:[#allocation8 + $0x1328] sm:$0xff] }
 0x4ec   :  { %8240 = vmatpush1.bf16.msra.mxu1 %v13593_v55  ;;  %v13592_v55 = vcombine.high %v7886_v36, %v7890_v58  ;;  %v13591_v46 = vcombine.low %v7886_v36, %v7890_v58 }
 0x4ed   :  { %8241 = vmatprep.subr.bf16.mxu1 %v13602_v34  ;;  %v7905_v34 = vld [vmem:[#allocation8 + $0x11f0] sm:$0xff] }
 0x4ee   :  { %8279 = vmatpush1.bf16.msra.mxu0 %v13587_v26  ;;  %v7901_v26 = vld [vmem:[#allocation8 + $0x11d0] sm:$0xff] }
 0x4ef   :  { %8280 = vmatprep.subr.bf16.mxu0 %v13596_v8  ;;  %v7894_v8 = vld [vmem:[#allocation8 + $0x1198] sm:$0xff]  ;;  %v13606_v11 = vcombine.high %v7901_v26, %v7905_v34  ;;  %v13605_v30 = vcombine.low %v7901_v26, %v7905_v34  ;;  %v8445_v26 = vld [vmem:[#allocation8 + $0x1368] sm:$0xff] }
 0x4f0   :  { %8242 = vmatpush1.bf16.msra.mxu1 %v13601_v0  ;;  %v13600_v0 = vcombine.high %v7894_v8, %v7898_v14  ;;  %v13599_v20 = vcombine.low %v7894_v8, %v7898_v14 }
 0x4f1   :  { %8309 = vmatprep.subr.bf16.mxu1 %v13550_v18  ;;  %v8404_v18 = vld [vmem:[#allocation8 + $0x1220] sm:$0xff] }
 0x4f2   :  { %8281 = vmatpush1.bf16.msra.mxu0 %v13595_v52  ;;  %v8400_v52 = vld [vmem:[#allocation8 + $0x1200] sm:$0xff] }
 0x4f3   :  { %8282 = vmatprep.subr.bf16.mxu0 %v13604_v29  ;;  %8260 = vmatmul.mubr.bf16.vlgmr.msra.gmra.mrb[0].mxu1 %v17106_v5  ;;  %v7902_v29 = vld [vmem:[#allocation8 + $0x11d8] sm:$0xff]  ;;  %v13610_v28 = vcombine.high %v8400_v52, %v8404_v18  ;;  %v13609_v6 = vcombine.low %v8400_v52, %v8404_v18  ;;  %v8453_v52 = vld [vmem:[#allocation8 + $0x13a8] sm:$0xff] }
 0x4f4   :  { %8310 = vmatpush1.bf16.msra.mxu1 %v13549_v7  ;;  %8341 = vmatprep.mubr.bf16.mxu1 %v14762_v59  ;;  %v13608_v7 = vcombine.high %v7902_v29, %v7906_v49  ;;  %v13607_v16 = vcombine.low %v7902_v29, %v7906_v49 }
 0x4f5   :  { %8311 = vmatprep.subr.bf16.mxu1 %v13558_v15  ;;  %v8412_v15 = vld [vmem:[#allocation8 + $0x1260] sm:$0xff] }
 0x4f6   :  { %8283 = vmatpush1.bf16.msra.mxu0 %v13603_v17  ;;  %v8408_v17 = vld [vmem:[#allocation8 + $0x1240] sm:$0xff] }
 0x4f7   :  { %8350 = vmatprep.subr.bf16.mxu0 %v13552_v47  ;;  %v8401_v47 = vld [vmem:[#allocation8 + $0x1208] sm:$0xff]  ;;  %v13618_v4 = vcombine.high %v8408_v17, %v8412_v15  ;;  %v13617_v12 = vcombine.low %v8408_v17, %v8412_v15 }
 0x4f8   :  { %8312 = vmatpush1.bf16.msra.mxu1 %v13557_v57  ;;  %v13612_v57 = vcombine.high %v8401_v47, %v8405_v1  ;;  %v13611_v2 = vcombine.low %v8401_v47, %v8405_v1  ;;  %v8461_v17 = vld [vmem:[#allocation8 + $0x13e8] sm:$0xff] }
 0x4f9   :  { %8301 = vmatmul.mubr.bf16.vlgmr.msra.gmra.mrb[16].mxu0 %v17106_v5  ;;  %8313 = vmatprep.subr.bf16.mxu1 %v13566_v38  ;;  %v8420_v38 = vld [vmem:[#allocation8 + $0x12a0] sm:$0xff] }
 0x4fa   :  { %8351 = vmatpush1.bf16.msra.mxu0 %v13551_v9  ;;  %8382 = vmatprep.mubr.bf16.mxu0 %v14762_v59  ;;  %v8416_v9 = vld [vmem:[#allocation8 + $0x1280] sm:$0xff] }
 0x4fb   :  { %8352 = vmatprep.subr.bf16.mxu0 %v13560_v39  ;;  %v8409_v39 = vld [vmem:[#allocation8 + $0x1248] sm:$0xff]  ;;  %v13626_v27 = vcombine.high %v8416_v9, %v8420_v38  ;;  %v13625_v23 = vcombine.low %v8416_v9, %v8420_v38  ;;  %v8407_v9 = vld [vmem:[#allocation8 + $0x1238] sm:$0xff] }
 0x4fc   :  { %8314 = vmatpush1.bf16.msra.mxu1 %v13565_v61  ;;  %v13620_v61 = vcombine.high %v8409_v39, %v8413_v50  ;;  %v13619_v3 = vcombine.low %v8409_v39, %v8413_v50  ;;  %v17182_v50 = vrot.slane %v17106_v5, 4 }
 0x4fd   :  { %8315 = vmatprep.subr.bf16.mxu1 %v13574_v19  ;;  %v8428_v19 = vld [vmem:[#allocation8 + $0x12e0] sm:$0xff] }
 0x4fe   :  { %8353 = vmatpush1.bf16.msra.mxu0 %v13559_v41  ;;  %v8424_v41 = vld [vmem:[#allocation8 + $0x12c0] sm:$0xff] }
 0x4ff   :  { %8354 = vmatprep.subr.bf16.mxu0 %v13568_v43  ;;  %v8417_v43 = vld [vmem:[#allocation8 + $0x1288] sm:$0xff]  ;;  %v13634_v48 = vcombine.high %v8424_v41, %v8428_v19  ;;  %v13633_v60 = vcombine.low %v8424_v41, %v8428_v19  ;;  %v8411_v41 = vld [vmem:[#allocation8 + $0x1258] sm:$0xff] }
 0x500   :  { %8316 = vmatpush1.bf16.msra.mxu1 %v13573_v63  ;;  %v13628_v63 = vcombine.high %v8417_v43, %v8421_v40  ;;  %v13627_v21 = vcombine.low %v8417_v43, %v8421_v40  ;;  %v8415_v19 = vld [vmem:[#allocation8 + $0x1278] sm:$0xff] }
 0x501   :  { %8317 = vmatprep.subr.bf16.mxu1 %v13582_v10  ;;  %v8436_v10 = vld [vmem:[#allocation8 + $0x1320] sm:$0xff] }
 0x502   :  { %8355 = vmatpush1.bf16.msra.mxu0 %v13567_v53  ;;  %v8432_v53 = vld [vmem:[#allocation8 + $0x1300] sm:$0xff] }
 0x503   :  { %8356 = vmatprep.subr.bf16.mxu0 %v13576_v31  ;;  %v8425_v31 = vld [vmem:[#allocation8 + $0x12c8] sm:$0xff]  ;;  %v13642_v45 = vcombine.high %v8432_v53, %v8436_v10  ;;  %v13641_v35 = vcombine.low %v8432_v53, %v8436_v10  ;;  %v8423_v53 = vld [vmem:[#allocation8 + $0x12b8] sm:$0xff] }
 0x504   :  { %8318 = vmatpush1.bf16.msra.mxu1 %v13581_v51  ;;  %v13636_v51 = vcombine.high %v8425_v31, %v8429_v25  ;;  %v13635_v36 = vcombine.low %v8425_v31, %v8429_v25  ;;  %v13623_v31 = vcombine.low %v8411_v41, %v8415_v19 }
 0x505   :  { %8319 = vmatprep.subr.bf16.mxu1 %v13590_v32  ;;  %v8444_v32 = vld [vmem:[#allocation8 + $0x1360] sm:$0xff] }
 0x506   :  { %8357 = vmatpush1.bf16.msra.mxu0 %v13575_v42  ;;  %v8440_v42 = vld [vmem:[#allocation8 + $0x1340] sm:$0xff] }
 0x507   :  { %8358 = vmatprep.subr.bf16.mxu0 %v13584_v56  ;;  %v8433_v56 = vld [vmem:[#allocation8 + $0x1308] sm:$0xff]  ;;  %v13650_v58 = vcombine.high %v8440_v42, %v8444_v32  ;;  %v13649_v34 = vcombine.low %v8440_v42, %v8444_v32  ;;  %v8431_v42 = vld [vmem:[#allocation8 + $0x12f8] sm:$0xff] }
 0x508   :  { %8320 = vmatpush1.bf16.msra.mxu1 %v13589_v24  ;;  %v13644_v24 = vcombine.high %v8433_v56, %v8437_v44  ;;  %v13643_v8 = vcombine.low %v8433_v56, %v8437_v44 }
 0x509   :  { %8321 = vmatprep.subr.bf16.mxu1 %v13598_v22  ;;  %v8452_v22 = vld [vmem:[#allocation8 + $0x13a0] sm:$0xff] }
 0x50a   :  { %8359 = vmatpush1.bf16.msra.mxu0 %v13583_v54  ;;  %v8448_v54 = vld [vmem:[#allocation8 + $0x1380] sm:$0xff] }
 0x50b   :  { %8360 = vmatprep.subr.bf16.mxu0 %v13592_v55  ;;  %v8441_v55 = vld [vmem:[#allocation8 + $0x1348] sm:$0xff]  ;;  %v13658_v14 = vcombine.high %v8448_v54, %v8452_v22  ;;  %v13657_v18 = vcombine.low %v8448_v54, %v8452_v22  ;;  %v8439_v54 = vld [vmem:[#allocation8 + $0x1338] sm:$0xff] }
 0x50c   :  { %8322 = vmatpush1.bf16.msra.mxu1 %v13597_v33  ;;  %v13652_v33 = vcombine.high %v8441_v55, %v8445_v26  ;;  %v13651_v29 = vcombine.low %v8441_v55, %v8445_v26 }
 0x50d   :  { %8323 = vmatprep.subr.bf16.mxu1 %v13606_v11  ;;  %v8460_v11 = vld [vmem:[#allocation8 + $0x13e0] sm:$0xff] }
 0x50e   :  { %8361 = vmatpush1.bf16.msra.mxu0 %v13591_v46  ;;  %v8456_v46 = vld [vmem:[#allocation8 + $0x13c0] sm:$0xff] }
 0x50f   :  { %8362 = vmatprep.subr.bf16.mxu0 %v13600_v0  ;;  %v8449_v0 = vld [vmem:[#allocation8 + $0x1388] sm:$0xff]  ;;  %v13666_v49 = vcombine.high %v8456_v46, %v8460_v11  ;;  %v13665_v15 = vcombine.low %v8456_v46, %v8460_v11  ;;  %v8447_v46 = vld [vmem:[#allocation8 + $0x1378] sm:$0xff] }
 0x510   :  { %8324 = vmatpush1.bf16.msra.mxu1 %v13605_v30  ;;  %v13660_v30 = vcombine.high %v8449_v0, %v8453_v52  ;;  %v13659_v47 = vcombine.low %v8449_v0, %v8453_v52 }
 0x511   :  { %8787 = vmatprep.subr.bf16.mxu1 %v13610_v28  ;;  %v8406_v28 = vld [vmem:[#allocation8 + $0x1230] sm:$0xff] }
 0x512   :  { %8363 = vmatpush1.bf16.msra.mxu0 %v13599_v20  ;;  %v8402_v20 = vld [vmem:[#allocation8 + $0x1210] sm:$0xff] }
 0x513   :  { %8364 = vmatprep.subr.bf16.mxu0 %v13608_v7  ;;  %8342 = vmatmul.mubr.bf16.vlgmr.msra.gmra.mrb[4].mxu1 %v17106_v5  ;;  %v8457_v7 = vld [vmem:[#allocation8 + $0x13c8] sm:$0xff]  ;;  %v13614_v1 = vcombine.high %v8402_v20, %v8406_v28  ;;  %v13613_v38 = vcombine.low %v8402_v20, %v8406_v28  ;;  %v8455_v20 = vld [vmem:[#allocation8 + $0x13b8] sm:$0xff] }
 0x514   :  { %8788 = vmatpush1.bf16.msra.mxu1 %v13609_v6  ;;  %8819 = vmatprep.mubr.bf16.mxu1 %v14762_v59  ;;  %v13668_v6 = vcombine.high %v8457_v7, %v8461_v17  ;;  %v13667_v39 = vcombine.low %v8457_v7, %v8461_v17 }
 0x515   :  { %8789 = vmatprep.subr.bf16.mxu1 %v13618_v4  ;;  %v8414_v4 = vld [vmem:[#allocation8 + $0x1270] sm:$0xff] }
 0x516   :  { %8365 = vmatpush1.bf16.msra.mxu0 %v13607_v16  ;;  %v8410_v16 = vld [vmem:[#allocation8 + $0x1250] sm:$0xff] }
 0x517   :  { %8828 = vmatprep.subr.bf16.mxu0 %v13612_v57  ;;  %v8403_v57 = vld [vmem:[#allocation8 + $0x1218] sm:$0xff]  ;;  %v13621_v43 = vcombine.low %v8410_v16, %v8414_v4 }
 0x518   :  { %8790 = vmatpush1.bf16.msra.mxu1 %v13617_v12  ;;  %v13622_v12 = vcombine.high %v8410_v16, %v8414_v4  ;;  %v13615_v40 = vcombine.low %v8403_v57, %v8407_v9  ;;  %v8463_v16 = vld [vmem:[#allocation8 + $0x13f8] sm:$0xff] }
 0x519   :  { %8383 = vmatmul.mubr.bf16.vlgmr.msra.gmra.mrb[20].mxu0 %v17106_v5  ;;  %8791 = vmatprep.subr.bf16.mxu1 %v13626_v27  ;;  %v8418_v27 = vld [vmem:[#allocation8 + $0x1290] sm:$0xff]  ;;  %v13624_v5 = vcombine.high %v8411_v41, %v8415_v19 }
 0x51a   :  { %8829 = vmatpush1.bf16.msra.mxu0 %v13611_v2  ;;  %8860 = vmatprep.mubr.bf16.mxu0 %v14762_v59  ;;  %v13616_v2 = vcombine.high %v8403_v57, %v8407_v9 }
 0x51b   :  { %8830 = vmatprep.subr.bf16.mxu0 %v13620_v61  ;;  %v8422_v61 = vld [vmem:[#allocation8 + $0x12b0] sm:$0xff] }
 0x51c   :  { %8792 = vmatpush1.bf16.msra.mxu1 %v13625_v23  ;;  %v13630_v23 = vcombine.high %v8418_v27, %v8422_v61  ;;  %v13629_v10 = vcombine.low %v8418_v27, %v8422_v61  ;;  %v8965_v27 = vld [vmem:[#allocation8 + $0x1428] sm:$0xff] }
 0x51d   :  { %8793 = vmatprep.subr.bf16.mxu1 %v13634_v48  ;;  %v8430_v48 = vld [vmem:[#allocation8 + $0x12f0] sm:$0xff] }
 0x51e   :  { %8831 = vmatpush1.bf16.msra.mxu0 %v13619_v3  ;;  %v8426_v3 = vld [vmem:[#allocation8 + $0x12d0] sm:$0xff] }
 0x51f   :  { %8832 = vmatprep.subr.bf16.mxu0 %v13628_v63  ;;  %v8419_v63 = vld [vmem:[#allocation8 + $0x1298] sm:$0xff]  ;;  %v13638_v25 = vcombine.high %v8426_v3, %v8430_v48  ;;  %v13637_v32 = vcombine.low %v8426_v3, %v8430_v48  ;;  %v8973_v3 = vld [vmem:[#allocation8 + $0x1468] sm:$0xff] }
 0x520   :  { %8794 = vmatpush1.bf16.msra.mxu1 %v13633_v60  ;;  %v13632_v60 = vcombine.high %v8419_v63, %v8423_v53  ;;  %v13631_v56 = vcombine.low %v8419_v63, %v8423_v53 }
 0x521   :  { %8795 = vmatprep.subr.bf16.mxu1 %v13642_v45  ;;  %v8438_v45 = vld [vmem:[#allocation8 + $0x1330] sm:$0xff] }
 0x522   :  { %8833 = vmatpush1.bf16.msra.mxu0 %v13627_v21  ;;  %v8434_v21 = vld [vmem:[#allocation8 + $0x1310] sm:$0xff] }
 0x523   :  { %8834 = vmatprep.subr.bf16.mxu0 %v13636_v51  ;;  %v8427_v51 = vld [vmem:[#allocation8 + $0x12d8] sm:$0xff]  ;;  %v13646_v44 = vcombine.high %v8434_v21, %v8438_v45  ;;  %v13645_v22 = vcombine.low %v8434_v21, %v8438_v45  ;;  %v8981_v21 = vld [vmem:[#allocation8 + $0x14a8] sm:$0xff] }
 0x524   :  { %8796 = vmatpush1.bf16.msra.mxu1 %v13641_v35  ;;  %v13640_v35 = vcombine.high %v8427_v51, %v8431_v42  ;;  %v13639_v55 = vcombine.low %v8427_v51, %v8431_v42 }
 0x525   :  { %8797 = vmatprep.subr.bf16.mxu1 %v13650_v58  ;;  %v8446_v58 = vld [vmem:[#allocation8 + $0x1370] sm:$0xff] }
 0x526   :  { %8835 = vmatpush1.bf16.msra.mxu0 %v13635_v36  ;;  %v8442_v36 = vld [vmem:[#allocation8 + $0x1350] sm:$0xff] }
 0x527   :  { %8836 = vmatprep.subr.bf16.mxu0 %v13644_v24  ;;  %v8435_v24 = vld [vmem:[#allocation8 + $0x1318] sm:$0xff]  ;;  %v13654_v26 = vcombine.high %v8442_v36, %v8446_v58  ;;  %v13653_v11 = vcombine.low %v8442_v36, %v8446_v58  ;;  %v8989_v36 = vld [vmem:[#allocation8 + $0x14e8] sm:$0xff] }
 0x528   :  { %8798 = vmatpush1.bf16.msra.mxu1 %v13649_v34  ;;  %v13648_v34 = vcombine.high %v8435_v24, %v8439_v54  ;;  %v13647_v0 = vcombine.low %v8435_v24, %v8439_v54 }
 0x529   :  { %8799 = vmatprep.subr.bf16.mxu1 %v13658_v14  ;;  %v8454_v14 = vld [vmem:[#allocation8 + $0x13b0] sm:$0xff] }
 0x52a   :  { %8837 = vmatpush1.bf16.msra.mxu0 %v13643_v8  ;;  %v8450_v8 = vld [vmem:[#allocation8 + $0x1390] sm:$0xff] }
 0x52b   :  { %8838 = vmatprep.subr.bf16.mxu0 %v13652_v33  ;;  %v8443_v33 = vld [vmem:[#allocation8 + $0x1358] sm:$0xff]  ;;  %v13662_v52 = vcombine.high %v8450_v8, %v8454_v14  ;;  %v13661_v28 = vcombine.low %v8450_v8, %v8454_v14 }
 0x52c   :  { %8800 = vmatpush1.bf16.msra.mxu1 %v13657_v18  ;;  %v13656_v18 = vcombine.high %v8443_v33, %v8447_v46  ;;  %v13655_v7 = vcombine.low %v8443_v33, %v8447_v46 }
 0x52d   :  { %8801 = vmatprep.subr.bf16.mxu1 %v13666_v49  ;;  %v8462_v49 = vld [vmem:[#allocation8 + $0x13f0] sm:$0xff] }
 0x52e   :  { %8839 = vmatpush1.bf16.msra.mxu0 %v13651_v29  ;;  %v8458_v29 = vld [vmem:[#allocation8 + $0x13d0] sm:$0xff] }
 0x52f   :  { %8840 = vmatprep.subr.bf16.mxu0 %v13660_v30  ;;  %v8451_v30 = vld [vmem:[#allocation8 + $0x1398] sm:$0xff]  ;;  %v13670_v17 = vcombine.high %v8458_v29, %v8462_v49  ;;  %v13669_v4 = vcombine.low %v8458_v29, %v8462_v49 }
 0x530   :  { %8802 = vmatpush1.bf16.msra.mxu1 %v13665_v15  ;;  %v13664_v15 = vcombine.high %v8451_v30, %v8455_v20  ;;  %v13663_v57 = vcombine.low %v8451_v30, %v8455_v20 }
 0x531   :  { %8869 = vmatprep.subr.bf16.mxu1 %v13614_v1  ;;  %v8964_v1 = vld [vmem:[#allocation8 + $0x1420] sm:$0xff] }
 0x532   :  { %8841 = vmatpush1.bf16.msra.mxu0 %v13659_v47  ;;  %v8960_v47 = vld [vmem:[#allocation8 + $0x1400] sm:$0xff] }
 0x533   :  { %8842 = vmatprep.subr.bf16.mxu0 %v13668_v6  ;;  %8820 = vmatmul.mubr.bf16.vlgmr.msra.gmra.mrb[0].mxu1 %v17182_v50  ;;  %v8459_v6 = vld [vmem:[#allocation8 + $0x13d8] sm:$0xff]  ;;  %v13674_v9 = vcombine.high %v8960_v47, %v8964_v1  ;;  %v13673_v61 = vcombine.low %v8960_v47, %v8964_v1 }
 0x534   :  { %8870 = vmatpush1.bf16.msra.mxu1 %v13613_v38  ;;  %8901 = vmatprep.mubr.bf16.mxu1 %v14762_v59  ;;  %v13672_v38 = vcombine.high %v8459_v6, %v8463_v16  ;;  %v13671_v41 = vcombine.low %v8459_v6, %v8463_v16 }
 0x535   :  { %8871 = vmatprep.subr.bf16.mxu1 %v13622_v12  ;;  %v8972_v12 = vld [vmem:[#allocation8 + $0x1460] sm:$0xff] }
 0x536   :  { %8843 = vmatpush1.bf16.msra.mxu0 %v13667_v39  ;;  %v8968_v39 = vld [vmem:[#allocation8 + $0x1440] sm:$0xff] }
 0x537   :  { %8910 = vmatprep.subr.bf16.mxu0 %v13616_v2  ;;  %v8961_v2 = vld [vmem:[#allocation8 + $0x1408] sm:$0xff]  ;;  %v13682_v19 = vcombine.high %v8968_v39, %v8972_v12  ;;  %v13681_v48 = vcombine.low %v8968_v39, %v8972_v12 }
 0x538   :  { %8872 = vmatpush1.bf16.msra.mxu1 %v13621_v43  ;;  %v13676_v43 = vcombine.high %v8961_v2, %v8965_v27  ;;  %v13675_v63 = vcombine.low %v8961_v2, %v8965_v27 }
 0x539   :  { %8861 = vmatmul.mubr.bf16.vlgmr.msra.gmra.mrb[16].mxu0 %v17182_v50  ;;  %8873 = vmatprep.subr.bf16.mxu1 %v13630_v23  ;;  %v8980_v23 = vld [vmem:[#allocation8 + $0x14a0] sm:$0xff] }
 0x53a   :  { %8911 = vmatpush1.bf16.msra.mxu0 %v13615_v40  ;;  %8942 = vmatprep.mubr.bf16.mxu0 %v14762_v59  ;;  %v8976_v40 = vld [vmem:[#allocation8 + $0x1480] sm:$0xff] }
 0x53b   :  { %8912 = vmatprep.subr.bf16.mxu0 %v13624_v5  ;;  %v8969_v5 = vld [vmem:[#allocation8 + $0x1448] sm:$0xff]  ;;  %v13690_v53 = vcombine.high %v8976_v40, %v8980_v23  ;;  %v13689_v45 = vcombine.low %v8976_v40, %v8980_v23 }
 0x53c   :  { %8874 = vmatpush1.bf16.msra.mxu1 %v13629_v10  ;;  %v13684_v10 = vcombine.high %v8969_v5, %v8973_v3  ;;  %v13683_v51 = vcombine.low %v8969_v5, %v8973_v3 }
 0x53d   :  { %8875 = vmatprep.subr.bf16.mxu1 %v13638_v25  ;;  %v8988_v25 = vld [vmem:[#allocation8 + $0x14e0] sm:$0xff] }
 0x53e   :  { %8913 = vmatpush1.bf16.msra.mxu0 %v13623_v31  ;;  %v8984_v31 = vld [vmem:[#allocation8 + $0x14c0] sm:$0xff] }
 0x53f   :  { %8914 = vmatprep.subr.bf16.mxu0 %v13632_v60  ;;  %v8977_v60 = vld [vmem:[#allocation8 + $0x1488] sm:$0xff]  ;;  %v13698_v42 = vcombine.high %v8984_v31, %v8988_v25  ;;  %v13697_v58 = vcombine.low %v8984_v31, %v8988_v25 }
 0x540   :  { %8876 = vmatpush1.bf16.msra.mxu1 %v13637_v32  ;;  %v13692_v32 = vcombine.high %v8977_v60, %v8981_v21  ;;  %v13691_v24 = vcombine.low %v8977_v60, %v8981_v21 }
 0x541   :  { %8877 = vmatprep.subr.bf16.mxu1 %v13646_v44  ;;  %v8996_v44 = vld [vmem:[#allocation8 + $0x1520] sm:$0xff] }
 0x542   :  { %8915 = vmatpush1.bf16.msra.mxu0 %v13631_v56  ;;  %v8992_v56 = vld [vmem:[#allocation8 + $0x1500] sm:$0xff] }
 0x543   :  { %8916 = vmatprep.subr.bf16.mxu0 %v13640_v35  ;;  %v8985_v35 = vld [vmem:[#allocation8 + $0x14c8] sm:$0xff]  ;;  %v13705_v8 = vcombine.low %v8992_v56, %v8996_v44 }
 0x544   :  { %8878 = vmatpush1.bf16.msra.mxu1 %v13645_v22  ;;  %v13700_v54 = vcombine.high %v8985_v35, %v8989_v36  ;;  %v9000_v22 = vld [vmem:[#allocation8 + $0x1540] sm:$0xff]  ;;  %v13699_v14 = vcombine.low %v8985_v35, %v8989_v36 }
 0x545   :  { %8879 = vmatprep.subr.bf16.mxu1 %v13654_v26  ;;  %v8993_v26 = vld [vmem:[#allocation8 + $0x1508] sm:$0xff] }
 0x546   :  { %8917 = vmatpush1.bf16.msra.mxu0 %v13639_v55  ;;  %v9004_v55 = vld [vmem:[#allocation8 + $0x1560] sm:$0xff] }
 0x547   :  { %8918 = vmatprep.subr.bf16.mxu0 %v13648_v34  ;;  %v8997_v34 = vld [vmem:[#allocation8 + $0x1528] sm:$0xff]  ;;  %v13714_v33 = vcombine.high %v9000_v22, %v9004_v55  ;;  %v13713_v29 = vcombine.low %v9000_v22, %v9004_v55 }
 0x548   :  { %8880 = vmatpush1.bf16.msra.mxu1 %v13653_v11  ;;  %v13708_v46 = vcombine.high %v8993_v26, %v8997_v34  ;;  %v9008_v11 = vld [vmem:[#allocation8 + $0x1580] sm:$0xff]  ;;  %v13707_v49 = vcombine.low %v8993_v26, %v8997_v34 }
 0x549   :  { %8881 = vmatprep.subr.bf16.mxu1 %v13662_v52  ;;  %v9001_v52 = vld [vmem:[#allocation8 + $0x1548] sm:$0xff] }
 0x54a   :  { %8919 = vmatpush1.bf16.msra.mxu0 %v13647_v0  ;;  %v9012_v0 = vld [vmem:[#allocation8 + $0x15a0] sm:$0xff] }
 0x54b   :  { %8920 = vmatprep.subr.bf16.mxu0 %v13656_v18  ;;  %v9005_v18 = vld [vmem:[#allocation8 + $0x1568] sm:$0xff]  ;;  %v13722_v30 = vcombine.high %v9008_v11, %v9012_v0  ;;  %v13721_v47 = vcombine.low %v9008_v11, %v9012_v0 }
 0x54c   :  { %8882 = vmatpush1.bf16.msra.mxu1 %v13661_v28  ;;  %v13716_v20 = vcombine.high %v9001_v52, %v9005_v18  ;;  %v9016_v28 = vld [vmem:[#allocation8 + $0x15c0] sm:$0xff]  ;;  %v13715_v1 = vcombine.low %v9001_v52, %v9005_v18 }
 0x54d   :  { %8883 = vmatprep.subr.bf16.mxu1 %v13670_v17  ;;  %v9009_v17 = vld [vmem:[#allocation8 + $0x1588] sm:$0xff] }
 0x54e   :  { %8921 = vmatpush1.bf16.msra.mxu0 %v13655_v7  ;;  %v9020_v7 = vld [vmem:[#allocation8 + $0x15e0] sm:$0xff] }
 0x54f   :  { %8922 = vmatprep.subr.bf16.mxu0 %v13664_v15  ;;  %v9013_v15 = vld [vmem:[#allocation8 + $0x15a8] sm:$0xff]  ;;  %v13730_v6 = vcombine.high %v9016_v28, %v9020_v7  ;;  %v13729_v39 = vcombine.low %v9016_v28, %v9020_v7 }
 0x550   :  { %8884 = vmatpush1.bf16.msra.mxu1 %v13669_v4  ;;  %v13724_v16 = vcombine.high %v9009_v17, %v9013_v15  ;;  %v8962_v4 = vld [vmem:[#allocation8 + $0x1410] sm:$0xff]  ;;  %v13723_v12 = vcombine.low %v9009_v17, %v9013_v15 }
 0x551   :  { %9344 = vmatprep.subr.bf16.mxu1 %v13674_v9  ;;  %v9017_v9 = vld [vmem:[#allocation8 + $0x15c8] sm:$0xff] }
 0x552   :  { %8923 = vmatpush1.bf16.msra.mxu0 %v13663_v57  ;;  %v8966_v57 = vld [vmem:[#allocation8 + $0x1430] sm:$0xff] }
 0x553   :  { %8924 = vmatprep.subr.bf16.mxu0 %v13672_v38  ;;  %8902 = vmatmul.mubr.bf16.vlgmr.msra.gmra.mrb[4].mxu1 %v17182_v50  ;;  %v9021_v38 = vld [vmem:[#allocation8 + $0x15e8] sm:$0xff]  ;;  %v13678_v2 = vcombine.high %v8962_v4, %v8966_v57  ;;  %v13677_v40 = vcombine.low %v8962_v4, %v8966_v57 }
 0x554   :  { %9345 = vmatpush1.bf16.msra.mxu1 %v13673_v61  ;;  %9376 = vmatprep.mubr.bf16.mxu1 %v14762_v59  ;;  %v13732_v27 = vcombine.high %v9017_v9, %v9021_v38  ;;  %v8970_v61 = vld [vmem:[#allocation8 + $0x1450] sm:$0xff]  ;;  %v13731_v23 = vcombine.low %v9017_v9, %v9021_v38 }
 0x555   :  { %9346 = vmatprep.subr.bf16.mxu1 %v13682_v19  ;;  %v8963_v19 = vld [vmem:[#allocation8 + $0x1418] sm:$0xff] }
 0x556   :  { %8925 = vmatpush1.bf16.msra.mxu0 %v13671_v41  ;;  %v8974_v41 = vld [vmem:[#allocation8 + $0x1470] sm:$0xff] }
 0x557   :  { %9385 = vmatprep.subr.bf16.mxu0 %v13676_v43  ;;  %v8967_v43 = vld [vmem:[#allocation8 + $0x1438] sm:$0xff]  ;;  %v13686_v5 = vcombine.high %v8970_v61, %v8974_v41  ;;  %v13685_v31 = vcombine.low %v8970_v61, %v8974_v41 }
 0x558   :  { %9347 = vmatpush1.bf16.msra.mxu1 %v13681_v48  ;;  %v13680_v3 = vcombine.high %v8963_v19, %v8967_v43  ;;  %v8978_v48 = vld [vmem:[#allocation8 + $0x1490] sm:$0xff]  ;;  %v13679_v25 = vcombine.low %v8963_v19, %v8967_v43 }
 0x559   :  { %8943 = vmatmul.mubr.bf16.vlgmr.msra.gmra.mrb[20].mxu0 %v17182_v50  ;;  %9348 = vmatprep.subr.bf16.mxu1 %v13690_v53  ;;  %v13706_v50 = vcombine.high %v8992_v56, %v8996_v44  ;;  %v8971_v53 = vld [vmem:[#allocation8 + $0x1458] sm:$0xff] }
 0x55a   :  { %9386 = vmatpush1.bf16.msra.mxu0 %v13675_v63  ;;  %9417 = vmatprep.mubr.bf16.mxu0 %v14762_v59  ;;  %v8982_v63 = vld [vmem:[#allocation8 + $0x14b0] sm:$0xff] }
 0x55b   :  { %9387 = vmatprep.subr.bf16.mxu0 %v13684_v10  ;;  %v8975_v10 = vld [vmem:[#allocation8 + $0x1478] sm:$0xff]  ;;  %v13694_v60 = vcombine.high %v8978_v48, %v8982_v63  ;;  %v13693_v56 = vcombine.low %v8978_v48, %v8982_v63 }
 0x55c   :  { %9349 = vmatpush1.bf16.msra.mxu1 %v13689_v45  ;;  %v13688_v21 = vcombine.high %v8971_v53, %v8975_v10  ;;  %v8986_v45 = vld [vmem:[#allocation8 + $0x14d0] sm:$0xff]  ;;  %v13687_v44 = vcombine.low %v8971_v53, %v8975_v10 }
 0x55d   :  { %9350 = vmatprep.subr.bf16.mxu1 %v13698_v42  ;;  %v8979_v42 = vld [vmem:[#allocation8 + $0x1498] sm:$0xff] }
 0x55e   :  { %9388 = vmatpush1.bf16.msra.mxu0 %v13683_v51  ;;  %v8990_v51 = vld [vmem:[#allocation8 + $0x14f0] sm:$0xff] }
 0x55f   :  { %9389 = vmatprep.subr.bf16.mxu0 %v13692_v32  ;;  %v8983_v32 = vld [vmem:[#allocation8 + $0x14b8] sm:$0xff]  ;;  %v13702_v35 = vcombine.high %v8986_v45, %v8990_v51  ;;  %v13701_v22 = vcombine.low %v8986_v45, %v8990_v51 }
 0x560   :  { %9351 = vmatpush1.bf16.msra.mxu1 %v13697_v58  ;;  %v13696_v36 = vcombine.high %v8979_v42, %v8983_v32  ;;  %v8994_v58 = vld [vmem:[#allocation8 + $0x1510] sm:$0xff]  ;;  %v13695_v55 = vcombine.low %v8979_v42, %v8983_v32 }
 0x561   :  { %9352 = vmatprep.subr.bf16.mxu1 %v13706_v50  ;;  %v8987_v50 = vld [vmem:[#allocation8 + $0x14d8] sm:$0xff] }
 0x562   :  { %9390 = vmatpush1.bf16.msra.mxu0 %v13691_v24  ;;  %v8998_v24 = vld [vmem:[#allocation8 + $0x1530] sm:$0xff] }
 0x563   :  { %9391 = vmatprep.subr.bf16.mxu0 %v13700_v54  ;;  %v8991_v54 = vld [vmem:[#allocation8 + $0x14f8] sm:$0xff]  ;;  %v13710_v26 = vcombine.high %v8994_v58, %v8998_v24  ;;  %v13709_v11 = vcombine.low %v8994_v58, %v8998_v24 }
 0x564   :  { %9353 = vmatpush1.bf16.msra.mxu1 %v13705_v8  ;;  %v13704_v34 = vcombine.high %v8987_v50, %v8991_v54  ;;  %v9002_v8 = vld [vmem:[#allocation8 + $0x1550] sm:$0xff]  ;;  %v13703_v0 = vcombine.low %v8987_v50, %v8991_v54 }
 0x565   :  { %9354 = vmatprep.subr.bf16.mxu1 %v13714_v33  ;;  %v8995_v33 = vld [vmem:[#allocation8 + $0x1518] sm:$0xff] }
 0x566   :  { %9392 = vmatpush1.bf16.msra.mxu0 %v13699_v14  ;;  %v9006_v14 = vld [vmem:[#allocation8 + $0x1570] sm:$0xff] }
 0x567   :  { %9393 = vmatprep.subr.bf16.mxu0 %v13708_v46  ;;  %v8999_v46 = vld [vmem:[#allocation8 + $0x1538] sm:$0xff]  ;;  %v13718_v52 = vcombine.high %v9002_v8, %v9006_v14  ;;  %v13717_v28 = vcombine.low %v9002_v8, %v9006_v14 }
 0x568   :  { %9355 = vmatpush1.bf16.msra.mxu1 %v13713_v29  ;;  %v13712_v18 = vcombine.high %v8995_v33, %v8999_v46  ;;  %v9010_v29 = vld [vmem:[#allocation8 + $0x1590] sm:$0xff]  ;;  %v13711_v7 = vcombine.low %v8995_v33, %v8999_v46 }
 0x569   :  { %9356 = vmatprep.subr.bf16.mxu1 %v13722_v30  ;;  %v9003_v30 = vld [vmem:[#allocation8 + $0x1558] sm:$0xff] }
 0x56a   :  { %9394 = vmatpush1.bf16.msra.mxu0 %v13707_v49  ;;  %v9014_v49 = vld [vmem:[#allocation8 + $0x15b0] sm:$0xff] }
 0x56b   :  { %9395 = vmatprep.subr.bf16.mxu0 %v13716_v20  ;;  %v9007_v20 = vld [vmem:[#allocation8 + $0x1578] sm:$0xff]  ;;  %v13726_v17 = vcombine.high %v9010_v29, %v9014_v49  ;;  %v13725_v4 = vcombine.low %v9010_v29, %v9014_v49 }
 0x56c   :  { %9357 = vmatpush1.bf16.msra.mxu1 %v13721_v47  ;;  %v13720_v15 = vcombine.high %v9003_v30, %v9007_v20  ;;  %v9018_v47 = vld [vmem:[#allocation8 + $0x15d0] sm:$0xff]  ;;  %v13719_v57 = vcombine.low %v9003_v30, %v9007_v20 }
 0x56d   :  { %9358 = vmatprep.subr.bf16.mxu1 %v13730_v6  ;;  %v9011_v6 = vld [vmem:[#allocation8 + $0x1598] sm:$0xff] }
 0x56e   :  { %9396 = vmatpush1.bf16.msra.mxu0 %v13715_v1  ;;  %v9022_v1 = vld [vmem:[#allocation8 + $0x15f0] sm:$0xff] }
 0x56f   :  { %9397 = vmatprep.subr.bf16.mxu0 %v13724_v16  ;;  %v9015_v16 = vld [vmem:[#allocation8 + $0x15b8] sm:$0xff]  ;;  %v13734_v9 = vcombine.high %v9018_v47, %v9022_v1  ;;  %v13733_v61 = vcombine.low %v9018_v47, %v9022_v1 }
 0x570   :  { %9359 = vmatpush1.bf16.msra.mxu1 %v13729_v39  ;;  %v13728_v38 = vcombine.high %v9011_v6, %v9015_v16  ;;  %v9517_v39 = vld [vmem:[#allocation8 + $0x1600] sm:$0xff]  ;;  %v13727_v41 = vcombine.low %v9011_v6, %v9015_v16 }
 0x571   :  { %9426 = vmatprep.subr.bf16.mxu1 %v13678_v2  ;;  %v9019_v2 = vld [vmem:[#allocation8 + $0x15d8] sm:$0xff] }
 0x572   :  { %9398 = vmatpush1.bf16.msra.mxu0 %v13723_v12  ;;  %v9521_v12 = vld [vmem:[#allocation8 + $0x1620] sm:$0xff] }
 0x573   :  { %9399 = vmatprep.subr.bf16.mxu0 %v13732_v27  ;;  %9377 = vmatmul.mubr.bf16.vlgmr.msra.gmra.mrb[0].mxu1 %v17104_v13  ;;  %v9023_v27 = vld [vmem:[#allocation8 + $0x15f8] sm:$0xff]  ;;  %v13738_v19 = vcombine.high %v9517_v39, %v9521_v12  ;;  %v13737_v48 = vcombine.low %v9517_v39, %v9521_v12 }
 0x574   :  { %9427 = vmatpush1.bf16.msra.mxu1 %v13677_v40  ;;  %9458 = vmatprep.mubr.bf16.mxu1 %v14762_v59  ;;  %v13736_v43 = vcombine.high %v9019_v2, %v9023_v27  ;;  %v9525_v40 = vld [vmem:[#allocation8 + $0x1640] sm:$0xff]  ;;  %v13735_v63 = vcombine.low %v9019_v2, %v9023_v27 }
 0x575   :  { %9428 = vmatprep.subr.bf16.mxu1 %v13686_v5  ;;  %v9518_v5 = vld [vmem:[#allocation8 + $0x1608] sm:$0xff] }
 0x576   :  { %9400 = vmatpush1.bf16.msra.mxu0 %v13731_v23  ;;  %v9529_v23 = vld [vmem:[#allocation8 + $0x1660] sm:$0xff] }
 0x577   :  { %9467 = vmatprep.subr.bf16.mxu0 %v13680_v3  ;;  %v9522_v3 = vld [vmem:[#allocation8 + $0x1628] sm:$0xff]  ;;  %v13746_v53 = vcombine.high %v9525_v40, %v9529_v23  ;;  %v13745_v45 = vcombine.low %v9525_v40, %v9529_v23 }
 0x578   :  { %9429 = vmatpush1.bf16.msra.mxu1 %v13685_v31  ;;  %v13740_v10 = vcombine.high %v9518_v5, %v9522_v3  ;;  %v9533_v31 = vld [vmem:[#allocation8 + $0x1680] sm:$0xff]  ;;  %v13739_v51 = vcombine.low %v9518_v5, %v9522_v3 }
 0x579   :  { %9418 = vmatmul.mubr.bf16.vlgmr.msra.gmra.mrb[16].mxu0 %v17104_v13  ;;  %9430 = vmatprep.subr.bf16.mxu1 %v13694_v60  ;;  %v9526_v60 = vld [vmem:[#allocation8 + $0x1648] sm:$0xff] }
 0x57a   :  { %9468 = vmatpush1.bf16.msra.mxu0 %v13679_v25  ;;  %9499 = vmatprep.mubr.bf16.mxu0 %v14762_v59  ;;  %v9537_v25 = vld [vmem:[#allocation8 + $0x16a0] sm:$0xff] }
 0x57b   :  { %9469 = vmatprep.subr.bf16.mxu0 %v13688_v21  ;;  %v9530_v21 = vld [vmem:[#allocation8 + $0x1668] sm:$0xff]  ;;  %v13754_v42 = vcombine.high %v9533_v31, %v9537_v25  ;;  %v13753_v58 = vcombine.low %v9533_v31, %v9537_v25 }
 0x57c   :  { %9431 = vmatpush1.bf16.msra.mxu1 %v13693_v56  ;;  %v13748_v32 = vcombine.high %v9526_v60, %v9530_v21  ;;  %v9541_v56 = vld [vmem:[#allocation8 + $0x16c0] sm:$0xff]  ;;  %v13747_v24 = vcombine.low %v9526_v60, %v9530_v21  ;;  %v17201_v60 = vrot.slane %v17104_v13, 4 }
 0x57d   :  { %9432 = vmatprep.subr.bf16.mxu1 %v13702_v35  ;;  %v9534_v35 = vld [vmem:[#allocation8 + $0x1688] sm:$0xff] }
 0x57e   :  { %9470 = vmatpush1.bf16.msra.mxu0 %v13687_v44  ;;  %v9545_v44 = vld [vmem:[#allocation8 + $0x16e0] sm:$0xff] }
 0x57f   :  { %9471 = vmatprep.subr.bf16.mxu0 %v13696_v36  ;;  %v9538_v36 = vld [vmem:[#allocation8 + $0x16a8] sm:$0xff]  ;;  %v13762_v50 = vcombine.high %v9541_v56, %v9545_v44  ;;  %v13761_v8 = vcombine.low %v9541_v56, %v9545_v44  ;;  %v9532_v56 = vld [vmem:[#allocation8 + $0x1678] sm:$0xff] }
 0x580   :  { %9433 = vmatpush1.bf16.msra.mxu1 %v13701_v22  ;;  %v13756_v54 = vcombine.high %v9534_v35, %v9538_v36  ;;  %v9549_v22 = vld [vmem:[#allocation8 + $0x1700] sm:$0xff]  ;;  %v13755_v14 = vcombine.low %v9534_v35, %v9538_v36 }
 0x581   :  { %9434 = vmatprep.subr.bf16.mxu1 %v13710_v26  ;;  %v9542_v26 = vld [vmem:[#allocation8 + $0x16c8] sm:$0xff] }
 0x582   :  { %9472 = vmatpush1.bf16.msra.mxu0 %v13695_v55  ;;  %v9553_v55 = vld [vmem:[#allocation8 + $0x1720] sm:$0xff] }
 0x583   :  { %9473 = vmatprep.subr.bf16.mxu0 %v13704_v34  ;;  %v9546_v34 = vld [vmem:[#allocation8 + $0x16e8] sm:$0xff]  ;;  %v13770_v33 = vcombine.high %v9549_v22, %v9553_v55  ;;  %v13769_v29 = vcombine.low %v9549_v22, %v9553_v55 }
 0x584   :  { %9435 = vmatpush1.bf16.msra.mxu1 %v13709_v11  ;;  %v13764_v46 = vcombine.high %v9542_v26, %v9546_v34  ;;  %v9557_v11 = vld [vmem:[#allocation8 + $0x1740] sm:$0xff]  ;;  %v13763_v49 = vcombine.low %v9542_v26, %v9546_v34 }
 0x585   :  { %9436 = vmatprep.subr.bf16.mxu1 %v13718_v52  ;;  %v9550_v52 = vld [vmem:[#allocation8 + $0x1708] sm:$0xff] }
 0x586   :  { %9474 = vmatpush1.bf16.msra.mxu0 %v13703_v0  ;;  %v9561_v0 = vld [vmem:[#allocation8 + $0x1760] sm:$0xff] }
 0x587   :  { %9475 = vmatprep.subr.bf16.mxu0 %v13712_v18  ;;  %v9554_v18 = vld [vmem:[#allocation8 + $0x1728] sm:$0xff]  ;;  %v13778_v30 = vcombine.high %v9557_v11, %v9561_v0  ;;  %v13777_v47 = vcombine.low %v9557_v11, %v9561_v0 }
 0x588   :  { %9437 = vmatpush1.bf16.msra.mxu1 %v13717_v28  ;;  %v13772_v20 = vcombine.high %v9550_v52, %v9554_v18  ;;  %v9565_v28 = vld [vmem:[#allocation8 + $0x1780] sm:$0xff]  ;;  %v13771_v1 = vcombine.low %v9550_v52, %v9554_v18 }
 0x589   :  { %9438 = vmatprep.subr.bf16.mxu1 %v13726_v17  ;;  %v9558_v17 = vld [vmem:[#allocation8 + $0x1748] sm:$0xff] }
 0x58a   :  { %9476 = vmatpush1.bf16.msra.mxu0 %v13711_v7  ;;  %v9569_v7 = vld [vmem:[#allocation8 + $0x17a0] sm:$0xff] }
 0x58b   :  { %9477 = vmatprep.subr.bf16.mxu0 %v13720_v15  ;;  %v9562_v15 = vld [vmem:[#allocation8 + $0x1768] sm:$0xff]  ;;  %v13786_v6 = vcombine.high %v9565_v28, %v9569_v7  ;;  %v13785_v39 = vcombine.low %v9565_v28, %v9569_v7 }
 0x58c   :  { %9439 = vmatpush1.bf16.msra.mxu1 %v13725_v4  ;;  %v13780_v16 = vcombine.high %v9558_v17, %v9562_v15  ;;  %v9573_v4 = vld [vmem:[#allocation8 + $0x17c0] sm:$0xff]  ;;  %v13779_v12 = vcombine.low %v9558_v17, %v9562_v15 }
 0x58d   :  { %9440 = vmatprep.subr.bf16.mxu1 %v13734_v9  ;;  %v9566_v9 = vld [vmem:[#allocation8 + $0x1788] sm:$0xff] }
 0x58e   :  { %9478 = vmatpush1.bf16.msra.mxu0 %v13719_v57  ;;  %v9577_v57 = vld [vmem:[#allocation8 + $0x17e0] sm:$0xff] }
 0x58f   :  { %9479 = vmatprep.subr.bf16.mxu0 %v13728_v38  ;;  %v9570_v38 = vld [vmem:[#allocation8 + $0x17a8] sm:$0xff]  ;;  %v13794_v2 = vcombine.high %v9573_v4, %v9577_v57  ;;  %v13793_v40 = vcombine.low %v9573_v4, %v9577_v57 }
 0x590   :  { %9441 = vmatpush1.bf16.msra.mxu1 %v13733_v61  ;;  %v13788_v27 = vcombine.high %v9566_v9, %v9570_v38  ;;  %v9519_v61 = vld [vmem:[#allocation8 + $0x1610] sm:$0xff]  ;;  %v13787_v23 = vcombine.low %v9566_v9, %v9570_v38 }
 0x591   :  { %9904 = vmatprep.subr.bf16.mxu1 %v13738_v19  ;;  %v9574_v19 = vld [vmem:[#allocation8 + $0x17c8] sm:$0xff] }
 0x592   :  { %9480 = vmatpush1.bf16.msra.mxu0 %v13727_v41  ;;  %v9523_v41 = vld [vmem:[#allocation8 + $0x1630] sm:$0xff] }
 0x593   :  { %9481 = vmatprep.subr.bf16.mxu0 %v13736_v43  ;;  %9459 = vmatmul.mubr.bf16.vlgmr.msra.gmra.mrb[4].mxu1 %v17104_v13  ;;  %v9578_v43 = vld [vmem:[#allocation8 + $0x17e8] sm:$0xff]  ;;  %v13742_v5 = vcombine.high %v9519_v61, %v9523_v41  ;;  %v13741_v31 = vcombine.low %v9519_v61, %v9523_v41 }
 0x594   :  { %9905 = vmatpush1.bf16.msra.mxu1 %v13737_v48  ;;  %9936 = vmatprep.mubr.bf16.mxu1 %v14762_v59  ;;  %v13796_v3 = vcombine.high %v9574_v19, %v9578_v43  ;;  %v9527_v48 = vld [vmem:[#allocation8 + $0x1650] sm:$0xff]  ;;  %v13795_v25 = vcombine.low %v9574_v19, %v9578_v43 }
 0x595   :  { %9906 = vmatprep.subr.bf16.mxu1 %v13746_v53  ;;  %v9520_v53 = vld [vmem:[#allocation8 + $0x1618] sm:$0xff] }
 0x596   :  { %9482 = vmatpush1.bf16.msra.mxu0 %v13735_v63  ;;  %v9531_v63 = vld [vmem:[#allocation8 + $0x1670] sm:$0xff] }
 0x597   :  { %9945 = vmatprep.subr.bf16.mxu0 %v13740_v10  ;;  %v9524_v10 = vld [vmem:[#allocation8 + $0x1638] sm:$0xff]  ;;  %v13750_v21 = vcombine.high %v9527_v48, %v9531_v63  ;;  %v13749_v44 = vcombine.low %v9527_v48, %v9531_v63 }
 0x598   :  { %9907 = vmatpush1.bf16.msra.mxu1 %v13745_v45  ;;  %v13744_v45 = vcombine.high %v9520_v53, %v9524_v10  ;;  %v13743_v35 = vcombine.low %v9520_v53, %v9524_v10 }
 0x599   :  { %9500 = vmatmul.mubr.bf16.vlgmr.msra.gmra.mrb[20].mxu0 %v17104_v13  ;;  %9908 = vmatprep.subr.bf16.mxu1 %v13754_v42  ;;  %v9539_v42 = vld [vmem:[#allocation8 + $0x16b0] sm:$0xff] }
 0x59a   :  { %9946 = vmatpush1.bf16.msra.mxu0 %v13739_v51  ;;  %9977 = vmatprep.mubr.bf16.mxu0 %v14762_v59  ;;  %v9535_v51 = vld [vmem:[#allocation8 + $0x1690] sm:$0xff] }
 0x59b   :  { %9947 = vmatprep.subr.bf16.mxu0 %v13748_v32  ;;  %v9528_v32 = vld [vmem:[#allocation8 + $0x1658] sm:$0xff]  ;;  %v13758_v36 = vcombine.high %v9535_v51, %v9539_v42  ;;  %v13757_v22 = vcombine.low %v9535_v51, %v9539_v42 }
 0x59c   :  { %9909 = vmatpush1.bf16.msra.mxu1 %v13753_v58  ;;  %v13752_v13 = vcombine.high %v9528_v32, %v9532_v56  ;;  %v9543_v58 = vld [vmem:[#allocation8 + $0x16d0] sm:$0xff]  ;;  %v13751_v55 = vcombine.low %v9528_v32, %v9532_v56 }
 0x59d   :  { %9910 = vmatprep.subr.bf16.mxu1 %v13762_v50  ;;  %v9536_v50 = vld [vmem:[#allocation8 + $0x1698] sm:$0xff] }
 0x59e   :  { %9948 = vmatpush1.bf16.msra.mxu0 %v13747_v24  ;;  %v9547_v24 = vld [vmem:[#allocation8 + $0x16f0] sm:$0xff] }
 0x59f   :  { %9949 = vmatprep.subr.bf16.mxu0 %v13756_v54  ;;  %v9540_v54 = vld [vmem:[#allocation8 + $0x16b8] sm:$0xff]  ;;  %v13766_v26 = vcombine.high %v9543_v58, %v9547_v24  ;;  %v13765_v11 = vcombine.low %v9543_v58, %v9547_v24 }
 0x5a0   :  { %9911 = vmatpush1.bf16.msra.mxu1 %v13761_v8  ;;  %v13760_v34 = vcombine.high %v9536_v50, %v9540_v54  ;;  %v9551_v8 = vld [vmem:[#allocation8 + $0x1710] sm:$0xff]  ;;  %v13759_v0 = vcombine.low %v9536_v50, %v9540_v54 }
 0x5a1   :  { %9912 = vmatprep.subr.bf16.mxu1 %v13770_v33  ;;  %v9544_v33 = vld [vmem:[#allocation8 + $0x16d8] sm:$0xff] }
 0x5a2   :  { %9950 = vmatpush1.bf16.msra.mxu0 %v13755_v14  ;;  %v9555_v14 = vld [vmem:[#allocation8 + $0x1730] sm:$0xff] }
 0x5a3   :  { %9951 = vmatprep.subr.bf16.mxu0 %v13764_v46  ;;  %v9548_v46 = vld [vmem:[#allocation8 + $0x16f8] sm:$0xff]  ;;  %v13774_v52 = vcombine.high %v9551_v8, %v9555_v14  ;;  %v13773_v28 = vcombine.low %v9551_v8, %v9555_v14 }
 0x5a4   :  { %9913 = vmatpush1.bf16.msra.mxu1 %v13769_v29  ;;  %v13768_v18 = vcombine.high %v9544_v33, %v9548_v46  ;;  %v9559_v29 = vld [vmem:[#allocation8 + $0x1750] sm:$0xff]  ;;  %v13767_v7 = vcombine.low %v9544_v33, %v9548_v46 }
 0x5a5   :  { %9914 = vmatprep.subr.bf16.mxu1 %v13778_v30  ;;  %v9552_v30 = vld [vmem:[#allocation8 + $0x1718] sm:$0xff] }
 0x5a6   :  { %9952 = vmatpush1.bf16.msra.mxu0 %v13763_v49  ;;  %v9563_v49 = vld [vmem:[#allocation8 + $0x1770] sm:$0xff] }
 0x5a7   :  { %9953 = vmatprep.subr.bf16.mxu0 %v13772_v20  ;;  %v9556_v20 = vld [vmem:[#allocation8 + $0x1738] sm:$0xff]  ;;  %v13782_v17 = vcombine.high %v9559_v29, %v9563_v49  ;;  %v13781_v4 = vcombine.low %v9559_v29, %v9563_v49 }
 0x5a8   :  { %9915 = vmatpush1.bf16.msra.mxu1 %v13777_v47  ;;  %v13776_v15 = vcombine.high %v9552_v30, %v9556_v20  ;;  %v9567_v47 = vld [vmem:[#allocation8 + $0x1790] sm:$0xff]  ;;  %v13775_v57 = vcombine.low %v9552_v30, %v9556_v20  ;;  %v10117_v20 = vld [vmem:[#allocation8 + $0x1940] sm:$0xff] }
 0x5a9   :  { %9916 = vmatprep.subr.bf16.mxu1 %v13786_v6  ;;  %v9560_v6 = vld [vmem:[#allocation8 + $0x1758] sm:$0xff] }
 0x5aa   :  { %9954 = vmatpush1.bf16.msra.mxu0 %v13771_v1  ;;  %v9571_v1 = vld [vmem:[#allocation8 + $0x17b0] sm:$0xff] }
 0x5ab   :  { %9955 = vmatprep.subr.bf16.mxu0 %v13780_v16  ;;  %v9564_v16 = vld [vmem:[#allocation8 + $0x1778] sm:$0xff]  ;;  %v13790_v9 = vcombine.high %v9567_v47, %v9571_v1  ;;  %v13789_v61 = vcombine.low %v9567_v47, %v9571_v1 }
 0x5ac   :  { %9917 = vmatpush1.bf16.msra.mxu1 %v13785_v39  ;;  %v13784_v38 = vcombine.high %v9560_v6, %v9564_v16  ;;  %v9575_v39 = vld [vmem:[#allocation8 + $0x17d0] sm:$0xff]  ;;  %v13783_v41 = vcombine.low %v9560_v6, %v9564_v16  ;;  %v10125_v16 = vld [vmem:[#allocation8 + $0x1980] sm:$0xff] }
 0x5ad   :  { %9918 = vmatprep.subr.bf16.mxu1 %v13794_v2  ;;  %v9568_v2 = vld [vmem:[#allocation8 + $0x1798] sm:$0xff] }
 0x5ae   :  { %9956 = vmatpush1.bf16.msra.mxu0 %v13779_v12  ;;  %v9579_v12 = vld [vmem:[#allocation8 + $0x17f0] sm:$0xff] }
 0x5af   :  { %9957 = vmatprep.subr.bf16.mxu0 %v13788_v27  ;;  %v9572_v27 = vld [vmem:[#allocation8 + $0x17b8] sm:$0xff]  ;;  %v13798_v19 = vcombine.high %v9575_v39, %v9579_v12  ;;  %v13797_v48 = vcombine.low %v9575_v39, %v9579_v12 }
 0x5b0   :  { %9919 = vmatpush1.bf16.msra.mxu1 %v13793_v40  ;;  %v13792_v43 = vcombine.high %v9568_v2, %v9572_v27  ;;  %v10077_v40 = vld [vmem:[#allocation8 + $0x1800] sm:$0xff]  ;;  %v13791_v63 = vcombine.low %v9568_v2, %v9572_v27 }
 0x5b1   :  { %9986 = vmatprep.subr.bf16.mxu1 %v13742_v5  ;;  %v9576_v5 = vld [vmem:[#allocation8 + $0x17d8] sm:$0xff]  ;;  %v10133_v27 = vld [vmem:[#allocation8 + $0x19c0] sm:$0xff] }
 0x5b2   :  { %9958 = vmatpush1.bf16.msra.mxu0 %v13787_v23  ;;  %v10081_v23 = vld [vmem:[#allocation8 + $0x1820] sm:$0xff] }
 0x5b3   :  { %9959 = vmatprep.subr.bf16.mxu0 %v13796_v3  ;;  %9937 = vmatmul.mubr.bf16.vlgmr.msra.gmra.mrb[0].mxu1 %v17201_v60  ;;  %v9580_v3 = vld [vmem:[#allocation8 + $0x17f8] sm:$0xff]  ;;  %v13802_v53 = vcombine.high %v10077_v40, %v10081_v23  ;;  %v13801_v51 = vcombine.low %v10077_v40, %v10081_v23 }
 0x5b4   :  { %9987 = vmatpush1.bf16.msra.mxu1 %v13741_v31  ;;  %10018 = vmatprep.mubr.bf16.mxu1 %v14762_v59  ;;  %v13800_v10 = vcombine.high %v9576_v5, %v9580_v3  ;;  %v10085_v31 = vld [vmem:[#allocation8 + $0x1840] sm:$0xff]  ;;  %v13799_v42 = vcombine.low %v9576_v5, %v9580_v3  ;;  %v10079_v3 = vld [vmem:[#allocation8 + $0x1810] sm:$0xff] }
 0x5b5   :  { %9988 = vmatprep.subr.bf16.mxu1 %v13750_v21  ;;  %v10078_v21 = vld [vmem:[#allocation8 + $0x1808] sm:$0xff] }
 0x5b6   :  { %9960 = vmatpush1.bf16.msra.mxu0 %v13795_v25  ;;  %v10089_v25 = vld [vmem:[#allocation8 + $0x1860] sm:$0xff] }
 0x5b7   :  { %10027 = vmatprep.subr.bf16.mxu0 %v13744_v45  ;;  %v10082_v45 = vld [vmem:[#allocation8 + $0x1828] sm:$0xff]  ;;  %v13810_v32 = vcombine.high %v10085_v31, %v10089_v25  ;;  %v13809_v58 = vcombine.low %v10085_v31, %v10089_v25 }
 0x5b8   :  { %9989 = vmatpush1.bf16.msra.mxu1 %v13749_v44  ;;  %v13804_v56 = vcombine.high %v10078_v21, %v10082_v45  ;;  %v10093_v44 = vld [vmem:[#allocation8 + $0x1880] sm:$0xff]  ;;  %v13803_v24 = vcombine.low %v10078_v21, %v10082_v45  ;;  %v10087_v45 = vld [vmem:[#allocation8 + $0x1850] sm:$0xff] }
 0x5b9   :  { %9978 = vmatmul.mubr.bf16.vlgmr.msra.gmra.mrb[16].mxu0 %v17201_v60  ;;  %9990 = vmatprep.subr.bf16.mxu1 %v13758_v36  ;;  %v10086_v36 = vld [vmem:[#allocation8 + $0x1848] sm:$0xff] }
 0x5ba   :  { %10028 = vmatpush1.bf16.msra.mxu0 %v13743_v35  ;;  %10059 = vmatprep.mubr.bf16.mxu0 %v14762_v59  ;;  %v10097_v35 = vld [vmem:[#allocation8 + $0x18a0] sm:$0xff] }
 0x5bb   :  { %10029 = vmatprep.subr.bf16.mxu0 %v13752_v13  ;;  %v10090_v13 = vld [vmem:[#allocation8 + $0x1868] sm:$0xff]  ;;  %v13818_v50 = vcombine.high %v10093_v44, %v10097_v35  ;;  %v13817_v8 = vcombine.low %v10093_v44, %v10097_v35 }
 0x5bc   :  { %9991 = vmatpush1.bf16.msra.mxu1 %v13757_v22  ;;  %v13812_v54 = vcombine.high %v10086_v36, %v10090_v13  ;;  %v10101_v22 = vld [vmem:[#allocation8 + $0x18c0] sm:$0xff]  ;;  %v13811_v14 = vcombine.low %v10086_v36, %v10090_v13  ;;  %v10095_v13 = vld [vmem:[#allocation8 + $0x1890] sm:$0xff] }
 0x5bd   :  { %9992 = vmatprep.subr.bf16.mxu1 %v13766_v26  ;;  %v10094_v26 = vld [vmem:[#allocation8 + $0x1888] sm:$0xff] }
 0x5be   :  { %10030 = vmatpush1.bf16.msra.mxu0 %v13751_v55  ;;  %v10105_v55 = vld [vmem:[#allocation8 + $0x18e0] sm:$0xff] }
 0x5bf   :  { %10031 = vmatprep.subr.bf16.mxu0 %v13760_v34  ;;  %v10098_v34 = vld [vmem:[#allocation8 + $0x18a8] sm:$0xff]  ;;  %v13826_v33 = vcombine.high %v10101_v22, %v10105_v55  ;;  %v13825_v29 = vcombine.low %v10101_v22, %v10105_v55 }
 0x5c0   :  { %9993 = vmatpush1.bf16.msra.mxu1 %v13765_v11  ;;  %v13820_v46 = vcombine.high %v10094_v26, %v10098_v34  ;;  %v10109_v11 = vld [vmem:[#allocation8 + $0x1900] sm:$0xff]  ;;  %v13819_v49 = vcombine.low %v10094_v26, %v10098_v34  ;;  %v10103_v34 = vld [vmem:[#allocation8 + $0x18d0] sm:$0xff] }
 0x5c1   :  { %9994 = vmatprep.subr.bf16.mxu1 %v13774_v52  ;;  %v10102_v52 = vld [vmem:[#allocation8 + $0x18c8] sm:$0xff] }
 0x5c2   :  { %10032 = vmatpush1.bf16.msra.mxu0 %v13759_v0  ;;  %v10113_v0 = vld [vmem:[#allocation8 + $0x1920] sm:$0xff] }
 0x5c3   :  { %10033 = vmatprep.subr.bf16.mxu0 %v13768_v18  ;;  %v10106_v18 = vld [vmem:[#allocation8 + $0x18e8] sm:$0xff] }
 0x5c4   :  { %9995 = vmatpush1.bf16.msra.mxu1 %v13773_v28  ;;  %v13828_v30 = vcombine.high %v10102_v52, %v10106_v18  ;;  %v10121_v28 = vld [vmem:[#allocation8 + $0x1960] sm:$0xff]  ;;  %v13827_v47 = vcombine.low %v10102_v52, %v10106_v18  ;;  %v10111_v18 = vld [vmem:[#allocation8 + $0x1910] sm:$0xff] }
 0x5c5   :  { %9996 = vmatprep.subr.bf16.mxu1 %v13782_v17  ;;  %v10114_v17 = vld [vmem:[#allocation8 + $0x1928] sm:$0xff]  ;;  %v13842_v1 = vcombine.high %v10117_v20, %v10121_v28 }
 0x5c6   :  { %10034 = vmatpush1.bf16.msra.mxu0 %v13767_v7  ;;  %v10110_v7 = vld [vmem:[#allocation8 + $0x1908] sm:$0xff] }
 0x5c7   :  { %10035 = vmatprep.subr.bf16.mxu0 %v13776_v15  ;;  %v13833_v15 = vcombine.low %v10109_v11, %v10113_v0  ;;  %v13836_v6 = vcombine.high %v10110_v7, %v10114_v17  ;;  %v13835_v39 = vcombine.low %v10110_v7, %v10114_v17  ;;  %v10119_v17 = vld [vmem:[#allocation8 + $0x1950] sm:$0xff] }
 0x5c8   :  { %9997 = vmatpush1.bf16.msra.mxu1 %v13781_v4  ;;  %v10129_v4 = vld [vmem:[#allocation8 + $0x19a0] sm:$0xff] }
 0x5c9   :  { %9998 = vmatprep.subr.bf16.mxu1 %v13790_v9  ;;  %v10122_v9 = vld [vmem:[#allocation8 + $0x1968] sm:$0xff]  ;;  %v13850_v12 = vcombine.high %v10125_v16, %v10129_v4 }
 0x5ca   :  { %10036 = vmatpush1.bf16.msra.mxu0 %v13775_v57  ;;  %v10118_v57 = vld [vmem:[#allocation8 + $0x1948] sm:$0xff] }
 0x5cb   :  { %10037 = vmatprep.subr.bf16.mxu0 %v13784_v38  ;;  %v13841_v38 = vcombine.low %v10117_v20, %v10121_v28  ;;  %v13844_v2 = vcombine.high %v10118_v57, %v10122_v9  ;;  %v13843_v40 = vcombine.low %v10118_v57, %v10122_v9  ;;  %v10127_v9 = vld [vmem:[#allocation8 + $0x1990] sm:$0xff] }
 0x5cc   :  { %9999 = vmatpush1.bf16.msra.mxu1 %v13789_v61  ;;  %v10137_v61 = vld [vmem:[#allocation8 + $0x19e0] sm:$0xff] }
 0x5cd   :  { %10000 = vmatprep.subr.bf16.mxu1 %v13798_v19  ;;  %v10130_v19 = vld [vmem:[#allocation8 + $0x19a8] sm:$0xff]  ;;  %v13858_v23 = vcombine.high %v10133_v27, %v10137_v61 }
 0x5ce   :  { %10038 = vmatpush1.bf16.msra.mxu0 %v13783_v41  ;;  %v10126_v41 = vld [vmem:[#allocation8 + $0x1988] sm:$0xff] }
 0x5cf   :  { %10039 = vmatprep.subr.bf16.mxu0 %v13792_v43  ;;  %v13849_v43 = vcombine.low %v10125_v16, %v10129_v4  ;;  %v13852_v5 = vcombine.high %v10126_v41, %v10130_v19  ;;  %v13851_v31 = vcombine.low %v10126_v41, %v10130_v19  ;;  %v10135_v19 = vld [vmem:[#allocation8 + $0x19d0] sm:$0xff] }
 0x5d0   :  { %10001 = vmatpush1.bf16.msra.mxu1 %v13797_v48  ;;  %v10083_v48 = vld [vmem:[#allocation8 + $0x1830] sm:$0xff] }
 0x5d1   :  { %10461 = vmatprep.subr.bf16.mxu1 %v13802_v53  ;;  %v10138_v53 = vld [vmem:[#allocation8 + $0x19e8] sm:$0xff]  ;;  %v13806_v25 = vcombine.high %v10079_v3, %v10083_v48 }
 0x5d2   :  { %10040 = vmatpush1.bf16.msra.mxu0 %v13791_v63  ;;  %v10134_v63 = vld [vmem:[#allocation8 + $0x19c8] sm:$0xff] }
 0x5d3   :  { %10041 = vmatprep.subr.bf16.mxu0 %v13800_v10  ;;  %10019 = vmatmul.mubr.bf16.vlgmr.msra.gmra.mrb[4].mxu1 %v17201_v60  ;;  %v13857_v10 = vcombine.low %v10133_v27, %v10137_v61  ;;  %v13860_v21 = vcombine.high %v10134_v63, %v10138_v53  ;;  %v13859_v44 = vcombine.low %v10134_v63, %v10138_v53  ;;  %v10634_v53 = vld [vmem:[#allocation8 + $0x1a00] sm:$0xff] }
 0x5d4   :  { %10462 = vmatpush1.bf16.msra.mxu1 %v13801_v51  ;;  %10493 = vmatprep.mubr.bf16.mxu1 %v14762_v59  ;;  %v10091_v51 = vld [vmem:[#allocation8 + $0x1870] sm:$0xff] }
 0x5d5   :  { %10463 = vmatprep.subr.bf16.mxu1 %v13810_v32  ;;  %v10084_v32 = vld [vmem:[#allocation8 + $0x1838] sm:$0xff]  ;;  %v13814_v35 = vcombine.high %v10087_v45, %v10091_v51 }
 0x5d6   :  { %10042 = vmatpush1.bf16.msra.mxu0 %v13799_v42  ;;  %v10080_v42 = vld [vmem:[#allocation8 + $0x1818] sm:$0xff] }
 0x5d7   :  { %10502 = vmatprep.subr.bf16.mxu0 %v13804_v56  ;;  %v13805_v56 = vcombine.low %v10079_v3, %v10083_v48  ;;  %v13808_v36 = vcombine.high %v10080_v42, %v10084_v32  ;;  %v13807_v22 = vcombine.low %v10080_v42, %v10084_v32  ;;  %v10642_v32 = vld [vmem:[#allocation8 + $0x1a40] sm:$0xff] }
 0x5d8   :  { %10464 = vmatpush1.bf16.msra.mxu1 %v13809_v58  ;;  %v10099_v58 = vld [vmem:[#allocation8 + $0x18b0] sm:$0xff] }
 0x5d9   :  { %10060 = vmatmul.mubr.bf16.vlgmr.msra.gmra.mrb[20].mxu0 %v17201_v60  ;;  %10465 = vmatprep.subr.bf16.mxu1 %v13818_v50  ;;  %v13834_v60 = vcombine.high %v10109_v11, %v10113_v0  ;;  %v10092_v50 = vld [vmem:[#allocation8 + $0x1878] sm:$0xff]  ;;  %v13822_v55 = vcombine.high %v10095_v13, %v10099_v58 }
 0x5da   :  { %10503 = vmatpush1.bf16.msra.mxu0 %v13803_v24  ;;  %10534 = vmatprep.mubr.bf16.mxu0 %v14762_v59  ;;  %v10088_v24 = vld [vmem:[#allocation8 + $0x1858] sm:$0xff] }
 0x5db   :  { %10504 = vmatprep.subr.bf16.mxu0 %v13812_v54  ;;  %v13813_v54 = vcombine.low %v10087_v45, %v10091_v51  ;;  %v13816_v26 = vcombine.high %v10088_v24, %v10092_v50  ;;  %v13815_v11 = vcombine.low %v10088_v24, %v10092_v50  ;;  %v10650_v50 = vld [vmem:[#allocation8 + $0x1a80] sm:$0xff] }
 0x5dc   :  { %10466 = vmatpush1.bf16.msra.mxu1 %v13817_v8  ;;  %v10107_v8 = vld [vmem:[#allocation8 + $0x18f0] sm:$0xff] }
 0x5dd   :  { %10467 = vmatprep.subr.bf16.mxu1 %v13826_v33  ;;  %v10100_v33 = vld [vmem:[#allocation8 + $0x18b8] sm:$0xff]  ;;  %v13830_v0 = vcombine.high %v10103_v34, %v10107_v8 }
 0x5de   :  { %10505 = vmatpush1.bf16.msra.mxu0 %v13811_v14  ;;  %v10096_v14 = vld [vmem:[#allocation8 + $0x1898] sm:$0xff] }
 0x5df   :  { %10506 = vmatprep.subr.bf16.mxu0 %v13820_v46  ;;  %v13821_v46 = vcombine.low %v10095_v13, %v10099_v58  ;;  %v13824_v52 = vcombine.high %v10096_v14, %v10100_v33  ;;  %v13823_v20 = vcombine.low %v10096_v14, %v10100_v33  ;;  %v10658_v33 = vld [vmem:[#allocation8 + $0x1ac0] sm:$0xff] }
 0x5e0   :  { %10468 = vmatpush1.bf16.msra.mxu1 %v13825_v29  ;;  %v10115_v29 = vld [vmem:[#allocation8 + $0x1930] sm:$0xff] }
 0x5e1   :  { %10469 = vmatprep.subr.bf16.mxu1 %v13834_v60  ;;  %v10108_v60 = vld [vmem:[#allocation8 + $0x18f8] sm:$0xff]  ;;  %v13838_v28 = vcombine.high %v10111_v18, %v10115_v29 }
 0x5e2   :  { %10507 = vmatpush1.bf16.msra.mxu0 %v13819_v49  ;;  %v10104_v49 = vld [vmem:[#allocation8 + $0x18d8] sm:$0xff] }
 0x5e3   :  { %10508 = vmatprep.subr.bf16.mxu0 %v13828_v30  ;;  %v13829_v30 = vcombine.low %v10103_v34, %v10107_v8  ;;  %v13832_v7 = vcombine.high %v10104_v49, %v10108_v60  ;;  %v13831_v16 = vcombine.low %v10104_v49, %v10108_v60  ;;  %v10666_v60 = vld [vmem:[#allocation8 + $0x1b00] sm:$0xff] }
 0x5e4   :  { %10470 = vmatpush1.bf16.msra.mxu1 %v13833_v15  ;;  %v10123_v15 = vld [vmem:[#allocation8 + $0x1970] sm:$0xff] }
 0x5e5   :  { %10471 = vmatprep.subr.bf16.mxu1 %v13842_v1  ;;  %v10116_v1 = vld [vmem:[#allocation8 + $0x1938] sm:$0xff]  ;;  %v13846_v4 = vcombine.high %v10119_v17, %v10123_v15 }
 0x5e6   :  { %10509 = vmatpush1.bf16.msra.mxu0 %v13827_v47  ;;  %v10112_v47 = vld [vmem:[#allocation8 + $0x1918] sm:$0xff] }
 0x5e7   :  { %10510 = vmatprep.subr.bf16.mxu0 %v13836_v6  ;;  %v13837_v6 = vcombine.low %v10111_v18, %v10115_v29  ;;  %v13840_v57 = vcombine.high %v10112_v47, %v10116_v1  ;;  %v13839_v27 = vcombine.low %v10112_v47, %v10116_v1  ;;  %v10674_v1 = vld [vmem:[#allocation8 + $0x1b40] sm:$0xff] }
 0x5e8   :  { %10472 = vmatpush1.bf16.msra.mxu1 %v13841_v38  ;;  %v10131_v38 = vld [vmem:[#allocation8 + $0x19b0] sm:$0xff] }
 0x5e9   :  { %10473 = vmatprep.subr.bf16.mxu1 %v13850_v12  ;;  %v10124_v12 = vld [vmem:[#allocation8 + $0x1978] sm:$0xff]  ;;  %v13854_v61 = vcombine.high %v10127_v9, %v10131_v38 }
 0x5ea   :  { %10511 = vmatpush1.bf16.msra.mxu0 %v13835_v39  ;;  %v10120_v39 = vld [vmem:[#allocation8 + $0x1958] sm:$0xff] }
 0x5eb   :  { %10512 = vmatprep.subr.bf16.mxu0 %v13844_v2  ;;  %v13845_v2 = vcombine.low %v10119_v17, %v10123_v15  ;;  %v13848_v41 = vcombine.high %v10120_v39, %v10124_v12  ;;  %v13847_v3 = vcombine.low %v10120_v39, %v10124_v12  ;;  %v10682_v12 = vld [vmem:[#allocation8 + $0x1b80] sm:$0xff] }
 0x5ec   :  { %10474 = vmatpush1.bf16.msra.mxu1 %v13849_v43  ;;  %v10139_v43 = vld [vmem:[#allocation8 + $0x19f0] sm:$0xff] }
 0x5ed   :  { %10475 = vmatprep.subr.bf16.mxu1 %v13858_v23  ;;  %v10132_v23 = vld [vmem:[#allocation8 + $0x19b8] sm:$0xff]  ;;  %v13862_v48 = vcombine.high %v10135_v19, %v10139_v43 }
 0x5ee   :  { %10513 = vmatpush1.bf16.msra.mxu0 %v13843_v40  ;;  %v10128_v40 = vld [vmem:[#allocation8 + $0x1998] sm:$0xff] }
 0x5ef   :  { %10514 = vmatprep.subr.bf16.mxu0 %v13852_v5  ;;  %v13853_v5 = vcombine.low %v10127_v9, %v10131_v38  ;;  %v13856_v63 = vcombine.high %v10128_v40, %v10132_v23  ;;  %v13855_v45 = vcombine.low %v10128_v40, %v10132_v23  ;;  %v10690_v23 = vld [vmem:[#allocation8 + $0x1bc0] sm:$0xff] }
 0x5f0   :  { %10476 = vmatpush1.bf16.msra.mxu1 %v13857_v10  ;;  %v10638_v10 = vld [vmem:[#allocation8 + $0x1a20] sm:$0xff] }
 0x5f1   :  { %10543 = vmatprep.subr.bf16.mxu1 %v13806_v25  ;;  %v10140_v25 = vld [vmem:[#allocation8 + $0x19f8] sm:$0xff]  ;;  %v13866_v51 = vcombine.high %v10634_v53, %v10638_v10 }
 0x5f2   :  { %10515 = vmatpush1.bf16.msra.mxu0 %v13851_v31  ;;  %v10136_v31 = vld [vmem:[#allocation8 + $0x19d8] sm:$0xff] }
 0x5f3   :  { %10516 = vmatprep.subr.bf16.mxu0 %v13860_v21  ;;  %10494 = vmatmul.mubr.bf16.vlgmr.msra.gmra.mrb[0].mxu1 %v17129_v62  ;;  %v13861_v21 = vcombine.low %v10135_v19, %v10139_v43  ;;  %v13864_v42 = vcombine.high %v10136_v31, %v10140_v25  ;;  %v13863_v13 = vcombine.low %v10136_v31, %v10140_v25  ;;  %v10636_v25 = vld [vmem:[#allocation8 + $0x1a10] sm:$0xff] }
 0x5f4   :  { %10544 = vmatpush1.bf16.msra.mxu1 %v13805_v56  ;;  %10575 = vmatprep.mubr.bf16.mxu1 %v14762_v59  ;;  %v10646_v56 = vld [vmem:[#allocation8 + $0x1a60] sm:$0xff] }
 0x5f5   :  { %10545 = vmatprep.subr.bf16.mxu1 %v13814_v35  ;;  %v10639_v35 = vld [vmem:[#allocation8 + $0x1a28] sm:$0xff]  ;;  %v13874_v58 = vcombine.high %v10642_v32, %v10646_v56 }
 0x5f6   :  { %10517 = vmatpush1.bf16.msra.mxu0 %v13859_v44  ;;  %v10635_v44 = vld [vmem:[#allocation8 + $0x1a08] sm:$0xff] }
 0x5f7   :  { %10584 = vmatprep.subr.bf16.mxu0 %v13808_v36  ;;  %v13865_v36 = vcombine.low %v10634_v53, %v10638_v10  ;;  %v13868_v24 = vcombine.high %v10635_v44, %v10639_v35  ;;  %v13867_v34 = vcombine.low %v10635_v44, %v10639_v35  ;;  %v10644_v35 = vld [vmem:[#allocation8 + $0x1a50] sm:$0xff] }
 0x5f8   :  { %10546 = vmatpush1.bf16.msra.mxu1 %v13813_v54  ;;  %v10654_v54 = vld [vmem:[#allocation8 + $0x1aa0] sm:$0xff] }
 0x5f9   :  { %10535 = vmatmul.mubr.bf16.vlgmr.msra.gmra.mrb[16].mxu0 %v17129_v62  ;;  %10547 = vmatprep.subr.bf16.mxu1 %v13822_v55  ;;  %v10647_v55 = vld [vmem:[#allocation8 + $0x1a68] sm:$0xff]  ;;  %v13882_v8 = vcombine.high %v10650_v50, %v10654_v54 }
 0x5fa   :  { %10585 = vmatpush1.bf16.msra.mxu0 %v13807_v22  ;;  %10616 = vmatprep.mubr.bf16.mxu0 %v14762_v59  ;;  %v10643_v22 = vld [vmem:[#allocation8 + $0x1a48] sm:$0xff] }
 0x5fb   :  { %10586 = vmatprep.subr.bf16.mxu0 %v13816_v26  ;;  %v13873_v26 = vcombine.low %v10642_v32, %v10646_v56  ;;  %v13876_v14 = vcombine.high %v10643_v22, %v10647_v55  ;;  %v13875_v18 = vcombine.low %v10643_v22, %v10647_v55 }
 0x5fc   :  { %10548 = vmatpush1.bf16.msra.mxu1 %v13821_v46  ;;  %v10662_v46 = vld [vmem:[#allocation8 + $0x1ae0] sm:$0xff] }
 0x5fd   :  { %10549 = vmatprep.subr.bf16.mxu1 %v13830_v0  ;;  %v10655_v0 = vld [vmem:[#allocation8 + $0x1aa8] sm:$0xff]  ;;  %v13890_v29 = vcombine.high %v10658_v33, %v10662_v46 }
 0x5fe   :  { %10587 = vmatpush1.bf16.msra.mxu0 %v13815_v11  ;;  %v10651_v11 = vld [vmem:[#allocation8 + $0x1a88] sm:$0xff] }
 0x5ff   :  { %10588 = vmatprep.subr.bf16.mxu0 %v13824_v52  ;;  %v13881_v52 = vcombine.low %v10650_v50, %v10654_v54  ;;  %v13884_v49 = vcombine.high %v10651_v11, %v10655_v0  ;;  %v13883_v17 = vcombine.low %v10651_v11, %v10655_v0  ;;  %v17220_v54 = vrot.slane %v17129_v62, 4  ;;  %v10660_v0 = vld [vmem:[#allocation8 + $0x1ad0] sm:$0xff] }
 0x600   :  { %10550 = vmatpush1.bf16.msra.mxu1 %v13829_v30  ;;  %v10670_v30 = vld [vmem:[#allocation8 + $0x1b20] sm:$0xff] }
 0x601   :  { %10551 = vmatprep.subr.bf16.mxu1 %v13838_v28  ;;  %v10663_v28 = vld [vmem:[#allocation8 + $0x1ae8] sm:$0xff]  ;;  %v13898_v15 = vcombine.high %v10666_v60, %v10670_v30 }
 0x602   :  { %10589 = vmatpush1.bf16.msra.mxu0 %v13823_v20  ;;  %v10659_v20 = vld [vmem:[#allocation8 + $0x1ac8] sm:$0xff] }
 0x603   :  { %10590 = vmatprep.subr.bf16.mxu0 %v13832_v7  ;;  %v13889_v7 = vcombine.low %v10658_v33, %v10662_v46  ;;  %v13892_v47 = vcombine.high %v10659_v20, %v10663_v28  ;;  %v13891_v9 = vcombine.low %v10659_v20, %v10663_v28  ;;  %v10668_v28 = vld [vmem:[#allocation8 + $0x1b10] sm:$0xff] }
 0x604   :  { %10552 = vmatpush1.bf16.msra.mxu1 %v13837_v6  ;;  %v10678_v6 = vld [vmem:[#allocation8 + $0x1b60] sm:$0xff] }
 0x605   :  { %10553 = vmatprep.subr.bf16.mxu1 %v13846_v4  ;;  %v10671_v4 = vld [vmem:[#allocation8 + $0x1b28] sm:$0xff]  ;;  %v13906_v38 = vcombine.high %v10674_v1, %v10678_v6 }
 0x606   :  { %10591 = vmatpush1.bf16.msra.mxu0 %v13831_v16  ;;  %v10667_v16 = vld [vmem:[#allocation8 + $0x1b08] sm:$0xff] }
 0x607   :  { %10592 = vmatprep.subr.bf16.mxu0 %v13840_v57  ;;  %v13897_v57 = vcombine.low %v10666_v60, %v10670_v30  ;;  %v13900_v39 = vcombine.high %v10667_v16, %v10671_v4  ;;  %v13899_v19 = vcombine.low %v10667_v16, %v10671_v4  ;;  %v10676_v4 = vld [vmem:[#allocation8 + $0x1b50] sm:$0xff] }
 0x608   :  { %10554 = vmatpush1.bf16.msra.mxu1 %v13845_v2  ;;  %v10686_v2 = vld [vmem:[#allocation8 + $0x1ba0] sm:$0xff] }
 0x609   :  { %10555 = vmatprep.subr.bf16.mxu1 %v13854_v61  ;;  %v10679_v61 = vld [vmem:[#allocation8 + $0x1b68] sm:$0xff]  ;;  %v13914_v43 = vcombine.high %v10682_v12, %v10686_v2 }
 0x60a   :  { %10593 = vmatpush1.bf16.msra.mxu0 %v13839_v27  ;;  %v10675_v27 = vld [vmem:[#allocation8 + $0x1b48] sm:$0xff] }
 0x60b   :  { %10594 = vmatprep.subr.bf16.mxu0 %v13848_v41  ;;  %v13905_v41 = vcombine.low %v10674_v1, %v10678_v6  ;;  %v13908_v40 = vcombine.high %v10675_v27, %v10679_v61  ;;  %v13907_v53 = vcombine.low %v10675_v27, %v10679_v61  ;;  %v10684_v61 = vld [vmem:[#allocation8 + $0x1b90] sm:$0xff] }
 0x60c   :  { %10556 = vmatpush1.bf16.msra.mxu1 %v13853_v5  ;;  %v10694_v5 = vld [vmem:[#allocation8 + $0x1be0] sm:$0xff] }
 0x60d   :  { %10557 = vmatprep.subr.bf16.mxu1 %v13862_v48  ;;  %v10687_v48 = vld [vmem:[#allocation8 + $0x1ba8] sm:$0xff]  ;;  %v13922_v10 = vcombine.high %v10690_v23, %v10694_v5 }
 0x60e   :  { %10595 = vmatpush1.bf16.msra.mxu0 %v13847_v3  ;;  %v10683_v3 = vld [vmem:[#allocation8 + $0x1b88] sm:$0xff] }
 0x60f   :  { %10596 = vmatprep.subr.bf16.mxu0 %v13856_v63  ;;  %v13913_v63 = vcombine.low %v10682_v12, %v10686_v2  ;;  %v13916_v31 = vcombine.high %v10683_v3, %v10687_v48  ;;  %v13915_v32 = vcombine.low %v10683_v3, %v10687_v48  ;;  %v10692_v48 = vld [vmem:[#allocation8 + $0x1bd0] sm:$0xff] }
 0x610   :  { %10558 = vmatpush1.bf16.msra.mxu1 %v13861_v21  ;;  %v10640_v21 = vld [vmem:[#allocation8 + $0x1a30] sm:$0xff] }
 0x611   :  { %11021 = vmatprep.subr.bf16.mxu1 %v13866_v51  ;;  %v10695_v51 = vld [vmem:[#allocation8 + $0x1be8] sm:$0xff]  ;;  %v13870_v56 = vcombine.high %v10636_v25, %v10640_v21 }
 0x612   :  { %10597 = vmatpush1.bf16.msra.mxu0 %v13855_v45  ;;  %v10691_v45 = vld [vmem:[#allocation8 + $0x1bc8] sm:$0xff] }
 0x613   :  { %10598 = vmatprep.subr.bf16.mxu0 %v13864_v42  ;;  %10576 = vmatmul.mubr.bf16.vlgmr.msra.gmra.mrb[4].mxu1 %v17129_v62  ;;  %v13921_v42 = vcombine.low %v10690_v23, %v10694_v5  ;;  %v13924_v44 = vcombine.high %v10691_v45, %v10695_v51  ;;  %v13923_v50 = vcombine.low %v10691_v45, %v10695_v51  ;;  %v11194_v51 = vld [vmem:[#allocation8 + $0x1c00] sm:$0xff] }
 0x614   :  { %11022 = vmatpush1.bf16.msra.mxu1 %v13865_v36  ;;  %11053 = vmatprep.mubr.bf16.mxu1 %v14762_v59  ;;  %v10648_v36 = vld [vmem:[#allocation8 + $0x1a70] sm:$0xff] }
 0x615   :  { %11023 = vmatprep.subr.bf16.mxu1 %v13874_v58  ;;  %v10641_v58 = vld [vmem:[#allocation8 + $0x1a38] sm:$0xff]  ;;  %v13878_v22 = vcombine.high %v10644_v35, %v10648_v36  ;;  %v13877_v33 = vcombine.low %v10644_v35, %v10648_v36 }
 0x616   :  { %10599 = vmatpush1.bf16.msra.mxu0 %v13863_v13  ;;  %v10637_v13 = vld [vmem:[#allocation8 + $0x1a18] sm:$0xff] }
 0x617   :  { %11062 = vmatprep.subr.bf16.mxu0 %v13868_v24  ;;  %v13869_v24 = vcombine.low %v10636_v25, %v10640_v21  ;;  %v13872_v55 = vcombine.high %v10637_v13, %v10641_v58  ;;  %v13871_v46 = vcombine.low %v10637_v13, %v10641_v58  ;;  %v11202_v58 = vld [vmem:[#allocation8 + $0x1c40] sm:$0xff] }
 0x618   :  { %11024 = vmatpush1.bf16.msra.mxu1 %v13873_v26  ;;  %v10652_v26 = vld [vmem:[#allocation8 + $0x1a90] sm:$0xff] }
 0x619   :  { %10617 = vmatmul.mubr.bf16.vlgmr.msra.gmra.mrb[20].mxu0 %v17129_v62  ;;  %11025 = vmatprep.subr.bf16.mxu1 %v13882_v8  ;;  %v10645_v8 = vld [vmem:[#allocation8 + $0x1a58] sm:$0xff] }
 0x61a   :  { %11063 = vmatpush1.bf16.msra.mxu0 %v13867_v34  ;;  %11094 = vmatprep.mubr.bf16.mxu0 %v14762_v59  ;;  %v10656_v34 = vld [vmem:[#allocation8 + $0x1ab0] sm:$0xff] }
 0x61b   :  { %11064 = vmatprep.subr.bf16.mxu0 %v13876_v14  ;;  %v10649_v14 = vld [vmem:[#allocation8 + $0x1a78] sm:$0xff]  ;;  %v13886_v11 = vcombine.high %v10652_v26, %v10656_v34 }
 0x61c   :  { %11026 = vmatpush1.bf16.msra.mxu1 %v13881_v52  ;;  %v13880_v62 = vcombine.high %v10645_v8, %v10649_v14  ;;  %v10664_v52 = vld [vmem:[#allocation8 + $0x1af0] sm:$0xff]  ;;  %v13879_v60 = vcombine.low %v10645_v8, %v10649_v14  ;;  %v11210_v14 = vld [vmem:[#allocation8 + $0x1c80] sm:$0xff] }
 0x61d   :  { %11027 = vmatprep.subr.bf16.mxu1 %v13890_v29  ;;  %v10657_v29 = vld [vmem:[#allocation8 + $0x1ab8] sm:$0xff]  ;;  %v13894_v30 = vcombine.high %v10660_v0, %v10664_v52 }
 0x61e   :  { %11065 = vmatpush1.bf16.msra.mxu0 %v13875_v18  ;;  %v10653_v18 = vld [vmem:[#allocation8 + $0x1a98] sm:$0xff] }
 0x61f   :  { %11066 = vmatprep.subr.bf16.mxu0 %v13884_v49  ;;  %v13885_v49 = vcombine.low %v10652_v26, %v10656_v34  ;;  %v13888_v20 = vcombine.high %v10653_v18, %v10657_v29  ;;  %v13887_v1 = vcombine.low %v10653_v18, %v10657_v29  ;;  %v11218_v29 = vld [vmem:[#allocation8 + $0x1cc0] sm:$0xff] }
 0x620   :  { %11028 = vmatpush1.bf16.msra.mxu1 %v13889_v7  ;;  %v10672_v7 = vld [vmem:[#allocation8 + $0x1b30] sm:$0xff] }
 0x621   :  { %11029 = vmatprep.subr.bf16.mxu1 %v13898_v15  ;;  %v10665_v15 = vld [vmem:[#allocation8 + $0x1af8] sm:$0xff]  ;;  %v13902_v6 = vcombine.high %v10668_v28, %v10672_v7 }
 0x622   :  { %11067 = vmatpush1.bf16.msra.mxu0 %v13883_v17  ;;  %v10661_v17 = vld [vmem:[#allocation8 + $0x1ad8] sm:$0xff] }
 0x623   :  { %11068 = vmatprep.subr.bf16.mxu0 %v13892_v47  ;;  %v13893_v47 = vcombine.low %v10660_v0, %v10664_v52  ;;  %v13896_v16 = vcombine.high %v10661_v17, %v10665_v15  ;;  %v13895_v12 = vcombine.low %v10661_v17, %v10665_v15  ;;  %v11226_v15 = vld [vmem:[#allocation8 + $0x1d00] sm:$0xff] }
 0x624   :  { %11030 = vmatpush1.bf16.msra.mxu1 %v13897_v57  ;;  %v10680_v57 = vld [vmem:[#allocation8 + $0x1b70] sm:$0xff] }
 0x625   :  { %11031 = vmatprep.subr.bf16.mxu1 %v13906_v38  ;;  %v10673_v38 = vld [vmem:[#allocation8 + $0x1b38] sm:$0xff]  ;;  %v13910_v2 = vcombine.high %v10676_v4, %v10680_v57 }
 0x626   :  { %11069 = vmatpush1.bf16.msra.mxu0 %v13891_v9  ;;  %v10669_v9 = vld [vmem:[#allocation8 + $0x1b18] sm:$0xff] }
 0x627   :  { %11070 = vmatprep.subr.bf16.mxu0 %v13900_v39  ;;  %v13901_v39 = vcombine.low %v10668_v28, %v10672_v7  ;;  %v13904_v27 = vcombine.high %v10669_v9, %v10673_v38  ;;  %v13903_v23 = vcombine.low %v10669_v9, %v10673_v38  ;;  %v11234_v9 = vld [vmem:[#allocation8 + $0x1d40] sm:$0xff] }
 0x628   :  { %11032 = vmatpush1.bf16.msra.mxu1 %v13905_v41  ;;  %v10688_v41 = vld [vmem:[#allocation8 + $0x1bb0] sm:$0xff]  ;;  %v11238_v38 = vld [vmem:[#allocation8 + $0x1d60] sm:$0xff] }
 0x629   :  { %11033 = vmatprep.subr.bf16.mxu1 %v13914_v43  ;;  %v10681_v43 = vld [vmem:[#allocation8 + $0x1b78] sm:$0xff]  ;;  %v13918_v5 = vcombine.high %v10684_v61, %v10688_v41 }
 0x62a   :  { %11071 = vmatpush1.bf16.msra.mxu0 %v13899_v19  ;;  %v10677_v19 = vld [vmem:[#allocation8 + $0x1b58] sm:$0xff] }
 0x62b   :  { %11072 = vmatprep.subr.bf16.mxu0 %v13908_v40  ;;  %v13909_v40 = vcombine.low %v10676_v4, %v10680_v57  ;;  %v13912_v3 = vcombine.high %v10677_v19, %v10681_v43  ;;  %v13911_v25 = vcombine.low %v10677_v19, %v10681_v43  ;;  %v11242_v19 = vld [vmem:[#allocation8 + $0x1d80] sm:$0xff] }
 0x62c   :  { %11034 = vmatpush1.bf16.msra.mxu1 %v13913_v63  ;;  %v10696_v63 = vld [vmem:[#allocation8 + $0x1bf0] sm:$0xff]  ;;  %v11246_v43 = vld [vmem:[#allocation8 + $0x1da0] sm:$0xff] }
 0x62d   :  { %11035 = vmatprep.subr.bf16.mxu1 %v13922_v10  ;;  %v10689_v10 = vld [vmem:[#allocation8 + $0x1bb8] sm:$0xff]  ;;  %v13926_v21 = vcombine.high %v10692_v48, %v10696_v63 }
 0x62e   :  { %11073 = vmatpush1.bf16.msra.mxu0 %v13907_v53  ;;  %v10685_v53 = vld [vmem:[#allocation8 + $0x1b98] sm:$0xff] }
 0x62f   :  { %11074 = vmatprep.subr.bf16.mxu0 %v13916_v31  ;;  %v13917_v31 = vcombine.low %v10684_v61, %v10688_v41  ;;  %v13920_v45 = vcombine.high %v10685_v53, %v10689_v10  ;;  %v13919_v35 = vcombine.low %v10685_v53, %v10689_v10  ;;  %v13970_v61 = vcombine.high %v11234_v9, %v11238_v38  ;;  %v11250_v53 = vld [vmem:[#allocation8 + $0x1dc0] sm:$0xff] }
 0x630   :  { %11036 = vmatpush1.bf16.msra.mxu1 %v13921_v42  ;;  %v11198_v42 = vld [vmem:[#allocation8 + $0x1c20] sm:$0xff] }
 0x631   :  { %11103 = vmatprep.subr.bf16.mxu1 %v13870_v56  ;;  %v10697_v56 = vld [vmem:[#allocation8 + $0x1bf8] sm:$0xff]  ;;  %v13930_v36 = vcombine.high %v11194_v51, %v11198_v42  ;;  %v11254_v10 = vld [vmem:[#allocation8 + $0x1de0] sm:$0xff] }
 0x632   :  { %11075 = vmatpush1.bf16.msra.mxu0 %v13915_v32  ;;  %v10693_v32 = vld [vmem:[#allocation8 + $0x1bd8] sm:$0xff] }
 0x633   :  { %11076 = vmatprep.subr.bf16.mxu0 %v13924_v44  ;;  %11054 = vmatmul.mubr.bf16.vlgmr.msra.gmra.mrb[0].mxu1 %v17220_v54  ;;  %v13925_v44 = vcombine.low %v10692_v48, %v10696_v63  ;;  %v13928_v13 = vcombine.high %v10693_v32, %v10697_v56  ;;  %v13927_v26 = vcombine.low %v10693_v32, %v10697_v56  ;;  %v11196_v32 = vld [vmem:[#allocation8 + $0x1c10] sm:$0xff] }
 0x634   :  { %11104 = vmatpush1.bf16.msra.mxu1 %v13869_v24  ;;  %11135 = vmatprep.mubr.bf16.mxu1 %v14762_v59  ;;  %v11206_v24 = vld [vmem:[#allocation8 + $0x1c60] sm:$0xff]  ;;  %v13978_v48 = vcombine.high %v11242_v19, %v11246_v43  ;;  %v11200_v56 = vld [vmem:[#allocation8 + $0x1c30] sm:$0xff] }
 0x635   :  { %11105 = vmatprep.subr.bf16.mxu1 %v13878_v22  ;;  %v11199_v22 = vld [vmem:[#allocation8 + $0x1c28] sm:$0xff]  ;;  %v13938_v34 = vcombine.high %v11202_v58, %v11206_v24 }
 0x636   :  { %11077 = vmatpush1.bf16.msra.mxu0 %v13923_v50  ;;  %v11195_v50 = vld [vmem:[#allocation8 + $0x1c08] sm:$0xff] }
 0x637   :  { %11144 = vmatprep.subr.bf16.mxu0 %v13872_v55  ;;  %v13929_v55 = vcombine.low %v11194_v51, %v11198_v42  ;;  %v13932_v8 = vcombine.high %v11195_v50, %v11199_v22  ;;  %v13931_v0 = vcombine.low %v11195_v50, %v11199_v22  ;;  %v13986_v51 = vcombine.high %v11250_v53, %v11254_v10  ;;  %v11204_v50 = vld [vmem:[#allocation8 + $0x1c50] sm:$0xff] }
 0x638   :  { %11106 = vmatpush1.bf16.msra.mxu1 %v13877_v33  ;;  %v11214_v33 = vld [vmem:[#allocation8 + $0x1ca0] sm:$0xff]  ;;  %v11208_v22 = vld [vmem:[#allocation8 + $0x1c70] sm:$0xff] }
 0x639   :  { %11095 = vmatmul.mubr.bf16.vlgmr.msra.gmra.mrb[16].mxu0 %v17220_v54  ;;  %11107 = vmatprep.subr.bf16.mxu1 %v13886_v11  ;;  %v11207_v11 = vld [vmem:[#allocation8 + $0x1c68] sm:$0xff]  ;;  %v13946_v52 = vcombine.high %v11210_v14, %v11214_v33 }
 0x63a   :  { %11145 = vmatpush1.bf16.msra.mxu0 %v13871_v46  ;;  %11176 = vmatprep.mubr.bf16.mxu0 %v14762_v59  ;;  %v11203_v46 = vld [vmem:[#allocation8 + $0x1c48] sm:$0xff] }
 0x63b   :  { %11146 = vmatprep.subr.bf16.mxu0 %v13880_v62  ;;  %v13937_v62 = vcombine.low %v11202_v58, %v11206_v24  ;;  %v13940_v18 = vcombine.high %v11203_v46, %v11207_v11  ;;  %v13939_v28 = vcombine.low %v11203_v46, %v11207_v11  ;;  %v13934_v58 = vcombine.high %v11196_v32, %v11200_v56  ;;  %v11212_v46 = vld [vmem:[#allocation8 + $0x1c90] sm:$0xff] }
 0x63c   :  { %11108 = vmatpush1.bf16.msra.mxu1 %v13885_v49  ;;  %v11222_v49 = vld [vmem:[#allocation8 + $0x1ce0] sm:$0xff]  ;;  %v11216_v11 = vld [vmem:[#allocation8 + $0x1cb0] sm:$0xff] }
 0x63d   :  { %11109 = vmatprep.subr.bf16.mxu1 %v13894_v30  ;;  %v11215_v30 = vld [vmem:[#allocation8 + $0x1ca8] sm:$0xff]  ;;  %v13954_v7 = vcombine.high %v11218_v29, %v11222_v49 }
 0x63e   :  { %11147 = vmatpush1.bf16.msra.mxu0 %v13879_v60  ;;  %v11211_v60 = vld [vmem:[#allocation8 + $0x1c88] sm:$0xff] }
 0x63f   :  { %11148 = vmatprep.subr.bf16.mxu0 %v13888_v20  ;;  %v13945_v20 = vcombine.low %v11210_v14, %v11214_v33  ;;  %v13948_v17 = vcombine.high %v11211_v60, %v11215_v30  ;;  %v13947_v4 = vcombine.low %v11211_v60, %v11215_v30  ;;  %v13942_v14 = vcombine.high %v11204_v50, %v11208_v22  ;;  %v11220_v60 = vld [vmem:[#allocation8 + $0x1cd0] sm:$0xff] }
 0x640   :  { %11110 = vmatpush1.bf16.msra.mxu1 %v13893_v47  ;;  %v11230_v47 = vld [vmem:[#allocation8 + $0x1d20] sm:$0xff]  ;;  %v11224_v30 = vld [vmem:[#allocation8 + $0x1cf0] sm:$0xff] }
 0x641   :  { %11111 = vmatprep.subr.bf16.mxu1 %v13902_v6  ;;  %v11223_v6 = vld [vmem:[#allocation8 + $0x1ce8] sm:$0xff] }
 0x642   :  { %11149 = vmatpush1.bf16.msra.mxu0 %v13887_v1  ;;  %v11219_v1 = vld [vmem:[#allocation8 + $0x1cc8] sm:$0xff] }
 0x643   :  { %11150 = vmatprep.subr.bf16.mxu0 %v13896_v16  ;;  %v13953_v16 = vcombine.low %v11218_v29, %v11222_v49  ;;  %v13956_v57 = vcombine.high %v11219_v1, %v11223_v6  ;;  %v13950_v29 = vcombine.high %v11212_v46, %v11216_v11 }
 0x644   :  { %11112 = vmatpush1.bf16.msra.mxu1 %v13901_v39  ;;  %v11227_v39 = vld [vmem:[#allocation8 + $0x1d08] sm:$0xff] }
 0x645   :  { %11113 = vmatprep.subr.bf16.mxu1 %v13910_v2  ;;  %v13961_v2 = vcombine.low %v11226_v15, %v11230_v47 }
 0x646   :  { %11151 = vmatpush1.bf16.msra.mxu0 %v13895_v12  ;;  %v11231_v12 = vld [vmem:[#allocation8 + $0x1d28] sm:$0xff] }
 0x647   :  { %11152 = vmatprep.subr.bf16.mxu0 %v13904_v27  ;;  %v13955_v27 = vcombine.low %v11219_v1, %v11223_v6  ;;  %v13964_v41 = vcombine.high %v11227_v39, %v11231_v12  ;;  %v11228_v1 = vld [vmem:[#allocation8 + $0x1d10] sm:$0xff] }
 0x648   :  { %11114 = vmatpush1.bf16.msra.mxu1 %v13909_v40  ;;  %v11235_v40 = vld [vmem:[#allocation8 + $0x1d48] sm:$0xff]  ;;  %v11232_v6 = vld [vmem:[#allocation8 + $0x1d30] sm:$0xff] }
 0x649   :  { %11115 = vmatprep.subr.bf16.mxu1 %v13918_v5  ;;  %v13969_v5 = vcombine.low %v11234_v9, %v11238_v38  ;;  %v13966_v9 = vcombine.high %v11228_v1, %v11232_v6 }
 0x64a   :  { %11153 = vmatpush1.bf16.msra.mxu0 %v13903_v23  ;;  %v11239_v23 = vld [vmem:[#allocation8 + $0x1d68] sm:$0xff] }
 0x64b   :  { %11154 = vmatprep.subr.bf16.mxu0 %v13912_v3  ;;  %v13963_v3 = vcombine.low %v11227_v39, %v11231_v12  ;;  %v13972_v63 = vcombine.high %v11235_v40, %v11239_v23  ;;  %v11236_v39 = vld [vmem:[#allocation8 + $0x1d50] sm:$0xff] }
 0x64c   :  { %11116 = vmatpush1.bf16.msra.mxu1 %v13917_v31  ;;  %v11243_v31 = vld [vmem:[#allocation8 + $0x1d88] sm:$0xff]  ;;  %v11240_v12 = vld [vmem:[#allocation8 + $0x1d70] sm:$0xff] }
 0x64d   :  { %11117 = vmatprep.subr.bf16.mxu1 %v13926_v21  ;;  %v13977_v21 = vcombine.low %v11242_v19, %v11246_v43  ;;  %v13974_v19 = vcombine.high %v11236_v39, %v11240_v12 }
 0x64e   :  { %11155 = vmatpush1.bf16.msra.mxu0 %v13911_v25  ;;  %v11247_v25 = vld [vmem:[#allocation8 + $0x1da8] sm:$0xff] }
 0x64f   :  { %11156 = vmatprep.subr.bf16.mxu0 %v13920_v45  ;;  %v13971_v45 = vcombine.low %v11235_v40, %v11239_v23  ;;  %v13980_v42 = vcombine.high %v11243_v31, %v11247_v25  ;;  %v11244_v40 = vld [vmem:[#allocation8 + $0x1d90] sm:$0xff] }
 0x650   :  { %11118 = vmatpush1.bf16.msra.mxu1 %v13925_v44  ;;  %v11251_v44 = vld [vmem:[#allocation8 + $0x1dc8] sm:$0xff]  ;;  %v11248_v23 = vld [vmem:[#allocation8 + $0x1db0] sm:$0xff] }
 0x651   :  { %11578 = vmatprep.subr.bf16.mxu1 %v13930_v36  ;;  %v13985_v36 = vcombine.low %v11250_v53, %v11254_v10  ;;  %v13982_v53 = vcombine.high %v11244_v40, %v11248_v23 }
 0x652   :  { %11157 = vmatpush1.bf16.msra.mxu0 %v13919_v35  ;;  %v11255_v35 = vld [vmem:[#allocation8 + $0x1de8] sm:$0xff] }
 0x653   :  { %11158 = vmatprep.subr.bf16.mxu0 %v13928_v13  ;;  %11136 = vmatmul.mubr.bf16.vlgmr.msra.gmra.mrb[4].mxu1 %v17220_v54  ;;  %v13979_v13 = vcombine.low %v11243_v31, %v11247_v25  ;;  %v13988_v24 = vcombine.high %v11251_v44, %v11255_v35  ;;  %v11252_v31 = vld [vmem:[#allocation8 + $0x1dd0] sm:$0xff] }
 0x654   :  { %11579 = vmatpush1.bf16.msra.mxu1 %v13929_v55  ;;  %11610 = vmatprep.mubr.bf16.mxu1 %v14762_v59  ;;  %v11197_v55 = vld [vmem:[#allocation8 + $0x1c18] sm:$0xff]  ;;  %v11256_v25 = vld [vmem:[#allocation8 + $0x1df0] sm:$0xff] }
 0x655   :  { %11580 = vmatprep.subr.bf16.mxu1 %v13938_v34  ;;  %v13933_v34 = vcombine.low %v11196_v32, %v11200_v56  ;;  %v13990_v32 = vcombine.high %v11252_v31, %v11256_v25 }
 0x656   :  { %11159 = vmatpush1.bf16.msra.mxu0 %v13927_v26  ;;  %v11201_v26 = vld [vmem:[#allocation8 + $0x1c38] sm:$0xff] }
 0x657   :  { %11619 = vmatprep.subr.bf16.mxu0 %v13932_v8  ;;  %v13987_v8 = vcombine.low %v11251_v44, %v11255_v35  ;;  %v13936_v33 = vcombine.high %v11197_v55, %v11201_v26  ;;  %v11751_v44 = vld [vmem:[#allocation8 + $0x1e00] sm:$0xff] }
 0x658   :  { %11581 = vmatpush1.bf16.msra.mxu1 %v13937_v62  ;;  %v11205_v62 = vld [vmem:[#allocation8 + $0x1c58] sm:$0xff]  ;;  %v11755_v35 = vld [vmem:[#allocation8 + $0x1e20] sm:$0xff] }
 0x659   :  { %11177 = vmatmul.mubr.bf16.vlgmr.msra.gmra.mrb[20].mxu0 %v17220_v54  ;;  %11582 = vmatprep.subr.bf16.mxu1 %v13946_v52  ;;  %v13962_v54 = vcombine.high %v11226_v15, %v11230_v47  ;;  %v13941_v52 = vcombine.low %v11204_v50, %v11208_v22  ;;  %v13958_v15 = vcombine.high %v11220_v60, %v11224_v30 }
 0x65a   :  { %11620 = vmatpush1.bf16.msra.mxu0 %v13931_v0  ;;  %11651 = vmatprep.mubr.bf16.mxu0 %v14762_v59  ;;  %v11209_v0 = vld [vmem:[#allocation8 + $0x1c78] sm:$0xff]  ;;  %v13994_v50 = vcombine.high %v11751_v44, %v11755_v35 }
 0x65b   :  { %11621 = vmatprep.subr.bf16.mxu0 %v13940_v18  ;;  %v13935_v18 = vcombine.low %v11197_v55, %v11201_v26  ;;  %v13944_v49 = vcombine.high %v11205_v62, %v11209_v0  ;;  %v11759_v55 = vld [vmem:[#allocation8 + $0x1e40] sm:$0xff] }
 0x65c   :  { %11583 = vmatpush1.bf16.msra.mxu1 %v13945_v20  ;;  %v11213_v20 = vld [vmem:[#allocation8 + $0x1c98] sm:$0xff]  ;;  %v11763_v26 = vld [vmem:[#allocation8 + $0x1e60] sm:$0xff] }
 0x65d   :  { %11584 = vmatprep.subr.bf16.mxu1 %v13954_v7  ;;  %v13949_v7 = vcombine.low %v11212_v46, %v11216_v11  ;;  %v14002_v46 = vcombine.high %v11759_v55, %v11763_v26 }
 0x65e   :  { %11622 = vmatpush1.bf16.msra.mxu0 %v13939_v28  ;;  %v11217_v28 = vld [vmem:[#allocation8 + $0x1cb8] sm:$0xff] }
 0x65f   :  { %11623 = vmatprep.subr.bf16.mxu0 %v13948_v17  ;;  %v13943_v17 = vcombine.low %v11205_v62, %v11209_v0  ;;  %v13952_v47 = vcombine.high %v11213_v20, %v11217_v28  ;;  %v11767_v62 = vld [vmem:[#allocation8 + $0x1e80] sm:$0xff] }
 0x660   :  { %11585 = vmatpush1.bf16.msra.mxu1 %v13953_v16  ;;  %v11221_v16 = vld [vmem:[#allocation8 + $0x1cd8] sm:$0xff]  ;;  %v11771_v0 = vld [vmem:[#allocation8 + $0x1ea0] sm:$0xff] }
 0x661   :  { %11586 = vmatprep.subr.bf16.mxu1 %v13962_v54  ;;  %v13957_v54 = vcombine.low %v11220_v60, %v11224_v30  ;;  %v14010_v60 = vcombine.high %v11767_v62, %v11771_v0 }
 0x662   :  { %11624 = vmatpush1.bf16.msra.mxu0 %v13947_v4  ;;  %v11225_v4 = vld [vmem:[#allocation8 + $0x1cf8] sm:$0xff] }
 0x663   :  { %11625 = vmatprep.subr.bf16.mxu0 %v13956_v57  ;;  %v13951_v57 = vcombine.low %v11213_v20, %v11217_v28  ;;  %v13960_v38 = vcombine.high %v11221_v16, %v11225_v4  ;;  %v11775_v20 = vld [vmem:[#allocation8 + $0x1ec0] sm:$0xff] }
 0x664   :  { %11587 = vmatpush1.bf16.msra.mxu1 %v13961_v2  ;;  %v11229_v2 = vld [vmem:[#allocation8 + $0x1d18] sm:$0xff]  ;;  %v11779_v28 = vld [vmem:[#allocation8 + $0x1ee0] sm:$0xff] }
 0x665   :  { %11588 = vmatprep.subr.bf16.mxu1 %v13970_v61  ;;  %v13965_v61 = vcombine.low %v11228_v1, %v11232_v6  ;;  %v14018_v1 = vcombine.high %v11775_v20, %v11779_v28 }
 0x666   :  { %11626 = vmatpush1.bf16.msra.mxu0 %v13955_v27  ;;  %v11233_v27 = vld [vmem:[#allocation8 + $0x1d38] sm:$0xff] }
 0x667   :  { %11627 = vmatprep.subr.bf16.mxu0 %v13964_v41  ;;  %v13959_v41 = vcombine.low %v11221_v16, %v11225_v4  ;;  %v13968_v43 = vcombine.high %v11229_v2, %v11233_v27  ;;  %v11783_v16 = vld [vmem:[#allocation8 + $0x1f00] sm:$0xff] }
 0x668   :  { %11589 = vmatpush1.bf16.msra.mxu1 %v13969_v5  ;;  %v11237_v5 = vld [vmem:[#allocation8 + $0x1d58] sm:$0xff]  ;;  %v11787_v4 = vld [vmem:[#allocation8 + $0x1f20] sm:$0xff] }
 0x669   :  { %11590 = vmatprep.subr.bf16.mxu1 %v13978_v48  ;;  %v13973_v48 = vcombine.low %v11236_v39, %v11240_v12  ;;  %v14026_v39 = vcombine.high %v11783_v16, %v11787_v4 }
 0x66a   :  { %11628 = vmatpush1.bf16.msra.mxu0 %v13963_v3  ;;  %v11241_v3 = vld [vmem:[#allocation8 + $0x1d78] sm:$0xff] }
 0x66b   :  { %11629 = vmatprep.subr.bf16.mxu0 %v13972_v63  ;;  %v13967_v63 = vcombine.low %v11229_v2, %v11233_v27  ;;  %v13976_v10 = vcombine.high %v11237_v5, %v11241_v3  ;;  %v11791_v2 = vld [vmem:[#allocation8 + $0x1f40] sm:$0xff] }
 0x66c   :  { %11591 = vmatpush1.bf16.msra.mxu1 %v13977_v21  ;;  %v11245_v21 = vld [vmem:[#allocation8 + $0x1d98] sm:$0xff]  ;;  %v11795_v27 = vld [vmem:[#allocation8 + $0x1f60] sm:$0xff] }
 0x66d   :  { %11592 = vmatprep.subr.bf16.mxu1 %v13986_v51  ;;  %v13981_v51 = vcombine.low %v11244_v40, %v11248_v23  ;;  %v14034_v40 = vcombine.high %v11791_v2, %v11795_v27 }
 0x66e   :  { %11630 = vmatpush1.bf16.msra.mxu0 %v13971_v45  ;;  %v11249_v45 = vld [vmem:[#allocation8 + $0x1db8] sm:$0xff] }
 0x66f   :  { %11631 = vmatprep.subr.bf16.mxu0 %v13980_v42  ;;  %v13975_v42 = vcombine.low %v11237_v5, %v11241_v3  ;;  %v13984_v56 = vcombine.high %v11245_v21, %v11249_v45  ;;  %v11799_v5 = vld [vmem:[#allocation8 + $0x1f80] sm:$0xff] }
 0x670   :  { %11593 = vmatpush1.bf16.msra.mxu1 %v13985_v36  ;;  %v11253_v36 = vld [vmem:[#allocation8 + $0x1dd8] sm:$0xff]  ;;  %v11803_v3 = vld [vmem:[#allocation8 + $0x1fa0] sm:$0xff] }
 0x671   :  { %11660 = vmatprep.subr.bf16.mxu1 %v13934_v58  ;;  %v13989_v58 = vcombine.low %v11252_v31, %v11256_v25  ;;  %v14042_v31 = vcombine.high %v11799_v5, %v11803_v3 }
 0x672   :  { %11632 = vmatpush1.bf16.msra.mxu0 %v13979_v13  ;;  %v11257_v13 = vld [vmem:[#allocation8 + $0x1df8] sm:$0xff] }
 0x673   :  { %11633 = vmatprep.subr.bf16.mxu0 %v13988_v24  ;;  %11611 = vmatmul.mubr.bf16.vlgmr.msra.gmra.mrb[0].mxu1 %v17127_v37  ;;  %v13983_v24 = vcombine.low %v11245_v21, %v11249_v45  ;;  %v13992_v22 = vcombine.high %v11253_v36, %v11257_v13  ;;  %v11807_v21 = vld [vmem:[#allocation8 + $0x1fc0] sm:$0xff] }
 0x674   :  { %11661 = vmatpush1.bf16.msra.mxu1 %v13933_v34  ;;  %11692 = vmatprep.mubr.bf16.mxu1 %v14762_v59  ;;  %v11752_v34 = vld [vmem:[#allocation8 + $0x1e08] sm:$0xff]  ;;  %v11811_v45 = vld [vmem:[#allocation8 + $0x1fe0] sm:$0xff] }
 0x675   :  { %11662 = vmatprep.subr.bf16.mxu1 %v13942_v14  ;;  %v13993_v14 = vcombine.low %v11751_v44, %v11755_v35  ;;  %v14050_v44 = vcombine.high %v11807_v21, %v11811_v45 }
 0x676   :  { %11634 = vmatpush1.bf16.msra.mxu0 %v13987_v8  ;;  %v11756_v8 = vld [vmem:[#allocation8 + $0x1e28] sm:$0xff] }
 0x677   :  { %11701 = vmatprep.subr.bf16.mxu0 %v13936_v33  ;;  %v13991_v33 = vcombine.low %v11253_v36, %v11257_v13  ;;  %v13996_v11 = vcombine.high %v11752_v34, %v11756_v8  ;;  %v11753_v36 = vld [vmem:[#allocation8 + $0x1e10] sm:$0xff] }
 0x678   :  { %11663 = vmatpush1.bf16.msra.mxu1 %v13941_v52  ;;  %v11760_v52 = vld [vmem:[#allocation8 + $0x1e48] sm:$0xff]  ;;  %v11757_v13 = vld [vmem:[#allocation8 + $0x1e30] sm:$0xff] }
 0x679   :  { %11652 = vmatmul.mubr.bf16.vlgmr.msra.gmra.mrb[16].mxu0 %v17127_v37  ;;  %11664 = vmatprep.subr.bf16.mxu1 %v13950_v29  ;;  %v14001_v29 = vcombine.low %v11759_v55, %v11763_v26  ;;  %v13998_v55 = vcombine.high %v11753_v36, %v11757_v13 }
 0x67a   :  { %11702 = vmatpush1.bf16.msra.mxu0 %v13935_v18  ;;  %11733 = vmatprep.mubr.bf16.mxu0 %v14762_v59  ;;  %v11764_v18 = vld [vmem:[#allocation8 + $0x1e68] sm:$0xff] }
 0x67b   :  { %11703 = vmatprep.subr.bf16.mxu0 %v13944_v49  ;;  %v13995_v49 = vcombine.low %v11752_v34, %v11756_v8  ;;  %v14004_v30 = vcombine.high %v11760_v52, %v11764_v18  ;;  %v11761_v34 = vld [vmem:[#allocation8 + $0x1e50] sm:$0xff] }
 0x67c   :  { %11665 = vmatpush1.bf16.msra.mxu1 %v13949_v7  ;;  %v11768_v7 = vld [vmem:[#allocation8 + $0x1e88] sm:$0xff]  ;;  %v11765_v8 = vld [vmem:[#allocation8 + $0x1e70] sm:$0xff] }
 0x67d   :  { %11666 = vmatprep.subr.bf16.mxu1 %v13958_v15  ;;  %v14009_v15 = vcombine.low %v11767_v62, %v11771_v0  ;;  %v17239_v62 = vrot.slane %v17127_v37, 4  ;;  %v14006_v0 = vcombine.high %v11761_v34, %v11765_v8 }
 0x67e   :  { %11704 = vmatpush1.bf16.msra.mxu0 %v13943_v17  ;;  %v11772_v17 = vld [vmem:[#allocation8 + $0x1ea8] sm:$0xff] }
 0x67f   :  { %11705 = vmatprep.subr.bf16.mxu0 %v13952_v47  ;;  %v14003_v47 = vcombine.low %v11760_v52, %v11764_v18  ;;  %v14012_v6 = vcombine.high %v11768_v7, %v11772_v17  ;;  %v11769_v18 = vld [vmem:[#allocation8 + $0x1e90] sm:$0xff] }
 0x680   :  { %11667 = vmatpush1.bf16.msra.mxu1 %v13957_v54  ;;  %v11776_v54 = vld [vmem:[#allocation8 + $0x1ec8] sm:$0xff] }
 0x681   :  { %11668 = vmatprep.subr.bf16.mxu1 %v13966_v9  ;;  %v14017_v9 = vcombine.low %v11775_v20, %v11779_v28 }
 0x682   :  { %11706 = vmatpush1.bf16.msra.mxu0 %v13951_v57  ;;  %v11780_v57 = vld [vmem:[#allocation8 + $0x1ee8] sm:$0xff] }
 0x683   :  { %11707 = vmatprep.subr.bf16.mxu0 %v13960_v38  ;;  %v14011_v38 = vcombine.low %v11768_v7, %v11772_v17  ;;  %v14020_v12 = vcombine.high %v11776_v54, %v11780_v57  ;;  %v11777_v7 = vld [vmem:[#allocation8 + $0x1ed0] sm:$0xff] }
 0x684   :  { %11669 = vmatpush1.bf16.msra.mxu1 %v13965_v61  ;;  %v11784_v61 = vld [vmem:[#allocation8 + $0x1f08] sm:$0xff]  ;;  %v11781_v17 = vld [vmem:[#allocation8 + $0x1ef0] sm:$0xff] }
 0x685   :  { %11670 = vmatprep.subr.bf16.mxu1 %v13974_v19  ;;  %v14025_v19 = vcombine.low %v11783_v16, %v11787_v4  ;;  %v14022_v16 = vcombine.high %v11777_v7, %v11781_v17 }
 0x686   :  { %11708 = vmatpush1.bf16.msra.mxu0 %v13959_v41  ;;  %v11788_v41 = vld [vmem:[#allocation8 + $0x1f28] sm:$0xff] }
 0x687   :  { %11709 = vmatprep.subr.bf16.mxu0 %v13968_v43  ;;  %v14019_v43 = vcombine.low %v11776_v54, %v11780_v57  ;;  %v14028_v23 = vcombine.high %v11784_v61, %v11788_v41  ;;  %v11785_v54 = vld [vmem:[#allocation8 + $0x1f10] sm:$0xff] }
 0x688   :  { %11671 = vmatpush1.bf16.msra.mxu1 %v13973_v48  ;;  %v11792_v48 = vld [vmem:[#allocation8 + $0x1f48] sm:$0xff]  ;;  %v11789_v57 = vld [vmem:[#allocation8 + $0x1f30] sm:$0xff] }
 0x689   :  { %11672 = vmatprep.subr.bf16.mxu1 %v13982_v53  ;;  %v14033_v53 = vcombine.low %v11791_v2, %v11795_v27  ;;  %v14030_v2 = vcombine.high %v11785_v54, %v11789_v57 }
 0x68a   :  { %11710 = vmatpush1.bf16.msra.mxu0 %v13967_v63  ;;  %v11796_v63 = vld [vmem:[#allocation8 + $0x1f68] sm:$0xff] }
 0x68b   :  { %11711 = vmatprep.subr.bf16.mxu0 %v13976_v10  ;;  %v14027_v10 = vcombine.low %v11784_v61, %v11788_v41  ;;  %v14036_v25 = vcombine.high %v11792_v48, %v11796_v63  ;;  %v11793_v61 = vld [vmem:[#allocation8 + $0x1f50] sm:$0xff] }
 0x68c   :  { %11673 = vmatpush1.bf16.msra.mxu1 %v13981_v51  ;;  %v11800_v51 = vld [vmem:[#allocation8 + $0x1f88] sm:$0xff]  ;;  %v11797_v41 = vld [vmem:[#allocation8 + $0x1f70] sm:$0xff] }
 0x68d   :  { %11674 = vmatprep.subr.bf16.mxu1 %v13990_v32  ;;  %v14041_v32 = vcombine.low %v11799_v5, %v11803_v3  ;;  %v11801_v3 = vld [vmem:[#allocation8 + $0x1f90] sm:$0xff] }
 0x68e   :  { %11712 = vmatpush1.bf16.msra.mxu0 %v13975_v42  ;;  %v11804_v42 = vld [vmem:[#allocation8 + $0x1fa8] sm:$0xff] }
 0x68f   :  { %11713 = vmatprep.subr.bf16.mxu0 %v13984_v56  ;;  %v14035_v56 = vcombine.low %v11792_v48, %v11796_v63  ;;  %v14044_v35 = vcombine.high %v11800_v51, %v11804_v42  ;;  %v11805_v48 = vld [vmem:[#allocation8 + $0x1fb0] sm:$0xff]  ;;  %v11794_v63 = vld [vmem:[#allocation8 + $0x1f58] sm:$0xff] }
 0x690   :  { %11675 = vmatpush1.bf16.msra.mxu1 %v13989_v58  ;;  %v11808_v58 = vld [vmem:[#allocation8 + $0x1fc8] sm:$0xff] }
 0x691   :  { %12138 = vmatprep.subr.bf16.mxu1 %v13994_v50  ;;  %v14049_v50 = vcombine.low %v11807_v21, %v11811_v45  ;;  %v11809_v45 = vld [vmem:[#allocation8 + $0x1fd0] sm:$0xff] }
 0x692   :  { %11714 = vmatpush1.bf16.msra.mxu0 %v13983_v24  ;;  %v11812_v24 = vld [vmem:[#allocation8 + $0x1fe8] sm:$0xff] }
 0x693   :  { %11715 = vmatprep.subr.bf16.mxu0 %v13992_v22  ;;  %11693 = vmatmul.mubr.bf16.vlgmr.msra.gmra.mrb[4].mxu1 %v17127_v37  ;;  %v14043_v22 = vcombine.low %v11800_v51, %v11804_v42  ;;  %v14052_v26 = vcombine.high %v11808_v58, %v11812_v24  ;;  %v11813_v51 = vld [vmem:[#allocation8 + $0x1ff0] sm:$0xff]  ;;  %v11802_v42 = vld [vmem:[#allocation8 + $0x1f98] sm:$0xff] }
 0x694   :  { %12139 = vmatpush1.bf16.msra.mxu1 %v13993_v14  ;;  %12170 = vmatprep.mubr.bf16.mxu1 %v14762_v59  ;;  %v11754_v14 = vld [vmem:[#allocation8 + $0x1e18] sm:$0xff] }
 0x695   :  { %12140 = vmatprep.subr.bf16.mxu1 %v14002_v46  ;;  %v13997_v46 = vcombine.low %v11753_v36, %v11757_v13  ;;  %v11810_v13 = vld [vmem:[#allocation8 + $0x1fd8] sm:$0xff] }
 0x696   :  { %11716 = vmatpush1.bf16.msra.mxu0 %v13991_v33  ;;  %v11758_v33 = vld [vmem:[#allocation8 + $0x1e38] sm:$0xff] }
 0x697   :  { %12179 = vmatprep.subr.bf16.mxu0 %v13996_v11  ;;  %v14051_v11 = vcombine.low %v11808_v58, %v11812_v24  ;;  %v14000_v52 = vcombine.high %v11754_v14, %v11758_v33  ;;  %v13999_v20 = vcombine.low %v11754_v14, %v11758_v33  ;;  %v11814_v58 = vld [vmem:[#allocation8 + $0x1ff8] sm:$0xff]  ;;  %v14053_v24 = vcombine.low %v11809_v45, %v11813_v51  ;;  %v14500_v14 = vld [vmem:[#allocation11 + $0xc0] sm:$0xff]   ;;  %v14505_v33 = vld [vmem:[#allocation11 + $0x8] sm:$0xff]  }
 0x698   :  { %12141 = vmatpush1.bf16.msra.mxu1 %v14001_v29  ;;  %v11773_v29 = vld [vmem:[#allocation8 + $0x1eb0] sm:$0xff] }
 0x699   :  { %11734 = vmatmul.mubr.bf16.vlgmr.msra.gmra.mrb[20].mxu0 %v17127_v37  ;;  %12142 = vmatprep.subr.bf16.mxu1 %v14010_v60  ;;  %v11766_v60 = vld [vmem:[#allocation8 + $0x1e78] sm:$0xff]  ;;  %v14014_v28 = vcombine.high %v11769_v18, %v11773_v29 }
 0x69a   :  { %12180 = vmatpush1.bf16.msra.mxu0 %v13995_v49  ;;  %12211 = vmatprep.mubr.bf16.mxu0 %v14762_v59  ;;  %v11762_v49 = vld [vmem:[#allocation8 + $0x1e58] sm:$0xff] }
 0x69b   :  { %12181 = vmatprep.subr.bf16.mxu0 %v14004_v30  ;;  %v14005_v30 = vcombine.low %v11761_v34, %v11765_v8  ;;  %v14008_v37 = vcombine.high %v11762_v49, %v11766_v60  ;;  %v14055_v34 = vcombine.low %v11810_v13, %v11814_v58  ;;  %v14503_v8 = vld [vmem:[#allocation11 + $0x48] sm:$0xff]  }
 0x69c   :  { %12143 = vmatpush1.bf16.msra.mxu1 %v14009_v15  ;;  %v11770_v15 = vld [vmem:[#allocation8 + $0x1e98] sm:$0xff] }
 0x69d   :  { %12144 = vmatprep.subr.bf16.mxu1 %v14018_v1  ;;  %v14013_v1 = vcombine.low %v11769_v18, %v11773_v29  ;;  %v14506_v18 = vld [vmem:[#allocation11 + $0x88] sm:$0xff]   ;;  %v14511_v29 = vld [vmem:[#allocation11 + $0x58] sm:$0xff]  }
 0x69e   :  { %12182 = vmatpush1.bf16.msra.mxu0 %v14003_v47  ;;  %v11774_v47 = vld [vmem:[#allocation8 + $0x1eb8] sm:$0xff] }
 0x69f   :  { %12183 = vmatprep.subr.bf16.mxu0 %v14012_v6  ;;  %v14007_v6 = vcombine.low %v11762_v49, %v11766_v60  ;;  %v14016_v4 = vcombine.high %v11770_v15, %v11774_v47  ;;  %v14508_v49 = vld [vmem:[#allocation11 + $0xd0] sm:$0xff]   ;;  %v14513_v60 = vld [vmem:[#allocation11 + $0x18] sm:$0xff]  }
 0x6a0   :  { %12145 = vmatpush1.bf16.msra.mxu1 %v14017_v9  ;;  %v11778_v9 = vld [vmem:[#allocation8 + $0x1ed8] sm:$0xff] }
 0x6a1   :  { %12146 = vmatprep.subr.bf16.mxu1 %v14026_v39  ;;  %v14021_v39 = vcombine.low %v11777_v7, %v11781_v17  ;;  %v14519_v7 = vld [vmem:[#allocation11 + $0x68] sm:$0xff]   ;;  %v14516_v17 = vld [vmem:[#allocation11 + $0xe0] sm:$0xff]  }
 0x6a2   :  { %12184 = vmatpush1.bf16.msra.mxu0 %v14011_v38  ;;  %v11782_v38 = vld [vmem:[#allocation8 + $0x1ef8] sm:$0xff] }
 0x6a3   :  { %12185 = vmatprep.subr.bf16.mxu0 %v14020_v12  ;;  %v14015_v12 = vcombine.low %v11770_v15, %v11774_v47  ;;  %v14024_v27 = vcombine.high %v11778_v9, %v11782_v38  ;;  %v14521_v15 = vld [vmem:[#allocation11 + $0x28] sm:$0xff]   ;;  %v14518_v47 = vld [vmem:[#allocation11 + $0xa0] sm:$0xff]  }
 0x6a4   :  { %12147 = vmatpush1.bf16.msra.mxu1 %v14025_v19  ;;  %v11786_v19 = vld [vmem:[#allocation8 + $0x1f18] sm:$0xff] }
 0x6a5   :  { %12148 = vmatprep.subr.bf16.mxu1 %v14034_v40  ;;  %v14029_v40 = vcombine.low %v11785_v54, %v11789_v57  ;;  %v14525_v54 = vld [vmem:[#allocation11 + $0x30] sm:$0xff]  }
 0x6a6   :  { %12186 = vmatpush1.bf16.msra.mxu0 %v14019_v43  ;;  %v11790_v43 = vld [vmem:[#allocation8 + $0x1f38] sm:$0xff] }
 0x6a7   :  { %12187 = vmatprep.subr.bf16.mxu0 %v14028_v23  ;;  %v14023_v23 = vcombine.low %v11778_v9, %v11782_v38  ;;  %v14032_v5 = vcombine.high %v11786_v19, %v11790_v43  ;;  %v14526_v57 = vld [vmem:[#allocation11 + $0xb0] sm:$0xff]   ;;  %v14527_v9 = vld [vmem:[#allocation11 + $0x78] sm:$0xff]  }
 0x6a8   :  { %12149 = vmatpush1.bf16.msra.mxu1 %v14033_v53  ;;  %v11798_v53 = vld [vmem:[#allocation8 + $0x1f78] sm:$0xff]  ;;  %v14528_v38 = vld [vmem:[#allocation11 + $0xf8] sm:$0xff]  }
 0x6a9   :  { %12150 = vmatprep.subr.bf16.mxu1 %v14042_v31  ;;  %v14031_v31 = vcombine.low %v11786_v19, %v11790_v43  ;;  %v14040_v21 = vcombine.high %v11794_v63, %v11798_v53  ;;  %v17250_v43 = vld [vmem:[#allocation10] sm:$0xff] }
 0x6aa   :  { %12188 = vmatpush1.bf16.msra.mxu0 %v14027_v10  ;;  %v14037_v10 = vcombine.low %v11793_v61, %v11797_v41 }
 0x6ab   :  { %12189 = vmatprep.subr.bf16.mxu0 %v14036_v25  ;;  %v14046_v25 = vcombine.high %v11801_v3, %v11805_v48 }
 0x6ac   :  { %12151 = vmatpush1.bf16.msra.mxu1 %v14041_v32  ;;  %v11806_v32 = vld [vmem:[#allocation8 + $0x1fb8] sm:$0xff] }
 0x6ad   :  { %12152 = vmatprep.subr.bf16.mxu1 %v14050_v44  ;;  %v14039_v44 = vcombine.low %v11794_v63, %v11798_v53  ;;  %v14048_v36 = vcombine.high %v11802_v42, %v11806_v32 }
 0x6ae   :  { %12190 = vmatpush1.bf16.msra.mxu0 %v14035_v56  ;;  %v14045_v56 = vcombine.low %v11801_v3, %v11805_v48 }
 0x6af   :  { %12191 = vmatprep.subr.bf16.mxu0 %v14044_v35  ;;  %v14054_v35 = vcombine.high %v11809_v45, %v11813_v51 }
 0x6b0   :  { %12153 = vmatpush1.bf16.msra.mxu1 %v14049_v50  ;;  %v14047_v50 = vcombine.low %v11802_v42, %v11806_v32 }
 0x6b1   :  { %12220 = vmatprep.subr.bf16.mxu1 %v13998_v55  ;;  %v14056_v55 = vcombine.high %v11810_v13, %v11814_v58 }
 0x6b2   :  { %12192 = vmatpush1.bf16.msra.mxu0 %v14043_v22  ;;  %v14499_v22 = vld [vmem:[#allocation11 + $0x40] sm:$0xff]  }
 0x6b3   :  { %12193 = vmatprep.subr.bf16.mxu0 %v14052_v26  ;;  %12171 = vmatmul.mubr.bf16.vlgmr.msra.gmra.mrb[0].mxu1 %v17239_v62  ;;  %v14501_v26 = vld [vmem:[#allocation11] sm:$0xff]  }
 0x6b4   :  { %12221 = vmatpush1.bf16.msra.mxu1 %v13997_v46  ;;  %12252 = vmatprep.mubr.bf16.mxu1 %v14762_v59  ;;  %v14502_v46 = vld [vmem:[#allocation11 + $0x80] sm:$0xff]  }
 0x6b5   :  { %12222 = vmatprep.subr.bf16.mxu1 %v14006_v0  ;;  %v14504_v0 = vld [vmem:[#allocation11 + $0xc8] sm:$0xff]  }
 0x6b6   :  { %12194 = vmatpush1.bf16.msra.mxu0 %v14051_v11  ;;  %v14507_v11 = vld [vmem:[#allocation11 + $0x50] sm:$0xff]  }
 0x6b7   :  { %12261 = vmatprep.subr.bf16.mxu0 %v14000_v52  ;;  %v14509_v52 = vld [vmem:[#allocation11 + $0x10] sm:$0xff]  }
 0x6b8   :  { %12223 = vmatpush1.bf16.msra.mxu1 %v14005_v30  ;;  %v14510_v30 = vld [vmem:[#allocation11 + $0x90] sm:$0xff]  }
 0x6b9   :  { %12212 = vmatmul.mubr.bf16.vlgmr.msra.gmra.mrb[16].mxu0 %v17239_v62  ;;  %12224 = vmatprep.subr.bf16.mxu1 %v14014_v28  ;;  %v14512_v28 = vld [vmem:[#allocation11 + $0xd8] sm:$0xff]  }
 0x6ba   :  { %12262 = vmatpush1.bf16.msra.mxu0 %v13999_v20  ;;  %12293 = vmatprep.mubr.bf16.mxu0 %v14762_v59  ;;  %v14038_v59 = vcombine.high %v11793_v61, %v11797_v41  ;;  %v14515_v20 = vld [vmem:[#allocation11 + $0x60] sm:$0xff]   ;;  %v3335_v61 = vlaneseq }
 0x6bb   :  { %12263 = vmatprep.subr.bf16.mxu0 %v14008_v37  ;;  %v14517_v37 = vld [vmem:[#allocation11 + $0x20] sm:$0xff]  }
 0x6bc   :  { %12225 = vmatpush1.bf16.msra.mxu1 %v14013_v1  ;;  %v14520_v1 = vld [vmem:[#allocation11 + $0xe8] sm:$0xff]   ;;  %v17247_v41 = vshrl.u32 %v3335_v61, 7 }
 0x6bd   :  { %12226 = vmatprep.subr.bf16.mxu1 %v14022_v16  ;;  %v14523_v16 = vld [vmem:[#allocation11 + $0x70] sm:$0xff]  }
 0x6be   :  { %12264 = vmatpush1.bf16.msra.mxu0 %v14007_v6  ;;  %v14522_v6 = vld [vmem:[#allocation11 + $0xa8] sm:$0xff]   ;;  %v3337_v19 = vsub.s32 0, %v17247_v41  ;;  %v3349_v3 = vsub.s32 3, %v17247_v41 }
 0x6bf   :  { %12265 = vmatprep.subr.bf16.mxu0 %v14016_v4  ;;  %v14524_v4 = vld [vmem:[#allocation11 + $0xf0] sm:$0xff]  }
 0x6c0   :  { %12227 = vmatpush1.bf16.msra.mxu1 %v14021_v39  ;;  %v14529_v39 = vld [vmem:[#allocation11 + $0x38] sm:$0xff]   ;;  %v3350_v45 = vrot.slane %v17250_v43, %v3349_v3 }
 0x6c1   :  { %12228 = vmatprep.subr.bf16.mxu1 %v14030_v2  ;;  %v14531_v2 = vld [vmem:[#allocation11 + $0x140] sm:$0xff]  }
 0x6c2   :  { %12266 = vmatpush1.bf16.msra.mxu0 %v14015_v12  ;;  %v14530_v12 = vld [vmem:[#allocation11 + $0xb8] sm:$0xff]  }
 0x6c3   :  { %12267 = vmatprep.subr.bf16.mxu0 %v14024_v27  ;;  %v14532_v27 = vld [vmem:[#allocation11 + $0x1c0] sm:$0xff]  }
 0x6c4   :  { %12229 = vmatpush1.bf16.msra.mxu1 %v14029_v40  ;;  %v3341_v40 = vsub.s32 1, %v17247_v41 }
 0x6c5   :  { %12230 = vmatprep.subr.bf16.mxu1 %v14038_v59  ;;  %v3345_v59 = vsub.s32 2, %v17247_v41 }
 0x6c6   :  { %12268 = vmatpush1.bf16.msra.mxu0 %v14023_v23  ;;  %v3338_v23 = vrot.slane %v17250_v43, %v3337_v19 }
 0x6c7   :  { %12269 = vmatprep.subr.bf16.mxu0 %v14032_v5  ;;  %v3342_v5 = vrot.slane %v17250_v43, %v3341_v40 }
 0x6c8   :  { %12231 = vmatpush1.bf16.msra.mxu1 %v14037_v10  ;;  %v3346_v10 = vrot.slane %v17250_v43, %v3345_v59 }
 0x6c9   :  { %12232 = vmatprep.subr.bf16.mxu1 %v14046_v25 }
 0x6ca   :  { %12270 = vmatpush1.bf16.msra.mxu0 %v14031_v31 }
 0x6cb   :  { %12271 = vmatprep.subr.bf16.mxu0 %v14040_v21 }
 0x6cc   :  { %12233 = vmatpush1.bf16.msra.mxu1 %v14045_v56 }
 0x6cd   :  { %12234 = vmatprep.subr.bf16.mxu1 %v14054_v35 }
 0x6ce   :  { %12272 = vmatpush1.bf16.msra.mxu0 %v14039_v44 }
 0x6cf   :  { %12273 = vmatprep.subr.bf16.mxu0 %v14048_v36  ;;  %v14533_v36 = vld [vmem:[#allocation11 + $0x100] sm:$0xff]  }
 0x6d0   :  { %12235 = vmatpush1.bf16.msra.mxu1 %v14053_v24 }
 0x6d1   :  { %14131 = vmatprep.subr.bf16.mxu1 %v14499_v22 }
 0x6d2   :  { %12274 = vmatpush1.bf16.msra.mxu0 %v14047_v50  ;;  %v14535_v50 = vld [vmem:[#allocation11 + $0x148] sm:$0xff]  }
 0x6d3   :  { %12275 = vmatprep.subr.bf16.mxu0 %v14056_v55  ;;  %12253 = vmatmul.mubr.bf16.vlgmr.msra.gmra.mrb[4].mxu1 %v17239_v62 }
 0x6d4   :  { %14132 = vmatpush3.bf16.msra.mxu1 %v14501_v26 }
 0x6d5   :  { %14133 = vmatprep.subr.bf16.mxu1 %v14503_v8 }
 0x6d6   :  { %12276 = vmatpush1.bf16.msra.mxu0 %v14055_v34  ;;  %v14537_v34 = vld [vmem:[#allocation11 + $0x108] sm:$0xff]  }
 0x6d7   :  { %14153 = vmatprep.subr.bf16.mxu0 %v14500_v14  ;;  %v14534_v14 = vld [vmem:[#allocation11 + $0x180] sm:$0xff]  }
 0x6d8   :  { %14134 = vmatpush3.bf16.msra.mxu1 %v14505_v33  ;;  %v14539_v33 = vld [vmem:[#allocation11 + $0x150] sm:$0xff]  }
 0x6d9   :  { %12294 = vmatmul.mubr.bf16.vlgmr.msra.gmra.mrb[20].mxu0 %v17239_v62  ;;  %14135 = vmatprep.subr.bf16.mxu1 %v14507_v11  ;;  %v14514_v62 = vld [vmem:[#allocation11 + $0x98] sm:$0xff]   ;;  %v14536_v11 = vld [vmem:[#allocation11 + $0x1c8] sm:$0xff]  }
 0x6da   :  { %14154 = vmatpush3.bf16.msra.mxu0 %v14502_v46 }
 0x6db   :  { %14155 = vmatprep.subr.bf16.mxu0 %v14504_v0  ;;  %v14541_v0 = vld [vmem:[#allocation11 + $0x110] sm:$0xff]  }
 0x6dc   :  { %14136 = vmatpush3.bf16.msra.mxu1 %v14509_v52  ;;  %v14538_v52 = vld [vmem:[#allocation11 + $0x188] sm:$0xff]  }
 0x6dd   :  { %14137 = vmatprep.subr.bf16.mxu1 %v14511_v29  ;;  %v14540_v29 = vld [vmem:[#allocation11 + $0x1d0] sm:$0xff]  }
 0x6de   :  { %14156 = vmatpush3.bf16.msra.mxu0 %v14506_v18  ;;  %v14543_v18 = vld [vmem:[#allocation11 + $0x158] sm:$0xff]  }
 0x6df   :  { %14157 = vmatprep.subr.bf16.mxu0 %v14508_v49  ;;  %v14545_v49 = vld [vmem:[#allocation11 + $0x118] sm:$0xff]  }
 0x6e0   :  { %14138 = vmatpush3.bf16.msra.mxu1 %v14513_v60  ;;  %v14542_v60 = vld [vmem:[#allocation11 + $0x190] sm:$0xff]  }
 0x6e1   :  { %14139 = vmatprep.subr.bf16.mxu1 %v14515_v20  ;;  %v14544_v20 = vld [vmem:[#allocation11 + $0x1d8] sm:$0xff]  }
 0x6e2   :  { %14158 = vmatpush3.bf16.msra.mxu0 %v14510_v30  ;;  %v14547_v30 = vld [vmem:[#allocation11 + $0x160] sm:$0xff]  }
 0x6e3   :  { %14159 = vmatprep.subr.bf16.mxu0 %v14512_v28  ;;  %v14549_v28 = vld [vmem:[#allocation11 + $0x120] sm:$0xff]  }
 0x6e4   :  { %14140 = vmatpush3.bf16.msra.mxu1 %v14517_v37  ;;  %v14546_v37 = vld [vmem:[#allocation11 + $0x198] sm:$0xff]  }
 0x6e5   :  { %14141 = vmatprep.subr.bf16.mxu1 %v14519_v7  ;;  %v14548_v7 = vld [vmem:[#allocation11 + $0x1e0] sm:$0xff]  }
 0x6e6   :  { %14160 = vmatpush3.bf16.msra.mxu0 %v14514_v62  ;;  %v14551_v62 = vld [vmem:[#allocation11 + $0x168] sm:$0xff]  }
 0x6e7   :  { %14161 = vmatprep.subr.bf16.mxu0 %v14516_v17  ;;  %v3353_v17 = vsub.s32 4, %v17247_v41 }
 0x6e8   :  { %14142 = vmatpush3.bf16.msra.mxu1 %v14521_v15  ;;  %v14553_v15 = vld [vmem:[#allocation11 + $0x128] sm:$0xff]  }
 0x6e9   :  { %14143 = vmatprep.subr.bf16.mxu1 %v14523_v16  ;;  %v14552_v16 = vld [vmem:[#allocation11 + $0x1e8] sm:$0xff]  }
 0x6ea   :  { %14162 = vmatpush3.bf16.msra.mxu0 %v14518_v47  ;;  %v3357_v47 = vsub.s32 5, %v17247_v41 }
 0x6eb   :  { %14163 = vmatprep.subr.bf16.mxu0 %v14520_v1  ;;  %v14550_v1 = vld [vmem:[#allocation11 + $0x1a0] sm:$0xff]  }
 0x6ec   :  { %14144 = vmatpush3.bf16.msra.mxu1 %v14525_v54  ;;  %v3361_v54 = vsub.s32 6, %v17247_v41 }
 0x6ed   :  { %14145 = vmatprep.subr.bf16.mxu1 %v14527_v9  ;;  %v14557_v9 = vld [vmem:[#allocation11 + $0x130] sm:$0xff]  }
 0x6ee   :  { %14164 = vmatpush3.bf16.msra.mxu0 %v14522_v6  ;;  %v14555_v6 = vld [vmem:[#allocation11 + $0x170] sm:$0xff]   ;;  %v3362_v40 = vrot.slane %v17250_v43, %v3361_v54 }
 0x6ef   :  { %14165 = vmatprep.subr.bf16.mxu0 %v14524_v4  ;;  %v3354_v4 = vrot.slane %v17250_v43, %v3353_v17 }
 0x6f0   :  { %14146 = vmatpush3.bf16.msra.mxu1 %v14529_v39  ;;  %v3365_v39 = vsub.s32 7, %v17247_v41 }
 0x6f1   :  { %14175 = vmatprep.subr.bf16.mxu1 %v14531_v2 }
 0x6f2   :  { %14166 = vmatpush3.bf16.msra.mxu0 %v14526_v57  ;;  %v3358_v57 = vrot.slane %v17250_v43, %v3357_v47 }
 0x6f3   :  { %14167 = vmatprep.subr.bf16.mxu0 %v14528_v38  ;;  %v14554_v38 = vld [vmem:[#allocation11 + $0x1a8] sm:$0xff]  }
 0x6f6   :  { %14168 = vmatpush3.bf16.msra.mxu0 %v14530_v12  ;;  %v14559_v12 = vld [vmem:[#allocation11 + $0x178] sm:$0xff]  }
 0x6f7   :  { %14197 = vmatprep.subr.bf16.mxu0 %v14532_v27  ;;  %v14556_v27 = vld [vmem:[#allocation11 + $0x1f0] sm:$0xff]  }
 0x786   :  { %v12172_v48 = vpop.f32.mrb[0].mxu1 }
 0x787   :  { %v14237_v63 = vadd.f32 %v12172_v48, %v3338_v23  ;;  %v12174_v53 = vpop.f32.mrb[1].mxu1  ;;  %v3366_v48 = vrot.slane %v17250_v43, %v3365_v39 }
 0x788   :  { %v14238_v31 = vadd.f32 %v12174_v53, %v3342_v5  ;;  %v12176_v25 = vpop.f32.mrb[2].mxu1  ;;  %v14561_v5 = vld [vmem:[#allocation11 + $0x138] sm:$0xff]  }
 0x789   :  { %v12310_v21 = vmax.f32 %v14237_v63, 0.0  ;;  %v12177_v51 = vpop.f32.mrb[3].mxu1  ;;  %v14558_v63 = vld [vmem:[#allocation11 + $0x1b0] sm:$0xff]  }
 0x78a   :  { %v12311_v42 = vmax.f32 %v14238_v31, 0.0 }
 0x78b   :  { %v12318_v13 = vpack.c.bf16 %v12310_v21, %v12310_v21 }
 0x78c   :  { %v12213_v32 = vpop.f32.mrb[16].mxu0  ;;  %v12319_v44 = vpack.c.bf16 %v12311_v42, %v12311_v42 }
 0x78d   :  { %v14239_v56 = vadd.f32 %v12213_v32, %v3346_v10  ;;  %v12215_v35 = vpop.f32.mrb[17].mxu0  ;;  %v14560_v10 = vld [vmem:[#allocation11 + $0x1f8] sm:$0xff]  }
 0x78e   :  { %v14240_v58 = vadd.f32 %v12215_v35, %v3350_v45  ;;  %v12217_v24 = vpop.f32.mrb[18].mxu0  ;;  %12877 = vmatprep.mubr.bf16.mxu1 %v12319_v44 }
 0x78f   :  { %v12312_v22 = vmax.f32 %v14239_v56, 0.0  ;;  %v12218_v55 = vpop.f32.mrb[19].mxu0  ;;  %12878 = vmatmul.mubr.bf16.vlgmr.msra.gmra.mrb[8].mxu1 %v12318_v13  ;;  %v14562_v56 = vld [vmem:[#allocation11 + $0x1b8] sm:$0xff]  }
 0x790   :  { %v12313_v26 = vmax.f32 %v14240_v58, 0.0  ;;  %14176 = vmatpush3.bf16.msra.mxu1 %v14533_v36 }
 0x791   :  { %14177 = vmatprep.subr.bf16.mxu1 %v14535_v50  ;;  %v12320_v46 = vpack.c.bf16 %v12312_v22, %v12312_v22  ;;  %v14057_v50 = vld [vmem:[#allocation13] ss:$0 sm:$0xff] }
 0x792   :  { %v12321_v8 = vpack.c.bf16 %v12313_v26, %v12313_v26 }
 0x794   :  { %12917 = vmatprep.mubr.bf16.mxu0 %v12321_v8  ;;  %14178 = vmatpush3.bf16.msra.mxu1 %v14537_v34 }
 0x795   :  { %12918 = vmatmul.mubr.bf16.vlgmr.msra.gmra.mrb[24].mxu0 %v12320_v46  ;;  %14179 = vmatprep.subr.bf16.mxu1 %v14539_v33 }
 0x796   :  { %14198 = vmatpush3.bf16.msra.mxu0 %v14534_v14 }
 0x797   :  { %14199 = vmatprep.subr.bf16.mxu0 %v14536_v11 }
 0x798   :  { %14180 = vmatpush3.bf16.msra.mxu1 %v14541_v0 }
 0x799   :  { %14181 = vmatprep.subr.bf16.mxu1 %v14543_v18 }
 0x79a   :  { %14200 = vmatpush3.bf16.msra.mxu0 %v14538_v52 }
 0x79b   :  { %14201 = vmatprep.subr.bf16.mxu0 %v14540_v29 }
 0x79c   :  { %14182 = vmatpush3.bf16.msra.mxu1 %v14545_v49 }
 0x79d   :  { %14183 = vmatprep.subr.bf16.mxu1 %v14547_v30 }
 0x79e   :  { %14202 = vmatpush3.bf16.msra.mxu0 %v14542_v60 }
 0x79f   :  { %14203 = vmatprep.subr.bf16.mxu0 %v14544_v20 }
 0x7a0   :  { %14184 = vmatpush3.bf16.msra.mxu1 %v14549_v28 }
 0x7a1   :  { %14185 = vmatprep.subr.bf16.mxu1 %v14551_v62 }
 0x7a2   :  { %14204 = vmatpush3.bf16.msra.mxu0 %v14546_v37 }
 0x7a3   :  { %14205 = vmatprep.subr.bf16.mxu0 %v14548_v7 }
 0x7a4   :  { %14186 = vmatpush3.bf16.msra.mxu1 %v14553_v15 }
 0x7a5   :  { %14187 = vmatprep.subr.bf16.mxu1 %v14555_v6 }
 0x7a6   :  { %14206 = vmatpush3.bf16.msra.mxu0 %v14550_v1  ;;  %v12254_v2 = vpop.f32.mrb[4].mxu1 }
 0x7a7   :  { %14207 = vmatprep.subr.bf16.mxu0 %v14552_v16  ;;  %v14241_v61 = vadd.f32 %v12254_v2, %v3354_v4  ;;  %v12256_v19 = vpop.f32.mrb[5].mxu1 }
 0x7a8   :  { %v14242_v23 = vadd.f32 %v12256_v19, %v3358_v57  ;;  %v12258_v59 = vpop.f32.mrb[6].mxu1  ;;  %14188 = vmatpush3.bf16.msra.mxu1 %v14557_v9 }
 0x7a9   :  { %v12314_v3 = vmax.f32 %v14241_v61, 0.0  ;;  %v12259_v53 = vpop.f32.mrb[7].mxu1  ;;  %14189 = vmatprep.subr.bf16.mxu1 %v14559_v12 }
 0x7aa   :  { %14208 = vmatpush3.bf16.msra.mxu0 %v14554_v38  ;;  %v12315_v41 = vmax.f32 %v14242_v23, 0.0 }
 0x7ab   :  { %14209 = vmatprep.subr.bf16.mxu0 %v14556_v27  ;;  %v12322_v51 = vpack.c.bf16 %v12314_v3, %v12314_v3 }
 0x7ac   :  { %v12295_v31 = vpop.f32.mrb[20].mxu0  ;;  %v12323_v21 = vpack.c.bf16 %v12315_v41, %v12315_v41  ;;  %14190 = vmatpush3.bf16.msra.mxu1 %v14561_v5 }
 0x7ad   :  { %v14243_v25 = vadd.f32 %v12295_v31, %v3362_v40  ;;  %v12297_v45 = vpop.f32.mrb[21].mxu0 }
 0x7ae   :  { %v14244_v42 = vadd.f32 %v12297_v45, %v3366_v48  ;;  %v12299_v32 = vpop.f32.mrb[22].mxu0  ;;  %14210 = vmatpush3.bf16.msra.mxu0 %v14558_v63  ;;  %12957 = vmatprep.mubr.bf16.mxu1 %v12323_v21 }
 0x7af   :  { %v12316_v44 = vmax.f32 %v14243_v25, 0.0  ;;  %v12300_v35 = vpop.f32.mrb[23].mxu0  ;;  %14211 = vmatprep.subr.bf16.mxu0 %v14560_v10  ;;  %12958 = vmatmul.mubr.bf16.vlgmr.msra.gmra.mrb[12].mxu1 %v12322_v51 }
 0x7b0   :  { %v12317_v43 = vmax.f32 %v14244_v42, 0.0 }
 0x7b1   :  { %v12324_v13 = vpack.c.bf16 %v12316_v44, %v12316_v44 }
 0x7b2   :  { %v12325_v36 = vpack.c.bf16 %v12317_v43, %v12317_v43  ;;  %14212 = vmatpush3.bf16.msra.mxu0 %v14562_v56 }
 0x7b4   :  { %12997 = vmatprep.mubr.bf16.mxu0 %v12325_v36 }
 0x7b5   :  { %12998 = vmatmul.mubr.bf16.vlgmr.msra.gmra.mrb[28].mxu0 %v12324_v13 }
 0x862   :  { %v14147_v58 = vpop.f32.mrb[8].mxu1 }
 0x863   :  { %v14148_v24 = vpop.f32.mrb[9].mxu1 }
 0x864   :  { %v14149_v22 = vadd.f32 %v14148_v24, %v14147_v58  ;;  %v14150_v55 = vpop.f32.mrb[10].mxu1 }
 0x865   :  { %v14151_v26 = vpop.f32.mrb[11].mxu1 }
 0x866   :  { %v12880_v8 = vadd.f32 %v14149_v22, %v14057_v50 }
 0x868   :  { %v14169_v34 = vpop.f32.mrb[24].mxu0 }
 0x869   :  { %v14170_v14 = vpop.f32.mrb[25].mxu0 }
 0x86a   :  { %v14171_v33 = vadd.f32 %v14170_v14, %v14169_v34  ;;  %v14172_v46 = vpop.f32.mrb[26].mxu0 }
 0x86b   :  { %v14173_v11 = vpop.f32.mrb[27].mxu0 }
 0x86c   :  { %v12920_v0 = vadd.f32 %v14171_v33, %v12880_v8 }
 0x882   :  { %v14191_v52 = vpop.f32.mrb[12].mxu1 }
 0x883   :  { %v14192_v18 = vpop.f32.mrb[13].mxu1 }
 0x884   :  { %v14193_v29 = vadd.f32 %v14192_v18, %v14191_v52  ;;  %v14194_v49 = vpop.f32.mrb[14].mxu1 }
 0x885   :  { %v14195_v60 = vpop.f32.mrb[15].mxu1 }
 0x886   :  { %v12960_v30 = vadd.f32 %v14193_v29, %v12920_v0 }
 0x888   :  { %v14213_v20 = vpop.f32.mrb[28].mxu0 }
 0x889   :  { %v14214_v28 = vpop.f32.mrb[29].mxu0 }
 0x88a   :  { %v14215_v37 = vadd.f32 %v14214_v28, %v14213_v20  ;;  %v14216_v62 = vpop.f32.mrb[30].mxu0 }
 0x88b   :  { %v14217_v7 = vpop.f32.mrb[31].mxu0 }
 0x88c   :  { %v13000_v17 = vadd.f32 %v14215_v37, %v12960_v30 }
 0x88e   :  { %13005 = vst [vmem:[#allocation14] sm:$0xff] %v13000_v17 }
 0x88f   :  { %14730 = shalt.err (!%p14727_p4)
}
 0x890   :  { %s14731_s27 = scalar_lea.hbm %s17286_s7, 128 }
 0x891   :  { %p14732_p5 = scmp.ne.s32.totalorder %s17286_s7, %s14731_s27  ;;  %p14735_p6 = scmp.lt.u32.totalorder %s14731_s27, %s17286_s7 }
 0x893   :  { %p14737_p7 = pnand %p14735_p6, %p14732_p5 }
 0x895   :  { %14740 = shalt.err (!%p14737_p7)
}
 0x896   :  { %13015 = dma.vmem_to_hbm [thread:$0]  %s13013_s14, 128, %s17286_s7, [#allocation4]  }
 0x897   :  { %14749 = dma.done.wait [#allocation4], 128  }
 0x898   :  { %14750 = vsyncadd [#allocation4], 4294967168 }
 0x899   :  { %13019 = vsyncpa [#allocation3], 1 }
 0x89a   :  { %13020 = vsyncpa [#allocation6], 1 }
 0x89b   :  { %13021 = vsyncpa [#allocation9], 1 }
 0x89c   :  { %13022 = vsyncpa [#allocation12], 1 }
 0x89d   :  { %13023 = vsyncpa [#allocation4], 1 }

</bundles_post_ra>
